<compile_context>
chip_gen: v7x
topology: tpu7x:2x2x1
jax: 0.10.0
libtpu: 0.0.40
codegen_flags: <defaults>
</compile_context>

<pallas_src>
import functools

import jax
import jax.numpy as jnp
from jax.experimental import pallas as pl
from jax.experimental.pallas import tpu as pltpu


def _mlp_kernel(x_ref, w0_ref, b0_ref, w1_ref, b1_ref, w2_ref, b2_ref,
                wf_ref, bf_ref, o_ref):
    # In-kernel bf16 cast of the streamed f32 x tile (saves a wrapper-side pass).
    x = x_ref[...].astype(jnp.bfloat16)

    # Layer 0: bf16 MXU matmul, f32 accumulation; bias/ReLU in f32.
    h = jnp.dot(x, w0_ref[...], preferred_element_type=jnp.float32)
    h = jnp.maximum(h + b0_ref[...], 0.0)
    # Layer 1
    h = jnp.dot(h.astype(jnp.bfloat16), w1_ref[...],
                preferred_element_type=jnp.float32)
    h = jnp.maximum(h + b1_ref[...], 0.0)
    # Layer 2
    h = jnp.dot(h.astype(jnp.bfloat16), w2_ref[...],
                preferred_element_type=jnp.float32)
    h = jnp.maximum(h + b2_ref[...], 0.0)

    # Final (hidden -> 1) layer: VPU multiply + cross-lane reduce (avoid a
    # degenerate N=1 MXU matmul), emitted LANE-DENSE as a (1, block_b) row.
    row = jnp.sum(h * wf_ref[...], axis=-1).reshape(1, -1)      # (1, TB) f32
    o_ref[...] = (row + bf_ref[...]).astype(o_ref.dtype)


@functools.partial(jax.jit, static_argnames=("block_b",))
def ann_forward(x, params, *, block_b=128):
    """x: (N, C, H, W) float32 (NCHW, like PyTorch). Returns (N, 1) float32."""
    w0, b0, w1, b1, w2, b2, wf, bf = params
    n = x.shape[0]
    d_in = w0.shape[0]
    hidden = w0.shape[1]

    # Flatten is a free view (same element order as nn.Flatten on NCHW); keep f32.
    x2d = x.reshape(n, -1)
    assert x2d.shape[1] == d_in

    # Clamp block_b for tiny batches (stay a multiple of 8); pad batch to a
    # multiple of block_b (padded rows are computed and discarded).
    block_b = min(block_b, max(8, pl.cdiv(n, 8) * 8))
    assert block_b % 8 == 0, "block_b must be a multiple of 8 (sublane alignment)"
    n_pad = pl.cdiv(n, block_b) * block_b
    if n_pad != n:
        x2d = jnp.pad(x2d, ((0, n_pad - n), (0, 0)))

    # Weights as bf16 (MXU-native input width); biases stay f32 (post-acc add).
    w0b = w0.astype(jnp.bfloat16)
    w1b = w1.astype(jnp.bfloat16)
    w2b = w2.astype(jnp.bfloat16)
    wf_row = wf.reshape(1, hidden).astype(jnp.float32)   # final layer as VPU row
    b0r = b0.reshape(1, hidden).astype(jnp.float32)
    b1r = b1.reshape(1, hidden).astype(jnp.float32)
    b2r = b2.reshape(1, hidden).astype(jnp.float32)
    bfr = bf.reshape(1, 1).astype(jnp.float32)

    grid = (n_pad // block_b,)

    # Grid-invariant (resident) operands: index_map always returns block (0, 0),
    # so Pallas fetches them once and keeps them in VMEM across the whole grid.
    def resident(shape):
        return pl.BlockSpec(shape, lambda i: (0, 0))

    out = pl.pallas_call(
        _mlp_kernel,
        out_shape=jax.ShapeDtypeStruct((1, n_pad), jnp.float32),  # lane-dense rows
        grid_spec=pltpu.PrefetchScalarGridSpec(
            num_scalar_prefetch=0,
            grid=grid,
            in_specs=[
                pl.BlockSpec((block_b, d_in), lambda i: (i, 0)),  # x tile (f32, streamed)
                resident((d_in, hidden)),                         # W0 (bf16)
                resident((1, hidden)),                            # b0 (f32)
                resident((hidden, hidden)),                       # W1 (bf16)
                resident((1, hidden)),                            # b1 (f32)
                resident((hidden, hidden)),                       # W2 (bf16)
                resident((1, hidden)),                            # b2 (f32)
                resident((1, hidden)),                            # Wf row (f32)
                resident((1, 1)),                                 # bf (f32)
            ],
            out_specs=pl.BlockSpec((1, block_b), lambda i: (0, i)),
        ),
        compiler_params=pltpu.CompilerParams(
            dimension_semantics=("parallel",),
            vmem_limit_bytes=48 << 20,   # fits v7x's 64 MiB/TC; plenty on v5e/v6e
        ),
    )(x2d, w0b, b0r, w1b, b1r, w2b, b2r, wf_row, bfr)

    # (1, n_pad) lane-dense row -> (N, 1) column, drop batch padding.
    return out[0, :n].reshape(n, 1)


def init_params(key, input_dim, hidden_dim=32 ** 2, num_layers=3):
    """Deterministic init mimicking nn.Linear default (U[-1/sqrt(fan_in), +1/sqrt(fan_in)]).

    Weights stored as (in_features, out_features) so the kernel does x @ W + b,
    equivalent to PyTorch's x @ W_torch.T + b.
    """
    params = []
    dims_in = [input_dim] + [hidden_dim] * (num_layers - 1)
    for i in range(num_layers):
        key, kw, kb = jax.random.split(key, 3)
        fan_in = dims_in[i]
        bound = 1.0 / jnp.sqrt(fan_in)
        w = jax.random.uniform(kw, (fan_in, hidden_dim), jnp.float32, -bound, bound)
        b = jax.random.uniform(kb, (hidden_dim,), jnp.float32, -bound, bound)
        params += [w, b]
    key, kw, kb = jax.random.split(key, 3)
    bound = 1.0 / jnp.sqrt(hidden_dim)
    wf = jax.random.uniform(kw, (hidden_dim, 1), jnp.float32, -bound, bound)
    bf = jax.random.uniform(kb, (1,), jnp.float32, -bound, bound)
    params += [wf, bf]          # <-- fix: final layer was previously dropped
    return tuple(params)


def reference_forward_bf16(x, params):
    """Plain-JAX reference using the same bf16-in / f32-accumulate path as the kernel."""
    w0, b0, w1, b1, w2, b2, wf, bf = params
    h = x.reshape(x.shape[0], -1).astype(jnp.bfloat16)
    h = jnp.maximum(
        jnp.dot(h, w0.astype(jnp.bfloat16), preferred_element_type=jnp.float32) + b0, 0.0)
    h = jnp.maximum(
        jnp.dot(h.astype(jnp.bfloat16), w1.astype(jnp.bfloat16),
                preferred_element_type=jnp.float32) + b1, 0.0)
    h = jnp.maximum(
        jnp.dot(h.astype(jnp.bfloat16), w2.astype(jnp.bfloat16),
                preferred_element_type=jnp.float32) + b2, 0.0)
    return h @ wf + bf  # final layer in f32, same as kernel


if __name__ == "__main__":
    key = jax.random.PRNGKey(0)
    # Small NCHW demo input: batch=2, channels=4, spatial=16x16 -> input_dim = 1024.
    batch, c, hgt, wid = 2, 4, 16, 16
    input_dim = c * hgt * wid
    hidden_dim = 32 ** 2  # 1024, module default

    key, kx, kp = jax.random.split(key, 3)
    x = jax.random.normal(kx, (batch, c, hgt, wid), jnp.float32)
    params = init_params(kp, input_dim, hidden_dim=hidden_dim, num_layers=3)

    out = ann_forward(x, params, block_b=128)
    jax.block_until_ready(out)

    ref = reference_forward_bf16(x, params)
    assert out.shape == (batch, 1), out.shape
    assert jnp.allclose(out, ref, atol=1e-2, rtol=1e-2), (
        float(jnp.max(jnp.abs(out - ref))))

    print("KERNEL_OK")
</pallas_src>

<mosaic_0001>
module attributes {stable_mosaic.version = 11 : i64} {
  func.func @_mlp_kernel(%arg0: i32, %arg1: memref<8x1024xf32, #tpu.memory_space<vmem>>, %arg2: memref<1024x1024xbf16, #tpu.memory_space<vmem>>, %arg3: memref<1x1024xf32, #tpu.memory_space<vmem>>, %arg4: memref<1024x1024xbf16, #tpu.memory_space<vmem>>, %arg5: memref<1x1024xf32, #tpu.memory_space<vmem>>, %arg6: memref<1024x1024xbf16, #tpu.memory_space<vmem>>, %arg7: memref<1x1024xf32, #tpu.memory_space<vmem>>, %arg8: memref<1x1024xf32, #tpu.memory_space<vmem>>, %arg9: memref<1x1xf32, #tpu.memory_space<vmem>>, %arg10: memref<1x8xf32, #tpu.memory_space<vmem>>) attributes {dimension_semantics = [#tpu.dimension_semantics<parallel>], iteration_bounds = array<i64: 1>, scalar_prefetch = 0 : i64, scratch_operands = 0 : i64, tpu.core_type = #tpu.core_type<tc>, window_params = [{transform_indices = @transform_0, window_bounds = array<i64: 8, 1024>}, {pipeline_mode = #tpu.pipeline_mode<synchronous>, transform_indices = @transform_1, window_bounds = array<i64: 1024, 1024>}, {pipeline_mode = #tpu.pipeline_mode<synchronous>, transform_indices = @transform_2, window_bounds = array<i64: 1, 1024>}, {pipeline_mode = #tpu.pipeline_mode<synchronous>, transform_indices = @transform_3, window_bounds = array<i64: 1024, 1024>}, {pipeline_mode = #tpu.pipeline_mode<synchronous>, transform_indices = @transform_4, window_bounds = array<i64: 1, 1024>}, {pipeline_mode = #tpu.pipeline_mode<synchronous>, transform_indices = @transform_5, window_bounds = array<i64: 1024, 1024>}, {pipeline_mode = #tpu.pipeline_mode<synchronous>, transform_indices = @transform_6, window_bounds = array<i64: 1, 1024>}, {pipeline_mode = #tpu.pipeline_mode<synchronous>, transform_indices = @transform_7, window_bounds = array<i64: 1, 1024>}, {pipeline_mode = #tpu.pipeline_mode<synchronous>, transform_indices = @transform_8, window_bounds = array<i64: 1, 1>}, {transform_indices = @transform_9, window_bounds = array<i64: 1, 8>}]} {
    %c0 = arith.constant 0 : index
    %c0_0 = arith.constant 0 : index
    %0 = vector.load %arg1[%c0, %c0_0] : memref<8x1024xf32, #tpu.memory_space<vmem>>, vector<8x1024xf32>
    %1 = arith.truncf %0 : vector<8x1024xf32> to vector<8x1024xbf16>
    %c0_1 = arith.constant 0 : index
    %c0_2 = arith.constant 0 : index
    %2 = vector.load %arg2[%c0_1, %c0_2] : memref<1024x1024xbf16, #tpu.memory_space<vmem>>, vector<1024x1024xbf16>
    %cst = arith.constant dense<0.000000e+00> : vector<8x1024xf32>
    %3 = tpu.matmul %1, %2, %cst {dimension_numbers = #tpu.dot_dimension_numbers<[1], [0], [0], [1], [0, 0, 1, 1], [], []>} : vector<8x1024xbf16>, vector<1024x1024xbf16>, vector<8x1024xf32> -> vector<8x1024xf32>
    %c0_3 = arith.constant 0 : index
    %c0_4 = arith.constant 0 : index
    %4 = vector.load %arg3[%c0_3, %c0_4] : memref<1x1024xf32, #tpu.memory_space<vmem>>, vector<1x1024xf32>
    %5 = vector.broadcast %4 : vector<1x1024xf32> to vector<8x1024xf32>
    %6 = arith.addf %3, %5 : vector<8x1024xf32>
    %cst_5 = arith.constant 0.000000e+00 : f32
    %7 = vector.broadcast %cst_5 : f32 to vector<8x1024xf32>
    %8 = arith.maximumf %6, %7 : vector<8x1024xf32>
    %9 = arith.truncf %8 : vector<8x1024xf32> to vector<8x1024xbf16>
    %c0_6 = arith.constant 0 : index
    %c0_7 = arith.constant 0 : index
    %10 = vector.load %arg4[%c0_6, %c0_7] : memref<1024x1024xbf16, #tpu.memory_space<vmem>>, vector<1024x1024xbf16>
    %cst_8 = arith.constant dense<0.000000e+00> : vector<8x1024xf32>
    %11 = tpu.matmul %9, %10, %cst_8 {dimension_numbers = #tpu.dot_dimension_numbers<[1], [0], [0], [1], [0, 0, 1, 1], [], []>} : vector<8x1024xbf16>, vector<1024x1024xbf16>, vector<8x1024xf32> -> vector<8x1024xf32>
    %c0_9 = arith.constant 0 : index
    %c0_10 = arith.constant 0 : index
    %12 = vector.load %arg5[%c0_9, %c0_10] : memref<1x1024xf32, #tpu.memory_space<vmem>>, vector<1x1024xf32>
    %13 = vector.broadcast %12 : vector<1x1024xf32> to vector<8x1024xf32>
    %14 = arith.addf %11, %13 : vector<8x1024xf32>
    %cst_11 = arith.constant 0.000000e+00 : f32
    %15 = vector.broadcast %cst_11 : f32 to vector<8x1024xf32>
    %16 = arith.maximumf %14, %15 : vector<8x1024xf32>
    %17 = arith.truncf %16 : vector<8x1024xf32> to vector<8x1024xbf16>
    %c0_12 = arith.constant 0 : index
    %c0_13 = arith.constant 0 : index
    %18 = vector.load %arg6[%c0_12, %c0_13] : memref<1024x1024xbf16, #tpu.memory_space<vmem>>, vector<1024x1024xbf16>
    %cst_14 = arith.constant dense<0.000000e+00> : vector<8x1024xf32>
    %19 = tpu.matmul %17, %18, %cst_14 {dimension_numbers = #tpu.dot_dimension_numbers<[1], [0], [0], [1], [0, 0, 1, 1], [], []>} : vector<8x1024xbf16>, vector<1024x1024xbf16>, vector<8x1024xf32> -> vector<8x1024xf32>
    %c0_15 = arith.constant 0 : index
    %c0_16 = arith.constant 0 : index
    %20 = vector.load %arg7[%c0_15, %c0_16] : memref<1x1024xf32, #tpu.memory_space<vmem>>, vector<1x1024xf32>
    %21 = vector.broadcast %20 : vector<1x1024xf32> to vector<8x1024xf32>
    %22 = arith.addf %19, %21 : vector<8x1024xf32>
    %cst_17 = arith.constant 0.000000e+00 : f32
    %23 = vector.broadcast %cst_17 : f32 to vector<8x1024xf32>
    %24 = arith.maximumf %22, %23 : vector<8x1024xf32>
    %c0_18 = arith.constant 0 : index
    %c0_19 = arith.constant 0 : index
    %25 = vector.load %arg8[%c0_18, %c0_19] : memref<1x1024xf32, #tpu.memory_space<vmem>>, vector<1x1024xf32>
    %26 = vector.broadcast %25 : vector<1x1024xf32> to vector<8x1024xf32>
    %27 = arith.mulf %24, %26 : vector<8x1024xf32>
    %cst_20 = arith.constant dense<0.000000e+00> : vector<8xf32>
    %28 = vector.multi_reduction <add>, %27, %cst_20 [1] : vector<8x1024xf32> to vector<8xf32>
    %29 = vector.shape_cast %28 : vector<8xf32> to vector<1x8xf32>
    %c0_21 = arith.constant 0 : index
    %c0_22 = arith.constant 0 : index
    %30 = vector.load %arg9[%c0_21, %c0_22] : memref<1x1xf32, #tpu.memory_space<vmem>>, vector<1x1xf32>
    %31 = vector.broadcast %30 : vector<1x1xf32> to vector<1x8xf32>
    %32 = arith.addf %29, %31 : vector<1x8xf32>
    %c0_23 = arith.constant 0 : index
    %c0_24 = arith.constant 0 : index
    %33 = vector.load %arg10[%c0_23, %c0_24] : memref<1x8xf32, #tpu.memory_space<vmem>>, vector<1x8xf32>
    tpu.vector_store %arg10[%c0_23, %c0_24], %32 {strides = array<i32>} : memref<1x8xf32, #tpu.memory_space<vmem>>, vector<1x8xf32>,
    return
  }
  func.func @transform_0(%arg0: i32) -> (i32, i32) {
    %c0_i32 = arith.constant 0 : i32
    %c0_i32_0 = arith.constant 0 : i32
    return %arg0, %c0_i32 : i32, i32
  }
  func.func @transform_1(%arg0: i32) -> (i32, i32) {
    %c0_i32 = arith.constant 0 : i32
    %c0_i32_0 = arith.constant 0 : i32
    %c0_i32_1 = arith.constant 0 : i32
    return %c0_i32, %c0_i32_0 : i32, i32
  }
  func.func @transform_2(%arg0: i32) -> (i32, i32) {
    %c0_i32 = arith.constant 0 : i32
    %c0_i32_0 = arith.constant 0 : i32
    %c0_i32_1 = arith.constant 0 : i32
    return %c0_i32, %c0_i32_0 : i32, i32
  }
  func.func @transform_3(%arg0: i32) -> (i32, i32) {
    %c0_i32 = arith.constant 0 : i32
    %c0_i32_0 = arith.constant 0 : i32
    %c0_i32_1 = arith.constant 0 : i32
    return %c0_i32, %c0_i32_0 : i32, i32
  }
  func.func @transform_4(%arg0: i32) -> (i32, i32) {
    %c0_i32 = arith.constant 0 : i32
    %c0_i32_0 = arith.constant 0 : i32
    %c0_i32_1 = arith.constant 0 : i32
    return %c0_i32, %c0_i32_0 : i32, i32
  }
  func.func @transform_5(%arg0: i32) -> (i32, i32) {
    %c0_i32 = arith.constant 0 : i32
    %c0_i32_0 = arith.constant 0 : i32
    %c0_i32_1 = arith.constant 0 : i32
    return %c0_i32, %c0_i32_0 : i32, i32
  }
  func.func @transform_6(%arg0: i32) -> (i32, i32) {
    %c0_i32 = arith.constant 0 : i32
    %c0_i32_0 = arith.constant 0 : i32
    %c0_i32_1 = arith.constant 0 : i32
    return %c0_i32, %c0_i32_0 : i32, i32
  }
  func.func @transform_7(%arg0: i32) -> (i32, i32) {
    %c0_i32 = arith.constant 0 : i32
    %c0_i32_0 = arith.constant 0 : i32
    %c0_i32_1 = arith.constant 0 : i32
    return %c0_i32, %c0_i32_0 : i32, i32
  }
  func.func @transform_8(%arg0: i32) -> (i32, i32) {
    %c0_i32 = arith.constant 0 : i32
    %c0_i32_0 = arith.constant 0 : i32
    %c0_i32_1 = arith.constant 0 : i32
    return %c0_i32, %c0_i32_0 : i32, i32
  }
  func.func @transform_9(%arg0: i32) -> (i32, i32) {
    %c0_i32 = arith.constant 0 : i32
    %c0_i32_0 = arith.constant 0 : i32
    return %c0_i32, %arg0 : i32, i32
  }
}

</mosaic_0001>

<bundles_post_ra>
// kernel: ann_forward.1
= control target key start
LH: loop header
LB: loop body
LE: loop exit
PB: predicated region body
PF: predicated region fallthrough
CT: control target
= control target key end

     0   :  { %vm11478_vm0 = vcmask 57344   ;;  %s18182_s1 = inlined_call_operand.vmem [shape: bf16[1024,1024], index: 1, kind: input, shape index: {}]   ;;  %s18183_s0 = inlined_call_operand.vmem [shape: f32[8,1024], index: 0, kind: input, shape index: {}]   ;;  %s18184_s2 = inlined_call_operand.vmem [shape: f32[1,1024], index: 2, kind: input, shape index: {}]   ;;  %s18185_s3 = inlined_call_operand.vmem [shape: bf16[1024,1024], index: 3, kind: input, shape index: {}]   ;;  %s18186_s4 = inlined_call_operand.vmem [shape: f32[1,1024], index: 4, kind: input, shape index: {}]   ;;  %s18187_s5 = inlined_call_operand.vmem [shape: bf16[1024,1024], index: 5, kind: input, shape index: {}]   ;;  %s18188_s6 = inlined_call_operand.vmem [shape: f32[1,1024], index: 6, kind: input, shape index: {}]   ;;  %s18189_s7 = inlined_call_operand.vmem [shape: f32[1,1024], index: 7, kind: input, shape index: {}]   ;;  %s18190_s8 = inlined_call_operand.<no memory space> [shape: f32[1,1], index: 8, kind: input, shape index: {}]   ;;  %s18191_s9 = inlined_call_operand.vmem [shape: f32[1,8], index: 9, kind: output, shape index: {}]  }
   0x1   :  { %v50_v0 = vld [vmem:[%s18182_s1] sm:$0xff]  ;;  %v51_v2 = vld [vmem:[%s18182_s1 + $0x8] sm:$0xff] }
   0x2   :  { %v54_v1 = vld [vmem:[%s18182_s1 + $0x20] sm:$0xff]  ;;  %v55_v4 = vld [vmem:[%s18182_s1 + $0x28] sm:$0xff] }
   0x3   :  { %v11485_v3 = vcombine.high %v50_v0, %v54_v1  ;;  %v11484_v5 = vcombine.low %v50_v0, %v54_v1  ;;  %v58_v6 = vld [vmem:[%s18182_s1 + $0x40] sm:$0xff]  ;;  %v11487_v8 = vcombine.high %v51_v2, %v55_v4  ;;  %v11486_v9 = vcombine.low %v51_v2, %v55_v4  ;;  %v59_v11 = vld [vmem:[%s18182_s1 + $0x48] sm:$0xff] }
   0x4   :  { %v62_v7 = vld [vmem:[%s18182_s1 + $0x60] sm:$0xff]  ;;  %v63_v12 = vld [vmem:[%s18182_s1 + $0x68] sm:$0xff] }
   0x5   :  { %v11493_v10 = vcombine.high %v58_v6, %v62_v7  ;;  %v66_v13 = vld [vmem:[%s18182_s1 + $0x80] sm:$0xff]  ;;  %3164 = vmatprep.subr.bf16.mxu0 %v11485_v3  ;;  %v11495_v14 = vcombine.high %v59_v11, %v63_v12  ;;  %v67_v16 = vld [vmem:[%s18182_s1 + $0x88] sm:$0xff]  ;;  %3328 = vmatprep.subr.bf16.mxu1 %v11487_v8  ;;  %v11492_v18 = vcombine.low %v58_v6, %v62_v7 }
   0x6   :  { %v70_v15 = vld [vmem:[%s18182_s1 + $0xa0] sm:$0xff]  ;;  %v71_v17 = vld [vmem:[%s18182_s1 + $0xa8] sm:$0xff]  ;;  %3165 = vmatpush1.bf16.msra.mxu0 %v11484_v5  ;;  %3329 = vmatpush1.bf16.msra.mxu1 %v11486_v9  ;;  %v11494_v19 = vcombine.low %v59_v11, %v63_v12 }
   0x7   :  { %3166 = vmatprep.subr.bf16.mxu0 %v11493_v10  ;;  %v11501_v20 = vcombine.high %v66_v13, %v70_v15  ;;  %3330 = vmatprep.subr.bf16.mxu1 %v11495_v14  ;;  %v11503_v21 = vcombine.high %v67_v16, %v71_v17  ;;  %v74_v22 = vld [vmem:[%s18182_s1 + $0xc0] sm:$0xff]  ;;  %v75_v24 = vld [vmem:[%s18182_s1 + $0xc8] sm:$0xff]  ;;  %v11500_v26 = vcombine.low %v66_v13, %v70_v15 }
   0x8   :  { %v78_v23 = vld [vmem:[%s18182_s1 + $0xe0] sm:$0xff]  ;;  %v79_v25 = vld [vmem:[%s18182_s1 + $0xe8] sm:$0xff]  ;;  %v11502_v27 = vcombine.low %v67_v16, %v71_v17 }
   0x9   :  { %v11509_v28 = vcombine.high %v74_v22, %v78_v23  ;;  %v11511_v29 = vcombine.high %v75_v24, %v79_v25  ;;  %v82_v30 = vld [vmem:[%s18182_s1 + $0x100] sm:$0xff]  ;;  %v83_v32 = vld [vmem:[%s18182_s1 + $0x108] sm:$0xff]  ;;  %v11508_v34 = vcombine.low %v74_v22, %v78_v23  ;;  %v11510_v35 = vcombine.low %v75_v24, %v79_v25 }
   0xa   :  { %3167 = vmatpush1.bf16.msra.mxu0 %v11492_v18  ;;  %3331 = vmatpush1.bf16.msra.mxu1 %v11494_v19  ;;  %v86_v31 = vld [vmem:[%s18182_s1 + $0x120] sm:$0xff]  ;;  %v87_v33 = vld [vmem:[%s18182_s1 + $0x128] sm:$0xff] }
   0xb   :  { %3168 = vmatprep.subr.bf16.mxu0 %v11501_v20  ;;  %3332 = vmatprep.subr.bf16.mxu1 %v11503_v21  ;;  %v11517_v36 = vcombine.high %v82_v30, %v86_v31  ;;  %v11519_v37 = vcombine.high %v83_v32, %v87_v33  ;;  %v90_v38 = vld [vmem:[%s18182_s1 + $0x140] sm:$0xff]  ;;  %v91_v40 = vld [vmem:[%s18182_s1 + $0x148] sm:$0xff]  ;;  %v11516_v42 = vcombine.low %v82_v30, %v86_v31 }
   0xc   :  { %v94_v39 = vld [vmem:[%s18182_s1 + $0x160] sm:$0xff]  ;;  %v95_v41 = vld [vmem:[%s18182_s1 + $0x168] sm:$0xff]  ;;  %v11518_v43 = vcombine.low %v83_v32, %v87_v33 }
   0xd   :  { %v11525_v44 = vcombine.high %v90_v38, %v94_v39  ;;  %v11527_v45 = vcombine.high %v91_v40, %v95_v41  ;;  %v98_v46 = vld [vmem:[%s18182_s1 + $0x180] sm:$0xff]  ;;  %v99_v48 = vld [vmem:[%s18182_s1 + $0x188] sm:$0xff]  ;;  %v11524_v50 = vcombine.low %v90_v38, %v94_v39  ;;  %v11526_v51 = vcombine.low %v91_v40, %v95_v41 }
   0xe   :  { %3169 = vmatpush1.bf16.msra.mxu0 %v11500_v26  ;;  %3333 = vmatpush1.bf16.msra.mxu1 %v11502_v27  ;;  %v102_v47 = vld [vmem:[%s18182_s1 + $0x1a0] sm:$0xff]  ;;  %v103_v49 = vld [vmem:[%s18182_s1 + $0x1a8] sm:$0xff] }
   0xf   :  { %3170 = vmatprep.subr.bf16.mxu0 %v11509_v28  ;;  %3334 = vmatprep.subr.bf16.mxu1 %v11511_v29  ;;  %v11533_v52 = vcombine.high %v98_v46, %v102_v47  ;;  %v35_v53 = vld [vmem:[%s18183_s0 + $0x8] sm:$0xff]  ;;  %v11535_v54 = vcombine.high %v99_v48, %v103_v49  ;;  %v106_v55 = vld [vmem:[%s18182_s1 + $0x1c0] sm:$0xff]  ;;  %v11532_v60 = vcombine.low %v98_v46, %v102_v47 }
  0x10   :  { %v110_v56 = vld [vmem:[%s18182_s1 + $0x1e0] sm:$0xff]  ;;  %v13336_v57 = vpack.c.bf16 %v35_v53, %v35_v53  ;;  %v107_v58 = vld [vmem:[%s18182_s1 + $0x1c8] sm:$0xff]  ;;  %v11534_v61 = vcombine.low %v99_v48, %v103_v49 }
  0x11   :  { %v111_v59 = vld [vmem:[%s18182_s1 + $0x1e8] sm:$0xff]  ;;  %v11541_v62 = vcombine.high %v106_v55, %v110_v56  ;;  %v114_v0 = vld [vmem:[%s18182_s1 + $0x200] sm:$0xff]  ;;  %v11540_v4 = vcombine.low %v106_v55, %v110_v56 }
  0x12   :  { %3171 = vmatpush1.bf16.msra.mxu0 %v11508_v34  ;;  %3335 = vmatpush1.bf16.msra.mxu1 %v11510_v35  ;;  %v11543_v63 = vcombine.high %v107_v58, %v111_v59  ;;  %v118_v1 = vld [vmem:[%s18182_s1 + $0x220] sm:$0xff]  ;;  %v115_v2 = vld [vmem:[%s18182_s1 + $0x208] sm:$0xff]  ;;  %v11542_v5 = vcombine.low %v107_v58, %v111_v59 }
  0x13   :  { %3172 = vmatprep.subr.bf16.mxu0 %v11517_v36  ;;  %3336 = vmatprep.subr.bf16.mxu1 %v11519_v37  ;;  %v119_v3 = vld [vmem:[%s18182_s1 + $0x228] sm:$0xff]  ;;  %v11549_v6 = vcombine.high %v114_v0, %v118_v1  ;;  %v122_v8 = vld [vmem:[%s18182_s1 + $0x240] sm:$0xff]  ;;  %v11548_v12 = vcombine.low %v114_v0, %v118_v1 }
  0x14   :  { %3196 = vmatprep.mubr.bf16.mxu0 %v13336_v57  ;;  %3360 = vmatprep.mubr.bf16.mxu1 %v13336_v57  ;;  %v11551_v7 = vcombine.high %v115_v2, %v119_v3  ;;  %v126_v9 = vld [vmem:[%s18182_s1 + $0x260] sm:$0xff]  ;;  %v123_v10 = vld [vmem:[%s18182_s1 + $0x248] sm:$0xff]  ;;  %v11550_v13 = vcombine.low %v115_v2, %v119_v3 }
  0x15   :  { %v127_v11 = vld [vmem:[%s18182_s1 + $0x268] sm:$0xff]  ;;  %v11557_v14 = vcombine.high %v122_v8, %v126_v9  ;;  %v130_v16 = vld [vmem:[%s18182_s1 + $0x280] sm:$0xff]  ;;  %v11556_v20 = vcombine.low %v122_v8, %v126_v9 }
  0x16   :  { %3173 = vmatpush1.bf16.msra.mxu0 %v11516_v42  ;;  %3337 = vmatpush1.bf16.msra.mxu1 %v11518_v43  ;;  %v11559_v15 = vcombine.high %v123_v10, %v127_v11  ;;  %v134_v17 = vld [vmem:[%s18182_s1 + $0x2a0] sm:$0xff]  ;;  %v131_v18 = vld [vmem:[%s18182_s1 + $0x288] sm:$0xff]  ;;  %v11558_v21 = vcombine.low %v123_v10, %v127_v11 }
  0x17   :  { %3174 = vmatprep.subr.bf16.mxu0 %v11525_v44  ;;  %3338 = vmatprep.subr.bf16.mxu1 %v11527_v45  ;;  %v135_v19 = vld [vmem:[%s18182_s1 + $0x2a8] sm:$0xff]  ;;  %v11565_v22 = vcombine.high %v130_v16, %v134_v17  ;;  %v138_v24 = vld [vmem:[%s18182_s1 + $0x2c0] sm:$0xff]  ;;  %v11564_v28 = vcombine.low %v130_v16, %v134_v17 }
  0x18   :  { %v11567_v23 = vcombine.high %v131_v18, %v135_v19  ;;  %v142_v25 = vld [vmem:[%s18182_s1 + $0x2e0] sm:$0xff]  ;;  %v139_v26 = vld [vmem:[%s18182_s1 + $0x2c8] sm:$0xff]  ;;  %v11566_v29 = vcombine.low %v131_v18, %v135_v19 }
  0x19   :  { %v143_v27 = vld [vmem:[%s18182_s1 + $0x2e8] sm:$0xff]  ;;  %v11573_v30 = vcombine.high %v138_v24, %v142_v25  ;;  %v146_v32 = vld [vmem:[%s18182_s1 + $0x300] sm:$0xff]  ;;  %v11572_v36 = vcombine.low %v138_v24, %v142_v25 }
  0x1a   :  { %3175 = vmatpush1.bf16.msra.mxu0 %v11524_v50  ;;  %3339 = vmatpush1.bf16.msra.mxu1 %v11526_v51  ;;  %v11575_v31 = vcombine.high %v139_v26, %v143_v27  ;;  %v150_v33 = vld [vmem:[%s18182_s1 + $0x320] sm:$0xff]  ;;  %v147_v34 = vld [vmem:[%s18182_s1 + $0x308] sm:$0xff]  ;;  %v11574_v37 = vcombine.low %v139_v26, %v143_v27 }
  0x1b   :  { %3176 = vmatprep.subr.bf16.mxu0 %v11533_v52  ;;  %3340 = vmatprep.subr.bf16.mxu1 %v11535_v54  ;;  %v151_v35 = vld [vmem:[%s18182_s1 + $0x328] sm:$0xff]  ;;  %v11581_v38 = vcombine.high %v146_v32, %v150_v33  ;;  %v154_v40 = vld [vmem:[%s18182_s1 + $0x340] sm:$0xff]  ;;  %v11580_v44 = vcombine.low %v146_v32, %v150_v33 }
  0x1c   :  { %v11583_v39 = vcombine.high %v147_v34, %v151_v35  ;;  %v158_v41 = vld [vmem:[%s18182_s1 + $0x360] sm:$0xff]  ;;  %v155_v42 = vld [vmem:[%s18182_s1 + $0x348] sm:$0xff]  ;;  %v11582_v45 = vcombine.low %v147_v34, %v151_v35 }
  0x1d   :  { %v159_v43 = vld [vmem:[%s18182_s1 + $0x368] sm:$0xff]  ;;  %v11589_v46 = vcombine.high %v154_v40, %v158_v41  ;;  %v162_v48 = vld [vmem:[%s18182_s1 + $0x380] sm:$0xff]  ;;  %v11588_v52 = vcombine.low %v154_v40, %v158_v41 }
  0x1e   :  { %3177 = vmatpush1.bf16.msra.mxu0 %v11532_v60  ;;  %3341 = vmatpush1.bf16.msra.mxu1 %v11534_v61  ;;  %v11591_v47 = vcombine.high %v155_v42, %v159_v43  ;;  %v166_v49 = vld [vmem:[%s18182_s1 + $0x3a0] sm:$0xff]  ;;  %v163_v50 = vld [vmem:[%s18182_s1 + $0x388] sm:$0xff]  ;;  %v11590_v53 = vcombine.low %v155_v42, %v159_v43 }
  0x1f   :  { %3178 = vmatprep.subr.bf16.mxu0 %v11541_v62  ;;  %3342 = vmatprep.subr.bf16.mxu1 %v11543_v63  ;;  %v167_v51 = vld [vmem:[%s18182_s1 + $0x3a8] sm:$0xff]  ;;  %v11597_v54 = vcombine.high %v162_v48, %v166_v49  ;;  %v170_v56 = vld [vmem:[%s18182_s1 + $0x3c0] sm:$0xff]  ;;  %v11596_v61 = vcombine.low %v162_v48, %v166_v49 }
  0x20   :  { %v11599_v55 = vcombine.high %v163_v50, %v167_v51  ;;  %v174_v58 = vld [vmem:[%s18182_s1 + $0x3e0] sm:$0xff]  ;;  %v171_v59 = vld [vmem:[%s18182_s1 + $0x3c8] sm:$0xff]  ;;  %v11598_v62 = vcombine.low %v163_v50, %v167_v51 }
  0x21   :  { %v175_v60 = vld [vmem:[%s18182_s1 + $0x3e8] sm:$0xff]  ;;  %v11605_v63 = vcombine.high %v170_v56, %v174_v58  ;;  %v178_v1 = vld [vmem:[%s18182_s1 + $0x400] sm:$0xff] }
  0x22   :  { %3179 = vmatpush1.bf16.msra.mxu0 %v11540_v4  ;;  %3343 = vmatpush1.bf16.msra.mxu1 %v11542_v5  ;;  %v11607_v0 = vcombine.high %v171_v59, %v175_v60  ;;  %v182_v2 = vld [vmem:[%s18182_s1 + $0x420] sm:$0xff]  ;;  %v179_v3 = vld [vmem:[%s18182_s1 + $0x408] sm:$0xff]  ;;  %v11604_v5 = vcombine.low %v170_v56, %v174_v58 }
  0x23   :  { %3180 = vmatprep.subr.bf16.mxu0 %v11549_v6  ;;  %3344 = vmatprep.subr.bf16.mxu1 %v11551_v7  ;;  %v183_v4 = vld [vmem:[%s18182_s1 + $0x428] sm:$0xff]  ;;  %v34_v6 = vld [vmem:[%s18183_s0] sm:$0xff]  ;;  %v11606_v7 = vcombine.low %v171_v59, %v175_v60  ;;  %v11613_v8 = vcombine.high %v178_v1, %v182_v2  ;;  %v11612_v16 = vcombine.low %v178_v1, %v182_v2 }
  0x24   :  { %v11615_v9 = vcombine.high %v179_v3, %v183_v4  ;;  %v186_v10 = vld [vmem:[%s18182_s1 + $0x440] sm:$0xff]  ;;  %v11614_v17 = vcombine.low %v179_v3, %v183_v4  ;;  %v199_v24 = vld [vmem:[%s18182_s1 + $0x4a8] sm:$0xff] }
  0x25   :  { %v190_v11 = vld [vmem:[%s18182_s1 + $0x460] sm:$0xff]  ;;  %v207_v32 = vld [vmem:[%s18182_s1 + $0x4e8] sm:$0xff] }
  0x26   :  { %3181 = vmatpush1.bf16.msra.mxu0 %v11548_v12  ;;  %3345 = vmatpush1.bf16.msra.mxu1 %v11550_v13  ;;  %v13463_v12 = vpack.c.bf16 %v34_v6, %v34_v6  ;;  %v187_v13 = vld [vmem:[%s18182_s1 + $0x448] sm:$0xff]  ;;  %v11621_v18 = vcombine.high %v186_v10, %v190_v11  ;;  %v11620_v25 = vcombine.low %v186_v10, %v190_v11  ;;  %v242_v6 = vld [vmem:[%s18182_s1 + $0x600] sm:$0xff] }
  0x27   :  { %3182 = vmatprep.subr.bf16.mxu0 %v11557_v14  ;;  %3346 = vmatprep.subr.bf16.mxu1 %v11559_v15  ;;  %v191_v14 = vld [vmem:[%s18182_s1 + $0x468] sm:$0xff]  ;;  %v37_v15 = vld [vmem:[%s18183_s0 + $0x18] sm:$0xff] }
  0x28   :  { %v11623_v19 = vcombine.high %v187_v13, %v191_v14  ;;  %v11622_v26 = vcombine.low %v187_v13, %v191_v14  ;;  %v215_v40 = vld [vmem:[%s18182_s1 + $0x528] sm:$0xff] }
  0x29   :  { %v223_v48 = vld [vmem:[%s18182_s1 + $0x568] sm:$0xff] }
  0x2a   :  { %3183 = vmatpush1.bf16.msra.mxu0 %v11556_v20  ;;  %3347 = vmatpush1.bf16.msra.mxu1 %v11558_v21  ;;  %v194_v20 = vld [vmem:[%s18182_s1 + $0x480] sm:$0xff]  ;;  %v231_v56 = vld [vmem:[%s18182_s1 + $0x5a8] sm:$0xff] }
  0x2b   :  { %3184 = vmatprep.subr.bf16.mxu0 %v11565_v22  ;;  %3348 = vmatprep.subr.bf16.mxu1 %v11567_v23  ;;  %v198_v21 = vld [vmem:[%s18182_s1 + $0x4a0] sm:$0xff]  ;;  %v13480_v22 = vpack.c.bf16 %v37_v15, %v37_v15  ;;  %v195_v23 = vld [vmem:[%s18182_s1 + $0x488] sm:$0xff] }
  0x2c   :  { %v11629_v27 = vcombine.high %v194_v20, %v198_v21  ;;  %v11628_v33 = vcombine.low %v194_v20, %v198_v21  ;;  %v11630_v34 = vcombine.low %v195_v23, %v199_v24  ;;  %v239_v1 = vld [vmem:[%s18182_s1 + $0x5e8] sm:$0xff]  ;;  %v250_v15 = vld [vmem:[%s18182_s1 + $0x640] sm:$0xff] }
  0x2e   :  { %3185 = vmatpush1.bf16.msra.mxu0 %v11564_v28  ;;  %3349 = vmatpush1.bf16.msra.mxu1 %v11566_v29  ;;  %v11631_v28 = vcombine.high %v195_v23, %v199_v24  ;;  %v202_v29 = vld [vmem:[%s18182_s1 + $0x4c0] sm:$0xff] }
  0x2f   :  { %3186 = vmatprep.subr.bf16.mxu0 %v11573_v30  ;;  %3350 = vmatprep.subr.bf16.mxu1 %v11575_v31  ;;  %v206_v30 = vld [vmem:[%s18182_s1 + $0x4e0] sm:$0xff]  ;;  %v203_v31 = vld [vmem:[%s18182_s1 + $0x4c8] sm:$0xff] }
  0x30   :  { %v11637_v35 = vcombine.high %v202_v29, %v206_v30  ;;  %v11636_v41 = vcombine.low %v202_v29, %v206_v30  ;;  %v11638_v42 = vcombine.low %v203_v31, %v207_v32  ;;  %v258_v24 = vld [vmem:[%s18182_s1 + $0x680] sm:$0xff] }
  0x32   :  { %3187 = vmatpush1.bf16.msra.mxu0 %v11572_v36  ;;  %3351 = vmatpush1.bf16.msra.mxu1 %v11574_v37  ;;  %v11639_v36 = vcombine.high %v203_v31, %v207_v32  ;;  %v210_v37 = vld [vmem:[%s18182_s1 + $0x500] sm:$0xff] }
  0x33   :  { %3188 = vmatprep.subr.bf16.mxu0 %v11581_v38  ;;  %3352 = vmatprep.subr.bf16.mxu1 %v11583_v39  ;;  %v214_v38 = vld [vmem:[%s18182_s1 + $0x520] sm:$0xff]  ;;  %v211_v39 = vld [vmem:[%s18182_s1 + $0x508] sm:$0xff] }
  0x34   :  { %v11645_v43 = vcombine.high %v210_v37, %v214_v38  ;;  %v11644_v49 = vcombine.low %v210_v37, %v214_v38  ;;  %v11646_v50 = vcombine.low %v211_v39, %v215_v40  ;;  %v266_v32 = vld [vmem:[%s18182_s1 + $0x6c0] sm:$0xff] }
  0x36   :  { %3189 = vmatpush1.bf16.msra.mxu0 %v11580_v44  ;;  %3353 = vmatpush1.bf16.msra.mxu1 %v11582_v45  ;;  %v11647_v44 = vcombine.high %v211_v39, %v215_v40  ;;  %v218_v45 = vld [vmem:[%s18182_s1 + $0x540] sm:$0xff] }
  0x37   :  { %3190 = vmatprep.subr.bf16.mxu0 %v11589_v46  ;;  %3354 = vmatprep.subr.bf16.mxu1 %v11591_v47  ;;  %v222_v46 = vld [vmem:[%s18182_s1 + $0x560] sm:$0xff]  ;;  %v219_v47 = vld [vmem:[%s18182_s1 + $0x548] sm:$0xff] }
  0x38   :  { %v11653_v51 = vcombine.high %v218_v45, %v222_v46  ;;  %v11652_v58 = vcombine.low %v218_v45, %v222_v46  ;;  %v11654_v59 = vcombine.low %v219_v47, %v223_v48  ;;  %v274_v40 = vld [vmem:[%s18182_s1 + $0x700] sm:$0xff] }
  0x3a   :  { %3191 = vmatpush1.bf16.msra.mxu0 %v11588_v52  ;;  %3355 = vmatpush1.bf16.msra.mxu1 %v11590_v53  ;;  %v11655_v52 = vcombine.high %v219_v47, %v223_v48  ;;  %v226_v53 = vld [vmem:[%s18182_s1 + $0x580] sm:$0xff] }
  0x3b   :  { %3192 = vmatprep.subr.bf16.mxu0 %v11597_v54  ;;  %3356 = vmatprep.subr.bf16.mxu1 %v11599_v55  ;;  %v230_v54 = vld [vmem:[%s18182_s1 + $0x5a0] sm:$0xff]  ;;  %v227_v55 = vld [vmem:[%s18182_s1 + $0x588] sm:$0xff] }
  0x3c   :  { %v11661_v60 = vcombine.high %v226_v53, %v230_v54  ;;  %v11660_v2 = vcombine.low %v226_v53, %v230_v54  ;;  %v11662_v3 = vcombine.low %v227_v55, %v231_v56  ;;  %v282_v48 = vld [vmem:[%s18182_s1 + $0x740] sm:$0xff] }
  0x3e   :  { %3193 = vmatpush1.bf16.msra.mxu0 %v11596_v61  ;;  %3357 = vmatpush1.bf16.msra.mxu1 %v11598_v62  ;;  %v11663_v61 = vcombine.high %v227_v55, %v231_v56  ;;  %v234_v62 = vld [vmem:[%s18182_s1 + $0x5c0] sm:$0xff] }
  0x3f   :  { %3194 = vmatprep.subr.bf16.mxu0 %v11605_v63  ;;  %3358 = vmatprep.subr.bf16.mxu1 %v11607_v0  ;;  %v238_v63 = vld [vmem:[%s18182_s1 + $0x5e0] sm:$0xff]  ;;  %v235_v0 = vld [vmem:[%s18182_s1 + $0x5c8] sm:$0xff] }
  0x40   :  { %v11669_v4 = vcombine.high %v234_v62, %v238_v63  ;;  %v11668_v10 = vcombine.low %v234_v62, %v238_v63  ;;  %v11670_v11 = vcombine.low %v235_v0, %v239_v1  ;;  %v290_v56 = vld [vmem:[%s18182_s1 + $0x780] sm:$0xff] }
  0x42   :  { %3195 = vmatpush1.bf16.msra.mxu0 %v11604_v5  ;;  %3359 = vmatpush1.bf16.msra.mxu1 %v11606_v7  ;;  %v11671_v5 = vcombine.high %v235_v0, %v239_v1  ;;  %v246_v7 = vld [vmem:[%s18182_s1 + $0x620] sm:$0xff] }
  0x43   :  { %3205 = vmatprep.subr.bf16.mxu0 %v11613_v8  ;;  %3369 = vmatprep.subr.bf16.mxu1 %v11615_v9  ;;  %v243_v8 = vld [vmem:[%s18182_s1 + $0x608] sm:$0xff]  ;;  %v11677_v13 = vcombine.high %v242_v6, %v246_v7  ;;  %v298_v1 = vld [vmem:[%s18182_s1 + $0x7c0] sm:$0xff] }
  0x44   :  { %v247_v9 = vld [vmem:[%s18182_s1 + $0x628] sm:$0xff] }
  0x45   :  { %3197 = vmatmul.mubr.bf16.vlgmr.msra.gmra.mrb[0].mxu0 %v13463_v12  ;;  %3361 = vmatmul.mubr.bf16.vlgmr.msra.gmra.mrb[0].mxu1 %v13463_v12  ;;  %v11679_v14 = vcombine.high %v243_v8, %v247_v9  ;;  %v11678_v20 = vcombine.low %v243_v8, %v247_v9  ;;  %v306_v9 = vld [vmem:[%s18182_s1 + $0x800] sm:$0xff] }
  0x46   :  { %3206 = vmatpush1.bf16.msra.mxu0 %v11612_v16  ;;  %3370 = vmatpush1.bf16.msra.mxu1 %v11614_v17  ;;  %v254_v16 = vld [vmem:[%s18182_s1 + $0x660] sm:$0xff]  ;;  %v251_v17 = vld [vmem:[%s18182_s1 + $0x648] sm:$0xff] }
  0x47   :  { %3207 = vmatprep.subr.bf16.mxu0 %v11621_v18  ;;  %3371 = vmatprep.subr.bf16.mxu1 %v11623_v19  ;;  %v255_v18 = vld [vmem:[%s18182_s1 + $0x668] sm:$0xff]  ;;  %v11676_v19 = vcombine.low %v242_v6, %v246_v7  ;;  %v11685_v21 = vcombine.high %v250_v15, %v254_v16 }
  0x48   :  { %3237 = vmatprep.mubr.bf16.mxu0 %v13480_v22  ;;  %3401 = vmatprep.mubr.bf16.mxu1 %v13480_v22  ;;  %v11687_v23 = vcombine.high %v251_v17, %v255_v18  ;;  %v11686_v29 = vcombine.low %v251_v17, %v255_v18 }
  0x4a   :  { %3208 = vmatpush1.bf16.msra.mxu0 %v11620_v25  ;;  %3372 = vmatpush1.bf16.msra.mxu1 %v11622_v26  ;;  %v262_v25 = vld [vmem:[%s18182_s1 + $0x6a0] sm:$0xff]  ;;  %v259_v26 = vld [vmem:[%s18182_s1 + $0x688] sm:$0xff] }
  0x4b   :  { %3209 = vmatprep.subr.bf16.mxu0 %v11629_v27  ;;  %3373 = vmatprep.subr.bf16.mxu1 %v11631_v28  ;;  %v263_v27 = vld [vmem:[%s18182_s1 + $0x6a8] sm:$0xff]  ;;  %v11684_v28 = vcombine.low %v250_v15, %v254_v16  ;;  %v11693_v30 = vcombine.high %v258_v24, %v262_v25  ;;  %v36_v15 = vld [vmem:[%s18183_s0 + $0x10] sm:$0xff] }
  0x4c   :  { %v11695_v31 = vcombine.high %v259_v26, %v263_v27  ;;  %v11694_v37 = vcombine.low %v259_v26, %v263_v27 }
  0x4e   :  { %3210 = vmatpush1.bf16.msra.mxu0 %v11628_v33  ;;  %3374 = vmatpush1.bf16.msra.mxu1 %v11630_v34  ;;  %v270_v33 = vld [vmem:[%s18182_s1 + $0x6e0] sm:$0xff]  ;;  %v267_v34 = vld [vmem:[%s18182_s1 + $0x6c8] sm:$0xff] }
  0x4f   :  { %3211 = vmatprep.subr.bf16.mxu0 %v11637_v35  ;;  %3375 = vmatprep.subr.bf16.mxu1 %v11639_v36  ;;  %v271_v35 = vld [vmem:[%s18182_s1 + $0x6e8] sm:$0xff]  ;;  %v11692_v36 = vcombine.low %v258_v24, %v262_v25  ;;  %v11701_v38 = vcombine.high %v266_v32, %v270_v33 }
  0x50   :  { %v11703_v39 = vcombine.high %v267_v34, %v271_v35  ;;  %v11702_v45 = vcombine.low %v267_v34, %v271_v35  ;;  %v319_v24 = vld [vmem:[%s18182_s1 + $0x868] sm:$0xff] }
  0x51   :  { %v39_v25 = vld [vmem:[%s18183_s0 + $0x28] sm:$0xff] }
  0x52   :  { %3212 = vmatpush1.bf16.msra.mxu0 %v11636_v41  ;;  %3376 = vmatpush1.bf16.msra.mxu1 %v11638_v42  ;;  %v278_v41 = vld [vmem:[%s18182_s1 + $0x720] sm:$0xff]  ;;  %v275_v42 = vld [vmem:[%s18182_s1 + $0x708] sm:$0xff] }
  0x53   :  { %3213 = vmatprep.subr.bf16.mxu0 %v11645_v43  ;;  %3377 = vmatprep.subr.bf16.mxu1 %v11647_v44  ;;  %v279_v43 = vld [vmem:[%s18182_s1 + $0x728] sm:$0xff]  ;;  %v11700_v44 = vcombine.low %v266_v32, %v270_v33  ;;  %v11709_v46 = vcombine.high %v274_v40, %v278_v41  ;;  %v13686_v32 = vpack.c.bf16 %v39_v25, %v39_v25 }
  0x54   :  { %v11711_v47 = vcombine.high %v275_v42, %v279_v43  ;;  %v11710_v53 = vcombine.low %v275_v42, %v279_v43  ;;  %v323_v33 = vld [vmem:[%s18182_s1 + $0x888] sm:$0xff] }
  0x55   :  { %v327_v34 = vld [vmem:[%s18182_s1 + $0x8a8] sm:$0xff] }
  0x56   :  { %3214 = vmatpush1.bf16.msra.mxu0 %v11644_v49  ;;  %3378 = vmatpush1.bf16.msra.mxu1 %v11646_v50  ;;  %v286_v49 = vld [vmem:[%s18182_s1 + $0x760] sm:$0xff]  ;;  %v283_v50 = vld [vmem:[%s18182_s1 + $0x748] sm:$0xff] }
  0x57   :  { %3215 = vmatprep.subr.bf16.mxu0 %v11653_v51  ;;  %3379 = vmatprep.subr.bf16.mxu1 %v11655_v52  ;;  %v287_v51 = vld [vmem:[%s18182_s1 + $0x768] sm:$0xff]  ;;  %v11708_v52 = vcombine.low %v274_v40, %v278_v41  ;;  %v11717_v54 = vcombine.high %v282_v48, %v286_v49  ;;  %v334_v40 = vld [vmem:[%s18182_s1 + $0x8e0] sm:$0xff] }
  0x58   :  { %v11719_v55 = vcombine.high %v283_v50, %v287_v51  ;;  %v11718_v62 = vcombine.low %v283_v50, %v287_v51  ;;  %v331_v41 = vld [vmem:[%s18182_s1 + $0x8c8] sm:$0xff] }
  0x59   :  { %v335_v42 = vld [vmem:[%s18182_s1 + $0x8e8] sm:$0xff] }
  0x5a   :  { %3216 = vmatpush1.bf16.msra.mxu0 %v11652_v58  ;;  %3380 = vmatpush1.bf16.msra.mxu1 %v11654_v59  ;;  %v294_v58 = vld [vmem:[%s18182_s1 + $0x7a0] sm:$0xff]  ;;  %v291_v59 = vld [vmem:[%s18182_s1 + $0x788] sm:$0xff] }
  0x5b   :  { %3217 = vmatprep.subr.bf16.mxu0 %v11661_v60  ;;  %3381 = vmatprep.subr.bf16.mxu1 %v11663_v61  ;;  %v295_v60 = vld [vmem:[%s18182_s1 + $0x7a8] sm:$0xff]  ;;  %v11716_v61 = vcombine.low %v282_v48, %v286_v49  ;;  %v11725_v63 = vcombine.high %v290_v56, %v294_v58  ;;  %v342_v48 = vld [vmem:[%s18182_s1 + $0x920] sm:$0xff] }
  0x5c   :  { %v11727_v0 = vcombine.high %v291_v59, %v295_v60  ;;  %v11726_v6 = vcombine.low %v291_v59, %v295_v60  ;;  %v339_v49 = vld [vmem:[%s18182_s1 + $0x908] sm:$0xff] }
  0x5d   :  { %v343_v50 = vld [vmem:[%s18182_s1 + $0x928] sm:$0xff] }
  0x5e   :  { %3218 = vmatpush1.bf16.msra.mxu0 %v11660_v2  ;;  %3382 = vmatpush1.bf16.msra.mxu1 %v11662_v3  ;;  %v302_v2 = vld [vmem:[%s18182_s1 + $0x7e0] sm:$0xff]  ;;  %v299_v3 = vld [vmem:[%s18182_s1 + $0x7c8] sm:$0xff] }
  0x5f   :  { %3219 = vmatprep.subr.bf16.mxu0 %v11669_v4  ;;  %3383 = vmatprep.subr.bf16.mxu1 %v11671_v5  ;;  %v303_v4 = vld [vmem:[%s18182_s1 + $0x7e8] sm:$0xff]  ;;  %v11724_v5 = vcombine.low %v290_v56, %v294_v58  ;;  %v11733_v7 = vcombine.high %v298_v1, %v302_v2  ;;  %v350_v56 = vld [vmem:[%s18182_s1 + $0x960] sm:$0xff] }
  0x60   :  { %v11735_v8 = vcombine.high %v299_v3, %v303_v4  ;;  %v11734_v16 = vcombine.low %v299_v3, %v303_v4  ;;  %v347_v58 = vld [vmem:[%s18182_s1 + $0x948] sm:$0xff] }
  0x61   :  { %v351_v59 = vld [vmem:[%s18182_s1 + $0x968] sm:$0xff] }
  0x62   :  { %3220 = vmatpush1.bf16.msra.mxu0 %v11668_v10  ;;  %3384 = vmatpush1.bf16.msra.mxu1 %v11670_v11  ;;  %v310_v10 = vld [vmem:[%s18182_s1 + $0x820] sm:$0xff]  ;;  %v307_v11 = vld [vmem:[%s18182_s1 + $0x808] sm:$0xff] }
  0x63   :  { %3221 = vmatprep.subr.bf16.mxu0 %v11677_v13  ;;  %3385 = vmatprep.subr.bf16.mxu1 %v11679_v14  ;;  %v311_v13 = vld [vmem:[%s18182_s1 + $0x828] sm:$0xff]  ;;  %v11732_v14 = vcombine.low %v298_v1, %v302_v2  ;;  %v11741_v17 = vcombine.high %v306_v9, %v310_v10  ;;  %v11740_v26 = vcombine.low %v306_v9, %v310_v10  ;;  %v358_v1 = vld [vmem:[%s18182_s1 + $0x9a0] sm:$0xff] }
  0x64   :  { %v11743_v18 = vcombine.high %v307_v11, %v311_v13  ;;  %v11742_v27 = vcombine.low %v307_v11, %v311_v13  ;;  %v355_v2 = vld [vmem:[%s18182_s1 + $0x988] sm:$0xff]  ;;  %v366_v9 = vld [vmem:[%s18182_s1 + $0x9e0] sm:$0xff] }
  0x65   :  { %v359_v3 = vld [vmem:[%s18182_s1 + $0x9a8] sm:$0xff] }
  0x66   :  { %3222 = vmatpush1.bf16.msra.mxu0 %v11676_v19  ;;  %3386 = vmatpush1.bf16.msra.mxu1 %v11678_v20  ;;  %v314_v19 = vld [vmem:[%s18182_s1 + $0x840] sm:$0xff]  ;;  %v363_v10 = vld [vmem:[%s18182_s1 + $0x9c8] sm:$0xff] }
  0x67   :  { %3223 = vmatprep.subr.bf16.mxu0 %v11685_v21  ;;  %3387 = vmatprep.subr.bf16.mxu1 %v11687_v23  ;;  %v318_v20 = vld [vmem:[%s18182_s1 + $0x860] sm:$0xff]  ;;  %v13669_v21 = vpack.c.bf16 %v36_v15, %v36_v15  ;;  %v315_v23 = vld [vmem:[%s18182_s1 + $0x848] sm:$0xff] }
  0x68   :  { %v11748_v35 = vcombine.low %v314_v19, %v318_v20  ;;  %v367_v11 = vld [vmem:[%s18182_s1 + $0x9e8] sm:$0xff] }
  0x6a   :  { %3224 = vmatpush1.bf16.msra.mxu0 %v11684_v28  ;;  %3388 = vmatpush1.bf16.msra.mxu1 %v11686_v29  ;;  %v11749_v28 = vcombine.high %v314_v19, %v318_v20  ;;  %v11751_v29 = vcombine.high %v315_v23, %v319_v24  ;;  %v371_v19 = vld [vmem:[%s18182_s1 + $0xa08] sm:$0xff] }
  0x6b   :  { %3225 = vmatprep.subr.bf16.mxu0 %v11693_v30  ;;  %3389 = vmatprep.subr.bf16.mxu1 %v11695_v31  ;;  %v322_v30 = vld [vmem:[%s18182_s1 + $0x880] sm:$0xff]  ;;  %v375_v20 = vld [vmem:[%s18182_s1 + $0xa28] sm:$0xff] }
  0x6c   :  { %v326_v31 = vld [vmem:[%s18182_s1 + $0x8a0] sm:$0xff] }
  0x6d   :  { %v11756_v43 = vcombine.low %v322_v30, %v326_v31 }
  0x6e   :  { %3226 = vmatpush1.bf16.msra.mxu0 %v11692_v36  ;;  %3390 = vmatpush1.bf16.msra.mxu1 %v11694_v37  ;;  %v11750_v36 = vcombine.low %v315_v23, %v319_v24  ;;  %v11757_v37 = vcombine.high %v322_v30, %v326_v31  ;;  %v11798_v24 = vcombine.low %v363_v10, %v367_v11  ;;  %v383_v30 = vld [vmem:[%s18182_s1 + $0xa68] sm:$0xff] }
  0x6f   :  { %3227 = vmatprep.subr.bf16.mxu0 %v11701_v38  ;;  %3391 = vmatprep.subr.bf16.mxu1 %v11703_v39  ;;  %v11759_v38 = vcombine.high %v323_v33, %v327_v34  ;;  %v330_v39 = vld [vmem:[%s18182_s1 + $0x8c0] sm:$0xff] }
  0x70   :  { %v11764_v51 = vcombine.low %v330_v39, %v334_v40 }
  0x72   :  { %3228 = vmatpush1.bf16.msra.mxu0 %v11700_v44  ;;  %3392 = vmatpush1.bf16.msra.mxu1 %v11702_v45  ;;  %v11758_v44 = vcombine.low %v323_v33, %v327_v34  ;;  %v11765_v45 = vcombine.high %v330_v39, %v334_v40  ;;  %v11806_v33 = vcombine.low %v371_v19, %v375_v20  ;;  %v391_v39 = vld [vmem:[%s18182_s1 + $0xaa8] sm:$0xff] }
  0x73   :  { %3229 = vmatprep.subr.bf16.mxu0 %v11709_v46  ;;  %3393 = vmatprep.subr.bf16.mxu1 %v11711_v47  ;;  %v11767_v46 = vcombine.high %v331_v41, %v335_v42  ;;  %v338_v47 = vld [vmem:[%s18182_s1 + $0x900] sm:$0xff] }
  0x74   :  { %v11772_v60 = vcombine.low %v338_v47, %v342_v48 }
  0x76   :  { %3230 = vmatpush1.bf16.msra.mxu0 %v11708_v52  ;;  %3394 = vmatpush1.bf16.msra.mxu1 %v11710_v53  ;;  %v11766_v52 = vcombine.low %v331_v41, %v335_v42  ;;  %v11773_v53 = vcombine.high %v338_v47, %v342_v48  ;;  %v399_v47 = vld [vmem:[%s18182_s1 + $0xae8] sm:$0xff] }
  0x77   :  { %3231 = vmatprep.subr.bf16.mxu0 %v11717_v54  ;;  %3395 = vmatprep.subr.bf16.mxu1 %v11719_v55  ;;  %v11775_v54 = vcombine.high %v339_v49, %v343_v50  ;;  %v346_v55 = vld [vmem:[%s18182_s1 + $0x940] sm:$0xff] }
  0x78   :  { %v11780_v4 = vcombine.low %v346_v55, %v350_v56 }
  0x7a   :  { %3232 = vmatpush1.bf16.msra.mxu0 %v11716_v61  ;;  %3396 = vmatpush1.bf16.msra.mxu1 %v11718_v62  ;;  %v11774_v61 = vcombine.low %v339_v49, %v343_v50  ;;  %v11781_v62 = vcombine.high %v346_v55, %v350_v56  ;;  %v407_v55 = vld [vmem:[%s18182_s1 + $0xb28] sm:$0xff] }
  0x7b   :  { %3233 = vmatprep.subr.bf16.mxu0 %v11725_v63  ;;  %3397 = vmatprep.subr.bf16.mxu1 %v11727_v0  ;;  %v11783_v63 = vcombine.high %v347_v58, %v351_v59  ;;  %v354_v0 = vld [vmem:[%s18182_s1 + $0x980] sm:$0xff] }
  0x7c   :  { %v11788_v13 = vcombine.low %v354_v0, %v358_v1 }
  0x7e   :  { %3234 = vmatpush1.bf16.msra.mxu0 %v11724_v5  ;;  %3398 = vmatpush1.bf16.msra.mxu1 %v11726_v6  ;;  %v11782_v5 = vcombine.low %v347_v58, %v351_v59  ;;  %v11789_v6 = vcombine.high %v354_v0, %v358_v1  ;;  %v415_v0 = vld [vmem:[%s18182_s1 + $0xb68] sm:$0xff] }
  0x7f   :  { %3235 = vmatprep.subr.bf16.mxu0 %v11733_v7  ;;  %3399 = vmatprep.subr.bf16.mxu1 %v11735_v8  ;;  %v11791_v7 = vcombine.high %v355_v2, %v359_v3  ;;  %v362_v8 = vld [vmem:[%s18182_s1 + $0x9c0] sm:$0xff] }
  0x80   :  { %v11797_v15 = vcombine.high %v362_v8, %v366_v9  ;;  %v11796_v23 = vcombine.low %v362_v8, %v366_v9  ;;  %v423_v8 = vld [vmem:[%s18182_s1 + $0xba8] sm:$0xff] }
  0x82   :  { %3236 = vmatpush1.bf16.msra.mxu0 %v11732_v14  ;;  %3400 = vmatpush1.bf16.msra.mxu1 %v11734_v16  ;;  %v11790_v14 = vcombine.low %v355_v2, %v359_v3  ;;  %v11799_v16 = vcombine.high %v363_v10, %v367_v11 }
  0x83   :  { %3246 = vmatprep.subr.bf16.mxu0 %v11741_v17  ;;  %3410 = vmatprep.subr.bf16.mxu1 %v11743_v18  ;;  %v370_v17 = vld [vmem:[%s18182_s1 + $0xa00] sm:$0xff] }
  0x84   :  { %v374_v18 = vld [vmem:[%s18182_s1 + $0xa20] sm:$0xff] }
  0x85   :  { %3238 = vmatmul.mubr.bf16.vlgmr.msra.gmra.mrb[0].mxu0 %v13669_v21  ;;  %3402 = vmatmul.mubr.bf16.vlgmr.msra.gmra.mrb[0].mxu1 %v13669_v21  ;;  %v11805_v25 = vcombine.high %v370_v17, %v374_v18  ;;  %v11804_v31 = vcombine.low %v370_v17, %v374_v18  ;;  %v431_v17 = vld [vmem:[%s18182_s1 + $0xbe8] sm:$0xff] }
  0x86   :  { %3247 = vmatpush1.bf16.msra.mxu0 %v11740_v26  ;;  %3411 = vmatpush1.bf16.msra.mxu1 %v11742_v27  ;;  %v11807_v26 = vcombine.high %v371_v19, %v375_v20  ;;  %v378_v27 = vld [vmem:[%s18182_s1 + $0xa40] sm:$0xff] }
  0x87   :  { %3248 = vmatprep.subr.bf16.mxu0 %v11749_v28  ;;  %3412 = vmatprep.subr.bf16.mxu1 %v11751_v29  ;;  %v382_v28 = vld [vmem:[%s18182_s1 + $0xa60] sm:$0xff]  ;;  %v379_v29 = vld [vmem:[%s18182_s1 + $0xa48] sm:$0xff] }
  0x88   :  { %3278 = vmatprep.mubr.bf16.mxu0 %v13686_v32  ;;  %3442 = vmatprep.mubr.bf16.mxu1 %v13686_v32  ;;  %v11813_v34 = vcombine.high %v378_v27, %v382_v28  ;;  %v11812_v40 = vcombine.low %v378_v27, %v382_v28  ;;  %v11814_v41 = vcombine.low %v379_v29, %v383_v30  ;;  %v439_v27 = vld [vmem:[%s18182_s1 + $0xc28] sm:$0xff] }
  0x8a   :  { %3249 = vmatpush1.bf16.msra.mxu0 %v11748_v35  ;;  %3413 = vmatpush1.bf16.msra.mxu1 %v11750_v36  ;;  %v11815_v35 = vcombine.high %v379_v29, %v383_v30  ;;  %v386_v36 = vld [vmem:[%s18182_s1 + $0xa80] sm:$0xff] }
  0x8b   :  { %3250 = vmatprep.subr.bf16.mxu0 %v11757_v37  ;;  %3414 = vmatprep.subr.bf16.mxu1 %v11759_v38  ;;  %v390_v37 = vld [vmem:[%s18182_s1 + $0xaa0] sm:$0xff]  ;;  %v387_v38 = vld [vmem:[%s18182_s1 + $0xa88] sm:$0xff] }
  0x8c   :  { %v11821_v42 = vcombine.high %v386_v36, %v390_v37  ;;  %v11820_v48 = vcombine.low %v386_v36, %v390_v37  ;;  %v11822_v49 = vcombine.low %v387_v38, %v391_v39  ;;  %v38_v29 = vld [vmem:[%s18183_s0 + $0x20] sm:$0xff]  ;;  %v443_v37 = vld [vmem:[%s18182_s1 + $0xc48] sm:$0xff] }
  0x8d   :  { %v13875_v36 = vpack.c.bf16 %v38_v29, %v38_v29 }
  0x8e   :  { %3251 = vmatpush1.bf16.msra.mxu0 %v11756_v43  ;;  %3415 = vmatpush1.bf16.msra.mxu1 %v11758_v44  ;;  %v11823_v43 = vcombine.high %v387_v38, %v391_v39  ;;  %v394_v44 = vld [vmem:[%s18182_s1 + $0xac0] sm:$0xff]  ;;  %v447_v38 = vld [vmem:[%s18182_s1 + $0xc68] sm:$0xff]  ;;  %v41_v39 = vld [vmem:[%s18183_s0 + $0x38] sm:$0xff] }
  0x8f   :  { %3252 = vmatprep.subr.bf16.mxu0 %v11765_v45  ;;  %3416 = vmatprep.subr.bf16.mxu1 %v11767_v46  ;;  %v398_v45 = vld [vmem:[%s18182_s1 + $0xae0] sm:$0xff]  ;;  %v395_v46 = vld [vmem:[%s18182_s1 + $0xac8] sm:$0xff] }
  0x90   :  { %v11829_v50 = vcombine.high %v394_v44, %v398_v45  ;;  %v11828_v56 = vcombine.low %v394_v44, %v398_v45  ;;  %v11830_v58 = vcombine.low %v395_v46, %v399_v47  ;;  %v450_v44 = vld [vmem:[%s18182_s1 + $0xc80] sm:$0xff] }
  0x91   :  { %v454_v45 = vld [vmem:[%s18182_s1 + $0xca0] sm:$0xff] }
  0x92   :  { %3253 = vmatpush1.bf16.msra.mxu0 %v11764_v51  ;;  %3417 = vmatpush1.bf16.msra.mxu1 %v11766_v52  ;;  %v11831_v51 = vcombine.high %v395_v46, %v399_v47  ;;  %v402_v52 = vld [vmem:[%s18182_s1 + $0xb00] sm:$0xff]  ;;  %v13892_v46 = vpack.c.bf16 %v41_v39, %v41_v39  ;;  %v451_v47 = vld [vmem:[%s18182_s1 + $0xc88] sm:$0xff] }
  0x93   :  { %3254 = vmatprep.subr.bf16.mxu0 %v11773_v53  ;;  %3418 = vmatprep.subr.bf16.mxu1 %v11775_v54  ;;  %v406_v53 = vld [vmem:[%s18182_s1 + $0xb20] sm:$0xff]  ;;  %v403_v54 = vld [vmem:[%s18182_s1 + $0xb08] sm:$0xff] }
  0x94   :  { %v11837_v59 = vcombine.high %v402_v52, %v406_v53  ;;  %v11836_v1 = vcombine.low %v402_v52, %v406_v53  ;;  %v11838_v2 = vcombine.low %v403_v54, %v407_v55  ;;  %v458_v53 = vld [vmem:[%s18182_s1 + $0xcc0] sm:$0xff] }
  0x96   :  { %3255 = vmatpush1.bf16.msra.mxu0 %v11772_v60  ;;  %3419 = vmatpush1.bf16.msra.mxu1 %v11774_v61  ;;  %v11839_v60 = vcombine.high %v403_v54, %v407_v55  ;;  %v410_v61 = vld [vmem:[%s18182_s1 + $0xb40] sm:$0xff]  ;;  %v459_v55 = vld [vmem:[%s18182_s1 + $0xcc8] sm:$0xff] }
  0x97   :  { %3256 = vmatprep.subr.bf16.mxu0 %v11781_v62  ;;  %3420 = vmatprep.subr.bf16.mxu1 %v11783_v63  ;;  %v414_v62 = vld [vmem:[%s18182_s1 + $0xb60] sm:$0xff]  ;;  %v411_v63 = vld [vmem:[%s18182_s1 + $0xb48] sm:$0xff] }
  0x98   :  { %v11845_v3 = vcombine.high %v410_v61, %v414_v62  ;;  %v11844_v9 = vcombine.low %v410_v61, %v414_v62  ;;  %v11846_v10 = vcombine.low %v411_v63, %v415_v0  ;;  %v462_v54 = vld [vmem:[%s18182_s1 + $0xce0] sm:$0xff] }
  0x99   :  { %v466_v62 = vld [vmem:[%s18182_s1 + $0xd00] sm:$0xff] }
  0x9a   :  { %3257 = vmatpush1.bf16.msra.mxu0 %v11780_v4  ;;  %3421 = vmatpush1.bf16.msra.mxu1 %v11782_v5  ;;  %v11847_v4 = vcombine.high %v411_v63, %v415_v0  ;;  %v418_v5 = vld [vmem:[%s18182_s1 + $0xb80] sm:$0xff]  ;;  %v467_v0 = vld [vmem:[%s18182_s1 + $0xd08] sm:$0xff] }
  0x9b   :  { %3258 = vmatprep.subr.bf16.mxu0 %v11789_v6  ;;  %3422 = vmatprep.subr.bf16.mxu1 %v11791_v7  ;;  %v422_v6 = vld [vmem:[%s18182_s1 + $0xba0] sm:$0xff]  ;;  %v419_v7 = vld [vmem:[%s18182_s1 + $0xb88] sm:$0xff] }
  0x9c   :  { %v11853_v11 = vcombine.high %v418_v5, %v422_v6  ;;  %v11852_v18 = vcombine.low %v418_v5, %v422_v6  ;;  %v11854_v19 = vcombine.low %v419_v7, %v423_v8  ;;  %v470_v63 = vld [vmem:[%s18182_s1 + $0xd20] sm:$0xff] }
  0x9d   :  { %v474_v6 = vld [vmem:[%s18182_s1 + $0xd40] sm:$0xff] }
  0x9e   :  { %3259 = vmatpush1.bf16.msra.mxu0 %v11788_v13  ;;  %3423 = vmatpush1.bf16.msra.mxu1 %v11790_v14  ;;  %v11855_v13 = vcombine.high %v419_v7, %v423_v8  ;;  %v426_v14 = vld [vmem:[%s18182_s1 + $0xbc0] sm:$0xff]  ;;  %v475_v8 = vld [vmem:[%s18182_s1 + $0xd48] sm:$0xff] }
  0x9f   :  { %3260 = vmatprep.subr.bf16.mxu0 %v11797_v15  ;;  %3424 = vmatprep.subr.bf16.mxu1 %v11799_v16  ;;  %v430_v15 = vld [vmem:[%s18182_s1 + $0xbe0] sm:$0xff]  ;;  %v427_v16 = vld [vmem:[%s18182_s1 + $0xbc8] sm:$0xff] }
  0xa0   :  { %v11861_v20 = vcombine.high %v426_v14, %v430_v15  ;;  %v11860_v28 = vcombine.low %v426_v14, %v430_v15  ;;  %v11862_v30 = vcombine.low %v427_v16, %v431_v17  ;;  %v478_v7 = vld [vmem:[%s18182_s1 + $0xd60] sm:$0xff] }
  0xa1   :  { %v482_v15 = vld [vmem:[%s18182_s1 + $0xd80] sm:$0xff] }
  0xa2   :  { %3261 = vmatpush1.bf16.msra.mxu0 %v11796_v23  ;;  %3425 = vmatpush1.bf16.msra.mxu1 %v11798_v24  ;;  %v11863_v23 = vcombine.high %v427_v16, %v431_v17  ;;  %v434_v24 = vld [vmem:[%s18182_s1 + $0xc00] sm:$0xff]  ;;  %v483_v17 = vld [vmem:[%s18182_s1 + $0xd88] sm:$0xff] }
  0xa3   :  { %3262 = vmatprep.subr.bf16.mxu0 %v11805_v25  ;;  %3426 = vmatprep.subr.bf16.mxu1 %v11807_v26  ;;  %v438_v25 = vld [vmem:[%s18182_s1 + $0xc20] sm:$0xff]  ;;  %v435_v26 = vld [vmem:[%s18182_s1 + $0xc08] sm:$0xff] }
  0xa4   :  { %v486_v16 = vld [vmem:[%s18182_s1 + $0xda0] sm:$0xff] }
  0xa5   :  { %v11916_v29 = vcombine.low %v482_v15, %v486_v16 }
  0xa6   :  { %3263 = vmatpush1.bf16.msra.mxu0 %v11804_v31  ;;  %3427 = vmatpush1.bf16.msra.mxu1 %v11806_v33  ;;  %v11869_v31 = vcombine.high %v434_v24, %v438_v25  ;;  %v11871_v33 = vcombine.high %v435_v26, %v439_v27 }
  0xa7   :  { %3264 = vmatprep.subr.bf16.mxu0 %v11813_v34  ;;  %3428 = vmatprep.subr.bf16.mxu1 %v11815_v35  ;;  %v442_v34 = vld [vmem:[%s18182_s1 + $0xc40] sm:$0xff] }
  0xa8   :  { %v446_v35 = vld [vmem:[%s18182_s1 + $0xc60] sm:$0xff] }
  0xaa   :  { %3265 = vmatpush1.bf16.msra.mxu0 %v11812_v40  ;;  %3429 = vmatpush1.bf16.msra.mxu1 %v11814_v41  ;;  %v11868_v40 = vcombine.low %v434_v24, %v438_v25  ;;  %v11870_v41 = vcombine.low %v435_v26, %v439_v27  ;;  %v490_v25 = vld [vmem:[%s18182_s1 + $0xdc0] sm:$0xff]  ;;  %v491_v27 = vld [vmem:[%s18182_s1 + $0xdc8] sm:$0xff] }
  0xab   :  { %3266 = vmatprep.subr.bf16.mxu0 %v11821_v42  ;;  %3430 = vmatprep.subr.bf16.mxu1 %v11823_v43  ;;  %v11877_v42 = vcombine.high %v442_v34, %v446_v35  ;;  %v11879_v43 = vcombine.high %v443_v37, %v447_v38  ;;  %v494_v26 = vld [vmem:[%s18182_s1 + $0xde0] sm:$0xff] }
  0xac   :  { %v11924_v39 = vcombine.low %v490_v25, %v494_v26 }
  0xae   :  { %3267 = vmatpush1.bf16.msra.mxu0 %v11820_v48  ;;  %3431 = vmatpush1.bf16.msra.mxu1 %v11822_v49  ;;  %v455_v48 = vld [vmem:[%s18182_s1 + $0xca8] sm:$0xff]  ;;  %v11876_v49 = vcombine.low %v442_v34, %v446_v35  ;;  %v498_v34 = vld [vmem:[%s18182_s1 + $0xe00] sm:$0xff] }
  0xaf   :  { %3268 = vmatprep.subr.bf16.mxu0 %v11829_v50  ;;  %3432 = vmatprep.subr.bf16.mxu1 %v11831_v51  ;;  %v11878_v50 = vcombine.low %v443_v37, %v447_v38  ;;  %v11885_v51 = vcombine.high %v450_v44, %v454_v45  ;;  %v11887_v52 = vcombine.high %v451_v47, %v455_v48  ;;  %v502_v35 = vld [vmem:[%s18182_s1 + $0xe20] sm:$0xff]  ;;  %v499_v37 = vld [vmem:[%s18182_s1 + $0xe08] sm:$0xff] }
  0xb0   :  { %v503_v38 = vld [vmem:[%s18182_s1 + $0xe28] sm:$0xff] }
  0xb2   :  { %3269 = vmatpush1.bf16.msra.mxu0 %v11828_v56  ;;  %3433 = vmatpush1.bf16.msra.mxu1 %v11830_v58  ;;  %v463_v56 = vld [vmem:[%s18182_s1 + $0xce8] sm:$0xff]  ;;  %v11884_v58 = vcombine.low %v450_v44, %v454_v45  ;;  %v510_v44 = vld [vmem:[%s18182_s1 + $0xe60] sm:$0xff] }
  0xb3   :  { %3270 = vmatprep.subr.bf16.mxu0 %v11837_v59  ;;  %3434 = vmatprep.subr.bf16.mxu1 %v11839_v60  ;;  %v11886_v59 = vcombine.low %v451_v47, %v455_v48  ;;  %v11893_v60 = vcombine.high %v458_v53, %v462_v54  ;;  %v11895_v61 = vcombine.high %v459_v55, %v463_v56  ;;  %v507_v45 = vld [vmem:[%s18182_s1 + $0xe48] sm:$0xff] }
  0xb4   :  { %v511_v47 = vld [vmem:[%s18182_s1 + $0xe68] sm:$0xff]  ;;  %v11932_v48 = vcombine.low %v498_v34, %v502_v35 }
  0xb6   :  { %3271 = vmatpush1.bf16.msra.mxu0 %v11836_v1  ;;  %3435 = vmatpush1.bf16.msra.mxu1 %v11838_v2  ;;  %v471_v1 = vld [vmem:[%s18182_s1 + $0xd28] sm:$0xff]  ;;  %v11892_v2 = vcombine.low %v458_v53, %v462_v54  ;;  %v518_v53 = vld [vmem:[%s18182_s1 + $0xea0] sm:$0xff] }
  0xb7   :  { %3272 = vmatprep.subr.bf16.mxu0 %v11845_v3  ;;  %3436 = vmatprep.subr.bf16.mxu1 %v11847_v4  ;;  %v11894_v3 = vcombine.low %v459_v55, %v463_v56  ;;  %v11901_v4 = vcombine.high %v466_v62, %v470_v63  ;;  %v11903_v5 = vcombine.high %v467_v0, %v471_v1  ;;  %v515_v54 = vld [vmem:[%s18182_s1 + $0xe88] sm:$0xff] }
  0xb8   :  { %v519_v55 = vld [vmem:[%s18182_s1 + $0xea8] sm:$0xff] }
  0xba   :  { %3273 = vmatpush1.bf16.msra.mxu0 %v11844_v9  ;;  %3437 = vmatpush1.bf16.msra.mxu1 %v11846_v10  ;;  %v479_v9 = vld [vmem:[%s18182_s1 + $0xd68] sm:$0xff]  ;;  %v11900_v10 = vcombine.low %v466_v62, %v470_v63  ;;  %v526_v62 = vld [vmem:[%s18182_s1 + $0xee0] sm:$0xff] }
  0xbb   :  { %3274 = vmatprep.subr.bf16.mxu0 %v11853_v11  ;;  %3438 = vmatprep.subr.bf16.mxu1 %v11855_v13  ;;  %v11902_v11 = vcombine.low %v467_v0, %v471_v1  ;;  %v11909_v13 = vcombine.high %v474_v6, %v478_v7  ;;  %v11911_v14 = vcombine.high %v475_v8, %v479_v9  ;;  %v523_v63 = vld [vmem:[%s18182_s1 + $0xec8] sm:$0xff] }
  0xbc   :  { %v527_v0 = vld [vmem:[%s18182_s1 + $0xee8] sm:$0xff] }
  0xbe   :  { %3275 = vmatpush1.bf16.msra.mxu0 %v11852_v18  ;;  %3439 = vmatpush1.bf16.msra.mxu1 %v11854_v19  ;;  %v487_v18 = vld [vmem:[%s18182_s1 + $0xda8] sm:$0xff]  ;;  %v11908_v19 = vcombine.low %v474_v6, %v478_v7  ;;  %v534_v6 = vld [vmem:[%s18182_s1 + $0xf20] sm:$0xff] }
  0xbf   :  { %3276 = vmatprep.subr.bf16.mxu0 %v11861_v20  ;;  %3440 = vmatprep.subr.bf16.mxu1 %v11863_v23  ;;  %v11910_v20 = vcombine.low %v475_v8, %v479_v9  ;;  %v11917_v23 = vcombine.high %v482_v15, %v486_v16  ;;  %v11919_v24 = vcombine.high %v483_v17, %v487_v18  ;;  %v531_v7 = vld [vmem:[%s18182_s1 + $0xf08] sm:$0xff]  ;;  %v542_v15 = vld [vmem:[%s18182_s1 + $0xf60] sm:$0xff] }
  0xc0   :  { %v535_v8 = vld [vmem:[%s18182_s1 + $0xf28] sm:$0xff] }
  0xc1   :  { %v539_v16 = vld [vmem:[%s18182_s1 + $0xf48] sm:$0xff] }
  0xc2   :  { %3277 = vmatpush1.bf16.msra.mxu0 %v11860_v28  ;;  %3441 = vmatpush1.bf16.msra.mxu1 %v11862_v30  ;;  %v495_v28 = vld [vmem:[%s18182_s1 + $0xde8] sm:$0xff]  ;;  %v11918_v30 = vcombine.low %v483_v17, %v487_v18 }
  0xc3   :  { %3287 = vmatprep.subr.bf16.mxu0 %v11869_v31  ;;  %3451 = vmatprep.subr.bf16.mxu1 %v11871_v33  ;;  %v11925_v31 = vcombine.high %v490_v25, %v494_v26  ;;  %v11927_v33 = vcombine.high %v491_v27, %v495_v28  ;;  %v543_v17 = vld [vmem:[%s18182_s1 + $0xf68] sm:$0xff]  ;;  %v550_v25 = vld [vmem:[%s18182_s1 + $0xfa0] sm:$0xff] }
  0xc4   :  { %v547_v26 = vld [vmem:[%s18182_s1 + $0xf88] sm:$0xff] }
  0xc5   :  { %3279 = vmatmul.mubr.bf16.vlgmr.msra.gmra.mrb[0].mxu0 %v13875_v36  ;;  %3443 = vmatmul.mubr.bf16.vlgmr.msra.gmra.mrb[0].mxu1 %v13875_v36 }
  0xc6   :  { %3288 = vmatpush1.bf16.msra.mxu0 %v11868_v40  ;;  %3452 = vmatpush1.bf16.msra.mxu1 %v11870_v41  ;;  %v11926_v40 = vcombine.low %v491_v27, %v495_v28  ;;  %v11933_v41 = vcombine.high %v498_v34, %v502_v35  ;;  %v551_v27 = vld [vmem:[%s18182_s1 + $0xfa8] sm:$0xff]  ;;  %v558_v34 = vld [vmem:[%s18182_s1 + $0xfe0] sm:$0xff] }
  0xc7   :  { %3289 = vmatprep.subr.bf16.mxu0 %v11877_v42  ;;  %3453 = vmatprep.subr.bf16.mxu1 %v11879_v43  ;;  %v11935_v42 = vcombine.high %v499_v37, %v503_v38  ;;  %v506_v43 = vld [vmem:[%s18182_s1 + $0xe40] sm:$0xff]  ;;  %v555_v35 = vld [vmem:[%s18182_s1 + $0xfc8] sm:$0xff] }
  0xc8   :  { %3319 = vmatprep.mubr.bf16.mxu0 %v13892_v46  ;;  %3483 = vmatprep.mubr.bf16.mxu1 %v13892_v46  ;;  %v11940_v56 = vcombine.low %v506_v43, %v510_v44 }
  0xca   :  { %3290 = vmatpush1.bf16.msra.mxu0 %v11876_v49  ;;  %3454 = vmatpush1.bf16.msra.mxu1 %v11878_v50  ;;  %v11934_v49 = vcombine.low %v499_v37, %v503_v38  ;;  %v11941_v50 = vcombine.high %v506_v43, %v510_v44  ;;  %v559_v37 = vld [vmem:[%s18182_s1 + $0xfe8] sm:$0xff]  ;;  %v56_v43 = vld [vmem:[%s18182_s1 + $0x30] sm:$0xff]  ;;  %v53_v44 = vld [vmem:[%s18182_s1 + $0x18] sm:$0xff] }
  0xcb   :  { %3291 = vmatprep.subr.bf16.mxu0 %v11885_v51  ;;  %3455 = vmatprep.subr.bf16.mxu1 %v11887_v52  ;;  %v11943_v51 = vcombine.high %v507_v45, %v511_v47  ;;  %v514_v52 = vld [vmem:[%s18182_s1 + $0xe80] sm:$0xff] }
  0xcc   :  { %v11948_v1 = vcombine.low %v514_v52, %v518_v53 }
  0xce   :  { %3292 = vmatpush1.bf16.msra.mxu0 %v11884_v58  ;;  %3456 = vmatpush1.bf16.msra.mxu1 %v11886_v59  ;;  %v11942_v58 = vcombine.low %v507_v45, %v511_v47  ;;  %v11949_v59 = vcombine.high %v514_v52, %v518_v53  ;;  %v57_v45 = vld [vmem:[%s18182_s1 + $0x38] sm:$0xff]  ;;  %v60_v52 = vld [vmem:[%s18182_s1 + $0x50] sm:$0xff] }
  0xcf   :  { %3293 = vmatprep.subr.bf16.mxu0 %v11893_v60  ;;  %3457 = vmatprep.subr.bf16.mxu1 %v11895_v61  ;;  %v11951_v60 = vcombine.high %v515_v54, %v519_v55  ;;  %v522_v61 = vld [vmem:[%s18182_s1 + $0xec0] sm:$0xff]  ;;  %v64_v53 = vld [vmem:[%s18182_s1 + $0x70] sm:$0xff] }
  0xd0   :  { %v11956_v9 = vcombine.low %v522_v61, %v526_v62 }
  0xd2   :  { %3294 = vmatpush1.bf16.msra.mxu0 %v11892_v2  ;;  %3458 = vmatpush1.bf16.msra.mxu1 %v11894_v3  ;;  %v11950_v2 = vcombine.low %v515_v54, %v519_v55  ;;  %v11957_v3 = vcombine.high %v522_v61, %v526_v62  ;;  %v61_v55 = vld [vmem:[%s18182_s1 + $0x58] sm:$0xff]  ;;  %v68_v62 = vld [vmem:[%s18182_s1 + $0x90] sm:$0xff] }
  0xd3   :  { %3295 = vmatprep.subr.bf16.mxu0 %v11901_v4  ;;  %3459 = vmatprep.subr.bf16.mxu1 %v11903_v5  ;;  %v11959_v4 = vcombine.high %v523_v63, %v527_v0  ;;  %v530_v5 = vld [vmem:[%s18182_s1 + $0xf00] sm:$0xff] }
  0xd4   :  { %v11964_v18 = vcombine.low %v530_v5, %v534_v6 }
  0xd6   :  { %3296 = vmatpush1.bf16.msra.mxu0 %v11900_v10  ;;  %3460 = vmatpush1.bf16.msra.mxu1 %v11902_v11  ;;  %v11958_v10 = vcombine.low %v523_v63, %v527_v0  ;;  %v11965_v11 = vcombine.high %v530_v5, %v534_v6  ;;  %v72_v63 = vld [vmem:[%s18182_s1 + $0xb0] sm:$0xff]  ;;  %v69_v0 = vld [vmem:[%s18182_s1 + $0x98] sm:$0xff] }
  0xd7   :  { %3297 = vmatprep.subr.bf16.mxu0 %v11909_v13  ;;  %3461 = vmatprep.subr.bf16.mxu1 %v11911_v14  ;;  %v11967_v13 = vcombine.high %v531_v7, %v535_v8  ;;  %v538_v14 = vld [vmem:[%s18182_s1 + $0xf40] sm:$0xff]  ;;  %v76_v6 = vld [vmem:[%s18182_s1 + $0xd0] sm:$0xff] }
  0xd8   :  { %v11972_v28 = vcombine.low %v538_v14, %v542_v15 }
  0xda   :  { %3298 = vmatpush1.bf16.msra.mxu0 %v11908_v19  ;;  %3462 = vmatpush1.bf16.msra.mxu1 %v11910_v20  ;;  %v11966_v19 = vcombine.low %v531_v7, %v535_v8  ;;  %v11973_v20 = vcombine.high %v538_v14, %v542_v15  ;;  %v80_v7 = vld [vmem:[%s18182_s1 + $0xf0] sm:$0xff]  ;;  %v77_v8 = vld [vmem:[%s18182_s1 + $0xd8] sm:$0xff] }
  0xdb   :  { %3299 = vmatprep.subr.bf16.mxu0 %v11917_v23  ;;  %3463 = vmatprep.subr.bf16.mxu1 %v11919_v24  ;;  %v11975_v23 = vcombine.high %v539_v16, %v543_v17  ;;  %v546_v24 = vld [vmem:[%s18182_s1 + $0xf80] sm:$0xff]  ;;  %v84_v15 = vld [vmem:[%s18182_s1 + $0x110] sm:$0xff] }
  0xdc   :  { %v11980_v38 = vcombine.low %v546_v24, %v550_v25 }
  0xde   :  { %3300 = vmatpush1.bf16.msra.mxu0 %v11916_v29  ;;  %3464 = vmatpush1.bf16.msra.mxu1 %v11918_v30  ;;  %v11974_v29 = vcombine.low %v539_v16, %v543_v17  ;;  %v11981_v30 = vcombine.high %v546_v24, %v550_v25  ;;  %v88_v16 = vld [vmem:[%s18182_s1 + $0x130] sm:$0xff]  ;;  %v89_v17 = vld [vmem:[%s18182_s1 + $0x138] sm:$0xff] }
  0xdf   :  { %3301 = vmatprep.subr.bf16.mxu0 %v11925_v31  ;;  %3465 = vmatprep.subr.bf16.mxu1 %v11927_v33  ;;  %v11983_v31 = vcombine.high %v547_v26, %v551_v27  ;;  %v554_v33 = vld [vmem:[%s18182_s1 + $0xfc0] sm:$0xff]  ;;  %v92_v24 = vld [vmem:[%s18182_s1 + $0x150] sm:$0xff] }
  0xe0   :  { %v11988_v47 = vcombine.low %v554_v33, %v558_v34  ;;  %v96_v25 = vld [vmem:[%s18182_s1 + $0x170] sm:$0xff] }
  0xe2   :  { %3302 = vmatpush1.bf16.msra.mxu0 %v11924_v39  ;;  %3466 = vmatpush1.bf16.msra.mxu1 %v11926_v40  ;;  %v11982_v39 = vcombine.low %v547_v26, %v551_v27  ;;  %v11989_v40 = vcombine.high %v554_v33, %v558_v34  ;;  %v93_v26 = vld [vmem:[%s18182_s1 + $0x158] sm:$0xff]  ;;  %v100_v33 = vld [vmem:[%s18182_s1 + $0x190] sm:$0xff] }
  0xe3   :  { %3303 = vmatprep.subr.bf16.mxu0 %v11933_v41  ;;  %3467 = vmatprep.subr.bf16.mxu1 %v11935_v42  ;;  %v11991_v41 = vcombine.high %v555_v35, %v559_v37  ;;  %v52_v42 = vld [vmem:[%s18182_s1 + $0x10] sm:$0xff]  ;;  %v97_v27 = vld [vmem:[%s18182_s1 + $0x178] sm:$0xff] }
  0xe4   :  { %v104_v34 = vld [vmem:[%s18182_s1 + $0x1b0] sm:$0xff] }
  0xe6   :  { %3304 = vmatpush1.bf16.msra.mxu0 %v11932_v48  ;;  %3468 = vmatpush1.bf16.msra.mxu1 %v11934_v49  ;;  %v40_v48 = vld [vmem:[%s18183_s0 + $0x30] sm:$0xff]  ;;  %v11990_v49 = vcombine.low %v555_v35, %v559_v37  ;;  %v101_v35 = vld [vmem:[%s18182_s1 + $0x198] sm:$0xff] }
  0xe7   :  { %3305 = vmatprep.subr.bf16.mxu0 %v11941_v50  ;;  %3469 = vmatprep.subr.bf16.mxu1 %v11943_v51  ;;  %v11489_v50 = vcombine.high %v52_v42, %v56_v43  ;;  %v11491_v51 = vcombine.high %v53_v44, %v57_v45  ;;  %v14081_v54 = vpack.c.bf16 %v40_v48, %v40_v48  ;;  %v105_v37 = vld [vmem:[%s18182_s1 + $0x1b8] sm:$0xff] }
  0xe8   :  { %v11538_v48 = vcombine.low %v101_v35, %v105_v37 }
  0xea   :  { %3306 = vmatpush1.bf16.msra.mxu0 %v11940_v56  ;;  %3470 = vmatpush1.bf16.msra.mxu1 %v11942_v58  ;;  %v65_v56 = vld [vmem:[%s18182_s1 + $0x78] sm:$0xff]  ;;  %v11488_v58 = vcombine.low %v52_v42, %v56_v43  ;;  %v108_v42 = vld [vmem:[%s18182_s1 + $0x1d0] sm:$0xff] }
  0xeb   :  { %3307 = vmatprep.subr.bf16.mxu0 %v11949_v59  ;;  %3471 = vmatprep.subr.bf16.mxu1 %v11951_v60  ;;  %v11490_v59 = vcombine.low %v53_v44, %v57_v45  ;;  %v11497_v60 = vcombine.high %v60_v52, %v64_v53  ;;  %v11499_v61 = vcombine.high %v61_v55, %v65_v56  ;;  %v112_v43 = vld [vmem:[%s18182_s1 + $0x1f0] sm:$0xff]  ;;  %v109_v44 = vld [vmem:[%s18182_s1 + $0x1d8] sm:$0xff] }
  0xec   :  { %v113_v45 = vld [vmem:[%s18182_s1 + $0x1f8] sm:$0xff] }
  0xee   :  { %3308 = vmatpush1.bf16.msra.mxu0 %v11948_v1  ;;  %3472 = vmatpush1.bf16.msra.mxu1 %v11950_v2  ;;  %v73_v1 = vld [vmem:[%s18182_s1 + $0xb8] sm:$0xff]  ;;  %v11496_v2 = vcombine.low %v60_v52, %v64_v53  ;;  %v120_v52 = vld [vmem:[%s18182_s1 + $0x230] sm:$0xff] }
  0xef   :  { %3309 = vmatprep.subr.bf16.mxu0 %v11957_v3  ;;  %3473 = vmatprep.subr.bf16.mxu1 %v11959_v4  ;;  %v11498_v3 = vcombine.low %v61_v55, %v65_v56  ;;  %v11505_v4 = vcombine.high %v68_v62, %v72_v63  ;;  %v11507_v5 = vcombine.high %v69_v0, %v73_v1  ;;  %v117_v53 = vld [vmem:[%s18182_s1 + $0x218] sm:$0xff] }
  0xf0   :  { %v121_v55 = vld [vmem:[%s18182_s1 + $0x238] sm:$0xff]  ;;  %v11544_v56 = vcombine.low %v108_v42, %v112_v43 }
  0xf2   :  { %3310 = vmatpush1.bf16.msra.mxu0 %v11956_v9  ;;  %3474 = vmatpush1.bf16.msra.mxu1 %v11958_v10  ;;  %v81_v9 = vld [vmem:[%s18182_s1 + $0xf8] sm:$0xff]  ;;  %v11504_v10 = vcombine.low %v68_v62, %v72_v63  ;;  %v128_v62 = vld [vmem:[%s18182_s1 + $0x270] sm:$0xff] }
  0xf3   :  { %3311 = vmatprep.subr.bf16.mxu0 %v11965_v11  ;;  %3475 = vmatprep.subr.bf16.mxu1 %v11967_v13  ;;  %v11506_v11 = vcombine.low %v69_v0, %v73_v1  ;;  %v11513_v13 = vcombine.high %v76_v6, %v80_v7  ;;  %v11515_v14 = vcombine.high %v77_v8, %v81_v9  ;;  %v125_v63 = vld [vmem:[%s18182_s1 + $0x258] sm:$0xff] }
  0xf4   :  { %v129_v0 = vld [vmem:[%s18182_s1 + $0x278] sm:$0xff] }
  0xf6   :  { %3312 = vmatpush1.bf16.msra.mxu0 %v11964_v18  ;;  %3476 = vmatpush1.bf16.msra.mxu1 %v11966_v19  ;;  %v11512_v18 = vcombine.low %v76_v6, %v80_v7  ;;  %v11514_v19 = vcombine.low %v77_v8, %v81_v9  ;;  %v136_v6 = vld [vmem:[%s18182_s1 + $0x2b0] sm:$0xff]  ;;  %v133_v7 = vld [vmem:[%s18182_s1 + $0x298] sm:$0xff] }
  0xf7   :  { %3313 = vmatprep.subr.bf16.mxu0 %v11973_v20  ;;  %3477 = vmatprep.subr.bf16.mxu1 %v11975_v23  ;;  %v11521_v20 = vcombine.high %v84_v15, %v88_v16  ;;  %v137_v8 = vld [vmem:[%s18182_s1 + $0x2b8] sm:$0xff] }
  0xfa   :  { %3314 = vmatpush1.bf16.msra.mxu0 %v11972_v28  ;;  %3478 = vmatpush1.bf16.msra.mxu1 %v11974_v29  ;;  %v11520_v28 = vcombine.low %v84_v15, %v88_v16  ;;  %v144_v15 = vld [vmem:[%s18182_s1 + $0x2f0] sm:$0xff]  ;;  %v141_v16 = vld [vmem:[%s18182_s1 + $0x2d8] sm:$0xff] }
  0xfb   :  { %3315 = vmatprep.subr.bf16.mxu0 %v11981_v30  ;;  %3479 = vmatprep.subr.bf16.mxu1 %v11983_v31  ;;  %v11529_v30 = vcombine.high %v92_v24, %v96_v25  ;;  %v11531_v31 = vcombine.high %v93_v26, %v97_v27 }
  0xfe   :  { %3316 = vmatpush1.bf16.msra.mxu0 %v11980_v38  ;;  %3480 = vmatpush1.bf16.msra.mxu1 %v11982_v39  ;;  %v11528_v38 = vcombine.low %v92_v24, %v96_v25  ;;  %v11530_v39 = vcombine.low %v93_v26, %v97_v27  ;;  %v152_v24 = vld [vmem:[%s18182_s1 + $0x330] sm:$0xff]  ;;  %v149_v25 = vld [vmem:[%s18182_s1 + $0x318] sm:$0xff] }
  0xff   :  { %3317 = vmatprep.subr.bf16.mxu0 %v11989_v40  ;;  %3481 = vmatprep.subr.bf16.mxu1 %v11991_v41  ;;  %v11537_v40 = vcombine.high %v100_v33, %v104_v34  ;;  %v11539_v41 = vcombine.high %v101_v35, %v105_v37  ;;  %v153_v26 = vld [vmem:[%s18182_s1 + $0x338] sm:$0xff] }
 0x100   :  { %v161_v35 = vld [vmem:[%s18182_s1 + $0x378] sm:$0xff] }
 0x102   :  { %3318 = vmatpush1.bf16.msra.mxu0 %v11988_v47  ;;  %3482 = vmatpush1.bf16.msra.mxu1 %v11990_v49  ;;  %v11536_v47 = vcombine.low %v100_v33, %v104_v34  ;;  %v11545_v49 = vcombine.high %v108_v42, %v112_v43  ;;  %v160_v33 = vld [vmem:[%s18182_s1 + $0x370] sm:$0xff]  ;;  %v157_v34 = vld [vmem:[%s18182_s1 + $0x358] sm:$0xff] }
 0x103   :  { %3492 = vmatprep.subr.bf16.mxu0 %v11489_v50  ;;  %3656 = vmatprep.subr.bf16.mxu1 %v11491_v51  ;;  %v11547_v50 = vcombine.high %v109_v44, %v113_v45  ;;  %v116_v51 = vld [vmem:[%s18182_s1 + $0x210] sm:$0xff]  ;;  %v165_v43 = vld [vmem:[%s18182_s1 + $0x398] sm:$0xff] }
 0x104   :  { %v11552_v1 = vcombine.low %v116_v51, %v120_v52  ;;  %v168_v42 = vld [vmem:[%s18182_s1 + $0x3b0] sm:$0xff] }
 0x105   :  { %3320 = vmatmul.mubr.bf16.vlgmr.msra.gmra.mrb[0].mxu0 %v14081_v54  ;;  %3484 = vmatmul.mubr.bf16.vlgmr.msra.gmra.mrb[0].mxu1 %v14081_v54 }
 0x106   :  { %3493 = vmatpush1.bf16.msra.mxu0 %v11488_v58  ;;  %3657 = vmatpush1.bf16.msra.mxu1 %v11490_v59  ;;  %v11546_v58 = vcombine.low %v109_v44, %v113_v45  ;;  %v11553_v59 = vcombine.high %v116_v51, %v120_v52  ;;  %v169_v44 = vld [vmem:[%s18182_s1 + $0x3b8] sm:$0xff]  ;;  %v176_v51 = vld [vmem:[%s18182_s1 + $0x3f0] sm:$0xff] }
 0x107   :  { %3494 = vmatprep.subr.bf16.mxu0 %v11497_v60  ;;  %3658 = vmatprep.subr.bf16.mxu1 %v11499_v61  ;;  %v11555_v60 = vcombine.high %v117_v53, %v121_v55  ;;  %v124_v61 = vld [vmem:[%s18182_s1 + $0x250] sm:$0xff]  ;;  %v173_v52 = vld [vmem:[%s18182_s1 + $0x3d8] sm:$0xff] }
 0x108   :  { %3524 = vmatprep.mubr.bf16.mxu0 %v13336_v57  ;;  %3688 = vmatprep.mubr.bf16.mxu1 %v13336_v57  ;;  %v85_v57 = vld [vmem:[%s18182_s1 + $0x118] sm:$0xff]  ;;  %v11560_v9 = vcombine.low %v124_v61, %v128_v62 }
 0x109   :  { %v11523_v23 = vcombine.high %v85_v57, %v89_v17  ;;  %v11522_v29 = vcombine.low %v85_v57, %v89_v17  ;;  %v145_v57 = vld [vmem:[%s18182_s1 + $0x2f8] sm:$0xff] }
 0x10a   :  { %3495 = vmatpush1.bf16.msra.mxu0 %v11496_v2  ;;  %3659 = vmatpush1.bf16.msra.mxu1 %v11498_v3  ;;  %v11554_v2 = vcombine.low %v117_v53, %v121_v55  ;;  %v11561_v3 = vcombine.high %v124_v61, %v128_v62  ;;  %v177_v53 = vld [vmem:[%s18182_s1 + $0x3f8] sm:$0xff]  ;;  %v184_v61 = vld [vmem:[%s18182_s1 + $0x430] sm:$0xff] }
 0x10b   :  { %3496 = vmatprep.subr.bf16.mxu0 %v11505_v4  ;;  %3660 = vmatprep.subr.bf16.mxu1 %v11507_v5  ;;  %v11563_v4 = vcombine.high %v125_v63, %v129_v0  ;;  %v132_v5 = vld [vmem:[%s18182_s1 + $0x290] sm:$0xff]  ;;  %v181_v62 = vld [vmem:[%s18182_s1 + $0x418] sm:$0xff] }
 0x10c   :  { %v11568_v17 = vcombine.low %v132_v5, %v136_v6 }
 0x10e   :  { %3497 = vmatpush1.bf16.msra.mxu0 %v11504_v10  ;;  %3661 = vmatpush1.bf16.msra.mxu1 %v11506_v11  ;;  %v11562_v10 = vcombine.low %v125_v63, %v129_v0  ;;  %v11569_v11 = vcombine.high %v132_v5, %v136_v6  ;;  %v185_v63 = vld [vmem:[%s18182_s1 + $0x438] sm:$0xff]  ;;  %v192_v5 = vld [vmem:[%s18182_s1 + $0x470] sm:$0xff] }
 0x10f   :  { %3498 = vmatprep.subr.bf16.mxu0 %v11513_v13  ;;  %3662 = vmatprep.subr.bf16.mxu1 %v11515_v14  ;;  %v11571_v13 = vcombine.high %v133_v7, %v137_v8  ;;  %v140_v14 = vld [vmem:[%s18182_s1 + $0x2d0] sm:$0xff]  ;;  %v189_v6 = vld [vmem:[%s18182_s1 + $0x458] sm:$0xff] }
 0x110   :  { %v11576_v27 = vcombine.low %v140_v14, %v144_v15 }
 0x112   :  { %3499 = vmatpush1.bf16.msra.mxu0 %v11512_v18  ;;  %3663 = vmatpush1.bf16.msra.mxu1 %v11514_v19  ;;  %v11570_v18 = vcombine.low %v133_v7, %v137_v8  ;;  %v11577_v19 = vcombine.high %v140_v14, %v144_v15  ;;  %v193_v7 = vld [vmem:[%s18182_s1 + $0x478] sm:$0xff]  ;;  %v200_v14 = vld [vmem:[%s18182_s1 + $0x4b0] sm:$0xff] }
 0x113   :  { %3500 = vmatprep.subr.bf16.mxu0 %v11521_v20  ;;  %3664 = vmatprep.subr.bf16.mxu1 %v11523_v23  ;;  %v11579_v20 = vcombine.high %v141_v16, %v145_v57  ;;  %v148_v23 = vld [vmem:[%s18182_s1 + $0x310] sm:$0xff]  ;;  %v197_v15 = vld [vmem:[%s18182_s1 + $0x498] sm:$0xff] }
 0x114   :  { %v11584_v37 = vcombine.low %v148_v23, %v152_v24 }
 0x116   :  { %3501 = vmatpush1.bf16.msra.mxu0 %v11520_v28  ;;  %3665 = vmatpush1.bf16.msra.mxu1 %v11522_v29  ;;  %v11578_v28 = vcombine.low %v141_v16, %v145_v57  ;;  %v11585_v29 = vcombine.high %v148_v23, %v152_v24  ;;  %v201_v16 = vld [vmem:[%s18182_s1 + $0x4b8] sm:$0xff]  ;;  %v208_v23 = vld [vmem:[%s18182_s1 + $0x4f0] sm:$0xff] }
 0x117   :  { %3502 = vmatprep.subr.bf16.mxu0 %v11529_v30  ;;  %3666 = vmatprep.subr.bf16.mxu1 %v11531_v31  ;;  %v11587_v30 = vcombine.high %v149_v25, %v153_v26  ;;  %v156_v31 = vld [vmem:[%s18182_s1 + $0x350] sm:$0xff]  ;;  %v209_v24 = vld [vmem:[%s18182_s1 + $0x4f8] sm:$0xff] }
 0x118   :  { %v11592_v45 = vcombine.low %v156_v31, %v160_v33 }
 0x11a   :  { %3503 = vmatpush1.bf16.msra.mxu0 %v11528_v38  ;;  %3667 = vmatpush1.bf16.msra.mxu1 %v11530_v39  ;;  %v11586_v38 = vcombine.low %v149_v25, %v153_v26  ;;  %v11593_v39 = vcombine.high %v156_v31, %v160_v33  ;;  %v11634_v26 = vcombine.low %v197_v15, %v201_v16  ;;  %v217_v31 = vld [vmem:[%s18182_s1 + $0x538] sm:$0xff] }
 0x11b   :  { %3504 = vmatprep.subr.bf16.mxu0 %v11537_v40  ;;  %3668 = vmatprep.subr.bf16.mxu1 %v11539_v41  ;;  %v11595_v40 = vcombine.high %v157_v34, %v161_v35  ;;  %v164_v41 = vld [vmem:[%s18182_s1 + $0x390] sm:$0xff] }
 0x11c   :  { %v11600_v55 = vcombine.low %v164_v41, %v168_v42 }
 0x11e   :  { %3505 = vmatpush1.bf16.msra.mxu0 %v11536_v47  ;;  %3669 = vmatpush1.bf16.msra.mxu1 %v11538_v48  ;;  %v11594_v47 = vcombine.low %v157_v34, %v161_v35  ;;  %v11601_v48 = vcombine.high %v164_v41, %v168_v42  ;;  %v225_v41 = vld [vmem:[%s18182_s1 + $0x578] sm:$0xff] }
 0x11f   :  { %3506 = vmatprep.subr.bf16.mxu0 %v11545_v49  ;;  %3670 = vmatprep.subr.bf16.mxu1 %v11547_v50  ;;  %v11603_v49 = vcombine.high %v165_v43, %v169_v44  ;;  %v172_v50 = vld [vmem:[%s18182_s1 + $0x3d0] sm:$0xff] }
 0x120   :  { %v11608_v0 = vcombine.low %v172_v50, %v176_v51 }
 0x122   :  { %3507 = vmatpush1.bf16.msra.mxu0 %v11544_v56  ;;  %3671 = vmatpush1.bf16.msra.mxu1 %v11546_v58  ;;  %v11602_v56 = vcombine.low %v165_v43, %v169_v44  ;;  %v11609_v58 = vcombine.high %v172_v50, %v176_v51  ;;  %v233_v50 = vld [vmem:[%s18182_s1 + $0x5b8] sm:$0xff] }
 0x123   :  { %3508 = vmatprep.subr.bf16.mxu0 %v11553_v59  ;;  %3672 = vmatprep.subr.bf16.mxu1 %v11555_v60  ;;  %v11611_v59 = vcombine.high %v173_v52, %v177_v53  ;;  %v180_v60 = vld [vmem:[%s18182_s1 + $0x410] sm:$0xff] }
 0x124   :  { %v11616_v8 = vcombine.low %v180_v60, %v184_v61 }
 0x126   :  { %3509 = vmatpush1.bf16.msra.mxu0 %v11552_v1  ;;  %3673 = vmatpush1.bf16.msra.mxu1 %v11554_v2  ;;  %v11610_v1 = vcombine.low %v173_v52, %v177_v53  ;;  %v11617_v2 = vcombine.high %v180_v60, %v184_v61  ;;  %v241_v60 = vld [vmem:[%s18182_s1 + $0x5f8] sm:$0xff] }
 0x127   :  { %3510 = vmatprep.subr.bf16.mxu0 %v11561_v3  ;;  %3674 = vmatprep.subr.bf16.mxu1 %v11563_v4  ;;  %v11619_v3 = vcombine.high %v181_v62, %v185_v63  ;;  %v188_v4 = vld [vmem:[%s18182_s1 + $0x450] sm:$0xff] }
 0x128   :  { %v11624_v57 = vcombine.low %v188_v4, %v192_v5 }
 0x12a   :  { %3511 = vmatpush1.bf16.msra.mxu0 %v11560_v9  ;;  %3675 = vmatpush1.bf16.msra.mxu1 %v11562_v10  ;;  %v11618_v9 = vcombine.low %v181_v62, %v185_v63  ;;  %v11625_v10 = vcombine.high %v188_v4, %v192_v5  ;;  %v249_v4 = vld [vmem:[%s18182_s1 + $0x638] sm:$0xff] }
 0x12b   :  { %3512 = vmatprep.subr.bf16.mxu0 %v11569_v11  ;;  %3676 = vmatprep.subr.bf16.mxu1 %v11571_v13  ;;  %v11627_v11 = vcombine.high %v189_v6, %v193_v7  ;;  %v196_v13 = vld [vmem:[%s18182_s1 + $0x490] sm:$0xff] }
 0x12c   :  { %v11632_v25 = vcombine.low %v196_v13, %v200_v14 }
 0x12e   :  { %3513 = vmatpush1.bf16.msra.mxu0 %v11568_v17  ;;  %3677 = vmatpush1.bf16.msra.mxu1 %v11570_v18  ;;  %v11626_v17 = vcombine.low %v189_v6, %v193_v7  ;;  %v11633_v18 = vcombine.high %v196_v13, %v200_v14  ;;  %v257_v13 = vld [vmem:[%s18182_s1 + $0x678] sm:$0xff] }
 0x12f   :  { %3514 = vmatprep.subr.bf16.mxu0 %v11577_v19  ;;  %3678 = vmatprep.subr.bf16.mxu1 %v11579_v20  ;;  %v11635_v19 = vcombine.high %v197_v15, %v201_v16  ;;  %v204_v20 = vld [vmem:[%s18182_s1 + $0x4d0] sm:$0xff] }
 0x130   :  { %v11640_v33 = vcombine.low %v204_v20, %v208_v23 }
 0x132   :  { %3515 = vmatpush1.bf16.msra.mxu0 %v11576_v27  ;;  %3679 = vmatpush1.bf16.msra.mxu1 %v11578_v28  ;;  %v11641_v27 = vcombine.high %v204_v20, %v208_v23  ;;  %v265_v20 = vld [vmem:[%s18182_s1 + $0x6b8] sm:$0xff] }
 0x133   :  { %3516 = vmatprep.subr.bf16.mxu0 %v11585_v29  ;;  %3680 = vmatprep.subr.bf16.mxu1 %v11587_v30  ;;  %v212_v29 = vld [vmem:[%s18182_s1 + $0x510] sm:$0xff] }
 0x134   :  { %v216_v30 = vld [vmem:[%s18182_s1 + $0x530] sm:$0xff] }
 0x135   :  { %v11649_v35 = vcombine.high %v212_v29, %v216_v30  ;;  %v11648_v42 = vcombine.low %v212_v29, %v216_v30  ;;  %v273_v29 = vld [vmem:[%s18182_s1 + $0x6f8] sm:$0xff] }
 0x136   :  { %3517 = vmatpush1.bf16.msra.mxu0 %v11584_v37  ;;  %3681 = vmatpush1.bf16.msra.mxu1 %v11586_v38  ;;  %v220_v38 = vld [vmem:[%s18182_s1 + $0x550] sm:$0xff] }
 0x137   :  { %3518 = vmatprep.subr.bf16.mxu0 %v11593_v39  ;;  %3682 = vmatprep.subr.bf16.mxu1 %v11595_v40  ;;  %v224_v39 = vld [vmem:[%s18182_s1 + $0x570] sm:$0xff]  ;;  %v221_v40 = vld [vmem:[%s18182_s1 + $0x558] sm:$0xff] }
 0x138   :  { %v11657_v44 = vcombine.high %v220_v38, %v224_v39  ;;  %v11656_v51 = vcombine.low %v220_v38, %v224_v39  ;;  %v11658_v52 = vcombine.low %v221_v40, %v225_v41  ;;  %v281_v38 = vld [vmem:[%s18182_s1 + $0x738] sm:$0xff] }
 0x13a   :  { %3519 = vmatpush1.bf16.msra.mxu0 %v11592_v45  ;;  %3683 = vmatpush1.bf16.msra.mxu1 %v11594_v47  ;;  %v11659_v45 = vcombine.high %v221_v40, %v225_v41  ;;  %v228_v47 = vld [vmem:[%s18182_s1 + $0x590] sm:$0xff] }
 0x13b   :  { %3520 = vmatprep.subr.bf16.mxu0 %v11601_v48  ;;  %3684 = vmatprep.subr.bf16.mxu1 %v11603_v49  ;;  %v232_v48 = vld [vmem:[%s18182_s1 + $0x5b0] sm:$0xff]  ;;  %v229_v49 = vld [vmem:[%s18182_s1 + $0x598] sm:$0xff] }
 0x13c   :  { %v11665_v53 = vcombine.high %v228_v47, %v232_v48  ;;  %v11664_v61 = vcombine.low %v228_v47, %v232_v48  ;;  %v11666_v62 = vcombine.low %v229_v49, %v233_v50  ;;  %v289_v47 = vld [vmem:[%s18182_s1 + $0x778] sm:$0xff] }
 0x13e   :  { %3521 = vmatpush1.bf16.msra.mxu0 %v11600_v55  ;;  %3685 = vmatpush1.bf16.msra.mxu1 %v11602_v56  ;;  %v11667_v55 = vcombine.high %v229_v49, %v233_v50  ;;  %v236_v56 = vld [vmem:[%s18182_s1 + $0x5d0] sm:$0xff] }
 0x13f   :  { %3522 = vmatprep.subr.bf16.mxu0 %v11609_v58  ;;  %3686 = vmatprep.subr.bf16.mxu1 %v11611_v59  ;;  %v240_v58 = vld [vmem:[%s18182_s1 + $0x5f0] sm:$0xff]  ;;  %v237_v59 = vld [vmem:[%s18182_s1 + $0x5d8] sm:$0xff] }
 0x140   :  { %v11673_v63 = vcombine.high %v236_v56, %v240_v58  ;;  %v11672_v5 = vcombine.low %v236_v56, %v240_v58  ;;  %v11674_v6 = vcombine.low %v237_v59, %v241_v60  ;;  %v297_v56 = vld [vmem:[%s18182_s1 + $0x7b8] sm:$0xff] }
 0x142   :  { %3523 = vmatpush1.bf16.msra.mxu0 %v11608_v0  ;;  %3687 = vmatpush1.bf16.msra.mxu1 %v11610_v1  ;;  %v11675_v0 = vcombine.high %v237_v59, %v241_v60  ;;  %v244_v1 = vld [vmem:[%s18182_s1 + $0x610] sm:$0xff] }
 0x143   :  { %3533 = vmatprep.subr.bf16.mxu0 %v11617_v2  ;;  %3697 = vmatprep.subr.bf16.mxu1 %v11619_v3  ;;  %v248_v2 = vld [vmem:[%s18182_s1 + $0x630] sm:$0xff]  ;;  %v245_v3 = vld [vmem:[%s18182_s1 + $0x618] sm:$0xff] }
 0x144   :  { %v11681_v7 = vcombine.high %v244_v1, %v248_v2  ;;  %v11680_v14 = vcombine.low %v244_v1, %v248_v2  ;;  %v11682_v15 = vcombine.low %v245_v3, %v249_v4  ;;  %v305_v1 = vld [vmem:[%s18182_s1 + $0x7f8] sm:$0xff] }
 0x145   :  { %3525 = vmatmul.mubr.bf16.vlgmr.msra.gmra.mrb[4].mxu0 %v13463_v12  ;;  %3689 = vmatmul.mubr.bf16.vlgmr.msra.gmra.mrb[4].mxu1 %v13463_v12  ;;  %v205_v12 = vld [vmem:[%s18182_s1 + $0x4d8] sm:$0xff] }
 0x146   :  { %3534 = vmatpush1.bf16.msra.mxu0 %v11616_v8  ;;  %3698 = vmatpush1.bf16.msra.mxu1 %v11618_v9  ;;  %v11643_v28 = vcombine.high %v205_v12, %v209_v24  ;;  %v11642_v34 = vcombine.low %v205_v12, %v209_v24  ;;  %v11683_v8 = vcombine.high %v245_v3, %v249_v4  ;;  %v252_v9 = vld [vmem:[%s18182_s1 + $0x650] sm:$0xff] }
 0x147   :  { %3535 = vmatprep.subr.bf16.mxu0 %v11625_v10  ;;  %3699 = vmatprep.subr.bf16.mxu1 %v11627_v11  ;;  %v256_v10 = vld [vmem:[%s18182_s1 + $0x670] sm:$0xff]  ;;  %v253_v11 = vld [vmem:[%s18182_s1 + $0x658] sm:$0xff] }
 0x148   :  { %3565 = vmatprep.mubr.bf16.mxu0 %v13480_v22  ;;  %3729 = vmatprep.mubr.bf16.mxu1 %v13480_v22  ;;  %v213_v22 = vld [vmem:[%s18182_s1 + $0x518] sm:$0xff]  ;;  %v11689_v16 = vcombine.high %v252_v9, %v256_v10  ;;  %v11688_v23 = vcombine.low %v252_v9, %v256_v10  ;;  %v11690_v12 = vcombine.low %v253_v11, %v257_v13 }
 0x149   :  { %v11651_v37 = vcombine.high %v213_v22, %v217_v31  ;;  %v11650_v43 = vcombine.low %v213_v22, %v217_v31  ;;  %v313_v9 = vld [vmem:[%s18182_s1 + $0x838] sm:$0xff] }
 0x14a   :  { %3536 = vmatpush1.bf16.msra.mxu0 %v11624_v57  ;;  %3700 = vmatpush1.bf16.msra.mxu1 %v11626_v17  ;;  %v11691_v57 = vcombine.high %v253_v11, %v257_v13  ;;  %v260_v17 = vld [vmem:[%s18182_s1 + $0x690] sm:$0xff] }
 0x14b   :  { %3537 = vmatprep.subr.bf16.mxu0 %v11633_v18  ;;  %3701 = vmatprep.subr.bf16.mxu1 %v11635_v19  ;;  %v264_v18 = vld [vmem:[%s18182_s1 + $0x6b0] sm:$0xff]  ;;  %v261_v19 = vld [vmem:[%s18182_s1 + $0x698] sm:$0xff] }
 0x14c   :  { %v11697_v24 = vcombine.high %v260_v17, %v264_v18  ;;  %v11696_v30 = vcombine.low %v260_v17, %v264_v18  ;;  %v11698_v22 = vcombine.low %v261_v19, %v265_v20  ;;  %v321_v17 = vld [vmem:[%s18182_s1 + $0x878] sm:$0xff] }
 0x14e   :  { %3538 = vmatpush1.bf16.msra.mxu0 %v11632_v25  ;;  %3702 = vmatpush1.bf16.msra.mxu1 %v11634_v26  ;;  %v11699_v25 = vcombine.high %v261_v19, %v265_v20  ;;  %v268_v26 = vld [vmem:[%s18182_s1 + $0x6d0] sm:$0xff] }
 0x14f   :  { %3539 = vmatprep.subr.bf16.mxu0 %v11641_v27  ;;  %3703 = vmatprep.subr.bf16.mxu1 %v11643_v28  ;;  %v272_v27 = vld [vmem:[%s18182_s1 + $0x6f0] sm:$0xff]  ;;  %v269_v28 = vld [vmem:[%s18182_s1 + $0x6d8] sm:$0xff] }
 0x150   :  { %v11705_v31 = vcombine.high %v268_v26, %v272_v27  ;;  %v11704_v39 = vcombine.low %v268_v26, %v272_v27  ;;  %v11706_v40 = vcombine.low %v269_v28, %v273_v29  ;;  %v329_v26 = vld [vmem:[%s18182_s1 + $0x8b8] sm:$0xff] }
 0x152   :  { %3540 = vmatpush1.bf16.msra.mxu0 %v11640_v33  ;;  %3704 = vmatpush1.bf16.msra.mxu1 %v11642_v34  ;;  %v11707_v33 = vcombine.high %v269_v28, %v273_v29  ;;  %v276_v34 = vld [vmem:[%s18182_s1 + $0x710] sm:$0xff] }
 0x153   :  { %3541 = vmatprep.subr.bf16.mxu0 %v11649_v35  ;;  %3705 = vmatprep.subr.bf16.mxu1 %v11651_v37  ;;  %v280_v35 = vld [vmem:[%s18182_s1 + $0x730] sm:$0xff]  ;;  %v277_v37 = vld [vmem:[%s18182_s1 + $0x718] sm:$0xff] }
 0x154   :  { %v11713_v41 = vcombine.high %v276_v34, %v280_v35  ;;  %v11712_v48 = vcombine.low %v276_v34, %v280_v35  ;;  %v11714_v49 = vcombine.low %v277_v37, %v281_v38 }
 0x156   :  { %3542 = vmatpush1.bf16.msra.mxu0 %v11648_v42  ;;  %3706 = vmatpush1.bf16.msra.mxu1 %v11650_v43  ;;  %v11715_v42 = vcombine.high %v277_v37, %v281_v38  ;;  %v284_v43 = vld [vmem:[%s18182_s1 + $0x750] sm:$0xff] }
 0x157   :  { %3543 = vmatprep.subr.bf16.mxu0 %v11657_v44  ;;  %3707 = vmatprep.subr.bf16.mxu1 %v11659_v45  ;;  %v288_v44 = vld [vmem:[%s18182_s1 + $0x770] sm:$0xff]  ;;  %v285_v45 = vld [vmem:[%s18182_s1 + $0x758] sm:$0xff] }
 0x158   :  { %v11721_v50 = vcombine.high %v284_v43, %v288_v44  ;;  %v11720_v58 = vcombine.low %v284_v43, %v288_v44  ;;  %v11722_v59 = vcombine.low %v285_v45, %v289_v47 }
 0x15a   :  { %3544 = vmatpush1.bf16.msra.mxu0 %v11656_v51  ;;  %3708 = vmatpush1.bf16.msra.mxu1 %v11658_v52  ;;  %v11723_v51 = vcombine.high %v285_v45, %v289_v47  ;;  %v292_v52 = vld [vmem:[%s18182_s1 + $0x790] sm:$0xff] }
 0x15b   :  { %3545 = vmatprep.subr.bf16.mxu0 %v11665_v53  ;;  %3709 = vmatprep.subr.bf16.mxu1 %v11667_v55  ;;  %v296_v53 = vld [vmem:[%s18182_s1 + $0x7b0] sm:$0xff]  ;;  %v293_v55 = vld [vmem:[%s18182_s1 + $0x798] sm:$0xff] }
 0x15c   :  { %v11729_v60 = vcombine.high %v292_v52, %v296_v53  ;;  %v11728_v2 = vcombine.low %v292_v52, %v296_v53  ;;  %v11730_v3 = vcombine.low %v293_v55, %v297_v56  ;;  %v348_v47 = vld [vmem:[%s18182_s1 + $0x950] sm:$0xff] }
 0x15e   :  { %3546 = vmatpush1.bf16.msra.mxu0 %v11664_v61  ;;  %3710 = vmatpush1.bf16.msra.mxu1 %v11666_v62  ;;  %v11731_v61 = vcombine.high %v293_v55, %v297_v56  ;;  %v300_v62 = vld [vmem:[%s18182_s1 + $0x7d0] sm:$0xff] }
 0x15f   :  { %3547 = vmatprep.subr.bf16.mxu0 %v11673_v63  ;;  %3711 = vmatprep.subr.bf16.mxu1 %v11675_v0  ;;  %v304_v63 = vld [vmem:[%s18182_s1 + $0x7f0] sm:$0xff]  ;;  %v301_v0 = vld [vmem:[%s18182_s1 + $0x7d8] sm:$0xff] }
 0x160   :  { %v11737_v4 = vcombine.high %v300_v62, %v304_v63  ;;  %v11736_v10 = vcombine.low %v300_v62, %v304_v63  ;;  %v11738_v11 = vcombine.low %v301_v0, %v305_v1  ;;  %v356_v56 = vld [vmem:[%s18182_s1 + $0x990] sm:$0xff] }
 0x162   :  { %3548 = vmatpush1.bf16.msra.mxu0 %v11672_v5  ;;  %3712 = vmatpush1.bf16.msra.mxu1 %v11674_v6  ;;  %v11739_v5 = vcombine.high %v301_v0, %v305_v1  ;;  %v308_v6 = vld [vmem:[%s18182_s1 + $0x810] sm:$0xff] }
 0x163   :  { %3549 = vmatprep.subr.bf16.mxu0 %v11681_v7  ;;  %3713 = vmatprep.subr.bf16.mxu1 %v11683_v8  ;;  %v312_v7 = vld [vmem:[%s18182_s1 + $0x830] sm:$0xff]  ;;  %v309_v8 = vld [vmem:[%s18182_s1 + $0x818] sm:$0xff] }
 0x164   :  { %v11745_v13 = vcombine.high %v308_v6, %v312_v7  ;;  %v11744_v18 = vcombine.low %v308_v6, %v312_v7  ;;  %v11746_v19 = vcombine.low %v309_v8, %v313_v9  ;;  %v364_v1 = vld [vmem:[%s18182_s1 + $0x9d0] sm:$0xff] }
 0x166   :  { %3550 = vmatpush1.bf16.msra.mxu0 %v11680_v14  ;;  %3714 = vmatpush1.bf16.msra.mxu1 %v11682_v15  ;;  %v11747_v14 = vcombine.high %v309_v8, %v313_v9  ;;  %v316_v15 = vld [vmem:[%s18182_s1 + $0x850] sm:$0xff] }
 0x167   :  { %3551 = vmatprep.subr.bf16.mxu0 %v11689_v16  ;;  %3715 = vmatprep.subr.bf16.mxu1 %v11691_v57  ;;  %v320_v16 = vld [vmem:[%s18182_s1 + $0x870] sm:$0xff]  ;;  %v317_v57 = vld [vmem:[%s18182_s1 + $0x858] sm:$0xff] }
 0x168   :  { %v11753_v20 = vcombine.high %v316_v15, %v320_v16  ;;  %v11752_v27 = vcombine.low %v316_v15, %v320_v16  ;;  %v11754_v28 = vcombine.low %v317_v57, %v321_v17  ;;  %v372_v9 = vld [vmem:[%s18182_s1 + $0xa10] sm:$0xff] }
 0x16a   :  { %3552 = vmatpush1.bf16.msra.mxu0 %v11688_v23  ;;  %3716 = vmatpush1.bf16.msra.mxu1 %v11690_v12  ;;  %v11755_v23 = vcombine.high %v317_v57, %v321_v17  ;;  %v324_v12 = vld [vmem:[%s18182_s1 + $0x890] sm:$0xff] }
 0x16b   :  { %3553 = vmatprep.subr.bf16.mxu0 %v11697_v24  ;;  %3717 = vmatprep.subr.bf16.mxu1 %v11699_v25  ;;  %v328_v24 = vld [vmem:[%s18182_s1 + $0x8b0] sm:$0xff]  ;;  %v325_v25 = vld [vmem:[%s18182_s1 + $0x898] sm:$0xff] }
 0x16c   :  { %v11761_v29 = vcombine.high %v324_v12, %v328_v24  ;;  %v11760_v34 = vcombine.low %v324_v12, %v328_v24  ;;  %v11762_v35 = vcombine.low %v325_v25, %v329_v26  ;;  %v380_v17 = vld [vmem:[%s18182_s1 + $0xa50] sm:$0xff] }
 0x16e   :  { %3554 = vmatpush1.bf16.msra.mxu0 %v11696_v30  ;;  %3718 = vmatpush1.bf16.msra.mxu1 %v11698_v22  ;;  %v11763_v30 = vcombine.high %v325_v25, %v329_v26  ;;  %v332_v22 = vld [vmem:[%s18182_s1 + $0x8d0] sm:$0xff] }
 0x16f   :  { %3555 = vmatprep.subr.bf16.mxu0 %v11705_v31  ;;  %3719 = vmatprep.subr.bf16.mxu1 %v11707_v33  ;;  %v336_v31 = vld [vmem:[%s18182_s1 + $0x8f0] sm:$0xff]  ;;  %v337_v33 = vld [vmem:[%s18182_s1 + $0x8f8] sm:$0xff] }
 0x170   :  { %v11769_v37 = vcombine.high %v332_v22, %v336_v31  ;;  %v388_v26 = vld [vmem:[%s18182_s1 + $0xa90] sm:$0xff] }
 0x172   :  { %3556 = vmatpush1.bf16.msra.mxu0 %v11704_v39  ;;  %3720 = vmatpush1.bf16.msra.mxu1 %v11706_v40  ;;  %v340_v39 = vld [vmem:[%s18182_s1 + $0x910] sm:$0xff] }
 0x173   :  { %3557 = vmatprep.subr.bf16.mxu0 %v11713_v41  ;;  %3721 = vmatprep.subr.bf16.mxu1 %v11715_v42  ;;  %v344_v40 = vld [vmem:[%s18182_s1 + $0x930] sm:$0xff]  ;;  %v345_v41 = vld [vmem:[%s18182_s1 + $0x938] sm:$0xff]  ;;  %v11768_v42 = vcombine.low %v332_v22, %v336_v31 }
 0x174   :  { %v11777_v44 = vcombine.high %v340_v39, %v344_v40 }
 0x176   :  { %3558 = vmatpush1.bf16.msra.mxu0 %v11712_v48  ;;  %3722 = vmatpush1.bf16.msra.mxu1 %v11714_v49  ;;  %v352_v48 = vld [vmem:[%s18182_s1 + $0x970] sm:$0xff]  ;;  %v349_v49 = vld [vmem:[%s18182_s1 + $0x958] sm:$0xff] }
 0x177   :  { %3559 = vmatprep.subr.bf16.mxu0 %v11721_v50  ;;  %3723 = vmatprep.subr.bf16.mxu1 %v11723_v51  ;;  %v353_v50 = vld [vmem:[%s18182_s1 + $0x978] sm:$0xff]  ;;  %v11776_v51 = vcombine.low %v340_v39, %v344_v40  ;;  %v11785_v53 = vcombine.high %v348_v47, %v352_v48 }
 0x178   :  { %v11787_v55 = vcombine.high %v349_v49, %v353_v50  ;;  %v11786_v62 = vcombine.low %v349_v49, %v353_v50  ;;  %v412_v50 = vld [vmem:[%s18182_s1 + $0xb50] sm:$0xff] }
 0x17a   :  { %3560 = vmatpush1.bf16.msra.mxu0 %v11720_v58  ;;  %3724 = vmatpush1.bf16.msra.mxu1 %v11722_v59  ;;  %v360_v58 = vld [vmem:[%s18182_s1 + $0x9b0] sm:$0xff]  ;;  %v357_v59 = vld [vmem:[%s18182_s1 + $0x998] sm:$0xff] }
 0x17b   :  { %3561 = vmatprep.subr.bf16.mxu0 %v11729_v60  ;;  %3725 = vmatprep.subr.bf16.mxu1 %v11731_v61  ;;  %v361_v60 = vld [vmem:[%s18182_s1 + $0x9b8] sm:$0xff]  ;;  %v11784_v61 = vcombine.low %v348_v47, %v352_v48  ;;  %v11793_v63 = vcombine.high %v356_v56, %v360_v58 }
 0x17c   :  { %v11795_v0 = vcombine.high %v357_v59, %v361_v60  ;;  %v11794_v6 = vcombine.low %v357_v59, %v361_v60  ;;  %v420_v60 = vld [vmem:[%s18182_s1 + $0xb90] sm:$0xff] }
 0x17e   :  { %3562 = vmatpush1.bf16.msra.mxu0 %v11728_v2  ;;  %3726 = vmatpush1.bf16.msra.mxu1 %v11730_v3  ;;  %v368_v2 = vld [vmem:[%s18182_s1 + $0x9f0] sm:$0xff]  ;;  %v365_v3 = vld [vmem:[%s18182_s1 + $0x9d8] sm:$0xff] }
 0x17f   :  { %3563 = vmatprep.subr.bf16.mxu0 %v11737_v4  ;;  %3727 = vmatprep.subr.bf16.mxu1 %v11739_v5  ;;  %v369_v4 = vld [vmem:[%s18182_s1 + $0x9f8] sm:$0xff]  ;;  %v11792_v5 = vcombine.low %v356_v56, %v360_v58  ;;  %v11801_v7 = vcombine.high %v364_v1, %v368_v2 }
 0x180   :  { %v11803_v8 = vcombine.high %v365_v3, %v369_v4  ;;  %v11802_v15 = vcombine.low %v365_v3, %v369_v4  ;;  %v428_v4 = vld [vmem:[%s18182_s1 + $0xbd0] sm:$0xff] }
 0x182   :  { %3564 = vmatpush1.bf16.msra.mxu0 %v11736_v10  ;;  %3728 = vmatpush1.bf16.msra.mxu1 %v11738_v11  ;;  %v376_v10 = vld [vmem:[%s18182_s1 + $0xa30] sm:$0xff]  ;;  %v373_v11 = vld [vmem:[%s18182_s1 + $0xa18] sm:$0xff] }
 0x183   :  { %3574 = vmatprep.subr.bf16.mxu0 %v11745_v13  ;;  %3738 = vmatprep.subr.bf16.mxu1 %v11747_v14  ;;  %v377_v13 = vld [vmem:[%s18182_s1 + $0xa38] sm:$0xff]  ;;  %v11800_v14 = vcombine.low %v364_v1, %v368_v2  ;;  %v11809_v16 = vcombine.high %v372_v9, %v376_v10 }
 0x184   :  { %v11811_v57 = vcombine.high %v373_v11, %v377_v13  ;;  %v11810_v12 = vcombine.low %v373_v11, %v377_v13  ;;  %v436_v13 = vld [vmem:[%s18182_s1 + $0xc10] sm:$0xff] }
 0x185   :  { %3566 = vmatmul.mubr.bf16.vlgmr.msra.gmra.mrb[4].mxu0 %v13669_v21  ;;  %3730 = vmatmul.mubr.bf16.vlgmr.msra.gmra.mrb[4].mxu1 %v13669_v21  ;;  %v333_v21 = vld [vmem:[%s18182_s1 + $0x8d8] sm:$0xff] }
 0x186   :  { %3575 = vmatpush1.bf16.msra.mxu0 %v11744_v18  ;;  %3739 = vmatpush1.bf16.msra.mxu1 %v11746_v19  ;;  %v11771_v38 = vcombine.high %v333_v21, %v337_v33  ;;  %v11770_v43 = vcombine.low %v333_v21, %v337_v33  ;;  %v384_v18 = vld [vmem:[%s18182_s1 + $0xa70] sm:$0xff]  ;;  %v381_v19 = vld [vmem:[%s18182_s1 + $0xa58] sm:$0xff] }
 0x187   :  { %3576 = vmatprep.subr.bf16.mxu0 %v11753_v20  ;;  %3740 = vmatprep.subr.bf16.mxu1 %v11755_v23  ;;  %v385_v20 = vld [vmem:[%s18182_s1 + $0xa78] sm:$0xff]  ;;  %v11808_v23 = vcombine.low %v372_v9, %v376_v10  ;;  %v11817_v24 = vcombine.high %v380_v17, %v384_v18  ;;  %v396_v33 = vld [vmem:[%s18182_s1 + $0xad0] sm:$0xff] }
 0x188   :  { %3606 = vmatprep.mubr.bf16.mxu0 %v13686_v32  ;;  %3770 = vmatprep.mubr.bf16.mxu1 %v13686_v32  ;;  %v341_v32 = vld [vmem:[%s18182_s1 + $0x918] sm:$0xff]  ;;  %v11819_v25 = vcombine.high %v381_v19, %v385_v20  ;;  %v11818_v22 = vcombine.low %v381_v19, %v385_v20  ;;  %v444_v20 = vld [vmem:[%s18182_s1 + $0xc50] sm:$0xff] }
 0x189   :  { %v11779_v45 = vcombine.high %v341_v32, %v345_v41  ;;  %v11778_v52 = vcombine.low %v341_v32, %v345_v41  ;;  %v404_v41 = vld [vmem:[%s18182_s1 + $0xb10] sm:$0xff] }
 0x18a   :  { %3577 = vmatpush1.bf16.msra.mxu0 %v11752_v27  ;;  %3741 = vmatpush1.bf16.msra.mxu1 %v11754_v28  ;;  %v392_v27 = vld [vmem:[%s18182_s1 + $0xab0] sm:$0xff]  ;;  %v389_v28 = vld [vmem:[%s18182_s1 + $0xa98] sm:$0xff] }
 0x18b   :  { %3578 = vmatprep.subr.bf16.mxu0 %v11761_v29  ;;  %3742 = vmatprep.subr.bf16.mxu1 %v11763_v30  ;;  %v393_v29 = vld [vmem:[%s18182_s1 + $0xab8] sm:$0xff]  ;;  %v11816_v30 = vcombine.low %v380_v17, %v384_v18  ;;  %v11825_v31 = vcombine.high %v388_v26, %v392_v27 }
 0x18c   :  { %v11827_v21 = vcombine.high %v389_v28, %v393_v29  ;;  %v11826_v39 = vcombine.low %v389_v28, %v393_v29  ;;  %v452_v29 = vld [vmem:[%s18182_s1 + $0xc90] sm:$0xff] }
 0x18e   :  { %3579 = vmatpush1.bf16.msra.mxu0 %v11760_v34  ;;  %3743 = vmatpush1.bf16.msra.mxu1 %v11762_v35  ;;  %v400_v34 = vld [vmem:[%s18182_s1 + $0xaf0] sm:$0xff]  ;;  %v397_v35 = vld [vmem:[%s18182_s1 + $0xad8] sm:$0xff] }
 0x18f   :  { %3580 = vmatprep.subr.bf16.mxu0 %v11769_v37  ;;  %3744 = vmatprep.subr.bf16.mxu1 %v11771_v38  ;;  %v401_v37 = vld [vmem:[%s18182_s1 + $0xaf8] sm:$0xff]  ;;  %v11824_v38 = vcombine.low %v388_v26, %v392_v27  ;;  %v11833_v40 = vcombine.high %v396_v33, %v400_v34 }
 0x190   :  { %v11835_v32 = vcombine.high %v397_v35, %v401_v37  ;;  %v11834_v47 = vcombine.low %v397_v35, %v401_v37  ;;  %v460_v37 = vld [vmem:[%s18182_s1 + $0xcd0] sm:$0xff] }
 0x192   :  { %3581 = vmatpush1.bf16.msra.mxu0 %v11768_v42  ;;  %3745 = vmatpush1.bf16.msra.mxu1 %v11770_v43  ;;  %v408_v42 = vld [vmem:[%s18182_s1 + $0xb30] sm:$0xff]  ;;  %v405_v43 = vld [vmem:[%s18182_s1 + $0xb18] sm:$0xff] }
 0x193   :  { %3582 = vmatprep.subr.bf16.mxu0 %v11777_v44  ;;  %3746 = vmatprep.subr.bf16.mxu1 %v11779_v45  ;;  %v409_v44 = vld [vmem:[%s18182_s1 + $0xb38] sm:$0xff]  ;;  %v11832_v45 = vcombine.low %v396_v33, %v400_v34  ;;  %v11841_v48 = vcombine.high %v404_v41, %v408_v42 }
 0x194   :  { %v11843_v49 = vcombine.high %v405_v43, %v409_v44  ;;  %v11842_v56 = vcombine.low %v405_v43, %v409_v44  ;;  %v468_v43 = vld [vmem:[%s18182_s1 + $0xd10] sm:$0xff] }
 0x195   :  { %v472_v44 = vld [vmem:[%s18182_s1 + $0xd30] sm:$0xff] }
 0x196   :  { %3583 = vmatpush1.bf16.msra.mxu0 %v11776_v51  ;;  %3747 = vmatpush1.bf16.msra.mxu1 %v11778_v52  ;;  %v416_v51 = vld [vmem:[%s18182_s1 + $0xb70] sm:$0xff]  ;;  %v413_v52 = vld [vmem:[%s18182_s1 + $0xb58] sm:$0xff] }
 0x197   :  { %3584 = vmatprep.subr.bf16.mxu0 %v11785_v53  ;;  %3748 = vmatprep.subr.bf16.mxu1 %v11787_v55  ;;  %v417_v53 = vld [vmem:[%s18182_s1 + $0xb78] sm:$0xff]  ;;  %v11840_v55 = vcombine.low %v404_v41, %v408_v42  ;;  %v11849_v58 = vcombine.high %v412_v50, %v416_v51 }
 0x198   :  { %v11851_v59 = vcombine.high %v413_v52, %v417_v53  ;;  %v11850_v1 = vcombine.low %v413_v52, %v417_v53  ;;  %v480_v52 = vld [vmem:[%s18182_s1 + $0xd70] sm:$0xff]  ;;  %v477_v53 = vld [vmem:[%s18182_s1 + $0xd58] sm:$0xff] }
 0x19a   :  { %3585 = vmatpush1.bf16.msra.mxu0 %v11784_v61  ;;  %3749 = vmatpush1.bf16.msra.mxu1 %v11786_v62  ;;  %v424_v61 = vld [vmem:[%s18182_s1 + $0xbb0] sm:$0xff]  ;;  %v421_v62 = vld [vmem:[%s18182_s1 + $0xb98] sm:$0xff] }
 0x19b   :  { %3586 = vmatprep.subr.bf16.mxu0 %v11793_v63  ;;  %3750 = vmatprep.subr.bf16.mxu1 %v11795_v0  ;;  %v425_v63 = vld [vmem:[%s18182_s1 + $0xbb8] sm:$0xff]  ;;  %v11848_v0 = vcombine.low %v412_v50, %v416_v51  ;;  %v11857_v2 = vcombine.high %v420_v60, %v424_v61  ;;  %v476_v51 = vld [vmem:[%s18182_s1 + $0xd50] sm:$0xff] }
 0x19c   :  { %v11859_v3 = vcombine.high %v421_v62, %v425_v63  ;;  %v11858_v9 = vcombine.low %v421_v62, %v425_v63  ;;  %v488_v62 = vld [vmem:[%s18182_s1 + $0xdb0] sm:$0xff]  ;;  %v485_v63 = vld [vmem:[%s18182_s1 + $0xd98] sm:$0xff] }
 0x19e   :  { %3587 = vmatpush1.bf16.msra.mxu0 %v11792_v5  ;;  %3751 = vmatpush1.bf16.msra.mxu1 %v11794_v6  ;;  %v432_v5 = vld [vmem:[%s18182_s1 + $0xbf0] sm:$0xff]  ;;  %v429_v6 = vld [vmem:[%s18182_s1 + $0xbd8] sm:$0xff] }
 0x19f   :  { %3588 = vmatprep.subr.bf16.mxu0 %v11801_v7  ;;  %3752 = vmatprep.subr.bf16.mxu1 %v11803_v8  ;;  %v433_v7 = vld [vmem:[%s18182_s1 + $0xbf8] sm:$0xff]  ;;  %v11856_v8 = vcombine.low %v420_v60, %v424_v61  ;;  %v11865_v10 = vcombine.high %v428_v4, %v432_v5  ;;  %v484_v61 = vld [vmem:[%s18182_s1 + $0xd90] sm:$0xff] }
 0x1a0   :  { %v11867_v11 = vcombine.high %v429_v6, %v433_v7  ;;  %v11866_v17 = vcombine.low %v429_v6, %v433_v7  ;;  %v492_v6 = vld [vmem:[%s18182_s1 + $0xdd0] sm:$0xff] }
 0x1a1   :  { %v496_v7 = vld [vmem:[%s18182_s1 + $0xdf0] sm:$0xff] }
 0x1a2   :  { %3589 = vmatpush1.bf16.msra.mxu0 %v11800_v14  ;;  %3753 = vmatpush1.bf16.msra.mxu1 %v11802_v15  ;;  %v440_v14 = vld [vmem:[%s18182_s1 + $0xc30] sm:$0xff]  ;;  %v437_v15 = vld [vmem:[%s18182_s1 + $0xc18] sm:$0xff] }
 0x1a3   :  { %3590 = vmatprep.subr.bf16.mxu0 %v11809_v16  ;;  %3754 = vmatprep.subr.bf16.mxu1 %v11811_v57  ;;  %v441_v16 = vld [vmem:[%s18182_s1 + $0xc38] sm:$0xff]  ;;  %v11864_v57 = vcombine.low %v428_v4, %v432_v5  ;;  %v11873_v18 = vcombine.high %v436_v13, %v440_v14 }
 0x1a4   :  { %v11875_v19 = vcombine.high %v437_v15, %v441_v16  ;;  %v11874_v26 = vcombine.low %v437_v15, %v441_v16  ;;  %v11920_v15 = vcombine.low %v484_v61, %v488_v62 }
 0x1a6   :  { %3591 = vmatpush1.bf16.msra.mxu0 %v11808_v23  ;;  %3755 = vmatpush1.bf16.msra.mxu1 %v11810_v12  ;;  %v448_v23 = vld [vmem:[%s18182_s1 + $0xc70] sm:$0xff]  ;;  %v445_v12 = vld [vmem:[%s18182_s1 + $0xc58] sm:$0xff] }
 0x1a7   :  { %3592 = vmatprep.subr.bf16.mxu0 %v11817_v24  ;;  %3756 = vmatprep.subr.bf16.mxu1 %v11819_v25  ;;  %v449_v24 = vld [vmem:[%s18182_s1 + $0xc78] sm:$0xff]  ;;  %v11872_v25 = vcombine.low %v436_v13, %v440_v14  ;;  %v11881_v27 = vcombine.high %v444_v20, %v448_v23 }
 0x1a8   :  { %v11883_v28 = vcombine.high %v445_v12, %v449_v24  ;;  %v11882_v33 = vcombine.low %v445_v12, %v449_v24  ;;  %v504_v12 = vld [vmem:[%s18182_s1 + $0xe30] sm:$0xff]  ;;  %v501_v24 = vld [vmem:[%s18182_s1 + $0xe18] sm:$0xff] }
 0x1aa   :  { %3593 = vmatpush1.bf16.msra.mxu0 %v11816_v30  ;;  %3757 = vmatpush1.bf16.msra.mxu1 %v11818_v22  ;;  %v456_v30 = vld [vmem:[%s18182_s1 + $0xcb0] sm:$0xff]  ;;  %v453_v22 = vld [vmem:[%s18182_s1 + $0xc98] sm:$0xff] }
 0x1ab   :  { %3594 = vmatprep.subr.bf16.mxu0 %v11825_v31  ;;  %3758 = vmatprep.subr.bf16.mxu1 %v11827_v21  ;;  %v457_v31 = vld [vmem:[%s18182_s1 + $0xcb8] sm:$0xff]  ;;  %v11880_v21 = vcombine.low %v444_v20, %v448_v23  ;;  %v11889_v34 = vcombine.high %v452_v29, %v456_v30  ;;  %v500_v23 = vld [vmem:[%s18182_s1 + $0xe10] sm:$0xff] }
 0x1ac   :  { %v11891_v35 = vcombine.high %v453_v22, %v457_v31 }
 0x1ae   :  { %3595 = vmatpush1.bf16.msra.mxu0 %v11824_v38  ;;  %3759 = vmatpush1.bf16.msra.mxu1 %v11826_v39  ;;  %v464_v38 = vld [vmem:[%s18182_s1 + $0xcf0] sm:$0xff]  ;;  %v465_v39 = vld [vmem:[%s18182_s1 + $0xcf8] sm:$0xff] }
 0x1af   :  { %3596 = vmatprep.subr.bf16.mxu0 %v11833_v40  ;;  %3760 = vmatprep.subr.bf16.mxu1 %v11835_v32  ;;  %v11888_v40 = vcombine.low %v452_v29, %v456_v30  ;;  %v11890_v32 = vcombine.low %v453_v22, %v457_v31  ;;  %v11897_v41 = vcombine.high %v460_v37, %v464_v38  ;;  %v508_v30 = vld [vmem:[%s18182_s1 + $0xe50] sm:$0xff]  ;;  %v509_v31 = vld [vmem:[%s18182_s1 + $0xe58] sm:$0xff] }
 0x1b0   :  { %v512_v22 = vld [vmem:[%s18182_s1 + $0xe70] sm:$0xff] }
 0x1b2   :  { %3597 = vmatpush1.bf16.msra.mxu0 %v11832_v45  ;;  %3761 = vmatpush1.bf16.msra.mxu1 %v11834_v47  ;;  %v473_v45 = vld [vmem:[%s18182_s1 + $0xd38] sm:$0xff]  ;;  %v11896_v47 = vcombine.low %v460_v37, %v464_v38  ;;  %v516_v38 = vld [vmem:[%s18182_s1 + $0xe90] sm:$0xff] }
 0x1b3   :  { %3598 = vmatprep.subr.bf16.mxu0 %v11841_v48  ;;  %3762 = vmatprep.subr.bf16.mxu1 %v11843_v49  ;;  %v11905_v49 = vcombine.high %v468_v43, %v472_v44 }
 0x1b6   :  { %3599 = vmatpush1.bf16.msra.mxu0 %v11840_v55  ;;  %3763 = vmatpush1.bf16.msra.mxu1 %v11842_v56  ;;  %v481_v55 = vld [vmem:[%s18182_s1 + $0xd78] sm:$0xff]  ;;  %v11904_v56 = vcombine.low %v468_v43, %v472_v44  ;;  %v524_v44 = vld [vmem:[%s18182_s1 + $0xed0] sm:$0xff] }
 0x1b7   :  { %3600 = vmatprep.subr.bf16.mxu0 %v11849_v58  ;;  %3764 = vmatprep.subr.bf16.mxu1 %v11851_v59  ;;  %v11913_v59 = vcombine.high %v476_v51, %v480_v52  ;;  %v11915_v60 = vcombine.high %v477_v53, %v481_v55 }
 0x1ba   :  { %3601 = vmatpush1.bf16.msra.mxu0 %v11848_v0  ;;  %3765 = vmatpush1.bf16.msra.mxu1 %v11850_v1  ;;  %v489_v0 = vld [vmem:[%s18182_s1 + $0xdb8] sm:$0xff]  ;;  %v11912_v1 = vcombine.low %v476_v51, %v480_v52  ;;  %v532_v52 = vld [vmem:[%s18182_s1 + $0xf10] sm:$0xff] }
 0x1bb   :  { %3602 = vmatprep.subr.bf16.mxu0 %v11857_v2  ;;  %3766 = vmatprep.subr.bf16.mxu1 %v11859_v3  ;;  %v11914_v2 = vcombine.low %v477_v53, %v481_v55  ;;  %v11921_v3 = vcombine.high %v484_v61, %v488_v62  ;;  %v11923_v5 = vcombine.high %v485_v63, %v489_v0  ;;  %v536_v53 = vld [vmem:[%s18182_s1 + $0xf30] sm:$0xff]  ;;  %v564_v55 = vlaneseq }
 0x1bc   :  { %v11969_v61 = vcombine.high %v532_v52, %v536_v53 }
 0x1be   :  { %3603 = vmatpush1.bf16.msra.mxu0 %v11856_v8  ;;  %3767 = vmatpush1.bf16.msra.mxu1 %v11858_v9 }
 0x1bf   :  { %3604 = vmatprep.subr.bf16.mxu0 %v11865_v10  ;;  %3768 = vmatprep.subr.bf16.mxu1 %v11867_v11  ;;  %v493_v10 = vld [vmem:[%s18182_s1 + $0xdd8] sm:$0xff] }
 0x1c0   :  { %v497_v11 = vld [vmem:[%s18182_s1 + $0xdf8] sm:$0xff] }
 0x1c1   :  { %v11931_v20 = vcombine.high %v493_v10, %v497_v11 }
 0x1c2   :  { %3605 = vmatpush1.bf16.msra.mxu0 %v11864_v57  ;;  %3769 = vmatpush1.bf16.msra.mxu1 %v11866_v17  ;;  %v11922_v17 = vcombine.low %v485_v63, %v489_v0  ;;  %v540_v63 = vld [vmem:[%s18182_s1 + $0xf50] sm:$0xff] }
 0x1c3   :  { %3615 = vmatprep.subr.bf16.mxu0 %v11873_v18  ;;  %3779 = vmatprep.subr.bf16.mxu1 %v11875_v19  ;;  %v11929_v18 = vcombine.high %v492_v6, %v496_v7  ;;  %v544_v0 = vld [vmem:[%s18182_s1 + $0xf70] sm:$0xff] }
 0x1c5   :  { %3607 = vmatmul.mubr.bf16.vlgmr.msra.gmra.mrb[4].mxu0 %v13875_v36  ;;  %3771 = vmatmul.mubr.bf16.vlgmr.msra.gmra.mrb[4].mxu1 %v13875_v36  ;;  %v461_v36 = vld [vmem:[%s18182_s1 + $0xcd8] sm:$0xff] }
 0x1c6   :  { %3616 = vmatpush1.bf16.msra.mxu0 %v11872_v25  ;;  %3780 = vmatpush1.bf16.msra.mxu1 %v11874_v26  ;;  %v11899_v42 = vcombine.high %v461_v36, %v465_v39  ;;  %v11898_v48 = vcombine.low %v461_v36, %v465_v39  ;;  %v505_v25 = vld [vmem:[%s18182_s1 + $0xe38] sm:$0xff]  ;;  %v11928_v26 = vcombine.low %v492_v6, %v496_v7  ;;  %v520_v36 = vld [vmem:[%s18182_s1 + $0xeb0] sm:$0xff] }
 0x1c7   :  { %3617 = vmatprep.subr.bf16.mxu0 %v11881_v27  ;;  %3781 = vmatprep.subr.bf16.mxu1 %v11883_v28  ;;  %v11930_v27 = vcombine.low %v493_v10, %v497_v11  ;;  %v11937_v28 = vcombine.high %v500_v23, %v504_v12  ;;  %v11939_v29 = vcombine.high %v501_v24, %v505_v25  ;;  %v517_v39 = vld [vmem:[%s18182_s1 + $0xe98] sm:$0xff]  ;;  %v548_v11 = vld [vmem:[%s18182_s1 + $0xf90] sm:$0xff] }
 0x1c8   :  { %3647 = vmatprep.mubr.bf16.mxu0 %v13892_v46  ;;  %3811 = vmatprep.mubr.bf16.mxu1 %v13892_v46  ;;  %v469_v46 = vld [vmem:[%s18182_s1 + $0xd18] sm:$0xff]  ;;  %v11977_v7 = vcombine.high %v540_v63, %v544_v0 }
 0x1c9   :  { %v11907_v50 = vcombine.high %v469_v46, %v473_v45  ;;  %v11906_v58 = vcombine.low %v469_v46, %v473_v45  ;;  %v528_v46 = vld [vmem:[%s18182_s1 + $0xef0] sm:$0xff]  ;;  %v525_v45 = vld [vmem:[%s18182_s1 + $0xed8] sm:$0xff] }
 0x1ca   :  { %3618 = vmatpush1.bf16.msra.mxu0 %v11880_v21  ;;  %3782 = vmatpush1.bf16.msra.mxu1 %v11882_v33  ;;  %v513_v21 = vld [vmem:[%s18182_s1 + $0xe78] sm:$0xff]  ;;  %v11936_v33 = vcombine.low %v500_v23, %v504_v12  ;;  %v556_v12 = vld [vmem:[%s18182_s1 + $0xfd0] sm:$0xff] }
 0x1cb   :  { %3619 = vmatprep.subr.bf16.mxu0 %v11889_v34  ;;  %3783 = vmatprep.subr.bf16.mxu1 %v11891_v35  ;;  %v11938_v34 = vcombine.low %v501_v24, %v505_v25  ;;  %v11945_v35 = vcombine.high %v508_v30, %v512_v22  ;;  %v11947_v37 = vcombine.high %v509_v31, %v513_v21  ;;  %v560_v24 = vld [vmem:[%s18182_s1 + $0xff0] sm:$0xff] }
 0x1ce   :  { %3620 = vmatpush1.bf16.msra.mxu0 %v11888_v40  ;;  %3784 = vmatpush1.bf16.msra.mxu1 %v11890_v32  ;;  %v521_v40 = vld [vmem:[%s18182_s1 + $0xeb8] sm:$0xff]  ;;  %v11944_v32 = vcombine.low %v508_v30, %v512_v22  ;;  %v11993_v30 = vcombine.high %v556_v12, %v560_v24 }
 0x1cf   :  { %3621 = vmatprep.subr.bf16.mxu0 %v11897_v41  ;;  %3785 = vmatprep.subr.bf16.mxu1 %v11899_v42  ;;  %v11946_v41 = vcombine.low %v509_v31, %v513_v21  ;;  %v11953_v42 = vcombine.high %v516_v38, %v520_v36  ;;  %v11955_v43 = vcombine.high %v517_v39, %v521_v40  ;;  %v3836_v31 = vld [vmem:[%s18185_s3] sm:$0xff] }
 0x1d0   :  { %v3840_v21 = vld [vmem:[%s18185_s3 + $0x20] sm:$0xff] }
 0x1d2   :  { %3622 = vmatpush1.bf16.msra.mxu0 %v11896_v47  ;;  %3786 = vmatpush1.bf16.msra.mxu1 %v11898_v48  ;;  %v529_v47 = vld [vmem:[%s18182_s1 + $0xef8] sm:$0xff]  ;;  %v11952_v48 = vcombine.low %v516_v38, %v520_v36  ;;  %v11997_v36 = vcombine.high %v3836_v31, %v3840_v21 }
 0x1d3   :  { %3623 = vmatprep.subr.bf16.mxu0 %v11905_v49  ;;  %3787 = vmatprep.subr.bf16.mxu1 %v11907_v50  ;;  %v11954_v49 = vcombine.low %v517_v39, %v521_v40  ;;  %v11961_v50 = vcombine.high %v524_v44, %v528_v46  ;;  %v11963_v51 = vcombine.high %v525_v45, %v529_v47 }
 0x1d6   :  { %3624 = vmatpush1.bf16.msra.mxu0 %v11904_v56  ;;  %3788 = vmatpush1.bf16.msra.mxu1 %v11906_v58  ;;  %v533_v56 = vld [vmem:[%s18182_s1 + $0xf18] sm:$0xff] }
 0x1d7   :  { %3625 = vmatprep.subr.bf16.mxu0 %v11913_v59  ;;  %3789 = vmatprep.subr.bf16.mxu1 %v11915_v60  ;;  %v537_v58 = vld [vmem:[%s18182_s1 + $0xf38] sm:$0xff]  ;;  %v11960_v59 = vcombine.low %v524_v44, %v528_v46  ;;  %v11962_v60 = vcombine.low %v525_v45, %v529_v47  ;;  %v3852_v45 = vld [vmem:[%s18185_s3 + $0x80] sm:$0xff] }
 0x1d8   :  { %v14741_v4 = vpop.f32.mrb[0].mxu0  ;;  %v14749_v8 = vpop.f32.mrb[0].mxu1  ;;  %v11971_v62 = vcombine.high %v533_v56, %v537_v58  ;;  %v11970_v6 = vcombine.low %v533_v56, %v537_v58  ;;  %v3856_v47 = vld [vmem:[%s18185_s3 + $0xa0] sm:$0xff] }
 0x1d9   :  { %v14751_v9 = vpop.f32.mrb[1].mxu0  ;;  %v14759_v13 = vpop.f32.mrb[1].mxu1  ;;  %v12013_v56 = vcombine.high %v3852_v45, %v3856_v47 }
 0x1da   :  { %v3325_v14 = vpop.f32.mrb[2].mxu0  ;;  %3626 = vmatpush1.bf16.msra.mxu0 %v11912_v1  ;;  %v3489_v16 = vpop.f32.mrb[2].mxu1  ;;  %3790 = vmatpush1.bf16.msra.mxu1 %v11914_v2  ;;  %v14828_v1 = vshrl.u32 %v564_v55, 7  ;;  %v541_v2 = vld [vmem:[%s18182_s1 + $0xf58] sm:$0xff] }
 0x1db   :  { %v3326_v57 = vpop.f32.mrb[3].mxu0  ;;  %3627 = vmatprep.subr.bf16.mxu0 %v11921_v3  ;;  %v3490_v19 = vpop.f32.mrb[3].mxu1  ;;  %3791 = vmatprep.subr.bf16.mxu1 %v11923_v5  ;;  %v545_v3 = vld [vmem:[%s18182_s1 + $0xf78] sm:$0xff]  ;;  %v11968_v5 = vcombine.low %v532_v52, %v536_v53  ;;  %v552_v14 = vld [vmem:[%s18182_s1 + $0xfb0] sm:$0xff] }
 0x1dc   :  { %v11979_v10 = vcombine.high %v541_v2, %v545_v3  ;;  %v549_v16 = vld [vmem:[%s18182_s1 + $0xf98] sm:$0xff]  ;;  %v11978_v19 = vcombine.low %v541_v2, %v545_v3  ;;  %v3868_v3 = vld [vmem:[%s18185_s3 + $0x100] sm:$0xff] }
 0x1dd   :  { %v553_v57 = vld [vmem:[%s18182_s1 + $0xfb8] sm:$0xff] }
 0x1de   :  { %3628 = vmatpush1.bf16.msra.mxu0 %v11920_v15  ;;  %3792 = vmatpush1.bf16.msra.mxu1 %v11922_v17  ;;  %v14843_v15 = vsub.s32 1, %v14828_v1  ;;  %v14854_v17 = vld [vmem:[%s18184_s2] sm:$0xff]  ;;  %v11987_v23 = vcombine.high %v549_v16, %v553_v57 }
 0x1df   :  { %3629 = vmatprep.subr.bf16.mxu0 %v11929_v18  ;;  %3793 = vmatprep.subr.bf16.mxu1 %v11931_v20  ;;  %v11976_v18 = vcombine.low %v540_v63, %v544_v0  ;;  %v11985_v20 = vcombine.high %v548_v11, %v552_v14 }
 0x1e0   :  { %v571_v25 = vrot.slane %v14854_v17, %v14843_v15 }
 0x1e2   :  { %3630 = vmatpush1.bf16.msra.mxu0 %v11928_v26  ;;  %3794 = vmatpush1.bf16.msra.mxu1 %v11930_v27  ;;  %v557_v26 = vld [vmem:[%s18182_s1 + $0xfd8] sm:$0xff] }
 0x1e3   :  { %3631 = vmatprep.subr.bf16.mxu0 %v11937_v28  ;;  %3795 = vmatprep.subr.bf16.mxu1 %v11939_v29  ;;  %v561_v27 = vld [vmem:[%s18182_s1 + $0xff8] sm:$0xff]  ;;  %v11984_v28 = vcombine.low %v548_v11, %v552_v14  ;;  %v11986_v29 = vcombine.low %v549_v16, %v553_v57  ;;  %v3876_v57 = vld [vmem:[%s18185_s3 + $0x140] sm:$0xff] }
 0x1e4   :  { %v11995_v22 = vcombine.high %v557_v26, %v561_v27  ;;  %v11994_v38 = vcombine.low %v557_v26, %v561_v27  ;;  %v3884_v26 = vld [vmem:[%s18185_s3 + $0x180] sm:$0xff] }
 0x1e5   :  { %v3888_v27 = vld [vmem:[%s18185_s3 + $0x1a0] sm:$0xff] }
 0x1e6   :  { %3632 = vmatpush1.bf16.msra.mxu0 %v11936_v33  ;;  %3796 = vmatpush1.bf16.msra.mxu1 %v11938_v34  ;;  %v13021_v33 = vadd.f32 %v14751_v9, %v571_v25  ;;  %v3837_v34 = vld [vmem:[%s18185_s3 + $0x8] sm:$0xff]  ;;  %v3844_v9 = vld [vmem:[%s18185_s3 + $0x40] sm:$0xff] }
 0x1e7   :  { %3633 = vmatprep.subr.bf16.mxu0 %v11945_v35  ;;  %3797 = vmatprep.subr.bf16.mxu1 %v11947_v37  ;;  %v3841_v35 = vld [vmem:[%s18185_s3 + $0x28] sm:$0xff]  ;;  %v11992_v37 = vcombine.low %v556_v12, %v560_v24 }
 0x1e8   :  { %v11999_v39 = vcombine.high %v3837_v34, %v3841_v35  ;;  %v3821_v40 = vmax.f32 %v13021_v33, 0.0  ;;  %v11998_v44 = vcombine.low %v3837_v34, %v3841_v35  ;;  %v3892_v33 = vld [vmem:[%s18185_s3 + $0x1c0] sm:$0xff]  ;;  %v3893_v35 = vld [vmem:[%s18185_s3 + $0x1c8] sm:$0xff] }
 0x1e9   :  { %v3896_v34 = vld [vmem:[%s18185_s3 + $0x1e0] sm:$0xff] }
 0x1ea   :  { %3634 = vmatpush1.bf16.msra.mxu0 %v11944_v32  ;;  %3798 = vmatpush1.bf16.msra.mxu1 %v11946_v41  ;;  %v3848_v32 = vld [vmem:[%s18185_s3 + $0x60] sm:$0xff]  ;;  %v11996_v41 = vcombine.low %v3836_v31, %v3840_v21  ;;  %v12045_v31 = vcombine.high %v3884_v26, %v3888_v27 }
 0x1eb   :  { %3635 = vmatprep.subr.bf16.mxu0 %v11953_v42  ;;  %3799 = vmatprep.subr.bf16.mxu1 %v11955_v43  ;;  %v3845_v42 = vld [vmem:[%s18185_s3 + $0x48] sm:$0xff]  ;;  %v12005_v46 = vcombine.high %v3844_v9, %v3848_v32  ;;  %v12004_v52 = vcombine.low %v3844_v9, %v3848_v32  ;;  %v3900_v9 = vld [vmem:[%s18185_s3 + $0x200] sm:$0xff] }
 0x1ec   :  { %v3849_v43 = vld [vmem:[%s18185_s3 + $0x68] sm:$0xff]  ;;  %v3904_v32 = vld [vmem:[%s18185_s3 + $0x220] sm:$0xff] }
 0x1ed   :  { %v12006_v53 = vcombine.low %v3845_v42, %v3849_v43 }
 0x1ee   :  { %3636 = vmatpush1.bf16.msra.mxu0 %v11952_v48  ;;  %3800 = vmatpush1.bf16.msra.mxu1 %v11954_v49  ;;  %v14901_v48 = vpack.c.bf16 %v3821_v40, %v3821_v40  ;;  %v12007_v49 = vcombine.high %v3845_v42, %v3849_v43  ;;  %v3905_v42 = vld [vmem:[%s18185_s3 + $0x228] sm:$0xff]  ;;  %v12052_v43 = vcombine.low %v3892_v33, %v3896_v34 }
 0x1ef   :  { %3637 = vmatprep.subr.bf16.mxu0 %v11961_v50  ;;  %3801 = vmatprep.subr.bf16.mxu1 %v11963_v51  ;;  %v3853_v50 = vld [vmem:[%s18185_s3 + $0x88] sm:$0xff] }
 0x1f0   :  { %v3857_v51 = vld [vmem:[%s18185_s3 + $0xa8] sm:$0xff] }
 0x1f1   :  { %v12015_v58 = vcombine.high %v3853_v50, %v3857_v51  ;;  %v12014_v63 = vcombine.low %v3853_v50, %v3857_v51  ;;  %v3909_v50 = vld [vmem:[%s18185_s3 + $0x248] sm:$0xff] }
 0x1f2   :  { %3638 = vmatpush1.bf16.msra.mxu0 %v11960_v59  ;;  %3802 = vmatpush1.bf16.msra.mxu1 %v11962_v60  ;;  %v3860_v59 = vld [vmem:[%s18185_s3 + $0xc0] sm:$0xff]  ;;  %v3913_v51 = vld [vmem:[%s18185_s3 + $0x268] sm:$0xff] }
 0x1f3   :  { %3639 = vmatprep.subr.bf16.mxu0 %v11969_v61  ;;  %3803 = vmatprep.subr.bf16.mxu1 %v11971_v62  ;;  %v3864_v60 = vld [vmem:[%s18185_s3 + $0xe0] sm:$0xff]  ;;  %v3865_v61 = vld [vmem:[%s18185_s3 + $0xe8] sm:$0xff]  ;;  %v12012_v62 = vcombine.low %v3852_v45, %v3856_v47 }
 0x1f4   :  { %v12021_v0 = vcombine.high %v3860_v59, %v3864_v60  ;;  %v3908_v47 = vld [vmem:[%s18185_s3 + $0x240] sm:$0xff] }
 0x1f6   :  { %3640 = vmatpush1.bf16.msra.mxu0 %v11968_v5  ;;  %3804 = vmatpush1.bf16.msra.mxu1 %v11970_v6  ;;  %v3872_v5 = vld [vmem:[%s18185_s3 + $0x120] sm:$0xff]  ;;  %v3869_v6 = vld [vmem:[%s18185_s3 + $0x108] sm:$0xff] }
 0x1f7   :  { %3641 = vmatprep.subr.bf16.mxu0 %v11977_v7  ;;  %3805 = vmatprep.subr.bf16.mxu1 %v11979_v10  ;;  %v3873_v7 = vld [vmem:[%s18185_s3 + $0x128] sm:$0xff]  ;;  %v12020_v10 = vcombine.low %v3860_v59, %v3864_v60  ;;  %v12029_v14 = vcombine.high %v3868_v3, %v3872_v5  ;;  %v3916_v59 = vld [vmem:[%s18185_s3 + $0x280] sm:$0xff] }
 0x1f8   :  { %v12031_v16 = vcombine.high %v3869_v6, %v3873_v7  ;;  %v12030_v12 = vcombine.low %v3869_v6, %v3873_v7  ;;  %v3920_v60 = vld [vmem:[%s18185_s3 + $0x2a0] sm:$0xff]  ;;  %v3925_v6 = vld [vmem:[%s18185_s3 + $0x2c8] sm:$0xff] }
 0x1f9   :  { %v3929_v7 = vld [vmem:[%s18185_s3 + $0x2e8] sm:$0xff] }
 0x1fa   :  { %3642 = vmatpush1.bf16.msra.mxu0 %v11976_v18  ;;  %3806 = vmatpush1.bf16.msra.mxu1 %v11978_v19  ;;  %v3880_v18 = vld [vmem:[%s18185_s3 + $0x160] sm:$0xff]  ;;  %v3877_v19 = vld [vmem:[%s18185_s3 + $0x148] sm:$0xff] }
 0x1fb   :  { %3643 = vmatprep.subr.bf16.mxu0 %v11985_v20  ;;  %3807 = vmatprep.subr.bf16.mxu1 %v11987_v23  ;;  %v3881_v20 = vld [vmem:[%s18185_s3 + $0x168] sm:$0xff]  ;;  %v12028_v23 = vcombine.low %v3868_v3, %v3872_v5  ;;  %v12037_v24 = vcombine.high %v3876_v57, %v3880_v18  ;;  %v3924_v3 = vld [vmem:[%s18185_s3 + $0x2c0] sm:$0xff] }
 0x1fc   :  { %v12039_v25 = vcombine.high %v3877_v19, %v3881_v20  ;;  %v3928_v5 = vld [vmem:[%s18185_s3 + $0x2e0] sm:$0xff] }
 0x1fe   :  { %3644 = vmatpush1.bf16.msra.mxu0 %v11984_v28  ;;  %3808 = vmatpush1.bf16.msra.mxu1 %v11986_v29  ;;  %v3885_v28 = vld [vmem:[%s18185_s3 + $0x188] sm:$0xff] }
 0x1ff   :  { %3645 = vmatprep.subr.bf16.mxu0 %v11993_v30  ;;  %3809 = vmatprep.subr.bf16.mxu1 %v11995_v22  ;;  %v3889_v29 = vld [vmem:[%s18185_s3 + $0x1a8] sm:$0xff]  ;;  %v12036_v30 = vcombine.low %v3876_v57, %v3880_v18  ;;  %v12038_v22 = vcombine.low %v3877_v19, %v3881_v20  ;;  %v3932_v57 = vld [vmem:[%s18185_s3 + $0x300] sm:$0xff] }
 0x200   :  { %v12047_v21 = vcombine.high %v3885_v28, %v3889_v29  ;;  %v3936_v18 = vld [vmem:[%s18185_s3 + $0x320] sm:$0xff]  ;;  %v3933_v19 = vld [vmem:[%s18185_s3 + $0x308] sm:$0xff] }
 0x201   :  { %v3937_v20 = vld [vmem:[%s18185_s3 + $0x328] sm:$0xff] }
 0x202   :  { %3646 = vmatpush1.bf16.msra.mxu0 %v11992_v37  ;;  %3810 = vmatpush1.bf16.msra.mxu1 %v11994_v38  ;;  %v3897_v37 = vld [vmem:[%s18185_s3 + $0x1e8] sm:$0xff]  ;;  %v12044_v38 = vcombine.low %v3884_v26, %v3888_v27  ;;  %v3940_v26 = vld [vmem:[%s18185_s3 + $0x340] sm:$0xff] }
 0x203   :  { %6950 = vmatprep.subr.bf16.mxu0 %v11997_v36  ;;  %7114 = vmatprep.subr.bf16.mxu1 %v11999_v39  ;;  %v12046_v36 = vcombine.low %v3885_v28, %v3889_v29  ;;  %v12053_v39 = vcombine.high %v3892_v33, %v3896_v34  ;;  %v12055_v40 = vcombine.high %v3893_v35, %v3897_v37  ;;  %v3944_v27 = vld [vmem:[%s18185_s3 + $0x360] sm:$0xff]  ;;  %v3941_v28 = vld [vmem:[%s18185_s3 + $0x348] sm:$0xff] }
 0x204   :  { %v3945_v29 = vld [vmem:[%s18185_s3 + $0x368] sm:$0xff]  ;;  %v3948_v34 = vld [vmem:[%s18185_s3 + $0x380] sm:$0xff] }
 0x205   :  { %3648 = vmatmul.mubr.bf16.vlgmr.msra.gmra.mrb[4].mxu0 %v14081_v54  ;;  %3812 = vmatmul.mubr.bf16.vlgmr.msra.gmra.mrb[4].mxu1 %v14081_v54  ;;  %v3861_v54 = vld [vmem:[%s18185_s3 + $0xc8] sm:$0xff]  ;;  %v12103_v33 = vcombine.high %v3941_v28, %v3945_v29 }
 0x206   :  { %6951 = vmatpush1.bf16.msra.mxu0 %v11996_v41  ;;  %6982 = vmatprep.mubr.bf16.mxu0 %v14901_v48  ;;  %v12023_v2 = vcombine.high %v3861_v54, %v3865_v61  ;;  %v12022_v11 = vcombine.low %v3861_v54, %v3865_v61  ;;  %v3901_v41 = vld [vmem:[%s18185_s3 + $0x208] sm:$0xff] }
 0x207   :  { %7115 = vmatpush1.bf16.msra.mxu1 %v11998_v44  ;;  %7146 = vmatprep.mubr.bf16.mxu1 %v14901_v48  ;;  %v12054_v44 = vcombine.low %v3893_v35, %v3897_v37  ;;  %v12063_v45 = vcombine.high %v3901_v41, %v3905_v42  ;;  %v3917_v54 = vld [vmem:[%s18185_s3 + $0x288] sm:$0xff]  ;;  %v3952_v35 = vld [vmem:[%s18185_s3 + $0x3a0] sm:$0xff]  ;;  %v15055_v37 = vsub.s32 3, %v14828_v1 }
 0x208   :  { %6952 = vmatprep.subr.bf16.mxu0 %v12005_v46  ;;  %7116 = vmatprep.subr.bf16.mxu1 %v12007_v49  ;;  %v12061_v46 = vcombine.high %v3900_v9, %v3904_v32  ;;  %v3912_v49 = vld [vmem:[%s18185_s3 + $0x260] sm:$0xff]  ;;  %v3921_v61 = vld [vmem:[%s18185_s3 + $0x2a8] sm:$0xff] }
 0x20a   :  { %6953 = vmatpush1.bf16.msra.mxu0 %v12004_v52  ;;  %v12060_v52 = vcombine.low %v3900_v9, %v3904_v32  ;;  %v12102_v9 = vcombine.low %v3941_v28, %v3945_v29  ;;  %v12109_v32 = vcombine.high %v3948_v34, %v3952_v35  ;;  %v3989_v28 = vld [vmem:[%s18185_s3 + $0x4c8] sm:$0xff] }
 0x20b   :  { %7117 = vmatpush1.bf16.msra.mxu1 %v12006_v53  ;;  %6954 = vmatprep.subr.bf16.mxu0 %v12013_v56  ;;  %v12062_v53 = vcombine.low %v3901_v41, %v3905_v42  ;;  %v12069_v56 = vcombine.high %v3908_v47, %v3912_v49  ;;  %v3956_v42 = vld [vmem:[%s18185_s3 + $0x3c0] sm:$0xff]  ;;  %v3993_v29 = vld [vmem:[%s18185_s3 + $0x4e8] sm:$0xff] }
 0x20c   :  { %7118 = vmatprep.subr.bf16.mxu1 %v12015_v58  ;;  %v12071_v58 = vcombine.high %v3909_v50, %v3913_v51 }
 0x20e   :  { %6955 = vmatpush1.bf16.msra.mxu0 %v12012_v62  ;;  %v12068_v62 = vcombine.low %v3908_v47, %v3912_v49  ;;  %v12108_v47 = vcombine.low %v3948_v34, %v3952_v35  ;;  %v3996_v34 = vld [vmem:[%s18185_s3 + $0x500] sm:$0xff] }
 0x20f   :  { %7119 = vmatpush1.bf16.msra.mxu1 %v12014_v63  ;;  %6956 = vmatprep.subr.bf16.mxu0 %v12021_v0  ;;  %v12070_v63 = vcombine.low %v3909_v50, %v3913_v51  ;;  %v12077_v0 = vcombine.high %v3916_v59, %v3920_v60  ;;  %v4000_v35 = vld [vmem:[%s18185_s3 + $0x520] sm:$0xff] }
 0x210   :  { %7120 = vmatprep.subr.bf16.mxu1 %v12023_v2  ;;  %v12079_v2 = vcombine.high %v3917_v54, %v3921_v61 }
 0x212   :  { %6957 = vmatpush1.bf16.msra.mxu0 %v12020_v10  ;;  %v12076_v10 = vcombine.low %v3916_v59, %v3920_v60  ;;  %v3969_v59 = vld [vmem:[%s18185_s3 + $0x428] sm:$0xff] }
 0x213   :  { %7121 = vmatpush1.bf16.msra.mxu1 %v12022_v11  ;;  %6958 = vmatprep.subr.bf16.mxu0 %v12029_v14  ;;  %v12078_v11 = vcombine.low %v3917_v54, %v3921_v61  ;;  %v12085_v14 = vcombine.high %v3924_v3, %v3928_v5 }
 0x214   :  { %7122 = vmatprep.subr.bf16.mxu1 %v12031_v16  ;;  %v12087_v16 = vcombine.high %v3925_v6, %v3929_v7 }
 0x216   :  { %6959 = vmatpush1.bf16.msra.mxu0 %v12028_v23  ;;  %v12084_v23 = vcombine.low %v3924_v3, %v3928_v5  ;;  %v3973_v5 = vld [vmem:[%s18185_s3 + $0x448] sm:$0xff] }
 0x217   :  { %7123 = vmatpush1.bf16.msra.mxu1 %v12030_v12  ;;  %6960 = vmatprep.subr.bf16.mxu0 %v12037_v24  ;;  %v12086_v12 = vcombine.low %v3925_v6, %v3929_v7  ;;  %v12093_v24 = vcombine.high %v3932_v57, %v3936_v18  ;;  %v3977_v6 = vld [vmem:[%s18185_s3 + $0x468] sm:$0xff] }
 0x218   :  { %7124 = vmatprep.subr.bf16.mxu1 %v12039_v25  ;;  %v12095_v25 = vcombine.high %v3933_v19, %v3937_v20 }
 0x21a   :  { %6961 = vmatpush1.bf16.msra.mxu0 %v12036_v30  ;;  %v12092_v30 = vcombine.low %v3932_v57, %v3936_v18  ;;  %v12135_v18 = vcombine.high %v3973_v5, %v3977_v6 }
 0x21b   :  { %7125 = vmatpush1.bf16.msra.mxu1 %v12038_v22  ;;  %6962 = vmatprep.subr.bf16.mxu0 %v12045_v31  ;;  %v15046_v22 = vsub.s32 0, %v14828_v1  ;;  %v12094_v31 = vcombine.low %v3933_v19, %v3937_v20  ;;  %v3981_v19 = vld [vmem:[%s18185_s3 + $0x488] sm:$0xff] }
 0x21c   :  { %7126 = vmatprep.subr.bf16.mxu1 %v12047_v21  ;;  %v12101_v21 = vcombine.high %v3940_v26, %v3944_v27  ;;  %v3985_v20 = vld [vmem:[%s18185_s3 + $0x4a8] sm:$0xff] }
 0x21e   :  { %6963 = vmatpush1.bf16.msra.mxu0 %v12044_v38  ;;  %v3949_v38 = vld [vmem:[%s18185_s3 + $0x388] sm:$0xff] }
 0x21f   :  { %7127 = vmatpush1.bf16.msra.mxu1 %v12046_v36  ;;  %6964 = vmatprep.subr.bf16.mxu0 %v12053_v39  ;;  %v3953_v36 = vld [vmem:[%s18185_s3 + $0x3a8] sm:$0xff]  ;;  %v12100_v39 = vcombine.low %v3940_v26, %v3944_v27  ;;  %v3988_v26 = vld [vmem:[%s18185_s3 + $0x4c0] sm:$0xff] }
 0x220   :  { %7128 = vmatprep.subr.bf16.mxu1 %v12055_v40  ;;  %v567_v40 = vrot.slane %v14854_v17, %v15046_v22  ;;  %v12111_v41 = vcombine.high %v3949_v38, %v3953_v36  ;;  %v12110_v50 = vcombine.low %v3949_v38, %v3953_v36  ;;  %v3992_v27 = vld [vmem:[%s18185_s3 + $0x4e0] sm:$0xff]  ;;  %v3997_v38 = vld [vmem:[%s18185_s3 + $0x508] sm:$0xff] }
 0x221   :  { %v4001_v36 = vld [vmem:[%s18185_s3 + $0x528] sm:$0xff] }
 0x222   :  { %6965 = vmatpush1.bf16.msra.mxu0 %v12052_v43  ;;  %v3960_v43 = vld [vmem:[%s18185_s3 + $0x3e0] sm:$0xff]  ;;  %v13020_v49 = vadd.f32 %v14741_v4, %v567_v40  ;;  %v3965_v4 = vld [vmem:[%s18185_s3 + $0x408] sm:$0xff]  ;;  %v12150_v40 = vcombine.low %v3989_v28, %v3993_v29 }
 0x223   :  { %7129 = vmatpush1.bf16.msra.mxu1 %v12054_v44  ;;  %6966 = vmatprep.subr.bf16.mxu0 %v12061_v46  ;;  %v579_v44 = vrot.slane %v14854_v17, %v15055_v37  ;;  %v3957_v46 = vld [vmem:[%s18185_s3 + $0x3c8] sm:$0xff]  ;;  %v12117_v51 = vcombine.high %v3956_v42, %v3960_v43  ;;  %v12116_v60 = vcombine.low %v3956_v42, %v3960_v43  ;;  %v4008_v42 = vld [vmem:[%s18185_s3 + $0x560] sm:$0xff] }
 0x224   :  { %7130 = vmatprep.subr.bf16.mxu1 %v12063_v45  ;;  %v3961_v45 = vld [vmem:[%s18185_s3 + $0x3e8] sm:$0xff]  ;;  %v3820_v54 = vmax.f32 %v13020_v49, 0.0 }
 0x225   :  { %v12118_v61 = vcombine.low %v3957_v46, %v3961_v45  ;;  %v4005_v43 = vld [vmem:[%s18185_s3 + $0x548] sm:$0xff] }
 0x226   :  { %6967 = vmatpush1.bf16.msra.mxu0 %v12060_v52  ;;  %v12119_v52 = vcombine.high %v3957_v46, %v3961_v45  ;;  %v15105_v7 = vpack.c.bf16 %v3820_v54, %v3820_v54  ;;  %v12156_v46 = vcombine.low %v3996_v34, %v4000_v35  ;;  %v12158_v45 = vcombine.low %v3997_v38, %v4001_v36  ;;  %v4024_v54 = vld [vmem:[%s18185_s3 + $0x5e0] sm:$0xff] }
 0x227   :  { %7131 = vmatpush1.bf16.msra.mxu1 %v12062_v53  ;;  %6968 = vmatprep.subr.bf16.mxu0 %v12069_v56  ;;  %v3964_v53 = vld [vmem:[%s18185_s3 + $0x400] sm:$0xff] }
 0x228   :  { %7132 = vmatprep.subr.bf16.mxu1 %v12071_v58  ;;  %v3968_v56 = vld [vmem:[%s18185_s3 + $0x420] sm:$0xff]  ;;  %v13023_v58 = vadd.f32 %v14759_v13, %v579_v44  ;;  %v4009_v44 = vld [vmem:[%s18185_s3 + $0x568] sm:$0xff] }
 0x229   :  { %v3972_v13 = vld [vmem:[%s18185_s3 + $0x440] sm:$0xff]  ;;  %v12124_v3 = vcombine.low %v3964_v53, %v3968_v56  ;;  %v12167_v49 = vcombine.high %v4005_v43, %v4009_v44 }
 0x22a   :  { %6969 = vmatpush1.bf16.msra.mxu0 %v12068_v62  ;;  %v12125_v62 = vcombine.high %v3964_v53, %v3968_v56  ;;  %v4017_v53 = vld [vmem:[%s18185_s3 + $0x5a8] sm:$0xff] }
 0x22b   :  { %7133 = vmatpush1.bf16.msra.mxu1 %v12070_v63  ;;  %6970 = vmatprep.subr.bf16.mxu0 %v12077_v0  ;;  %v12127_v63 = vcombine.high %v3965_v4, %v3969_v59  ;;  %v3823_v0 = vmax.f32 %v13023_v58, 0.0  ;;  %v12166_v58 = vcombine.low %v4005_v43, %v4009_v44  ;;  %v4060_v43 = vld [vmem:[%s18185_s3 + $0x700] sm:$0xff] }
 0x22c   :  { %7134 = vmatprep.subr.bf16.mxu1 %v12079_v2  ;;  %v3976_v2 = vld [vmem:[%s18185_s3 + $0x460] sm:$0xff] }
 0x22d   :  { %v15113_v57 = vpack.c.bf16 %v3823_v0, %v3823_v0  ;;  %v4064_v44 = vld [vmem:[%s18185_s3 + $0x720] sm:$0xff] }
 0x22e   :  { %6971 = vmatpush1.bf16.msra.mxu0 %v12076_v10  ;;  %v12126_v10 = vcombine.low %v3965_v4, %v3969_v59 }
 0x22f   :  { %7135 = vmatpush1.bf16.msra.mxu1 %v12078_v11  ;;  %6972 = vmatprep.subr.bf16.mxu0 %v12085_v14  ;;  %v12133_v11 = vcombine.high %v3972_v13, %v3976_v2  ;;  %v3980_v14 = vld [vmem:[%s18185_s3 + $0x480] sm:$0xff] }
 0x230   :  { %7136 = vmatprep.subr.bf16.mxu1 %v12087_v16  ;;  %v3984_v16 = vld [vmem:[%s18185_s3 + $0x4a0] sm:$0xff] }
 0x232   :  { %6973 = vmatpush1.bf16.msra.mxu0 %v12084_v23  ;;  %v12132_v23 = vcombine.low %v3972_v13, %v3976_v2 }
 0x233   :  { %7137 = vmatpush1.bf16.msra.mxu1 %v12086_v12  ;;  %6974 = vmatprep.subr.bf16.mxu0 %v12093_v24  ;;  %v12134_v12 = vcombine.low %v3973_v5, %v3977_v6  ;;  %v12141_v24 = vcombine.high %v3980_v14, %v3984_v16  ;;  %v4032_v5 = vld [vmem:[%s18185_s3 + $0x620] sm:$0xff]  ;;  %v4029_v6 = vld [vmem:[%s18185_s3 + $0x608] sm:$0xff] }
 0x234   :  { %7138 = vmatprep.subr.bf16.mxu1 %v12095_v25  ;;  %v12143_v25 = vcombine.high %v3981_v19, %v3985_v20 }
 0x236   :  { %6975 = vmatpush1.bf16.msra.mxu0 %v12092_v30  ;;  %v12140_v30 = vcombine.low %v3980_v14, %v3984_v16 }
 0x237   :  { %7139 = vmatpush1.bf16.msra.mxu1 %v12094_v31  ;;  %6976 = vmatprep.subr.bf16.mxu0 %v12101_v21  ;;  %v12142_v31 = vcombine.low %v3981_v19, %v3985_v20  ;;  %v12149_v21 = vcombine.high %v3988_v26, %v3992_v27  ;;  %v4036_v19 = vld [vmem:[%s18185_s3 + $0x640] sm:$0xff] }
 0x238   :  { %7140 = vmatprep.subr.bf16.mxu1 %v12103_v33  ;;  %v12151_v33 = vcombine.high %v3989_v28, %v3993_v29  ;;  %v4040_v20 = vld [vmem:[%s18185_s3 + $0x660] sm:$0xff] }
 0x239   :  { %v4044_v28 = vld [vmem:[%s18185_s3 + $0x680] sm:$0xff] }
 0x23a   :  { %6977 = vmatpush1.bf16.msra.mxu0 %v12100_v39  ;;  %v12148_v39 = vcombine.low %v3988_v26, %v3992_v27  ;;  %v12197_v26 = vcombine.high %v4036_v19, %v4040_v20  ;;  %v4048_v29 = vld [vmem:[%s18185_s3 + $0x6a0] sm:$0xff] }
 0x23b   :  { %7141 = vmatpush1.bf16.msra.mxu1 %v12102_v9  ;;  %6978 = vmatprep.subr.bf16.mxu0 %v12109_v32  ;;  %v12157_v9 = vcombine.high %v3996_v34, %v4000_v35  ;;  %v12159_v32 = vcombine.high %v3997_v38, %v4001_v36  ;;  %v12205_v34 = vcombine.high %v4044_v28, %v4048_v29  ;;  %v4052_v38 = vld [vmem:[%s18185_s3 + $0x6c0] sm:$0xff] }
 0x23c   :  { %7142 = vmatprep.subr.bf16.mxu1 %v12111_v41  ;;  %v4004_v41 = vld [vmem:[%s18185_s3 + $0x540] sm:$0xff] }
 0x23d   :  { %v12164_v56 = vcombine.low %v4004_v41, %v4008_v42  ;;  %v4056_v36 = vld [vmem:[%s18185_s3 + $0x6e0] sm:$0xff] }
 0x23e   :  { %6979 = vmatpush1.bf16.msra.mxu0 %v12108_v47  ;;  %v12165_v47 = vcombine.high %v4004_v41, %v4008_v42  ;;  %v12213_v41 = vcombine.high %v4052_v38, %v4056_v36 }
 0x23f   :  { %7143 = vmatpush1.bf16.msra.mxu1 %v12110_v50  ;;  %6980 = vmatprep.subr.bf16.mxu0 %v12117_v51  ;;  %v4012_v50 = vld [vmem:[%s18185_s3 + $0x580] sm:$0xff] }
 0x240   :  { %7144 = vmatprep.subr.bf16.mxu1 %v12119_v52  ;;  %v4016_v51 = vld [vmem:[%s18185_s3 + $0x5a0] sm:$0xff]  ;;  %v4013_v52 = vld [vmem:[%s18185_s3 + $0x588] sm:$0xff] }
 0x241   :  { %v12173_v4 = vcombine.high %v4012_v50, %v4016_v51  ;;  %v12175_v59 = vcombine.high %v4013_v52, %v4017_v53  ;;  %v12174_v0 = vcombine.low %v4013_v52, %v4017_v53  ;;  %v4068_v52 = vld [vmem:[%s18185_s3 + $0x740] sm:$0xff] }
 0x242   :  { %6981 = vmatpush1.bf16.msra.mxu0 %v12116_v60  ;;  %v4020_v60 = vld [vmem:[%s18185_s3 + $0x5c0] sm:$0xff] }
 0x243   :  { %7145 = vmatpush1.bf16.msra.mxu1 %v12118_v61  ;;  %6991 = vmatprep.subr.bf16.mxu0 %v12125_v62  ;;  %v4021_v61 = vld [vmem:[%s18185_s3 + $0x5c8] sm:$0xff]  ;;  %v12181_v13 = vcombine.high %v4020_v60, %v4024_v54  ;;  %v4072_v53 = vld [vmem:[%s18185_s3 + $0x760] sm:$0xff] }
 0x244   :  { %7155 = vmatprep.subr.bf16.mxu1 %v12127_v63  ;;  %v4025_v62 = vld [vmem:[%s18185_s3 + $0x5e8] sm:$0xff]  ;;  %v12172_v63 = vcombine.low %v4012_v50, %v4016_v51  ;;  %v12221_v50 = vcombine.high %v4060_v43, %v4064_v44 }
 0x245   :  { %6983 = vmatmul.mubr.bf16.vlgmr.msra.gmra.mrb[8].mxu0 %v15105_v7  ;;  %v12183_v2 = vcombine.high %v4021_v61, %v4025_v62  ;;  %v12182_v14 = vcombine.low %v4021_v61, %v4025_v62  ;;  %v4076_v62 = vld [vmem:[%s18185_s3 + $0x780] sm:$0xff] }
 0x246   :  { %7147 = vmatmul.mubr.bf16.vlgmr.msra.gmra.mrb[8].mxu1 %v15105_v7  ;;  %6992 = vmatpush1.bf16.msra.mxu0 %v12124_v3  ;;  %v4028_v3 = vld [vmem:[%s18185_s3 + $0x600] sm:$0xff] }
 0x247   :  { %7023 = vmatprep.mubr.bf16.mxu0 %v15113_v57  ;;  %7156 = vmatpush1.bf16.msra.mxu1 %v12126_v10  ;;  %v4033_v10 = vld [vmem:[%s18185_s3 + $0x628] sm:$0xff]  ;;  %v12189_v16 = vcombine.high %v4028_v3, %v4032_v5 }
 0x248   :  { %7187 = vmatprep.mubr.bf16.mxu1 %v15113_v57  ;;  %6993 = vmatprep.subr.bf16.mxu0 %v12133_v11  ;;  %v12180_v11 = vcombine.low %v4020_v60, %v4024_v54  ;;  %v12229_v54 = vcombine.high %v4068_v52, %v4072_v53 }
 0x249   :  { %7157 = vmatprep.subr.bf16.mxu1 %v12135_v18  ;;  %v12191_v18 = vcombine.high %v4029_v6, %v4033_v10 }
 0x24a   :  { %6994 = vmatpush1.bf16.msra.mxu0 %v12132_v23  ;;  %v4037_v23 = vld [vmem:[%s18185_s3 + $0x648] sm:$0xff] }
 0x24b   :  { %7158 = vmatpush1.bf16.msra.mxu1 %v12134_v12  ;;  %6995 = vmatprep.subr.bf16.mxu0 %v12141_v24  ;;  %v4041_v12 = vld [vmem:[%s18185_s3 + $0x668] sm:$0xff]  ;;  %v12188_v24 = vcombine.low %v4028_v3, %v4032_v5 }
 0x24c   :  { %7159 = vmatprep.subr.bf16.mxu1 %v12143_v25  ;;  %v12190_v25 = vcombine.low %v4029_v6, %v4033_v10  ;;  %v12199_v27 = vcombine.high %v4037_v23, %v4041_v12 }
 0x24e   :  { %6996 = vmatpush1.bf16.msra.mxu0 %v12140_v30  ;;  %v4045_v30 = vld [vmem:[%s18185_s3 + $0x688] sm:$0xff] }
 0x24f   :  { %7160 = vmatpush1.bf16.msra.mxu1 %v12142_v31  ;;  %6997 = vmatprep.subr.bf16.mxu0 %v12149_v21  ;;  %v4049_v31 = vld [vmem:[%s18185_s3 + $0x6a8] sm:$0xff]  ;;  %v12196_v21 = vcombine.low %v4036_v19, %v4040_v20 }
 0x250   :  { %7161 = vmatprep.subr.bf16.mxu1 %v12151_v33  ;;  %v12198_v33 = vcombine.low %v4037_v23, %v4041_v12  ;;  %v12207_v35 = vcombine.high %v4045_v30, %v4049_v31 }
 0x252   :  { %6998 = vmatpush1.bf16.msra.mxu0 %v12148_v39  ;;  %v4053_v39 = vld [vmem:[%s18185_s3 + $0x6c8] sm:$0xff] }
 0x253   :  { %7162 = vmatpush1.bf16.msra.mxu1 %v12150_v40  ;;  %6999 = vmatprep.subr.bf16.mxu0 %v12157_v9  ;;  %v4057_v40 = vld [vmem:[%s18185_s3 + $0x6e8] sm:$0xff]  ;;  %v12204_v9 = vcombine.low %v4044_v28, %v4048_v29 }
 0x254   :  { %7163 = vmatprep.subr.bf16.mxu1 %v12159_v32  ;;  %v12206_v32 = vcombine.low %v4045_v30, %v4049_v31  ;;  %v12215_v42 = vcombine.high %v4053_v39, %v4057_v40 }
 0x256   :  { %7000 = vmatpush1.bf16.msra.mxu0 %v12156_v46  ;;  %v4061_v46 = vld [vmem:[%s18185_s3 + $0x708] sm:$0xff] }
 0x257   :  { %7164 = vmatpush1.bf16.msra.mxu1 %v12158_v45  ;;  %7001 = vmatprep.subr.bf16.mxu0 %v12165_v47  ;;  %v4065_v45 = vld [vmem:[%s18185_s3 + $0x728] sm:$0xff]  ;;  %v12212_v47 = vcombine.low %v4052_v38, %v4056_v36 }
 0x258   :  { %7165 = vmatprep.subr.bf16.mxu1 %v12167_v49  ;;  %v12214_v49 = vcombine.low %v4053_v39, %v4057_v40  ;;  %v12223_v51 = vcombine.high %v4061_v46, %v4065_v45  ;;  %v12222_v60 = vcombine.low %v4061_v46, %v4065_v45 }
 0x25a   :  { %7002 = vmatpush1.bf16.msra.mxu0 %v12164_v56  ;;  %v4069_v56 = vld [vmem:[%s18185_s3 + $0x748] sm:$0xff] }
 0x25b   :  { %7166 = vmatpush1.bf16.msra.mxu1 %v12166_v58  ;;  %7003 = vmatprep.subr.bf16.mxu0 %v12173_v4  ;;  %v4073_v58 = vld [vmem:[%s18185_s3 + $0x768] sm:$0xff]  ;;  %v12220_v4 = vcombine.low %v4060_v43, %v4064_v44 }
 0x25c   :  { %7167 = vmatprep.subr.bf16.mxu1 %v12175_v59  ;;  %v15258_v59 = vsub.s32 2, %v14828_v1  ;;  %v12231_v61 = vcombine.high %v4069_v56, %v4073_v58  ;;  %v12230_v5 = vcombine.low %v4069_v56, %v4073_v58  ;;  %v4113_v43 = vld [vmem:[%s18185_s3 + $0x8a8] sm:$0xff] }
 0x25e   :  { %7004 = vmatpush1.bf16.msra.mxu0 %v12172_v63  ;;  %v4080_v63 = vld [vmem:[%s18185_s3 + $0x7a0] sm:$0xff]  ;;  %v575_v3 = vrot.slane %v14854_v17, %v15258_v59  ;;  %v4089_v17 = vld [vmem:[%s18185_s3 + $0x7e8] sm:$0xff] }
 0x25f   :  { %7168 = vmatpush1.bf16.msra.mxu1 %v12174_v0  ;;  %7005 = vmatprep.subr.bf16.mxu0 %v12181_v13  ;;  %v4077_v0 = vld [vmem:[%s18185_s3 + $0x788] sm:$0xff]  ;;  %v12237_v6 = vcombine.high %v4076_v62, %v4080_v63 }
 0x260   :  { %7169 = vmatprep.subr.bf16.mxu1 %v12183_v2  ;;  %v4081_v13 = vld [vmem:[%s18185_s3 + $0x7a8] sm:$0xff]  ;;  %v12228_v2 = vcombine.low %v4068_v52, %v4072_v53  ;;  %v13022_v19 = vadd.f32 %v14749_v8, %v575_v3  ;;  %v4132_v3 = vld [vmem:[%s18185_s3 + $0x940] sm:$0xff] }
 0x261   :  { %v12239_v10 = vcombine.high %v4077_v0, %v4081_v13  ;;  %v12238_v20 = vcombine.low %v4077_v0, %v4081_v13  ;;  %v4097_v8 = vld [vmem:[%s18185_s3 + $0x828] sm:$0xff] }
 0x262   :  { %7006 = vmatpush1.bf16.msra.mxu0 %v12180_v11  ;;  %v4084_v11 = vld [vmem:[%s18185_s3 + $0x7c0] sm:$0xff]  ;;  %v3822_v28 = vmax.f32 %v13022_v19, 0.0  ;;  %v4121_v52 = vld [vmem:[%s18185_s3 + $0x8e8] sm:$0xff] }
 0x263   :  { %7170 = vmatpush1.bf16.msra.mxu1 %v12182_v14  ;;  %7007 = vmatprep.subr.bf16.mxu0 %v12189_v16  ;;  %v4088_v14 = vld [vmem:[%s18185_s3 + $0x7e0] sm:$0xff]  ;;  %v4085_v16 = vld [vmem:[%s18185_s3 + $0x7c8] sm:$0xff] }
 0x264   :  { %7171 = vmatprep.subr.bf16.mxu1 %v12191_v18  ;;  %v12236_v18 = vcombine.low %v4076_v62, %v4080_v63  ;;  %v12245_v23 = vcombine.high %v4084_v11, %v4088_v14  ;;  %v12247_v12 = vcombine.high %v4085_v16, %v4089_v17  ;;  %v12246_v29 = vcombine.low %v4085_v16, %v4089_v17  ;;  %v4129_v62 = vld [vmem:[%s18185_s3 + $0x928] sm:$0xff]  ;;  %v4144_v19 = vld [vmem:[%s18185_s3 + $0x9a0] sm:$0xff] }
 0x265   :  { %v15311_v36 = vpack.c.bf16 %v3822_v28, %v3822_v28  ;;  %v4149_v28 = vld [vmem:[%s18185_s3 + $0x9c8] sm:$0xff] }
 0x266   :  { %7008 = vmatpush1.bf16.msra.mxu0 %v12188_v24  ;;  %v4092_v24 = vld [vmem:[%s18185_s3 + $0x800] sm:$0xff] }
 0x267   :  { %7172 = vmatpush1.bf16.msra.mxu1 %v12190_v25  ;;  %7009 = vmatprep.subr.bf16.mxu0 %v12197_v26  ;;  %v4096_v25 = vld [vmem:[%s18185_s3 + $0x820] sm:$0xff]  ;;  %v4093_v26 = vld [vmem:[%s18185_s3 + $0x808] sm:$0xff] }
 0x268   :  { %7173 = vmatprep.subr.bf16.mxu1 %v12199_v27  ;;  %v12244_v27 = vcombine.low %v4084_v11, %v4088_v14  ;;  %v12253_v30 = vcombine.high %v4092_v24, %v4096_v25  ;;  %v12255_v31 = vcombine.high %v4093_v26, %v4097_v8  ;;  %v12252_v38 = vcombine.low %v4092_v24, %v4096_v25 }
 0x269   :  { %v12254_v39 = vcombine.low %v4093_v26, %v4097_v8  ;;  %v4148_v8 = vld [vmem:[%s18185_s3 + $0x9c0] sm:$0xff] }
 0x26a   :  { %7010 = vmatpush1.bf16.msra.mxu0 %v12196_v21  ;;  %v4100_v21 = vld [vmem:[%s18185_s3 + $0x840] sm:$0xff] }
 0x26b   :  { %7174 = vmatpush1.bf16.msra.mxu1 %v12198_v33  ;;  %7011 = vmatprep.subr.bf16.mxu0 %v12205_v34  ;;  %v4104_v33 = vld [vmem:[%s18185_s3 + $0x860] sm:$0xff]  ;;  %v4101_v34 = vld [vmem:[%s18185_s3 + $0x848] sm:$0xff] }
 0x26c   :  { %7175 = vmatprep.subr.bf16.mxu1 %v12207_v35  ;;  %v4105_v35 = vld [vmem:[%s18185_s3 + $0x868] sm:$0xff]  ;;  %v12261_v40 = vcombine.high %v4100_v21, %v4104_v33  ;;  %v12260_v44 = vcombine.low %v4100_v21, %v4104_v33 }
 0x26d   :  { %v12262_v46 = vcombine.low %v4101_v34, %v4105_v35 }
 0x26e   :  { %7012 = vmatpush1.bf16.msra.mxu0 %v12204_v9  ;;  %v12263_v9 = vcombine.high %v4101_v34, %v4105_v35  ;;  %v4156_v34 = vld [vmem:[%s18185_s3 + $0xa00] sm:$0xff] }
 0x26f   :  { %7176 = vmatpush1.bf16.msra.mxu1 %v12206_v32  ;;  %7013 = vmatprep.subr.bf16.mxu0 %v12213_v41  ;;  %v4108_v32 = vld [vmem:[%s18185_s3 + $0x880] sm:$0xff] }
 0x270   :  { %7177 = vmatprep.subr.bf16.mxu1 %v12215_v42  ;;  %v4112_v41 = vld [vmem:[%s18185_s3 + $0x8a0] sm:$0xff]  ;;  %v4109_v42 = vld [vmem:[%s18185_s3 + $0x888] sm:$0xff] }
 0x271   :  { %v12269_v45 = vcombine.high %v4108_v32, %v4112_v41  ;;  %v12268_v53 = vcombine.low %v4108_v32, %v4112_v41  ;;  %v12270_v56 = vcombine.low %v4109_v42, %v4113_v43  ;;  %v4160_v35 = vld [vmem:[%s18185_s3 + $0xa20] sm:$0xff] }
 0x272   :  { %7014 = vmatpush1.bf16.msra.mxu0 %v12212_v47  ;;  %v12271_v47 = vcombine.high %v4109_v42, %v4113_v43  ;;  %v12317_v32 = vcombine.high %v4156_v34, %v4160_v35  ;;  %v4164_v42 = vld [vmem:[%s18185_s3 + $0xa40] sm:$0xff] }
 0x273   :  { %7178 = vmatpush1.bf16.msra.mxu1 %v12214_v49  ;;  %7015 = vmatprep.subr.bf16.mxu0 %v12221_v50  ;;  %v4116_v49 = vld [vmem:[%s18185_s3 + $0x8c0] sm:$0xff] }
 0x274   :  { %7179 = vmatprep.subr.bf16.mxu1 %v12223_v51  ;;  %v4120_v50 = vld [vmem:[%s18185_s3 + $0x8e0] sm:$0xff]  ;;  %v4117_v51 = vld [vmem:[%s18185_s3 + $0x8c8] sm:$0xff] }
 0x275   :  { %v12277_v58 = vcombine.high %v4116_v49, %v4120_v50  ;;  %v12276_v63 = vcombine.low %v4116_v49, %v4120_v50  ;;  %v12278_v0 = vcombine.low %v4117_v51, %v4121_v52  ;;  %v4168_v43 = vld [vmem:[%s18185_s3 + $0xa60] sm:$0xff] }
 0x276   :  { %7016 = vmatpush1.bf16.msra.mxu0 %v12220_v4  ;;  %v12279_v4 = vcombine.high %v4117_v51, %v4121_v52  ;;  %v12325_v49 = vcombine.high %v4164_v42, %v4168_v43  ;;  %v4172_v51 = vld [vmem:[%s18185_s3 + $0xa80] sm:$0xff] }
 0x277   :  { %7180 = vmatpush1.bf16.msra.mxu1 %v12222_v60  ;;  %7017 = vmatprep.subr.bf16.mxu0 %v12229_v54  ;;  %v4124_v60 = vld [vmem:[%s18185_s3 + $0x900] sm:$0xff] }
 0x278   :  { %7181 = vmatprep.subr.bf16.mxu1 %v12231_v61  ;;  %v4128_v54 = vld [vmem:[%s18185_s3 + $0x920] sm:$0xff]  ;;  %v4125_v61 = vld [vmem:[%s18185_s3 + $0x908] sm:$0xff] }
 0x279   :  { %v12285_v13 = vcombine.high %v4124_v60, %v4128_v54  ;;  %v12284_v11 = vcombine.low %v4124_v60, %v4128_v54  ;;  %v12286_v14 = vcombine.low %v4125_v61, %v4129_v62  ;;  %v4176_v52 = vld [vmem:[%s18185_s3 + $0xaa0] sm:$0xff] }
 0x27a   :  { %7018 = vmatpush1.bf16.msra.mxu0 %v12228_v2  ;;  %v12287_v2 = vcombine.high %v4125_v61, %v4129_v62  ;;  %v12333_v60 = vcombine.high %v4172_v51, %v4176_v52  ;;  %v4180_v61 = vld [vmem:[%s18185_s3 + $0xac0] sm:$0xff] }
 0x27b   :  { %7182 = vmatpush1.bf16.msra.mxu1 %v12230_v5  ;;  %7019 = vmatprep.subr.bf16.mxu0 %v12237_v6  ;;  %v4136_v5 = vld [vmem:[%s18185_s3 + $0x960] sm:$0xff]  ;;  %v4133_v6 = vld [vmem:[%s18185_s3 + $0x948] sm:$0xff] }
 0x27c   :  { %7183 = vmatprep.subr.bf16.mxu1 %v12239_v10  ;;  %v4137_v10 = vld [vmem:[%s18185_s3 + $0x968] sm:$0xff]  ;;  %v12293_v16 = vcombine.high %v4132_v3, %v4136_v5  ;;  %v4184_v62 = vld [vmem:[%s18185_s3 + $0xae0] sm:$0xff] }
 0x27d   :  { %v12295_v17 = vcombine.high %v4133_v6, %v4137_v10  ;;  %v12294_v24 = vcombine.low %v4133_v6, %v4137_v10  ;;  %v4188_v6 = vld [vmem:[%s18185_s3 + $0xb00] sm:$0xff] }
 0x27e   :  { %7020 = vmatpush1.bf16.msra.mxu0 %v12236_v18  ;;  %v4140_v18 = vld [vmem:[%s18185_s3 + $0x980] sm:$0xff] }
 0x27f   :  { %7184 = vmatpush1.bf16.msra.mxu1 %v12238_v20  ;;  %7021 = vmatprep.subr.bf16.mxu0 %v12245_v23  ;;  %v4141_v20 = vld [vmem:[%s18185_s3 + $0x988] sm:$0xff]  ;;  %v12301_v25 = vcombine.high %v4140_v18, %v4144_v19  ;;  %v4192_v10 = vld [vmem:[%s18185_s3 + $0xb20] sm:$0xff] }
 0x280   :  { %7185 = vmatprep.subr.bf16.mxu1 %v12247_v12  ;;  %v4145_v23 = vld [vmem:[%s18185_s3 + $0x9a8] sm:$0xff]  ;;  %v12292_v12 = vcombine.low %v4132_v3, %v4136_v5  ;;  %v12341_v3 = vcombine.high %v4180_v61, %v4184_v62 }
 0x281   :  { %v12303_v26 = vcombine.high %v4141_v20, %v4145_v23 }
 0x282   :  { %7022 = vmatpush1.bf16.msra.mxu0 %v12244_v27  ;;  %v4152_v27 = vld [vmem:[%s18185_s3 + $0x9e0] sm:$0xff] }
 0x283   :  { %7186 = vmatpush1.bf16.msra.mxu1 %v12246_v29  ;;  %7032 = vmatprep.subr.bf16.mxu0 %v12253_v30  ;;  %v4153_v29 = vld [vmem:[%s18185_s3 + $0x9e8] sm:$0xff]  ;;  %v12300_v30 = vcombine.low %v4140_v18, %v4144_v19  ;;  %v12309_v21 = vcombine.high %v4148_v8, %v4152_v27  ;;  %v12349_v18 = vcombine.high %v4188_v6, %v4192_v10 }
 0x284   :  { %7196 = vmatprep.subr.bf16.mxu1 %v12255_v31  ;;  %v12302_v31 = vcombine.low %v4141_v20, %v4145_v23  ;;  %v12311_v33 = vcombine.high %v4149_v28, %v4153_v29  ;;  %v4196_v20 = vld [vmem:[%s18185_s3 + $0xb40] sm:$0xff] }
 0x285   :  { %7024 = vmatmul.mubr.bf16.vlgmr.msra.gmra.mrb[8].mxu0 %v15311_v36  ;;  %v4200_v23 = vld [vmem:[%s18185_s3 + $0xb60] sm:$0xff] }
 0x286   :  { %7188 = vmatmul.mubr.bf16.vlgmr.msra.gmra.mrb[8].mxu1 %v15311_v36  ;;  %7033 = vmatpush1.bf16.msra.mxu0 %v12252_v38  ;;  %v4157_v38 = vld [vmem:[%s18185_s3 + $0xa08] sm:$0xff] }
 0x287   :  { %7197 = vmatpush1.bf16.msra.mxu1 %v12254_v39  ;;  %7034 = vmatprep.subr.bf16.mxu0 %v12261_v40  ;;  %v4161_v39 = vld [vmem:[%s18185_s3 + $0xa28] sm:$0xff]  ;;  %v12308_v40 = vcombine.low %v4148_v8, %v4152_v27  ;;  %v12357_v8 = vcombine.high %v4196_v20, %v4200_v23 }
 0x288   :  { %7198 = vmatprep.subr.bf16.mxu1 %v12263_v9  ;;  %v12310_v9 = vcombine.low %v4149_v28, %v4153_v29  ;;  %v12319_v41 = vcombine.high %v4157_v38, %v4161_v39  ;;  %v4204_v28 = vld [vmem:[%s18185_s3 + $0xb80] sm:$0xff] }
 0x289   :  { %v4208_v29 = vld [vmem:[%s18185_s3 + $0xba0] sm:$0xff] }
 0x28a   :  { %7035 = vmatpush1.bf16.msra.mxu0 %v12260_v44  ;;  %v4165_v44 = vld [vmem:[%s18185_s3 + $0xa48] sm:$0xff] }
 0x28b   :  { %7199 = vmatpush1.bf16.msra.mxu1 %v12262_v46  ;;  %7036 = vmatprep.subr.bf16.mxu0 %v12269_v45  ;;  %v4169_v46 = vld [vmem:[%s18185_s3 + $0xa68] sm:$0xff]  ;;  %v12316_v45 = vcombine.low %v4156_v34, %v4160_v35  ;;  %v12365_v34 = vcombine.high %v4204_v28, %v4208_v29 }
 0x28c   :  { %7200 = vmatprep.subr.bf16.mxu1 %v12271_v47  ;;  %v12318_v47 = vcombine.low %v4157_v38, %v4161_v39  ;;  %v12327_v50 = vcombine.high %v4165_v44, %v4169_v46  ;;  %v4212_v38 = vld [vmem:[%s18185_s3 + $0xbc0] sm:$0xff] }
 0x28d   :  { %v4216_v39 = vld [vmem:[%s18185_s3 + $0xbe0] sm:$0xff] }
 0x28e   :  { %7037 = vmatpush1.bf16.msra.mxu0 %v12268_v53  ;;  %v4173_v53 = vld [vmem:[%s18185_s3 + $0xa88] sm:$0xff] }
 0x28f   :  { %7201 = vmatpush1.bf16.msra.mxu1 %v12270_v56  ;;  %7038 = vmatprep.subr.bf16.mxu0 %v12277_v58  ;;  %v4177_v56 = vld [vmem:[%s18185_s3 + $0xaa8] sm:$0xff]  ;;  %v12324_v58 = vcombine.low %v4164_v42, %v4168_v43  ;;  %v12373_v42 = vcombine.high %v4212_v38, %v4216_v39 }
 0x290   :  { %7202 = vmatprep.subr.bf16.mxu1 %v12279_v4  ;;  %v12326_v4 = vcombine.low %v4165_v44, %v4169_v46  ;;  %v12335_v54 = vcombine.high %v4173_v53, %v4177_v56  ;;  %v4220_v44 = vld [vmem:[%s18185_s3 + $0xc00] sm:$0xff] }
 0x291   :  { %v4224_v46 = vld [vmem:[%s18185_s3 + $0xc20] sm:$0xff] }
 0x292   :  { %7039 = vmatpush1.bf16.msra.mxu0 %v12276_v63  ;;  %v4181_v63 = vld [vmem:[%s18185_s3 + $0xac8] sm:$0xff] }
 0x293   :  { %7203 = vmatpush1.bf16.msra.mxu1 %v12278_v0  ;;  %7040 = vmatprep.subr.bf16.mxu0 %v12285_v13  ;;  %v4185_v0 = vld [vmem:[%s18185_s3 + $0xae8] sm:$0xff]  ;;  %v12332_v13 = vcombine.low %v4172_v51, %v4176_v52  ;;  %v12381_v51 = vcombine.high %v4220_v44, %v4224_v46 }
 0x294   :  { %7204 = vmatprep.subr.bf16.mxu1 %v12287_v2  ;;  %v12334_v2 = vcombine.low %v4173_v53, %v4177_v56  ;;  %v12343_v5 = vcombine.high %v4181_v63, %v4185_v0  ;;  %v15496_v53 = vsub.s32 4, %v14828_v1  ;;  %v15499_v56 = vsub.s32 5, %v14828_v1 }
 0x296   :  { %7041 = vmatpush1.bf16.msra.mxu0 %v12284_v11  ;;  %v4189_v11 = vld [vmem:[%s18185_s3 + $0xb08] sm:$0xff] }
 0x297   :  { %7205 = vmatpush1.bf16.msra.mxu1 %v12286_v14  ;;  %7042 = vmatprep.subr.bf16.mxu0 %v12293_v16  ;;  %v4193_v14 = vld [vmem:[%s18185_s3 + $0xb28] sm:$0xff]  ;;  %v12340_v16 = vcombine.low %v4180_v61, %v4184_v62 }
 0x298   :  { %7206 = vmatprep.subr.bf16.mxu1 %v12295_v17  ;;  %v12342_v17 = vcombine.low %v4181_v63, %v4185_v0  ;;  %v12351_v19 = vcombine.high %v4189_v11, %v4193_v14 }
 0x29a   :  { %7043 = vmatpush1.bf16.msra.mxu0 %v12292_v12  ;;  %v4197_v12 = vld [vmem:[%s18185_s3 + $0xb48] sm:$0xff] }
 0x29b   :  { %7207 = vmatpush1.bf16.msra.mxu1 %v12294_v24  ;;  %7044 = vmatprep.subr.bf16.mxu0 %v12301_v25  ;;  %v4201_v24 = vld [vmem:[%s18185_s3 + $0xb68] sm:$0xff]  ;;  %v12348_v25 = vcombine.low %v4188_v6, %v4192_v10 }
 0x29c   :  { %7208 = vmatprep.subr.bf16.mxu1 %v12303_v26  ;;  %v12350_v26 = vcombine.low %v4189_v11, %v4193_v14  ;;  %v12359_v27 = vcombine.high %v4197_v12, %v4201_v24 }
 0x29e   :  { %7045 = vmatpush1.bf16.msra.mxu0 %v12300_v30  ;;  %v4205_v30 = vld [vmem:[%s18185_s3 + $0xb88] sm:$0xff] }
 0x29f   :  { %7209 = vmatpush1.bf16.msra.mxu1 %v12302_v31  ;;  %7046 = vmatprep.subr.bf16.mxu0 %v12309_v21  ;;  %v4209_v31 = vld [vmem:[%s18185_s3 + $0xba8] sm:$0xff]  ;;  %v12356_v21 = vcombine.low %v4196_v20, %v4200_v23  ;;  %v4232_v20 = vld [vmem:[%s18185_s3 + $0xc60] sm:$0xff] }
 0x2a0   :  { %7210 = vmatprep.subr.bf16.mxu1 %v12311_v33  ;;  %v12358_v33 = vcombine.low %v4197_v12, %v4201_v24  ;;  %v12367_v35 = vcombine.high %v4205_v30, %v4209_v31  ;;  %v4229_v23 = vld [vmem:[%s18185_s3 + $0xc48] sm:$0xff] }
 0x2a1   :  { %v4233_v12 = vld [vmem:[%s18185_s3 + $0xc68] sm:$0xff] }
 0x2a2   :  { %7047 = vmatpush1.bf16.msra.mxu0 %v12308_v40  ;;  %v4213_v40 = vld [vmem:[%s18185_s3 + $0xbc8] sm:$0xff] }
 0x2a3   :  { %7211 = vmatpush1.bf16.msra.mxu1 %v12310_v9  ;;  %7048 = vmatprep.subr.bf16.mxu0 %v12317_v32  ;;  %v4217_v9 = vld [vmem:[%s18185_s3 + $0xbe8] sm:$0xff]  ;;  %v12364_v32 = vcombine.low %v4204_v28, %v4208_v29  ;;  %v12391_v29 = vcombine.high %v4229_v23, %v4233_v12 }
 0x2a4   :  { %7212 = vmatprep.subr.bf16.mxu1 %v12319_v41  ;;  %v12366_v41 = vcombine.low %v4205_v30, %v4209_v31  ;;  %v12375_v43 = vcombine.high %v4213_v40, %v4217_v9  ;;  %v4240_v30 = vld [vmem:[%s18185_s3 + $0xca0] sm:$0xff]  ;;  %v4237_v31 = vld [vmem:[%s18185_s3 + $0xc88] sm:$0xff] }
 0x2a6   :  { %7049 = vmatpush1.bf16.msra.mxu0 %v12316_v45  ;;  %v4221_v45 = vld [vmem:[%s18185_s3 + $0xc08] sm:$0xff] }
 0x2a7   :  { %7213 = vmatpush1.bf16.msra.mxu1 %v12318_v47  ;;  %7050 = vmatprep.subr.bf16.mxu0 %v12325_v49  ;;  %v4225_v47 = vld [vmem:[%s18185_s3 + $0xc28] sm:$0xff]  ;;  %v12372_v49 = vcombine.low %v4212_v38, %v4216_v39 }
 0x2a8   :  { %7214 = vmatprep.subr.bf16.mxu1 %v12327_v50  ;;  %v12374_v50 = vcombine.low %v4213_v40, %v4217_v9  ;;  %v12383_v52 = vcombine.high %v4221_v45, %v4225_v47  ;;  %v4244_v40 = vld [vmem:[%s18185_s3 + $0xcc0] sm:$0xff] }
 0x2a9   :  { %v4248_v9 = vld [vmem:[%s18185_s3 + $0xce0] sm:$0xff] }
 0x2aa   :  { %7051 = vmatpush1.bf16.msra.mxu0 %v12324_v58  ;;  %v15502_v58 = vsub.s32 7, %v14828_v1 }
 0x2ab   :  { %7215 = vmatpush1.bf16.msra.mxu1 %v12326_v4  ;;  %7052 = vmatprep.subr.bf16.mxu0 %v12333_v60  ;;  %v15507_v4 = vld [vmem:[%s18184_s2] sm:$0xff] }
 0x2ac   :  { %7216 = vmatprep.subr.bf16.mxu1 %v12335_v54  ;;  %v583_v60 = vrot.slane %v15507_v4, %v15496_v53  ;;  %v587_v54 = vrot.slane %v15507_v4, %v15499_v56  ;;  %v595_v61 = vrot.slane %v15507_v4, %v15502_v58 }
 0x2ae   :  { %7053 = vmatpush1.bf16.msra.mxu0 %v12332_v13 }
 0x2af   :  { %7217 = vmatpush1.bf16.msra.mxu1 %v12334_v2  ;;  %7054 = vmatprep.subr.bf16.mxu0 %v12341_v3 }
 0x2b0   :  { %7218 = vmatprep.subr.bf16.mxu1 %v12343_v5 }
 0x2b2   :  { %7055 = vmatpush1.bf16.msra.mxu0 %v12340_v16 }
 0x2b3   :  { %7219 = vmatpush1.bf16.msra.mxu1 %v12342_v17  ;;  %7056 = vmatprep.subr.bf16.mxu0 %v12349_v18  ;;  %v4228_v18 = vld [vmem:[%s18185_s3 + $0xc40] sm:$0xff] }
 0x2b4   :  { %7220 = vmatprep.subr.bf16.mxu1 %v12351_v19  ;;  %v12389_v28 = vcombine.high %v4228_v18, %v4232_v20 }
 0x2b6   :  { %7057 = vmatpush1.bf16.msra.mxu0 %v12348_v25  ;;  %v12380_v25 = vcombine.low %v4220_v44, %v4224_v46  ;;  %v12405_v44 = vcombine.high %v4244_v40, %v4248_v9 }
 0x2b7   :  { %7221 = vmatpush1.bf16.msra.mxu1 %v12350_v26  ;;  %7058 = vmatprep.subr.bf16.mxu0 %v12357_v8  ;;  %v12382_v26 = vcombine.low %v4221_v45, %v4225_v47  ;;  %v4252_v45 = vld [vmem:[%s18185_s3 + $0xd00] sm:$0xff] }
 0x2b8   :  { %7222 = vmatprep.subr.bf16.mxu1 %v12359_v27  ;;  %v4236_v27 = vld [vmem:[%s18185_s3 + $0xc80] sm:$0xff] }
 0x2b9   :  { %v12397_v38 = vcombine.high %v4236_v27, %v4240_v30  ;;  %v4256_v47 = vld [vmem:[%s18185_s3 + $0xd20] sm:$0xff] }
 0x2ba   :  { %7059 = vmatpush1.bf16.msra.mxu0 %v12356_v21  ;;  %v4241_v21 = vld [vmem:[%s18185_s3 + $0xca8] sm:$0xff] }
 0x2bb   :  { %7223 = vmatpush1.bf16.msra.mxu1 %v12358_v33  ;;  %7060 = vmatprep.subr.bf16.mxu0 %v12365_v34  ;;  %v12388_v34 = vcombine.low %v4228_v18, %v4232_v20  ;;  %v12399_v39 = vcombine.high %v4237_v31, %v4241_v21 }
 0x2bc   :  { %7224 = vmatprep.subr.bf16.mxu1 %v12367_v35  ;;  %v12390_v35 = vcombine.low %v4229_v23, %v4233_v12  ;;  %v4276_v23 = vld [vmem:[%s18185_s3 + $0xdc0] sm:$0xff] }
 0x2bd   :  { %v4280_v12 = vld [vmem:[%s18185_s3 + $0xde0] sm:$0xff] }
 0x2be   :  { %7061 = vmatpush1.bf16.msra.mxu0 %v12364_v32  ;;  %v4245_v32 = vld [vmem:[%s18185_s3 + $0xcc8] sm:$0xff] }
 0x2bf   :  { %7225 = vmatpush1.bf16.msra.mxu1 %v12366_v41  ;;  %7062 = vmatprep.subr.bf16.mxu0 %v12373_v42  ;;  %v4249_v41 = vld [vmem:[%s18185_s3 + $0xce8] sm:$0xff]  ;;  %v12396_v42 = vcombine.low %v4236_v27, %v4240_v30 }
 0x2c0   :  { %7226 = vmatprep.subr.bf16.mxu1 %v12375_v43  ;;  %v12398_v43 = vcombine.low %v4237_v31, %v4241_v21  ;;  %v12407_v46 = vcombine.high %v4245_v32, %v4249_v41  ;;  %v4284_v31 = vld [vmem:[%s18185_s3 + $0xe00] sm:$0xff] }
 0x2c1   :  { %v4288_v21 = vld [vmem:[%s18185_s3 + $0xe20] sm:$0xff] }
 0x2c2   :  { %7063 = vmatpush1.bf16.msra.mxu0 %v12372_v49  ;;  %v4253_v49 = vld [vmem:[%s18185_s3 + $0xd08] sm:$0xff] }
 0x2c3   :  { %7227 = vmatpush1.bf16.msra.mxu1 %v12374_v50  ;;  %7073 = vmatprep.subr.bf16.mxu0 %v12381_v51  ;;  %v4257_v50 = vld [vmem:[%s18185_s3 + $0xd28] sm:$0xff]  ;;  %v12404_v51 = vcombine.low %v4244_v40, %v4248_v9  ;;  %v12445_v40 = vcombine.high %v4284_v31, %v4288_v21 }
 0x2c4   :  { %7237 = vmatprep.subr.bf16.mxu1 %v12383_v52  ;;  %v12406_v52 = vcombine.low %v4245_v32, %v4249_v41  ;;  %v4292_v32 = vld [vmem:[%s18185_s3 + $0xe40] sm:$0xff] }
 0x2c5   :  { %v4296_v41 = vld [vmem:[%s18185_s3 + $0xe60] sm:$0xff] }
 0x2d8   :  { %v3649_v62 = vpop.f32.mrb[4].mxu0  ;;  %v15515_v0 = vpop.f32.mrb[4].mxu1 }
 0x2d9   :  { %v13024_v63 = vadd.f32 %v3649_v62, %v583_v60  ;;  %v3651_v13 = vpop.f32.mrb[5].mxu0  ;;  %v3815_v3 = vpop.f32.mrb[5].mxu1  ;;  %v12413_v60 = vcombine.high %v4252_v45, %v4256_v47  ;;  %v4264_v62 = vld [vmem:[%s18185_s3 + $0xd60] sm:$0xff] }
 0x2da   :  { %v13025_v2 = vadd.f32 %v3651_v13, %v587_v54  ;;  %v3653_v5 = vpop.f32.mrb[6].mxu0  ;;  %v13027_v10 = vadd.f32 %v3815_v3, %v595_v61  ;;  %v3817_v11 = vpop.f32.mrb[6].mxu1  ;;  %v12415_v54 = vcombine.high %v4253_v49, %v4257_v50  ;;  %v4260_v61 = vld [vmem:[%s18185_s3 + $0xd40] sm:$0xff]  ;;  %v4265_v13 = vld [vmem:[%s18185_s3 + $0xd68] sm:$0xff]  ;;  %v12414_v3 = vcombine.low %v4253_v49, %v4257_v50 }
 0x2db   :  { %v3824_v6 = vmax.f32 %v13024_v63, 0.0  ;;  %v3654_v14 = vpop.f32.mrb[7].mxu0  ;;  %v3818_v17 = vpop.f32.mrb[7].mxu1  ;;  %v4261_v63 = vld [vmem:[%s18185_s3 + $0xd48] sm:$0xff]  ;;  %v12421_v5 = vcombine.high %v4260_v61, %v4264_v62  ;;  %v4272_v11 = vld [vmem:[%s18185_s3 + $0xda0] sm:$0xff] }
 0x2dc   :  { %v3825_v16 = vmax.f32 %v13025_v2, 0.0  ;;  %v3827_v19 = vmax.f32 %v13027_v10, 0.0  ;;  %v12412_v2 = vcombine.low %v4252_v45, %v4256_v47  ;;  %v4268_v10 = vld [vmem:[%s18185_s3 + $0xd80] sm:$0xff]  ;;  %v4269_v14 = vld [vmem:[%s18185_s3 + $0xd88] sm:$0xff]  ;;  %v12420_v17 = vcombine.low %v4260_v61, %v4264_v62 }
 0x2dd   :  { %v15531_v8 = vpack.c.bf16 %v3824_v6, %v3824_v6  ;;  %v12423_v6 = vcombine.high %v4261_v63, %v4265_v13  ;;  %v12422_v18 = vcombine.low %v4261_v63, %v4265_v13  ;;  %v12428_v27 = vcombine.low %v4268_v10, %v4272_v11  ;;  %v4300_v49 = vld [vmem:[%s18185_s3 + $0xe80] sm:$0xff] }
 0x2de   :  { %v15529_v24 = vpack.c.bf16 %v3825_v16, %v3825_v16  ;;  %v15547_v33 = vpack.c.bf16 %v3827_v19, %v3827_v19  ;;  %v4273_v16 = vld [vmem:[%s18185_s3 + $0xda8] sm:$0xff]  ;;  %v12429_v19 = vcombine.high %v4268_v10, %v4272_v11  ;;  %v12453_v45 = vcombine.high %v4292_v32, %v4296_v41  ;;  %v4304_v50 = vld [vmem:[%s18185_s3 + $0xea0] sm:$0xff] }
 0x2df   :  { %v12431_v20 = vcombine.high %v4269_v14, %v4273_v16  ;;  %v12461_v61 = vcombine.high %v4300_v49, %v4304_v50  ;;  %v4308_v63 = vld [vmem:[%s18185_s3 + $0xec0] sm:$0xff] }
 0x2e0   :  { %7064 = vmatprep.mubr.bf16.mxu0 %v15529_v24  ;;  %7228 = vmatprep.mubr.bf16.mxu1 %v15529_v24  ;;  %v4312_v13 = vld [vmem:[%s18185_s3 + $0xee0] sm:$0xff] }
 0x2e1   :  { %7065 = vmatmul.mubr.bf16.vlgmr.msra.gmra.mrb[8].mxu0 %v15531_v8  ;;  %7229 = vmatmul.mubr.bf16.vlgmr.msra.gmra.mrb[8].mxu1 %v15531_v8  ;;  %v12469_v10 = vcombine.high %v4308_v63, %v4312_v13 }
 0x2e2   :  { %7074 = vmatpush1.bf16.msra.mxu0 %v12380_v25  ;;  %7238 = vmatpush1.bf16.msra.mxu1 %v12382_v26  ;;  %v4277_v25 = vld [vmem:[%s18185_s3 + $0xdc8] sm:$0xff] }
 0x2e3   :  { %7105 = vmatprep.mubr.bf16.mxu0 %v15547_v33  ;;  %7269 = vmatprep.mubr.bf16.mxu1 %v15547_v33  ;;  %v4281_v26 = vld [vmem:[%s18185_s3 + $0xde8] sm:$0xff] }
 0x2e4   :  { %7075 = vmatprep.subr.bf16.mxu0 %v12389_v28  ;;  %7239 = vmatprep.subr.bf16.mxu1 %v12391_v29  ;;  %v12430_v28 = vcombine.low %v4269_v14, %v4273_v16  ;;  %v12437_v29 = vcombine.high %v4276_v23, %v4280_v12  ;;  %v12439_v30 = vcombine.high %v4277_v25, %v4281_v26  ;;  %v4316_v14 = vld [vmem:[%s18185_s3 + $0xf00] sm:$0xff] }
 0x2e5   :  { %v4320_v16 = vld [vmem:[%s18185_s3 + $0xf20] sm:$0xff] }
 0x2e6   :  { %7076 = vmatpush1.bf16.msra.mxu0 %v12388_v34  ;;  %7240 = vmatpush1.bf16.msra.mxu1 %v12390_v35  ;;  %v4285_v34 = vld [vmem:[%s18185_s3 + $0xe08] sm:$0xff] }
 0x2e7   :  { %7077 = vmatprep.subr.bf16.mxu0 %v12397_v38  ;;  %7241 = vmatprep.subr.bf16.mxu1 %v12399_v39  ;;  %v4289_v35 = vld [vmem:[%s18185_s3 + $0xe28] sm:$0xff]  ;;  %v12436_v38 = vcombine.low %v4276_v23, %v4280_v12  ;;  %v12438_v39 = vcombine.low %v4277_v25, %v4281_v26  ;;  %v12477_v23 = vcombine.high %v4316_v14, %v4320_v16  ;;  %v4324_v25 = vld [vmem:[%s18185_s3 + $0xf40] sm:$0xff] }
 0x2e8   :  { %v12447_v9 = vcombine.high %v4285_v34, %v4289_v35  ;;  %v4328_v26 = vld [vmem:[%s18185_s3 + $0xf60] sm:$0xff] }
 0x2ea   :  { %7078 = vmatpush1.bf16.msra.mxu0 %v12396_v42  ;;  %7242 = vmatpush1.bf16.msra.mxu1 %v12398_v43  ;;  %v4293_v42 = vld [vmem:[%s18185_s3 + $0xe48] sm:$0xff] }
 0x2eb   :  { %7079 = vmatprep.subr.bf16.mxu0 %v12405_v44  ;;  %7243 = vmatprep.subr.bf16.mxu1 %v12407_v46  ;;  %v4297_v43 = vld [vmem:[%s18185_s3 + $0xe68] sm:$0xff]  ;;  %v12444_v44 = vcombine.low %v4284_v31, %v4288_v21  ;;  %v12446_v46 = vcombine.low %v4285_v34, %v4289_v35  ;;  %v15686_v31 = vsub.s32 6, %v14828_v1  ;;  %v12485_v21 = vcombine.high %v4324_v25, %v4328_v26  ;;  %v4332_v35 = vld [vmem:[%s18185_s3 + $0xf80] sm:$0xff] }
 0x2ec   :  { %v12455_v47 = vcombine.high %v4293_v42, %v4297_v43 }
 0x2ee   :  { %7080 = vmatpush1.bf16.msra.mxu0 %v12404_v51  ;;  %7244 = vmatpush1.bf16.msra.mxu1 %v12406_v52  ;;  %v4301_v51 = vld [vmem:[%s18185_s3 + $0xe88] sm:$0xff] }
 0x2ef   :  { %7081 = vmatprep.subr.bf16.mxu0 %v12413_v60  ;;  %7245 = vmatprep.subr.bf16.mxu1 %v12415_v54  ;;  %v4305_v52 = vld [vmem:[%s18185_s3 + $0xea8] sm:$0xff]  ;;  %v12452_v60 = vcombine.low %v4292_v32, %v4296_v41  ;;  %v12454_v54 = vcombine.low %v4293_v42, %v4297_v43  ;;  %v591_v41 = vrot.slane %v15507_v4, %v15686_v31 }
 0x2f0   :  { %v12463_v62 = vcombine.high %v4301_v51, %v4305_v52  ;;  %v4345_v4 = vld [vmem:[%s18185_s3 + $0xfe8] sm:$0xff] }
 0x2f2   :  { %7082 = vmatpush1.bf16.msra.mxu0 %v12412_v2  ;;  %7246 = vmatpush1.bf16.msra.mxu1 %v12414_v3  ;;  %v4309_v2 = vld [vmem:[%s18185_s3 + $0xec8] sm:$0xff] }
 0x2f3   :  { %7083 = vmatprep.subr.bf16.mxu0 %v12421_v5  ;;  %7247 = vmatprep.subr.bf16.mxu1 %v12423_v6  ;;  %v4313_v3 = vld [vmem:[%s18185_s3 + $0xee8] sm:$0xff]  ;;  %v12460_v5 = vcombine.low %v4300_v49, %v4304_v50  ;;  %v12462_v6 = vcombine.low %v4301_v51, %v4305_v52  ;;  %v13026_v50 = vadd.f32 %v15515_v0, %v591_v41  ;;  %v3843_v0 = vld [vmem:[%s18185_s3 + $0x38] sm:$0xff] }
 0x2f4   :  { %v12471_v11 = vcombine.high %v4309_v2, %v4313_v3  ;;  %v3871_v41 = vld [vmem:[%s18185_s3 + $0x118] sm:$0xff] }
 0x2f6   :  { %7084 = vmatpush1.bf16.msra.mxu0 %v12420_v17  ;;  %7248 = vmatpush1.bf16.msra.mxu1 %v12422_v18  ;;  %v4317_v17 = vld [vmem:[%s18185_s3 + $0xf08] sm:$0xff] }
 0x2f7   :  { %7085 = vmatprep.subr.bf16.mxu0 %v12429_v19  ;;  %7249 = vmatprep.subr.bf16.mxu1 %v12431_v20  ;;  %v4321_v18 = vld [vmem:[%s18185_s3 + $0xf28] sm:$0xff]  ;;  %v12468_v19 = vcombine.low %v4308_v63, %v4312_v13  ;;  %v12470_v20 = vcombine.low %v4309_v2, %v4313_v3  ;;  %v3826_v13 = vmax.f32 %v13026_v50, 0.0  ;;  %v3883_v50 = vld [vmem:[%s18185_s3 + $0x178] sm:$0xff] }
 0x2f8   :  { %v12479_v12 = vcombine.high %v4317_v17, %v4321_v18 }
 0x2fa   :  { %7086 = vmatpush1.bf16.msra.mxu0 %v12428_v27  ;;  %7250 = vmatpush1.bf16.msra.mxu1 %v12430_v28  ;;  %v4325_v27 = vld [vmem:[%s18185_s3 + $0xf48] sm:$0xff] }
 0x2fb   :  { %7087 = vmatprep.subr.bf16.mxu0 %v12437_v29  ;;  %7251 = vmatprep.subr.bf16.mxu1 %v12439_v30  ;;  %v4329_v28 = vld [vmem:[%s18185_s3 + $0xf68] sm:$0xff]  ;;  %v12476_v29 = vcombine.low %v4316_v14, %v4320_v16  ;;  %v12478_v30 = vcombine.low %v4317_v17, %v4321_v18  ;;  %v15739_v16 = vpack.c.bf16 %v3826_v13, %v3826_v13 }
 0x2fc   :  { %v12487_v34 = vcombine.high %v4325_v27, %v4329_v28  ;;  %v12486_v32 = vcombine.low %v4325_v27, %v4329_v28 }
 0x2fe   :  { %7088 = vmatpush1.bf16.msra.mxu0 %v12436_v38  ;;  %7252 = vmatpush1.bf16.msra.mxu1 %v12438_v39  ;;  %v4336_v38 = vld [vmem:[%s18185_s3 + $0xfa0] sm:$0xff]  ;;  %v4333_v39 = vld [vmem:[%s18185_s3 + $0xf88] sm:$0xff] }
 0x2ff   :  { %7089 = vmatprep.subr.bf16.mxu0 %v12445_v40  ;;  %7253 = vmatprep.subr.bf16.mxu1 %v12447_v9  ;;  %v4337_v40 = vld [vmem:[%s18185_s3 + $0xfa8] sm:$0xff]  ;;  %v12484_v9 = vcombine.low %v4324_v25, %v4328_v26  ;;  %v12493_v42 = vcombine.high %v4332_v35, %v4336_v38  ;;  %v3859_v25 = vld [vmem:[%s18185_s3 + $0xb8] sm:$0xff] }
 0x300   :  { %v12495_v43 = vcombine.high %v4333_v39, %v4337_v40  ;;  %v12494_v49 = vcombine.low %v4333_v39, %v4337_v40 }
 0x302   :  { %7090 = vmatpush1.bf16.msra.mxu0 %v12444_v44  ;;  %7254 = vmatpush1.bf16.msra.mxu1 %v12446_v46  ;;  %v4340_v44 = vld [vmem:[%s18185_s3 + $0xfc0] sm:$0xff] }
 0x303   :  { %7091 = vmatprep.subr.bf16.mxu0 %v12453_v45  ;;  %7255 = vmatprep.subr.bf16.mxu1 %v12455_v47  ;;  %v4344_v46 = vld [vmem:[%s18185_s3 + $0xfe0] sm:$0xff]  ;;  %v4341_v45 = vld [vmem:[%s18185_s3 + $0xfc8] sm:$0xff]  ;;  %v12492_v47 = vcombine.low %v4332_v35, %v4336_v38 }
 0x304   :  { %v12501_v51 = vcombine.high %v4340_v44, %v4344_v46  ;;  %v12503_v52 = vcombine.high %v4341_v45, %v4345_v4  ;;  %v12502_v63 = vcombine.low %v4341_v45, %v4345_v4  ;;  %v3878_v4 = vld [vmem:[%s18185_s3 + $0x150] sm:$0xff] }
 0x306   :  { %7092 = vmatpush1.bf16.msra.mxu0 %v12452_v60  ;;  %7256 = vmatpush1.bf16.msra.mxu1 %v12454_v54  ;;  %v3838_v60 = vld [vmem:[%s18185_s3 + $0x10] sm:$0xff] }
 0x307   :  { %7093 = vmatprep.subr.bf16.mxu0 %v12461_v61  ;;  %7257 = vmatprep.subr.bf16.mxu1 %v12463_v62  ;;  %v3842_v54 = vld [vmem:[%s18185_s3 + $0x30] sm:$0xff]  ;;  %v3839_v61 = vld [vmem:[%s18185_s3 + $0x18] sm:$0xff]  ;;  %v12500_v62 = vcombine.low %v4340_v44, %v4344_v46 }
 0x308   :  { %v12001_v2 = vcombine.high %v3838_v60, %v3842_v54  ;;  %v12003_v3 = vcombine.high %v3839_v61, %v3843_v0  ;;  %v12000_v14 = vcombine.low %v3838_v60, %v3842_v54  ;;  %v12002_v17 = vcombine.low %v3839_v61, %v3843_v0  ;;  %v3886_v61 = vld [vmem:[%s18185_s3 + $0x190] sm:$0xff] }
 0x309   :  { %v3890_v0 = vld [vmem:[%s18185_s3 + $0x1b0] sm:$0xff] }
 0x30a   :  { %7094 = vmatpush1.bf16.msra.mxu0 %v12460_v5  ;;  %7258 = vmatpush1.bf16.msra.mxu1 %v12462_v6  ;;  %v3846_v5 = vld [vmem:[%s18185_s3 + $0x50] sm:$0xff] }
 0x30b   :  { %7095 = vmatprep.subr.bf16.mxu0 %v12469_v10  ;;  %7259 = vmatprep.subr.bf16.mxu1 %v12471_v11  ;;  %v3850_v6 = vld [vmem:[%s18185_s3 + $0x70] sm:$0xff]  ;;  %v3847_v10 = vld [vmem:[%s18185_s3 + $0x58] sm:$0xff] }
 0x30c   :  { %v3851_v11 = vld [vmem:[%s18185_s3 + $0x78] sm:$0xff]  ;;  %v12009_v18 = vcombine.high %v3846_v5, %v3850_v6  ;;  %v12008_v26 = vcombine.low %v3846_v5, %v3850_v6  ;;  %v3894_v6 = vld [vmem:[%s18185_s3 + $0x1d0] sm:$0xff] }
 0x30d   :  { %v12010_v27 = vcombine.low %v3847_v10, %v3851_v11 }
 0x30e   :  { %7096 = vmatpush1.bf16.msra.mxu0 %v12468_v19  ;;  %7260 = vmatpush1.bf16.msra.mxu1 %v12470_v20  ;;  %v12011_v19 = vcombine.high %v3847_v10, %v3851_v11  ;;  %v3854_v20 = vld [vmem:[%s18185_s3 + $0x90] sm:$0xff]  ;;  %v3895_v11 = vld [vmem:[%s18185_s3 + $0x1d8] sm:$0xff] }
 0x30f   :  { %7097 = vmatprep.subr.bf16.mxu0 %v12477_v23  ;;  %7261 = vmatprep.subr.bf16.mxu1 %v12479_v12  ;;  %v3858_v23 = vld [vmem:[%s18185_s3 + $0xb0] sm:$0xff]  ;;  %v3855_v12 = vld [vmem:[%s18185_s3 + $0x98] sm:$0xff] }
 0x310   :  { %v12017_v28 = vcombine.high %v3854_v20, %v3858_v23  ;;  %v12016_v35 = vcombine.low %v3854_v20, %v3858_v23  ;;  %v12018_v38 = vcombine.low %v3855_v12, %v3859_v25  ;;  %v3898_v10 = vld [vmem:[%s18185_s3 + $0x1f0] sm:$0xff] }
 0x311   :  { %v3902_v23 = vld [vmem:[%s18185_s3 + $0x210] sm:$0xff] }
 0x312   :  { %7098 = vmatpush1.bf16.msra.mxu0 %v12476_v29  ;;  %7262 = vmatpush1.bf16.msra.mxu1 %v12478_v30  ;;  %v12019_v29 = vcombine.high %v3855_v12, %v3859_v25  ;;  %v3862_v30 = vld [vmem:[%s18185_s3 + $0xd0] sm:$0xff]  ;;  %v3903_v25 = vld [vmem:[%s18185_s3 + $0x218] sm:$0xff] }
 0x313   :  { %7099 = vmatprep.subr.bf16.mxu0 %v12485_v21  ;;  %7263 = vmatprep.subr.bf16.mxu1 %v12487_v34  ;;  %v3866_v21 = vld [vmem:[%s18185_s3 + $0xf0] sm:$0xff]  ;;  %v3863_v34 = vld [vmem:[%s18185_s3 + $0xd8] sm:$0xff] }
 0x314   :  { %v12025_v39 = vcombine.high %v3862_v30, %v3866_v21  ;;  %v3906_v12 = vld [vmem:[%s18185_s3 + $0x230] sm:$0xff] }
 0x316   :  { %7100 = vmatpush1.bf16.msra.mxu0 %v12484_v9  ;;  %7264 = vmatpush1.bf16.msra.mxu1 %v12486_v32  ;;  %v3870_v9 = vld [vmem:[%s18185_s3 + $0x110] sm:$0xff] }
 0x317   :  { %7101 = vmatprep.subr.bf16.mxu0 %v12493_v42  ;;  %7265 = vmatprep.subr.bf16.mxu1 %v12495_v43  ;;  %v3874_v32 = vld [vmem:[%s18185_s3 + $0x130] sm:$0xff]  ;;  %v3875_v42 = vld [vmem:[%s18185_s3 + $0x138] sm:$0xff]  ;;  %v12024_v43 = vcombine.low %v3862_v30, %v3866_v21 }
 0x318   :  { %v12033_v46 = vcombine.high %v3870_v9, %v3874_v32  ;;  %v12035_v45 = vcombine.high %v3871_v41, %v3875_v42  ;;  %v3910_v21 = vld [vmem:[%s18185_s3 + $0x250] sm:$0xff] }
 0x31a   :  { %7102 = vmatpush1.bf16.msra.mxu0 %v12492_v47  ;;  %7266 = vmatpush1.bf16.msra.mxu1 %v12494_v49  ;;  %v3882_v47 = vld [vmem:[%s18185_s3 + $0x170] sm:$0xff]  ;;  %v3879_v49 = vld [vmem:[%s18185_s3 + $0x158] sm:$0xff] }
 0x31b   :  { %7103 = vmatprep.subr.bf16.mxu0 %v12501_v51  ;;  %7267 = vmatprep.subr.bf16.mxu1 %v12503_v52  ;;  %v12032_v51 = vcombine.low %v3870_v9, %v3874_v32  ;;  %v12034_v52 = vcombine.low %v3871_v41, %v3875_v42  ;;  %v12041_v60 = vcombine.high %v3878_v4, %v3882_v47  ;;  %v3918_v32 = vld [vmem:[%s18185_s3 + $0x290] sm:$0xff]  ;;  %v3919_v42 = vld [vmem:[%s18185_s3 + $0x298] sm:$0xff] }
 0x31c   :  { %v12043_v54 = vcombine.high %v3879_v49, %v3883_v50  ;;  %v12040_v13 = vcombine.low %v3878_v4, %v3882_v47  ;;  %v3922_v41 = vld [vmem:[%s18185_s3 + $0x2b0] sm:$0xff] }
 0x31d   :  { %v3926_v47 = vld [vmem:[%s18185_s3 + $0x2d0] sm:$0xff] }
 0x31e   :  { %7104 = vmatpush1.bf16.msra.mxu0 %v12500_v62  ;;  %7268 = vmatpush1.bf16.msra.mxu1 %v12502_v63  ;;  %v3887_v62 = vld [vmem:[%s18185_s3 + $0x198] sm:$0xff] }
 0x31f   :  { %7278 = vmatprep.subr.bf16.mxu0 %v12001_v2  ;;  %7442 = vmatprep.subr.bf16.mxu1 %v12003_v3  ;;  %v3891_v63 = vld [vmem:[%s18185_s3 + $0x1b8] sm:$0xff]  ;;  %v12042_v2 = vcombine.low %v3879_v49, %v3883_v50  ;;  %v12049_v3 = vcombine.high %v3886_v61, %v3890_v0  ;;  %v3930_v49 = vld [vmem:[%s18185_s3 + $0x2f0] sm:$0xff] }
 0x320   :  { %v12051_v5 = vcombine.high %v3887_v62, %v3891_v63  ;;  %v3927_v50 = vld [vmem:[%s18185_s3 + $0x2d8] sm:$0xff] }
 0x321   :  { %7106 = vmatmul.mubr.bf16.vlgmr.msra.gmra.mrb[8].mxu0 %v15739_v16  ;;  %7270 = vmatmul.mubr.bf16.vlgmr.msra.gmra.mrb[8].mxu1 %v15739_v16 }
 0x322   :  { %7279 = vmatpush1.bf16.msra.mxu0 %v12000_v14  ;;  %7310 = vmatprep.mubr.bf16.mxu0 %v14901_v48  ;;  %v3899_v14 = vld [vmem:[%s18185_s3 + $0x1f8] sm:$0xff] }
 0x323   :  { %7443 = vmatpush1.bf16.msra.mxu1 %v12002_v17  ;;  %7474 = vmatprep.mubr.bf16.mxu1 %v14901_v48  ;;  %v3867_v48 = vld [vmem:[%s18185_s3 + $0xf8] sm:$0xff]  ;;  %v12048_v17 = vcombine.low %v3886_v61, %v3890_v0  ;;  %v12059_v20 = vcombine.high %v3895_v11, %v3899_v14  ;;  %v3934_v0 = vld [vmem:[%s18185_s3 + $0x310] sm:$0xff] }
 0x324   :  { %7280 = vmatprep.subr.bf16.mxu0 %v12009_v18  ;;  %7444 = vmatprep.subr.bf16.mxu1 %v12011_v19  ;;  %v12027_v40 = vcombine.high %v3863_v34, %v3867_v48  ;;  %v12026_v44 = vcombine.low %v3863_v34, %v3867_v48  ;;  %v12050_v18 = vcombine.low %v3887_v62, %v3891_v63  ;;  %v3914_v34 = vld [vmem:[%s18185_s3 + $0x270] sm:$0xff]  ;;  %v3911_v48 = vld [vmem:[%s18185_s3 + $0x258] sm:$0xff] }
 0x325   :  { %v12057_v19 = vcombine.high %v3894_v6, %v3898_v10  ;;  %v3938_v62 = vld [vmem:[%s18185_s3 + $0x330] sm:$0xff]  ;;  %v3935_v63 = vld [vmem:[%s18185_s3 + $0x318] sm:$0xff] }
 0x326   :  { %7281 = vmatpush1.bf16.msra.mxu0 %v12008_v26  ;;  %v3907_v26 = vld [vmem:[%s18185_s3 + $0x238] sm:$0xff] }
 0x327   :  { %7445 = vmatpush1.bf16.msra.mxu1 %v12010_v27  ;;  %7282 = vmatprep.subr.bf16.mxu0 %v12017_v28  ;;  %v12056_v27 = vcombine.low %v3894_v6, %v3898_v10  ;;  %v12058_v28 = vcombine.low %v3895_v11, %v3899_v14  ;;  %v12067_v30 = vcombine.high %v3903_v25, %v3907_v26  ;;  %v3942_v10 = vld [vmem:[%s18185_s3 + $0x350] sm:$0xff]  ;;  %v3943_v14 = vld [vmem:[%s18185_s3 + $0x358] sm:$0xff] }
 0x328   :  { %7446 = vmatprep.subr.bf16.mxu1 %v12019_v29  ;;  %v12065_v29 = vcombine.high %v3902_v23, %v3906_v12  ;;  %v3946_v11 = vld [vmem:[%s18185_s3 + $0x370] sm:$0xff] }
 0x32a   :  { %7283 = vmatpush1.bf16.msra.mxu0 %v12016_v35  ;;  %v3915_v35 = vld [vmem:[%s18185_s3 + $0x278] sm:$0xff] }
 0x32b   :  { %7447 = vmatpush1.bf16.msra.mxu1 %v12018_v38  ;;  %7284 = vmatprep.subr.bf16.mxu0 %v12025_v39  ;;  %v12064_v38 = vcombine.low %v3902_v23, %v3906_v12  ;;  %v12066_v39 = vcombine.low %v3903_v25, %v3907_v26  ;;  %v12075_v9 = vcombine.high %v3911_v48, %v3915_v35  ;;  %v3950_v12 = vld [vmem:[%s18185_s3 + $0x390] sm:$0xff]  ;;  %v3951_v26 = vld [vmem:[%s18185_s3 + $0x398] sm:$0xff] }
 0x32c   :  { %7448 = vmatprep.subr.bf16.mxu1 %v12027_v40  ;;  %v12073_v40 = vcombine.high %v3910_v21, %v3914_v34  ;;  %v3954_v25 = vld [vmem:[%s18185_s3 + $0x3b0] sm:$0xff] }
 0x32e   :  { %7285 = vmatpush1.bf16.msra.mxu0 %v12024_v43  ;;  %v3923_v43 = vld [vmem:[%s18185_s3 + $0x2b8] sm:$0xff] }
 0x32f   :  { %7449 = vmatpush1.bf16.msra.mxu1 %v12026_v44  ;;  %7286 = vmatprep.subr.bf16.mxu0 %v12033_v46  ;;  %v12072_v44 = vcombine.low %v3910_v21, %v3914_v34  ;;  %v12074_v46 = vcombine.low %v3911_v48, %v3915_v35  ;;  %v12083_v4 = vcombine.high %v3919_v42, %v3923_v43  ;;  %v3958_v34 = vld [vmem:[%s18185_s3 + $0x3d0] sm:$0xff]  ;;  %v3959_v35 = vld [vmem:[%s18185_s3 + $0x3d8] sm:$0xff] }
 0x330   :  { %7450 = vmatprep.subr.bf16.mxu1 %v12035_v45  ;;  %v12081_v45 = vcombine.high %v3918_v32, %v3922_v41  ;;  %v3962_v48 = vld [vmem:[%s18185_s3 + $0x3f0] sm:$0xff] }
 0x332   :  { %7287 = vmatpush1.bf16.msra.mxu0 %v12032_v51  ;;  %v3931_v51 = vld [vmem:[%s18185_s3 + $0x2f8] sm:$0xff] }
 0x333   :  { %7451 = vmatpush1.bf16.msra.mxu1 %v12034_v52  ;;  %7288 = vmatprep.subr.bf16.mxu0 %v12041_v60  ;;  %v12080_v52 = vcombine.low %v3918_v32, %v3922_v41  ;;  %v12082_v60 = vcombine.low %v3919_v42, %v3923_v43  ;;  %v12091_v61 = vcombine.high %v3927_v50, %v3931_v51  ;;  %v3966_v41 = vld [vmem:[%s18185_s3 + $0x410] sm:$0xff]  ;;  %v3967_v43 = vld [vmem:[%s18185_s3 + $0x418] sm:$0xff] }
 0x334   :  { %7452 = vmatprep.subr.bf16.mxu1 %v12043_v54  ;;  %v12089_v54 = vcombine.high %v3926_v47, %v3930_v49  ;;  %v3970_v42 = vld [vmem:[%s18185_s3 + $0x430] sm:$0xff] }
 0x336   :  { %7289 = vmatpush1.bf16.msra.mxu0 %v12040_v13  ;;  %v3939_v13 = vld [vmem:[%s18185_s3 + $0x338] sm:$0xff] }
 0x337   :  { %7453 = vmatpush1.bf16.msra.mxu1 %v12042_v2  ;;  %7290 = vmatprep.subr.bf16.mxu0 %v12049_v3  ;;  %v12088_v2 = vcombine.low %v3926_v47, %v3930_v49  ;;  %v12090_v3 = vcombine.low %v3927_v50, %v3931_v51  ;;  %v12099_v6 = vcombine.high %v3935_v63, %v3939_v13  ;;  %v3974_v49 = vld [vmem:[%s18185_s3 + $0x450] sm:$0xff] }
 0x338   :  { %7454 = vmatprep.subr.bf16.mxu1 %v12051_v5  ;;  %v12097_v5 = vcombine.high %v3934_v0, %v3938_v62  ;;  %v3978_v50 = vld [vmem:[%s18185_s3 + $0x470] sm:$0xff]  ;;  %v12128_v51 = vcombine.low %v3966_v41, %v3970_v42 }
 0x33a   :  { %7291 = vmatpush1.bf16.msra.mxu0 %v12048_v17  ;;  %v3947_v17 = vld [vmem:[%s18185_s3 + $0x378] sm:$0xff] }
 0x33b   :  { %7455 = vmatpush1.bf16.msra.mxu1 %v12050_v18  ;;  %7292 = vmatprep.subr.bf16.mxu0 %v12057_v19  ;;  %v12096_v18 = vcombine.low %v3934_v0, %v3938_v62  ;;  %v12098_v19 = vcombine.low %v3935_v63, %v3939_v13  ;;  %v12107_v23 = vcombine.high %v3943_v14, %v3947_v17  ;;  %v3982_v0 = vld [vmem:[%s18185_s3 + $0x490] sm:$0xff]  ;;  %v3983_v13 = vld [vmem:[%s18185_s3 + $0x498] sm:$0xff] }
 0x33c   :  { %7456 = vmatprep.subr.bf16.mxu1 %v12059_v20  ;;  %v12105_v20 = vcombine.high %v3942_v10, %v3946_v11  ;;  %v3986_v62 = vld [vmem:[%s18185_s3 + $0x4b0] sm:$0xff] }
 0x33e   :  { %7293 = vmatpush1.bf16.msra.mxu0 %v12056_v27  ;;  %v3955_v27 = vld [vmem:[%s18185_s3 + $0x3b8] sm:$0xff] }
 0x33f   :  { %7457 = vmatpush1.bf16.msra.mxu1 %v12058_v28  ;;  %7294 = vmatprep.subr.bf16.mxu0 %v12065_v29  ;;  %v12104_v28 = vcombine.low %v3942_v10, %v3946_v11  ;;  %v12106_v29 = vcombine.low %v3943_v14, %v3947_v17  ;;  %v12115_v21 = vcombine.high %v3951_v26, %v3955_v27  ;;  %v3990_v11 = vld [vmem:[%s18185_s3 + $0x4d0] sm:$0xff]  ;;  %v3995_v17 = vld [vmem:[%s18185_s3 + $0x4f8] sm:$0xff] }
 0x340   :  { %7458 = vmatprep.subr.bf16.mxu1 %v12067_v30  ;;  %v12113_v30 = vcombine.high %v3950_v12, %v3954_v25  ;;  %v3994_v14 = vld [vmem:[%s18185_s3 + $0x4f0] sm:$0xff] }
 0x342   :  { %7295 = vmatpush1.bf16.msra.mxu0 %v12064_v38  ;;  %v3963_v38 = vld [vmem:[%s18185_s3 + $0x3f8] sm:$0xff] }
 0x343   :  { %7459 = vmatpush1.bf16.msra.mxu1 %v12066_v39  ;;  %7296 = vmatprep.subr.bf16.mxu0 %v12073_v40  ;;  %v12112_v39 = vcombine.low %v3950_v12, %v3954_v25  ;;  %v12114_v40 = vcombine.low %v3951_v26, %v3955_v27  ;;  %v12123_v32 = vcombine.high %v3959_v35, %v3963_v38  ;;  %v4002_v12 = vld [vmem:[%s18185_s3 + $0x530] sm:$0xff]  ;;  %v3999_v25 = vld [vmem:[%s18185_s3 + $0x518] sm:$0xff] }
 0x344   :  { %7460 = vmatprep.subr.bf16.mxu1 %v12075_v9  ;;  %v12121_v9 = vcombine.high %v3958_v34, %v3962_v48  ;;  %v4003_v26 = vld [vmem:[%s18185_s3 + $0x538] sm:$0xff]  ;;  %v12152_v27 = vcombine.low %v3990_v11, %v3994_v14 }
 0x346   :  { %7297 = vmatpush1.bf16.msra.mxu0 %v12072_v44  ;;  %v3971_v44 = vld [vmem:[%s18185_s3 + $0x438] sm:$0xff] }
 0x347   :  { %7461 = vmatpush1.bf16.msra.mxu1 %v12074_v46  ;;  %7298 = vmatprep.subr.bf16.mxu0 %v12081_v45  ;;  %v12120_v46 = vcombine.low %v3958_v34, %v3962_v48  ;;  %v12122_v45 = vcombine.low %v3959_v35, %v3963_v38  ;;  %v12131_v47 = vcombine.high %v3967_v43, %v3971_v44  ;;  %v4010_v34 = vld [vmem:[%s18185_s3 + $0x570] sm:$0xff]  ;;  %v4007_v48 = vld [vmem:[%s18185_s3 + $0x558] sm:$0xff] }
 0x348   :  { %7462 = vmatprep.subr.bf16.mxu1 %v12083_v4  ;;  %v12129_v4 = vcombine.high %v3966_v41, %v3970_v42  ;;  %v4011_v35 = vld [vmem:[%s18185_s3 + $0x578] sm:$0xff]  ;;  %v4018_v41 = vld [vmem:[%s18185_s3 + $0x5b0] sm:$0xff] }
 0x349   :  { %v4015_v42 = vld [vmem:[%s18185_s3 + $0x598] sm:$0xff] }
 0x34a   :  { %7299 = vmatpush1.bf16.msra.mxu0 %v12080_v52  ;;  %v3975_v52 = vld [vmem:[%s18185_s3 + $0x458] sm:$0xff] }
 0x34b   :  { %7463 = vmatpush1.bf16.msra.mxu1 %v12082_v60  ;;  %7300 = vmatprep.subr.bf16.mxu0 %v12089_v54  ;;  %v3979_v60 = vld [vmem:[%s18185_s3 + $0x478] sm:$0xff]  ;;  %v12130_v54 = vcombine.low %v3967_v43, %v3971_v44 }
 0x34c   :  { %7464 = vmatprep.subr.bf16.mxu1 %v12091_v61  ;;  %v12137_v61 = vcombine.high %v3974_v49, %v3978_v50  ;;  %v12139_v63 = vcombine.high %v3975_v52, %v3979_v60  ;;  %v4019_v43 = vld [vmem:[%s18185_s3 + $0x5b8] sm:$0xff] }
 0x34e   :  { %7301 = vmatpush1.bf16.msra.mxu0 %v12088_v2  ;;  %v3987_v2 = vld [vmem:[%s18185_s3 + $0x4b8] sm:$0xff] }
 0x34f   :  { %7465 = vmatpush1.bf16.msra.mxu1 %v12090_v3  ;;  %7302 = vmatprep.subr.bf16.mxu0 %v12097_v5  ;;  %v12136_v3 = vcombine.low %v3974_v49, %v3978_v50  ;;  %v12138_v5 = vcombine.low %v3975_v52, %v3979_v60  ;;  %v12147_v10 = vcombine.high %v3983_v13, %v3987_v2  ;;  %v4026_v49 = vld [vmem:[%s18185_s3 + $0x5f0] sm:$0xff]  ;;  %v4023_v50 = vld [vmem:[%s18185_s3 + $0x5d8] sm:$0xff] }
 0x350   :  { %7466 = vmatprep.subr.bf16.mxu1 %v12099_v6  ;;  %v12145_v6 = vcombine.high %v3982_v0, %v3986_v62  ;;  %v12178_v60 = vcombine.low %v4015_v42, %v4019_v43 }
 0x352   :  { %7303 = vmatpush1.bf16.msra.mxu0 %v12096_v18  ;;  %v12146_v18 = vcombine.low %v3983_v13, %v3987_v2  ;;  %v4035_v13 = vld [vmem:[%s18185_s3 + $0x638] sm:$0xff] }
 0x353   :  { %7467 = vmatpush1.bf16.msra.mxu1 %v12098_v19  ;;  %7304 = vmatprep.subr.bf16.mxu0 %v12105_v20  ;;  %v12153_v19 = vcombine.high %v3990_v11, %v3994_v14  ;;  %v4042_v11 = vld [vmem:[%s18185_s3 + $0x670] sm:$0xff]  ;;  %v4039_v14 = vld [vmem:[%s18185_s3 + $0x658] sm:$0xff] }
 0x354   :  { %7468 = vmatprep.subr.bf16.mxu1 %v12107_v23  ;;  %v3998_v23 = vld [vmem:[%s18185_s3 + $0x510] sm:$0xff] }
 0x355   :  { %v12160_v38 = vcombine.low %v3998_v23, %v4002_v12 }
 0x356   :  { %7305 = vmatpush1.bf16.msra.mxu0 %v12104_v28 }
 0x357   :  { %7469 = vmatpush1.bf16.msra.mxu1 %v12106_v29  ;;  %7306 = vmatprep.subr.bf16.mxu0 %v12113_v30  ;;  %v12161_v29 = vcombine.high %v3998_v23, %v4002_v12  ;;  %v12163_v30 = vcombine.high %v3999_v25, %v4003_v26  ;;  %v4050_v23 = vld [vmem:[%s18185_s3 + $0x6b0] sm:$0xff]  ;;  %v4047_v12 = vld [vmem:[%s18185_s3 + $0x698] sm:$0xff] }
 0x358   :  { %7470 = vmatprep.subr.bf16.mxu1 %v12115_v21  ;;  %v4006_v21 = vld [vmem:[%s18185_s3 + $0x550] sm:$0xff] }
 0x359   :  { %v12168_v44 = vcombine.low %v4006_v21, %v4010_v34 }
 0x35a   :  { %7307 = vmatpush1.bf16.msra.mxu0 %v12112_v39  ;;  %v12162_v39 = vcombine.low %v3999_v25, %v4003_v26  ;;  %v4051_v25 = vld [vmem:[%s18185_s3 + $0x6b8] sm:$0xff] }
 0x35b   :  { %7471 = vmatpush1.bf16.msra.mxu1 %v12114_v40  ;;  %7308 = vmatprep.subr.bf16.mxu0 %v12121_v9  ;;  %v12169_v40 = vcombine.high %v4006_v21, %v4010_v34  ;;  %v12171_v9 = vcombine.high %v4007_v48, %v4011_v35  ;;  %v4058_v21 = vld [vmem:[%s18185_s3 + $0x6f0] sm:$0xff]  ;;  %v4055_v34 = vld [vmem:[%s18185_s3 + $0x6d8] sm:$0xff] }
 0x35c   :  { %7472 = vmatprep.subr.bf16.mxu1 %v12123_v32  ;;  %v4014_v32 = vld [vmem:[%s18185_s3 + $0x590] sm:$0xff] }
 0x35d   :  { %v12176_v52 = vcombine.low %v4014_v32, %v4018_v41 }
 0x35e   :  { %7309 = vmatpush1.bf16.msra.mxu0 %v12120_v46  ;;  %v12170_v46 = vcombine.low %v4007_v48, %v4011_v35  ;;  %v4059_v48 = vld [vmem:[%s18185_s3 + $0x6f8] sm:$0xff] }
 0x35f   :  { %7473 = vmatpush1.bf16.msra.mxu1 %v12122_v45  ;;  %7319 = vmatprep.subr.bf16.mxu0 %v12129_v4  ;;  %v12177_v45 = vcombine.high %v4014_v32, %v4018_v41  ;;  %v12179_v4 = vcombine.high %v4015_v42, %v4019_v43  ;;  %v4066_v32 = vld [vmem:[%s18185_s3 + $0x730] sm:$0xff]  ;;  %v4063_v41 = vld [vmem:[%s18185_s3 + $0x718] sm:$0xff] }
 0x360   :  { %7483 = vmatprep.subr.bf16.mxu1 %v12131_v47  ;;  %v4022_v47 = vld [vmem:[%s18185_s3 + $0x5d0] sm:$0xff]  ;;  %v4067_v42 = vld [vmem:[%s18185_s3 + $0x738] sm:$0xff] }
 0x361   :  { %7311 = vmatmul.mubr.bf16.vlgmr.msra.gmra.mrb[12].mxu0 %v15105_v7  ;;  %v12184_v2 = vcombine.low %v4022_v47, %v4026_v49 }
 0x362   :  { %7475 = vmatmul.mubr.bf16.vlgmr.msra.gmra.mrb[12].mxu1 %v15105_v7  ;;  %7320 = vmatpush1.bf16.msra.mxu0 %v12128_v51  ;;  %v3991_v7 = vld [vmem:[%s18185_s3 + $0x4d8] sm:$0xff] }
 0x363   :  { %7351 = vmatprep.mubr.bf16.mxu0 %v15113_v57  ;;  %7484 = vmatpush1.bf16.msra.mxu1 %v12130_v54  ;;  %v12155_v20 = vcombine.high %v3991_v7, %v3995_v17  ;;  %v12154_v28 = vcombine.low %v3991_v7, %v3995_v17  ;;  %v4027_v51 = vld [vmem:[%s18185_s3 + $0x5f8] sm:$0xff]  ;;  %v12185_v54 = vcombine.high %v4022_v47, %v4026_v49  ;;  %v4074_v47 = vld [vmem:[%s18185_s3 + $0x770] sm:$0xff] }
 0x364   :  { %7515 = vmatprep.mubr.bf16.mxu1 %v15113_v57  ;;  %7321 = vmatprep.subr.bf16.mxu0 %v12137_v61  ;;  %v12144_v57 = vcombine.low %v3982_v0, %v3986_v62  ;;  %v12187_v61 = vcombine.high %v4023_v50, %v4027_v51  ;;  %v4030_v0 = vld [vmem:[%s18185_s3 + $0x610] sm:$0xff]  ;;  %v4043_v7 = vld [vmem:[%s18185_s3 + $0x678] sm:$0xff] }
 0x365   :  { %7485 = vmatprep.subr.bf16.mxu1 %v12139_v63  ;;  %v4034_v62 = vld [vmem:[%s18185_s3 + $0x630] sm:$0xff]  ;;  %v4031_v63 = vld [vmem:[%s18185_s3 + $0x618] sm:$0xff] }
 0x366   :  { %7322 = vmatpush1.bf16.msra.mxu0 %v12136_v3  ;;  %v12186_v3 = vcombine.low %v4023_v50, %v4027_v51  ;;  %v12192_v17 = vcombine.low %v4030_v0, %v4034_v62  ;;  %v4071_v49 = vld [vmem:[%s18185_s3 + $0x758] sm:$0xff] }
 0x367   :  { %7486 = vmatpush1.bf16.msra.mxu1 %v12138_v5  ;;  %7323 = vmatprep.subr.bf16.mxu0 %v12145_v6  ;;  %v12193_v5 = vcombine.high %v4030_v0, %v4034_v62  ;;  %v12195_v6 = vcombine.high %v4031_v63, %v4035_v13  ;;  %v4075_v50 = vld [vmem:[%s18185_s3 + $0x778] sm:$0xff]  ;;  %v4082_v0 = vld [vmem:[%s18185_s3 + $0x7b0] sm:$0xff] }
 0x368   :  { %7487 = vmatprep.subr.bf16.mxu1 %v12147_v10  ;;  %v4038_v10 = vld [vmem:[%s18185_s3 + $0x650] sm:$0xff]  ;;  %v4079_v62 = vld [vmem:[%s18185_s3 + $0x798] sm:$0xff] }
 0x369   :  { %v12200_v26 = vcombine.low %v4038_v10, %v4042_v11 }
 0x36a   :  { %7324 = vmatpush1.bf16.msra.mxu0 %v12144_v57  ;;  %v12194_v57 = vcombine.low %v4031_v63, %v4035_v13  ;;  %v4083_v63 = vld [vmem:[%s18185_s3 + $0x7b8] sm:$0xff] }
 0x36b   :  { %7488 = vmatpush1.bf16.msra.mxu1 %v12146_v18  ;;  %7325 = vmatprep.subr.bf16.mxu0 %v12153_v19  ;;  %v12201_v18 = vcombine.high %v4038_v10, %v4042_v11  ;;  %v12203_v19 = vcombine.high %v4039_v14, %v4043_v7  ;;  %v4090_v10 = vld [vmem:[%s18185_s3 + $0x7f0] sm:$0xff]  ;;  %v4087_v11 = vld [vmem:[%s18185_s3 + $0x7d8] sm:$0xff] }
 0x36c   :  { %7489 = vmatprep.subr.bf16.mxu1 %v12155_v20  ;;  %v4046_v20 = vld [vmem:[%s18185_s3 + $0x690] sm:$0xff] }
 0x36d   :  { %v12208_v35 = vcombine.low %v4046_v20, %v4050_v23 }
 0x36e   :  { %7326 = vmatpush1.bf16.msra.mxu0 %v12152_v27  ;;  %v12202_v27 = vcombine.low %v4039_v14, %v4043_v7  ;;  %v4091_v14 = vld [vmem:[%s18185_s3 + $0x7f8] sm:$0xff] }
 0x36f   :  { %7490 = vmatpush1.bf16.msra.mxu1 %v12154_v28  ;;  %7327 = vmatprep.subr.bf16.mxu0 %v12161_v29  ;;  %v12209_v28 = vcombine.high %v4046_v20, %v4050_v23  ;;  %v12211_v29 = vcombine.high %v4047_v12, %v4051_v25  ;;  %v4098_v20 = vld [vmem:[%s18185_s3 + $0x830] sm:$0xff]  ;;  %v4095_v23 = vld [vmem:[%s18185_s3 + $0x818] sm:$0xff] }
 0x370   :  { %7491 = vmatprep.subr.bf16.mxu1 %v12163_v30  ;;  %v4054_v30 = vld [vmem:[%s18185_s3 + $0x6d0] sm:$0xff] }
 0x371   :  { %v12216_v43 = vcombine.low %v4054_v30, %v4058_v21 }
 0x372   :  { %7328 = vmatpush1.bf16.msra.mxu0 %v12160_v38  ;;  %v12210_v38 = vcombine.low %v4047_v12, %v4051_v25  ;;  %v4099_v12 = vld [vmem:[%s18185_s3 + $0x838] sm:$0xff] }
 0x373   :  { %7492 = vmatpush1.bf16.msra.mxu1 %v12162_v39  ;;  %7329 = vmatprep.subr.bf16.mxu0 %v12169_v40  ;;  %v12217_v39 = vcombine.high %v4054_v30, %v4058_v21  ;;  %v12219_v40 = vcombine.high %v4055_v34, %v4059_v48  ;;  %v4106_v30 = vld [vmem:[%s18185_s3 + $0x870] sm:$0xff] }
 0x374   :  { %7493 = vmatprep.subr.bf16.mxu1 %v12171_v9  ;;  %v4062_v9 = vld [vmem:[%s18185_s3 + $0x710] sm:$0xff] }
 0x375   :  { %v12224_v51 = vcombine.low %v4062_v9, %v4066_v32 }
 0x376   :  { %7330 = vmatpush1.bf16.msra.mxu0 %v12168_v44  ;;  %v12218_v44 = vcombine.low %v4055_v34, %v4059_v48  ;;  %v4103_v34 = vld [vmem:[%s18185_s3 + $0x858] sm:$0xff] }
 0x377   :  { %7494 = vmatpush1.bf16.msra.mxu1 %v12170_v46  ;;  %7331 = vmatprep.subr.bf16.mxu0 %v12177_v45  ;;  %v12225_v46 = vcombine.high %v4062_v9, %v4066_v32  ;;  %v12227_v45 = vcombine.high %v4063_v41, %v4067_v42  ;;  %v4107_v48 = vld [vmem:[%s18185_s3 + $0x878] sm:$0xff] }
 0x378   :  { %7495 = vmatprep.subr.bf16.mxu1 %v12179_v4  ;;  %v4070_v4 = vld [vmem:[%s18185_s3 + $0x750] sm:$0xff]  ;;  %v12267_v9 = vcombine.high %v4103_v34, %v4107_v48  ;;  %v4111_v32 = vld [vmem:[%s18185_s3 + $0x898] sm:$0xff] }
 0x379   :  { %v12232_v13 = vcombine.low %v4070_v4, %v4074_v47 }
 0x37a   :  { %7332 = vmatpush1.bf16.msra.mxu0 %v12176_v52  ;;  %v12226_v52 = vcombine.low %v4063_v41, %v4067_v42  ;;  %v4115_v41 = vld [vmem:[%s18185_s3 + $0x8b8] sm:$0xff] }
 0x37b   :  { %7496 = vmatpush1.bf16.msra.mxu1 %v12178_v60  ;;  %7333 = vmatprep.subr.bf16.mxu0 %v12185_v54  ;;  %v12233_v60 = vcombine.high %v4070_v4, %v4074_v47  ;;  %v12235_v54 = vcombine.high %v4071_v49, %v4075_v50  ;;  %v4122_v4 = vld [vmem:[%s18185_s3 + $0x8f0] sm:$0xff]  ;;  %v4123_v47 = vld [vmem:[%s18185_s3 + $0x8f8] sm:$0xff] }
 0x37c   :  { %7497 = vmatprep.subr.bf16.mxu1 %v12187_v61  ;;  %v4078_v61 = vld [vmem:[%s18185_s3 + $0x790] sm:$0xff] }
 0x37d   :  { %v12240_v7 = vcombine.low %v4078_v61, %v4082_v0 }
 0x37e   :  { %7334 = vmatpush1.bf16.msra.mxu0 %v12184_v2  ;;  %v12234_v2 = vcombine.low %v4071_v49, %v4075_v50  ;;  %v12274_v49 = vcombine.low %v4111_v32, %v4115_v41 }
 0x37f   :  { %7498 = vmatpush1.bf16.msra.mxu1 %v12186_v3  ;;  %7335 = vmatprep.subr.bf16.mxu0 %v12193_v5  ;;  %v12241_v3 = vcombine.high %v4078_v61, %v4082_v0  ;;  %v12243_v5 = vcombine.high %v4079_v62, %v4083_v63  ;;  %v4131_v61 = vld [vmem:[%s18185_s3 + $0x938] sm:$0xff] }
 0x380   :  { %7499 = vmatprep.subr.bf16.mxu1 %v12195_v6  ;;  %v4086_v6 = vld [vmem:[%s18185_s3 + $0x7d0] sm:$0xff] }
 0x381   :  { %v12248_v25 = vcombine.low %v4086_v6, %v4090_v10 }
 0x382   :  { %7336 = vmatpush1.bf16.msra.mxu0 %v12192_v17  ;;  %v12242_v17 = vcombine.low %v4079_v62, %v4083_v63 }
 0x383   :  { %7500 = vmatpush1.bf16.msra.mxu1 %v12194_v57  ;;  %7337 = vmatprep.subr.bf16.mxu0 %v12201_v18  ;;  %v12249_v57 = vcombine.high %v4086_v6, %v4090_v10  ;;  %v12251_v18 = vcombine.high %v4087_v11, %v4091_v14  ;;  %v4139_v6 = vld [vmem:[%s18185_s3 + $0x978] sm:$0xff] }
 0x384   :  { %7501 = vmatprep.subr.bf16.mxu1 %v12203_v19  ;;  %v4094_v19 = vld [vmem:[%s18185_s3 + $0x810] sm:$0xff] }
 0x385   :  { %v12256_v21 = vcombine.low %v4094_v19, %v4098_v20 }
 0x386   :  { %7338 = vmatpush1.bf16.msra.mxu0 %v12200_v26  ;;  %v12250_v26 = vcombine.low %v4087_v11, %v4091_v14 }
 0x387   :  { %7502 = vmatpush1.bf16.msra.mxu1 %v12202_v27  ;;  %7339 = vmatprep.subr.bf16.mxu0 %v12209_v28  ;;  %v12257_v27 = vcombine.high %v4094_v19, %v4098_v20  ;;  %v12259_v28 = vcombine.high %v4095_v23, %v4099_v12  ;;  %v4147_v19 = vld [vmem:[%s18185_s3 + $0x9b8] sm:$0xff] }
 0x388   :  { %7503 = vmatprep.subr.bf16.mxu1 %v12211_v29  ;;  %v4102_v29 = vld [vmem:[%s18185_s3 + $0x850] sm:$0xff] }
 0x389   :  { %v12264_v42 = vcombine.low %v4102_v29, %v4106_v30 }
 0x38a   :  { %7340 = vmatpush1.bf16.msra.mxu0 %v12208_v35  ;;  %v12258_v35 = vcombine.low %v4095_v23, %v4099_v12 }
 0x38b   :  { %7504 = vmatpush1.bf16.msra.mxu1 %v12210_v38  ;;  %7341 = vmatprep.subr.bf16.mxu0 %v12217_v39  ;;  %v12265_v38 = vcombine.high %v4102_v29, %v4106_v30  ;;  %v4110_v39 = vld [vmem:[%s18185_s3 + $0x890] sm:$0xff]  ;;  %v4155_v29 = vld [vmem:[%s18185_s3 + $0x9f8] sm:$0xff] }
 0x38c   :  { %7505 = vmatprep.subr.bf16.mxu1 %v12219_v40  ;;  %v4114_v40 = vld [vmem:[%s18185_s3 + $0x8b0] sm:$0xff] }
 0x38e   :  { %7342 = vmatpush1.bf16.msra.mxu0 %v12216_v43  ;;  %v12266_v43 = vcombine.low %v4103_v34, %v4107_v48 }
 0x38f   :  { %7506 = vmatpush1.bf16.msra.mxu1 %v12218_v44  ;;  %7343 = vmatprep.subr.bf16.mxu0 %v12225_v46  ;;  %v12273_v44 = vcombine.high %v4110_v39, %v4114_v40  ;;  %v12275_v46 = vcombine.high %v4111_v32, %v4115_v41 }
 0x390   :  { %7507 = vmatprep.subr.bf16.mxu1 %v12227_v45  ;;  %v4118_v45 = vld [vmem:[%s18185_s3 + $0x8d0] sm:$0xff] }
 0x391   :  { %v12281_v50 = vcombine.high %v4118_v45, %v4122_v4  ;;  %v12280_v0 = vcombine.low %v4118_v45, %v4122_v4  ;;  %v4171_v45 = vld [vmem:[%s18185_s3 + $0xa78] sm:$0xff] }
 0x392   :  { %7344 = vmatpush1.bf16.msra.mxu0 %v12224_v51 }
 0x393   :  { %7508 = vmatpush1.bf16.msra.mxu1 %v12226_v52  ;;  %7345 = vmatprep.subr.bf16.mxu0 %v12233_v60  ;;  %v4126_v52 = vld [vmem:[%s18185_s3 + $0x910] sm:$0xff] }
 0x394   :  { %7509 = vmatprep.subr.bf16.mxu1 %v12235_v54  ;;  %v4130_v60 = vld [vmem:[%s18185_s3 + $0x930] sm:$0xff]  ;;  %v4127_v54 = vld [vmem:[%s18185_s3 + $0x918] sm:$0xff] }
 0x395   :  { %v12289_v63 = vcombine.high %v4126_v52, %v4130_v60  ;;  %v12288_v10 = vcombine.low %v4126_v52, %v4130_v60  ;;  %v12290_v11 = vcombine.low %v4127_v54, %v4131_v61  ;;  %v4179_v52 = vld [vmem:[%s18185_s3 + $0xab8] sm:$0xff] }
 0x396   :  { %7346 = vmatpush1.bf16.msra.mxu0 %v12232_v13  ;;  %v12291_v13 = vcombine.high %v4127_v54, %v4131_v61 }
 0x397   :  { %7510 = vmatpush1.bf16.msra.mxu1 %v12234_v2  ;;  %7347 = vmatprep.subr.bf16.mxu0 %v12241_v3  ;;  %v4134_v2 = vld [vmem:[%s18185_s3 + $0x950] sm:$0xff] }
 0x398   :  { %7511 = vmatprep.subr.bf16.mxu1 %v12243_v5  ;;  %v4138_v3 = vld [vmem:[%s18185_s3 + $0x970] sm:$0xff]  ;;  %v4135_v5 = vld [vmem:[%s18185_s3 + $0x958] sm:$0xff] }
 0x399   :  { %v12297_v14 = vcombine.high %v4134_v2, %v4138_v3  ;;  %v12296_v20 = vcombine.low %v4134_v2, %v4138_v3  ;;  %v12298_v23 = vcombine.low %v4135_v5, %v4139_v6  ;;  %v4187_v2 = vld [vmem:[%s18185_s3 + $0xaf8] sm:$0xff] }
 0x39a   :  { %7348 = vmatpush1.bf16.msra.mxu0 %v12240_v7  ;;  %v12299_v7 = vcombine.high %v4135_v5, %v4139_v6 }
 0x39b   :  { %7512 = vmatpush1.bf16.msra.mxu1 %v12242_v17  ;;  %7349 = vmatprep.subr.bf16.mxu0 %v12249_v57  ;;  %v4142_v17 = vld [vmem:[%s18185_s3 + $0x990] sm:$0xff] }
 0x39c   :  { %7513 = vmatprep.subr.bf16.mxu1 %v12251_v18  ;;  %v4146_v57 = vld [vmem:[%s18185_s3 + $0x9b0] sm:$0xff]  ;;  %v4143_v18 = vld [vmem:[%s18185_s3 + $0x998] sm:$0xff] }
 0x39d   :  { %v12305_v12 = vcombine.high %v4142_v17, %v4146_v57  ;;  %v12304_v30 = vcombine.low %v4142_v17, %v4146_v57  ;;  %v4195_v17 = vld [vmem:[%s18185_s3 + $0xb38] sm:$0xff] }
 0x39e   :  { %7350 = vmatpush1.bf16.msra.mxu0 %v12248_v25  ;;  %v12307_v25 = vcombine.high %v4143_v18, %v4147_v19 }
 0x39f   :  { %7514 = vmatpush1.bf16.msra.mxu1 %v12250_v26  ;;  %7360 = vmatprep.subr.bf16.mxu0 %v12257_v27  ;;  %v4150_v26 = vld [vmem:[%s18185_s3 + $0x9d0] sm:$0xff] }
 0x3a0   :  { %7524 = vmatprep.subr.bf16.mxu1 %v12259_v28  ;;  %v4154_v27 = vld [vmem:[%s18185_s3 + $0x9f0] sm:$0xff]  ;;  %v4151_v28 = vld [vmem:[%s18185_s3 + $0x9d8] sm:$0xff] }
 0x3a1   :  { %7352 = vmatmul.mubr.bf16.vlgmr.msra.gmra.mrb[12].mxu0 %v15311_v36  ;;  %v12313_v34 = vcombine.high %v4150_v26, %v4154_v27  ;;  %v12315_v48 = vcombine.high %v4151_v28, %v4155_v29  ;;  %v12314_v32 = vcombine.low %v4151_v28, %v4155_v29 }
 0x3a2   :  { %7516 = vmatmul.mubr.bf16.vlgmr.msra.gmra.mrb[12].mxu1 %v15311_v36  ;;  %7361 = vmatpush1.bf16.msra.mxu0 %v12256_v21  ;;  %v4119_v36 = vld [vmem:[%s18185_s3 + $0x8d8] sm:$0xff]  ;;  %v12306_v21 = vcombine.low %v4143_v18, %v4147_v19 }
 0x3a3   :  { %7392 = vmatprep.mubr.bf16.mxu0 %v15529_v24  ;;  %7525 = vmatpush1.bf16.msra.mxu1 %v12258_v35  ;;  %v12283_v51 = vcombine.high %v4119_v36, %v4123_v47  ;;  %v12282_v62 = vcombine.low %v4119_v36, %v4123_v47  ;;  %v4158_v35 = vld [vmem:[%s18185_s3 + $0xa10] sm:$0xff] }
 0x3a4   :  { %7556 = vmatprep.mubr.bf16.mxu1 %v15529_v24  ;;  %7362 = vmatprep.subr.bf16.mxu0 %v12265_v38  ;;  %v12272_v24 = vcombine.low %v4110_v39, %v4114_v40  ;;  %v4162_v38 = vld [vmem:[%s18185_s3 + $0xa30] sm:$0xff]  ;;  %v4159_v39 = vld [vmem:[%s18185_s3 + $0xa18] sm:$0xff] }
 0x3a5   :  { %7526 = vmatprep.subr.bf16.mxu1 %v12267_v9  ;;  %v4163_v40 = vld [vmem:[%s18185_s3 + $0xa38] sm:$0xff]  ;;  %v12312_v9 = vcombine.low %v4150_v26, %v4154_v27  ;;  %v12321_v41 = vcombine.high %v4158_v35, %v4162_v38  ;;  %v12320_v4 = vcombine.low %v4158_v35, %v4162_v38 }
 0x3a6   :  { %7363 = vmatpush1.bf16.msra.mxu0 %v12264_v42  ;;  %v12323_v42 = vcombine.high %v4159_v39, %v4163_v40  ;;  %v12322_v36 = vcombine.low %v4159_v39, %v4163_v40  ;;  %v4203_v26 = vld [vmem:[%s18185_s3 + $0xb78] sm:$0xff] }
 0x3a7   :  { %7527 = vmatpush1.bf16.msra.mxu1 %v12266_v43  ;;  %7364 = vmatprep.subr.bf16.mxu0 %v12273_v44  ;;  %v4166_v43 = vld [vmem:[%s18185_s3 + $0xa50] sm:$0xff]  ;;  %v4211_v35 = vld [vmem:[%s18185_s3 + $0xbb8] sm:$0xff] }
 0x3a8   :  { %7528 = vmatprep.subr.bf16.mxu1 %v12275_v46  ;;  %v4170_v44 = vld [vmem:[%s18185_s3 + $0xa70] sm:$0xff]  ;;  %v4167_v46 = vld [vmem:[%s18185_s3 + $0xa58] sm:$0xff] }
 0x3a9   :  { %v12329_v47 = vcombine.high %v4166_v43, %v4170_v44  ;;  %v12328_v60 = vcombine.low %v4166_v43, %v4170_v44  ;;  %v12330_v54 = vcombine.low %v4167_v46, %v4171_v45  ;;  %v4219_v43 = vld [vmem:[%s18185_s3 + $0xbf8] sm:$0xff] }
 0x3aa   :  { %7365 = vmatpush1.bf16.msra.mxu0 %v12272_v24  ;;  %v12331_v24 = vcombine.high %v4167_v46, %v4171_v45 }
 0x3ab   :  { %7529 = vmatpush1.bf16.msra.mxu1 %v12274_v49  ;;  %7366 = vmatprep.subr.bf16.mxu0 %v12281_v50  ;;  %v4174_v49 = vld [vmem:[%s18185_s3 + $0xa90] sm:$0xff] }
 0x3ac   :  { %7530 = vmatprep.subr.bf16.mxu1 %v12283_v51  ;;  %v4178_v50 = vld [vmem:[%s18185_s3 + $0xab0] sm:$0xff]  ;;  %v4175_v51 = vld [vmem:[%s18185_s3 + $0xa98] sm:$0xff] }
 0x3ad   :  { %v12337_v61 = vcombine.high %v4174_v49, %v4178_v50  ;;  %v12336_v3 = vcombine.low %v4174_v49, %v4178_v50  ;;  %v12338_v5 = vcombine.low %v4175_v51, %v4179_v52  ;;  %v4227_v49 = vld [vmem:[%s18185_s3 + $0xc38] sm:$0xff] }
 0x3ae   :  { %7367 = vmatpush1.bf16.msra.mxu0 %v12280_v0  ;;  %v12339_v0 = vcombine.high %v4175_v51, %v4179_v52 }
 0x3af   :  { %7531 = vmatpush1.bf16.msra.mxu1 %v12282_v62  ;;  %7368 = vmatprep.subr.bf16.mxu0 %v12289_v63  ;;  %v4182_v62 = vld [vmem:[%s18185_s3 + $0xad0] sm:$0xff] }
 0x3b0   :  { %7532 = vmatprep.subr.bf16.mxu1 %v12291_v13  ;;  %v4186_v63 = vld [vmem:[%s18185_s3 + $0xaf0] sm:$0xff]  ;;  %v4183_v13 = vld [vmem:[%s18185_s3 + $0xad8] sm:$0xff] }
 0x3b1   :  { %v12345_v6 = vcombine.high %v4182_v62, %v4186_v63  ;;  %v12344_v57 = vcombine.low %v4182_v62, %v4186_v63  ;;  %v12346_v18 = vcombine.low %v4183_v13, %v4187_v2  ;;  %v4231_v62 = vld [vmem:[%s18185_s3 + $0xc58] sm:$0xff] }
 0x3b2   :  { %7369 = vmatpush1.bf16.msra.mxu0 %v12288_v10  ;;  %v12347_v10 = vcombine.high %v4183_v13, %v4187_v2  ;;  %v4235_v63 = vld [vmem:[%s18185_s3 + $0xc78] sm:$0xff] }
 0x3b3   :  { %7533 = vmatpush1.bf16.msra.mxu1 %v12290_v11  ;;  %7370 = vmatprep.subr.bf16.mxu0 %v12297_v14  ;;  %v4190_v11 = vld [vmem:[%s18185_s3 + $0xb10] sm:$0xff] }
 0x3b4   :  { %7534 = vmatprep.subr.bf16.mxu1 %v12299_v7  ;;  %v4194_v14 = vld [vmem:[%s18185_s3 + $0xb30] sm:$0xff]  ;;  %v4191_v7 = vld [vmem:[%s18185_s3 + $0xb18] sm:$0xff] }
 0x3b5   :  { %v12353_v19 = vcombine.high %v4190_v11, %v4194_v14  ;;  %v12352_v27 = vcombine.low %v4190_v11, %v4194_v14  ;;  %v12354_v28 = vcombine.low %v4191_v7, %v4195_v17  ;;  %v4243_v11 = vld [vmem:[%s18185_s3 + $0xcb8] sm:$0xff] }
 0x3b6   :  { %7371 = vmatpush1.bf16.msra.mxu0 %v12296_v20  ;;  %v12355_v20 = vcombine.high %v4191_v7, %v4195_v17  ;;  %v12394_v7 = vcombine.low %v4231_v62, %v4235_v63 }
 0x3b7   :  { %7535 = vmatpush1.bf16.msra.mxu1 %v12298_v23  ;;  %7372 = vmatprep.subr.bf16.mxu0 %v12305_v12  ;;  %v4198_v23 = vld [vmem:[%s18185_s3 + $0xb50] sm:$0xff] }
 0x3b8   :  { %7536 = vmatprep.subr.bf16.mxu1 %v12307_v25  ;;  %v4202_v12 = vld [vmem:[%s18185_s3 + $0xb70] sm:$0xff]  ;;  %v4199_v25 = vld [vmem:[%s18185_s3 + $0xb58] sm:$0xff] }
 0x3b9   :  { %v12361_v29 = vcombine.high %v4198_v23, %v4202_v12  ;;  %v12360_v38 = vcombine.low %v4198_v23, %v4202_v12  ;;  %v12362_v39 = vcombine.low %v4199_v25, %v4203_v26 }
 0x3ba   :  { %7373 = vmatpush1.bf16.msra.mxu0 %v12304_v30  ;;  %v12363_v30 = vcombine.high %v4199_v25, %v4203_v26  ;;  %v4254_v26 = vld [vmem:[%s18185_s3 + $0xd10] sm:$0xff] }
 0x3bb   :  { %7537 = vmatpush1.bf16.msra.mxu1 %v12306_v21  ;;  %7374 = vmatprep.subr.bf16.mxu0 %v12313_v34  ;;  %v4206_v21 = vld [vmem:[%s18185_s3 + $0xb90] sm:$0xff] }
 0x3bc   :  { %7538 = vmatprep.subr.bf16.mxu1 %v12315_v48  ;;  %v4210_v34 = vld [vmem:[%s18185_s3 + $0xbb0] sm:$0xff]  ;;  %v4207_v48 = vld [vmem:[%s18185_s3 + $0xb98] sm:$0xff] }
 0x3bd   :  { %v12369_v40 = vcombine.high %v4206_v21, %v4210_v34  ;;  %v12368_v44 = vcombine.low %v4206_v21, %v4210_v34  ;;  %v12370_v46 = vcombine.low %v4207_v48, %v4211_v35 }
 0x3be   :  { %7375 = vmatpush1.bf16.msra.mxu0 %v12312_v9  ;;  %v12371_v9 = vcombine.high %v4207_v48, %v4211_v35  ;;  %v4262_v35 = vld [vmem:[%s18185_s3 + $0xd50] sm:$0xff] }
 0x3bf   :  { %7539 = vmatpush1.bf16.msra.mxu1 %v12314_v32  ;;  %7376 = vmatprep.subr.bf16.mxu0 %v12321_v41  ;;  %v4214_v32 = vld [vmem:[%s18185_s3 + $0xbd0] sm:$0xff] }
 0x3c0   :  { %7540 = vmatprep.subr.bf16.mxu1 %v12323_v42  ;;  %v4218_v41 = vld [vmem:[%s18185_s3 + $0xbf0] sm:$0xff]  ;;  %v4215_v42 = vld [vmem:[%s18185_s3 + $0xbd8] sm:$0xff] }
 0x3c1   :  { %v12377_v45 = vcombine.high %v4214_v32, %v4218_v41  ;;  %v12376_v50 = vcombine.low %v4214_v32, %v4218_v41  ;;  %v12378_v51 = vcombine.low %v4215_v42, %v4219_v43 }
 0x3c2   :  { %7377 = vmatpush1.bf16.msra.mxu0 %v12320_v4  ;;  %v12379_v4 = vcombine.high %v4215_v42, %v4219_v43  ;;  %v4270_v43 = vld [vmem:[%s18185_s3 + $0xd90] sm:$0xff] }
 0x3c3   :  { %7541 = vmatpush1.bf16.msra.mxu1 %v12322_v36  ;;  %7378 = vmatprep.subr.bf16.mxu0 %v12329_v47  ;;  %v4222_v36 = vld [vmem:[%s18185_s3 + $0xc10] sm:$0xff] }
 0x3c4   :  { %7542 = vmatprep.subr.bf16.mxu1 %v12331_v24  ;;  %v4226_v47 = vld [vmem:[%s18185_s3 + $0xc30] sm:$0xff]  ;;  %v4223_v24 = vld [vmem:[%s18185_s3 + $0xc18] sm:$0xff] }
 0x3c5   :  { %v12385_v52 = vcombine.high %v4222_v36, %v4226_v47  ;;  %v12386_v13 = vcombine.low %v4223_v24, %v4227_v49 }
 0x3c6   :  { %7379 = vmatpush1.bf16.msra.mxu0 %v12328_v60  ;;  %v12387_v60 = vcombine.high %v4223_v24, %v4227_v49 }
 0x3c7   :  { %7543 = vmatpush1.bf16.msra.mxu1 %v12330_v54  ;;  %7380 = vmatprep.subr.bf16.mxu0 %v12337_v61  ;;  %v4230_v54 = vld [vmem:[%s18185_s3 + $0xc50] sm:$0xff] }
 0x3c8   :  { %7544 = vmatprep.subr.bf16.mxu1 %v12339_v0  ;;  %v4234_v61 = vld [vmem:[%s18185_s3 + $0xc70] sm:$0xff]  ;;  %v12384_v0 = vcombine.low %v4222_v36, %v4226_v47 }
 0x3c9   :  { %v12393_v2 = vcombine.high %v4230_v54, %v4234_v61  ;;  %v12392_v14 = vcombine.low %v4230_v54, %v4234_v61  ;;  %v4279_v61 = vld [vmem:[%s18185_s3 + $0xdd8] sm:$0xff] }
 0x3ca   :  { %7381 = vmatpush1.bf16.msra.mxu0 %v12336_v3  ;;  %v4238_v3 = vld [vmem:[%s18185_s3 + $0xc90] sm:$0xff] }
 0x3cb   :  { %7545 = vmatpush1.bf16.msra.mxu1 %v12338_v5  ;;  %7382 = vmatprep.subr.bf16.mxu0 %v12345_v6  ;;  %v4242_v5 = vld [vmem:[%s18185_s3 + $0xcb0] sm:$0xff]  ;;  %v12395_v6 = vcombine.high %v4231_v62, %v4235_v63 }
 0x3cc   :  { %7546 = vmatprep.subr.bf16.mxu1 %v12347_v10  ;;  %v4239_v10 = vld [vmem:[%s18185_s3 + $0xc98] sm:$0xff]  ;;  %v12401_v17 = vcombine.high %v4238_v3, %v4242_v5 }
 0x3cd   :  { %v12402_v23 = vcombine.low %v4239_v10, %v4243_v11 }
 0x3ce   :  { %7383 = vmatpush1.bf16.msra.mxu0 %v12344_v57  ;;  %v12403_v57 = vcombine.high %v4239_v10, %v4243_v11  ;;  %v4286_v11 = vld [vmem:[%s18185_s3 + $0xe10] sm:$0xff] }
 0x3cf   :  { %7547 = vmatpush1.bf16.msra.mxu1 %v12346_v18  ;;  %7384 = vmatprep.subr.bf16.mxu0 %v12353_v19  ;;  %v4246_v18 = vld [vmem:[%s18185_s3 + $0xcd0] sm:$0xff] }
 0x3d0   :  { %7548 = vmatprep.subr.bf16.mxu1 %v12355_v20  ;;  %v4250_v19 = vld [vmem:[%s18185_s3 + $0xcf0] sm:$0xff]  ;;  %v4251_v20 = vld [vmem:[%s18185_s3 + $0xcf8] sm:$0xff] }
 0x3d1   :  { %v12409_v12 = vcombine.high %v4246_v18, %v4250_v19 }
 0x3d2   :  { %7385 = vmatpush1.bf16.msra.mxu0 %v12352_v27  ;;  %v4258_v27 = vld [vmem:[%s18185_s3 + $0xd30] sm:$0xff] }
 0x3d3   :  { %7549 = vmatpush1.bf16.msra.mxu1 %v12354_v28  ;;  %7386 = vmatprep.subr.bf16.mxu0 %v12361_v29  ;;  %v4255_v28 = vld [vmem:[%s18185_s3 + $0xd18] sm:$0xff]  ;;  %v12417_v34 = vcombine.high %v4254_v26, %v4258_v27 }
 0x3d4   :  { %7550 = vmatprep.subr.bf16.mxu1 %v12363_v30  ;;  %v4259_v29 = vld [vmem:[%s18185_s3 + $0xd38] sm:$0xff]  ;;  %v12408_v30 = vcombine.low %v4246_v18, %v4250_v19 }
 0x3d5   :  { %v12419_v48 = vcombine.high %v4255_v28, %v4259_v29  ;;  %v12418_v32 = vcombine.low %v4255_v28, %v4259_v29  ;;  %v4302_v29 = vld [vmem:[%s18185_s3 + $0xe90] sm:$0xff] }
 0x3d6   :  { %7387 = vmatpush1.bf16.msra.mxu0 %v12360_v38  ;;  %v4266_v38 = vld [vmem:[%s18185_s3 + $0xd70] sm:$0xff] }
 0x3d7   :  { %7551 = vmatpush1.bf16.msra.mxu1 %v12362_v39  ;;  %7388 = vmatprep.subr.bf16.mxu0 %v12369_v40  ;;  %v4263_v39 = vld [vmem:[%s18185_s3 + $0xd58] sm:$0xff]  ;;  %v12425_v41 = vcombine.high %v4262_v35, %v4266_v38 }
 0x3d8   :  { %7552 = vmatprep.subr.bf16.mxu1 %v12371_v9  ;;  %v4267_v40 = vld [vmem:[%s18185_s3 + $0xd78] sm:$0xff]  ;;  %v12416_v9 = vcombine.low %v4254_v26, %v4258_v27 }
 0x3d9   :  { %v12427_v42 = vcombine.high %v4263_v39, %v4267_v40  ;;  %v12426_v36 = vcombine.low %v4263_v39, %v4267_v40  ;;  %v4310_v40 = vld [vmem:[%s18185_s3 + $0xed0] sm:$0xff] }
 0x3da   :  { %7389 = vmatpush1.bf16.msra.mxu0 %v12368_v44  ;;  %v4274_v44 = vld [vmem:[%s18185_s3 + $0xdb0] sm:$0xff] }
 0x3db   :  { %7553 = vmatpush1.bf16.msra.mxu1 %v12370_v46  ;;  %7390 = vmatprep.subr.bf16.mxu0 %v12377_v45  ;;  %v4271_v46 = vld [vmem:[%s18185_s3 + $0xd98] sm:$0xff]  ;;  %v12433_v47 = vcombine.high %v4270_v43, %v4274_v44 }
 0x3dc   :  { %7554 = vmatprep.subr.bf16.mxu1 %v12379_v4  ;;  %v4275_v45 = vld [vmem:[%s18185_s3 + $0xdb8] sm:$0xff]  ;;  %v12424_v4 = vcombine.low %v4262_v35, %v4266_v38 }
 0x3de   :  { %7391 = vmatpush1.bf16.msra.mxu0 %v12376_v50  ;;  %v12435_v50 = vcombine.high %v4271_v46, %v4275_v45 }
 0x3df   :  { %7555 = vmatpush1.bf16.msra.mxu1 %v12378_v51  ;;  %7401 = vmatprep.subr.bf16.mxu0 %v12385_v52  ;;  %v4278_v51 = vld [vmem:[%s18185_s3 + $0xdd0] sm:$0xff] }
 0x3e0   :  { %7565 = vmatprep.subr.bf16.mxu1 %v12387_v60  ;;  %v4282_v52 = vld [vmem:[%s18185_s3 + $0xdf0] sm:$0xff] }
 0x3e1   :  { %7393 = vmatmul.mubr.bf16.vlgmr.msra.gmra.mrb[12].mxu0 %v15531_v8 }
 0x3e2   :  { %7557 = vmatmul.mubr.bf16.vlgmr.msra.gmra.mrb[12].mxu1 %v15531_v8  ;;  %7402 = vmatpush1.bf16.msra.mxu0 %v12384_v0  ;;  %v4247_v8 = vld [vmem:[%s18185_s3 + $0xcd8] sm:$0xff] }
 0x3e3   :  { %7433 = vmatprep.mubr.bf16.mxu0 %v15547_v33  ;;  %7566 = vmatpush1.bf16.msra.mxu1 %v12386_v13  ;;  %v12411_v25 = vcombine.high %v4247_v8, %v4251_v20  ;;  %v12410_v21 = vcombine.low %v4247_v8, %v4251_v20  ;;  %v4283_v0 = vld [vmem:[%s18185_s3 + $0xdf8] sm:$0xff]  ;;  %v12432_v13 = vcombine.low %v4270_v43, %v4274_v44  ;;  %v4294_v20 = vld [vmem:[%s18185_s3 + $0xe50] sm:$0xff] }
 0x3e4   :  { %7597 = vmatprep.mubr.bf16.mxu1 %v15547_v33  ;;  %7403 = vmatprep.subr.bf16.mxu0 %v12393_v2  ;;  %v12400_v33 = vcombine.low %v4238_v3, %v4242_v5  ;;  %v12434_v5 = vcombine.low %v4271_v46, %v4275_v45  ;;  %v12443_v10 = vcombine.high %v4279_v61, %v4283_v0  ;;  %v4318_v45 = vld [vmem:[%s18185_s3 + $0xf10] sm:$0xff] }
 0x3e5   :  { %7567 = vmatprep.subr.bf16.mxu1 %v12395_v6  ;;  %v12441_v6 = vcombine.high %v4278_v51, %v4282_v52  ;;  %v12442_v18 = vcombine.low %v4279_v61, %v4283_v0  ;;  %v4326_v0 = vld [vmem:[%s18185_s3 + $0xf50] sm:$0xff] }
 0x3e6   :  { %7404 = vmatpush1.bf16.msra.mxu0 %v12392_v14  ;;  %v4290_v14 = vld [vmem:[%s18185_s3 + $0xe30] sm:$0xff] }
 0x3e7   :  { %7568 = vmatpush1.bf16.msra.mxu1 %v12394_v7  ;;  %7405 = vmatprep.subr.bf16.mxu0 %v12401_v17  ;;  %v4287_v7 = vld [vmem:[%s18185_s3 + $0xe18] sm:$0xff]  ;;  %v12449_v19 = vcombine.high %v4286_v11, %v4290_v14 }
 0x3e8   :  { %7569 = vmatprep.subr.bf16.mxu1 %v12403_v57  ;;  %v4291_v17 = vld [vmem:[%s18185_s3 + $0xe38] sm:$0xff]  ;;  %v12440_v57 = vcombine.low %v4278_v51, %v4282_v52 }
 0x3e9   :  { %v12451_v8 = vcombine.high %v4287_v7, %v4291_v17  ;;  %v12450_v26 = vcombine.low %v4287_v7, %v4291_v17  ;;  %v4339_v7 = vld [vmem:[%s18185_s3 + $0xfb8] sm:$0xff]  ;;  %v16500_v17 = vld [vmem:[%s18186_s4] sm:$0xff] }
 0x3ea   :  { %7406 = vmatpush1.bf16.msra.mxu0 %v12400_v33  ;;  %v4298_v33 = vld [vmem:[%s18185_s3 + $0xe70] sm:$0xff] }
 0x3eb   :  { %7570 = vmatpush1.bf16.msra.mxu1 %v12402_v23  ;;  %7407 = vmatprep.subr.bf16.mxu0 %v12409_v12  ;;  %v4295_v23 = vld [vmem:[%s18185_s3 + $0xe58] sm:$0xff]  ;;  %v12457_v27 = vcombine.high %v4294_v20, %v4298_v33 }
 0x3ec   :  { %7571 = vmatprep.subr.bf16.mxu1 %v12411_v25  ;;  %v4299_v12 = vld [vmem:[%s18185_s3 + $0xe78] sm:$0xff]  ;;  %v12448_v25 = vcombine.low %v4286_v11, %v4290_v14  ;;  %v4338_v11 = vld [vmem:[%s18185_s3 + $0xfb0] sm:$0xff] }
 0x3ed   :  { %v12459_v28 = vcombine.high %v4295_v23, %v4299_v12  ;;  %v12458_v35 = vcombine.low %v4295_v23, %v4299_v12  ;;  %v4335_v14 = vld [vmem:[%s18185_s3 + $0xf98] sm:$0xff]  ;;  %v4357_v23 = vrot.slane %v16500_v17, %v14843_v15 }
 0x3ee   :  { %7408 = vmatpush1.bf16.msra.mxu0 %v12408_v30  ;;  %v4306_v30 = vld [vmem:[%s18185_s3 + $0xeb0] sm:$0xff]  ;;  %v4343_v12 = vld [vmem:[%s18185_s3 + $0xfd8] sm:$0xff] }
 0x3ef   :  { %7572 = vmatpush1.bf16.msra.mxu1 %v12410_v21  ;;  %7409 = vmatprep.subr.bf16.mxu0 %v12417_v34  ;;  %v4303_v21 = vld [vmem:[%s18185_s3 + $0xe98] sm:$0xff]  ;;  %v12465_v38 = vcombine.high %v4302_v29, %v4306_v30 }
 0x3f0   :  { %7573 = vmatprep.subr.bf16.mxu1 %v12419_v48  ;;  %v4307_v34 = vld [vmem:[%s18185_s3 + $0xeb8] sm:$0xff]  ;;  %v12456_v48 = vcombine.low %v4294_v20, %v4298_v33  ;;  %v4342_v20 = vld [vmem:[%s18185_s3 + $0xfd0] sm:$0xff] }
 0x3f1   :  { %v12467_v39 = vcombine.high %v4303_v21, %v4307_v34  ;;  %v12466_v43 = vcombine.low %v4303_v21, %v4307_v34  ;;  %v4346_v33 = vld [vmem:[%s18185_s3 + $0xff0] sm:$0xff]  ;;  %v7626_v21 = vld [vmem:[%s18187_s5 + $0x20] sm:$0xff] }
 0x3f2   :  { %7410 = vmatpush1.bf16.msra.mxu0 %v12416_v9  ;;  %v4314_v9 = vld [vmem:[%s18185_s3 + $0xef0] sm:$0xff] }
 0x3f3   :  { %7574 = vmatpush1.bf16.msra.mxu1 %v12418_v32  ;;  %7411 = vmatprep.subr.bf16.mxu0 %v12425_v41  ;;  %v4311_v32 = vld [vmem:[%s18185_s3 + $0xed8] sm:$0xff]  ;;  %v12473_v44 = vcombine.high %v4310_v40, %v4314_v9 }
 0x3f4   :  { %v16393_v24 = vpop.f32.mrb[8].mxu0  ;;  %v16395_v49 = vpop.f32.mrb[8].mxu1  ;;  %7575 = vmatprep.subr.bf16.mxu1 %v12427_v42  ;;  %v4315_v41 = vld [vmem:[%s18185_s3 + $0xef8] sm:$0xff]  ;;  %v12464_v42 = vcombine.low %v4302_v29, %v4306_v30  ;;  %v7622_v30 = vld [vmem:[%s18187_s5] sm:$0xff] }
 0x3f5   :  { %v16403_v60 = vpop.f32.mrb[9].mxu0  ;;  %v16405_v54 = vpop.f32.mrb[9].mxu1  ;;  %v12475_v46 = vcombine.high %v4311_v32, %v4315_v41  ;;  %v12474_v51 = vcombine.low %v4311_v32, %v4315_v41  ;;  %v7634_v41 = vld [vmem:[%s18187_s5 + $0x60] sm:$0xff] }
 0x3f6   :  { %v7111_v62 = vpop.f32.mrb[10].mxu0  ;;  %v7275_v63 = vpop.f32.mrb[10].mxu1  ;;  %7412 = vmatpush1.bf16.msra.mxu0 %v12424_v4  ;;  %v4322_v4 = vld [vmem:[%s18185_s3 + $0xf30] sm:$0xff]  ;;  %v13029_v34 = vadd.f32 %v16403_v60, %v4357_v23  ;;  %v7630_v60 = vld [vmem:[%s18187_s5 + $0x40] sm:$0xff] }
 0x3f7   :  { %7576 = vmatpush1.bf16.msra.mxu1 %v12426_v36  ;;  %v7112_v2 = vpop.f32.mrb[11].mxu0  ;;  %v7276_v3 = vpop.f32.mrb[11].mxu1  ;;  %7413 = vmatprep.subr.bf16.mxu0 %v12433_v47  ;;  %v4319_v36 = vld [vmem:[%s18185_s3 + $0xf18] sm:$0xff]  ;;  %v12481_v52 = vcombine.high %v4318_v45, %v4322_v4  ;;  %v4330_v62 = vld [vmem:[%s18185_s3 + $0xf70] sm:$0xff]  ;;  %v7662_v23 = vld [vmem:[%s18187_s5 + $0x140] sm:$0xff] }
 0x3f8   :  { %7577 = vmatprep.subr.bf16.mxu1 %v12435_v50  ;;  %v4323_v47 = vld [vmem:[%s18185_s3 + $0xf38] sm:$0xff]  ;;  %v12472_v50 = vcombine.low %v4310_v40, %v4314_v9  ;;  %v12480_v2 = vcombine.low %v4318_v45, %v4322_v4  ;;  %v12509_v40 = vcombine.high %v7622_v30, %v7626_v21  ;;  %v7607_v32 = vmax.f32 %v13029_v34, 0.0  ;;  %v7638_v4 = vld [vmem:[%s18187_s5 + $0x80] sm:$0xff] }
 0x3f9   :  { %v12483_v61 = vcombine.high %v4319_v36, %v4323_v47  ;;  %v4327_v63 = vld [vmem:[%s18185_s3 + $0xf58] sm:$0xff]  ;;  %v12482_v3 = vcombine.low %v4319_v36, %v4323_v47  ;;  %v12517_v45 = vcombine.high %v7630_v60, %v7634_v41  ;;  %v7642_v36 = vld [vmem:[%s18187_s5 + $0xa0] sm:$0xff] }
 0x3fa   :  { %7414 = vmatpush1.bf16.msra.mxu0 %v12432_v13  ;;  %v4331_v13 = vld [vmem:[%s18185_s3 + $0xf78] sm:$0xff]  ;;  %v16547_v47 = vpack.c.bf16 %v7607_v32, %v7607_v32  ;;  %v7674_v34 = vld [vmem:[%s18187_s5 + $0x1a0] sm:$0xff] }
 0x3fb   :  { %7578 = vmatpush1.bf16.msra.mxu1 %v12434_v5  ;;  %7415 = vmatprep.subr.bf16.mxu0 %v12441_v6  ;;  %v12489_v5 = vcombine.high %v4326_v0, %v4330_v62  ;;  %v12491_v6 = vcombine.high %v4327_v63, %v4331_v13  ;;  %v7678_v32 = vld [vmem:[%s18187_s5 + $0x1c0] sm:$0xff] }
 0x3fc   :  { %7579 = vmatprep.subr.bf16.mxu1 %v12443_v10  ;;  %v4334_v10 = vld [vmem:[%s18185_s3 + $0xf90] sm:$0xff] }
 0x3fe   :  { %7416 = vmatpush1.bf16.msra.mxu0 %v12440_v57  ;;  %v12488_v57 = vcombine.low %v4326_v0, %v4330_v62  ;;  %v12525_v62 = vcombine.high %v7638_v4, %v7642_v36 }
 0x3ff   :  { %7580 = vmatpush1.bf16.msra.mxu1 %v12442_v18  ;;  %7417 = vmatprep.subr.bf16.mxu0 %v12449_v19  ;;  %v12490_v18 = vcombine.low %v4327_v63, %v4331_v13  ;;  %v12497_v19 = vcombine.high %v4334_v10, %v4338_v11  ;;  %v7646_v13 = vld [vmem:[%s18187_s5 + $0xc0] sm:$0xff] }
 0x400   :  { %7581 = vmatprep.subr.bf16.mxu1 %v12451_v8  ;;  %v12499_v8 = vcombine.high %v4335_v14, %v4339_v7 }
 0x402   :  { %7418 = vmatpush1.bf16.msra.mxu0 %v12448_v25  ;;  %v4347_v25 = vld [vmem:[%s18185_s3 + $0xff8] sm:$0xff] }
 0x403   :  { %7582 = vmatpush1.bf16.msra.mxu1 %v12450_v26  ;;  %7419 = vmatprep.subr.bf16.mxu0 %v12457_v27  ;;  %v12496_v26 = vcombine.low %v4334_v10, %v4338_v11  ;;  %v12498_v27 = vcombine.low %v4335_v14, %v4339_v7  ;;  %v12507_v29 = vcombine.high %v4343_v12, %v4347_v25  ;;  %v7654_v14 = vld [vmem:[%s18187_s5 + $0x100] sm:$0xff] }
 0x404   :  { %7583 = vmatprep.subr.bf16.mxu1 %v12459_v28  ;;  %v12505_v28 = vcombine.high %v4342_v20, %v4346_v33  ;;  %v7658_v7 = vld [vmem:[%s18187_s5 + $0x120] sm:$0xff] }
 0x406   :  { %7420 = vmatpush1.bf16.msra.mxu0 %v12456_v48  ;;  %v7623_v48 = vld [vmem:[%s18187_s5 + $0x8] sm:$0xff] }
 0x407   :  { %7584 = vmatpush1.bf16.msra.mxu1 %v12458_v35  ;;  %7421 = vmatprep.subr.bf16.mxu0 %v12465_v38  ;;  %v7627_v35 = vld [vmem:[%s18187_s5 + $0x28] sm:$0xff]  ;;  %v12504_v38 = vcombine.low %v4342_v20, %v4346_v33  ;;  %v12541_v20 = vcombine.high %v7654_v14, %v7658_v7 }
 0x408   :  { %7585 = vmatprep.subr.bf16.mxu1 %v12467_v39  ;;  %v12506_v39 = vcombine.low %v4343_v12, %v4347_v25  ;;  %v12511_v9 = vcombine.high %v7623_v48, %v7627_v35  ;;  %v7666_v12 = vld [vmem:[%s18187_s5 + $0x160] sm:$0xff]  ;;  %v7663_v25 = vld [vmem:[%s18187_s5 + $0x148] sm:$0xff] }
 0x40a   :  { %7422 = vmatpush1.bf16.msra.mxu0 %v12464_v42  ;;  %v12508_v42 = vcombine.low %v7622_v30, %v7626_v21  ;;  %v7670_v21 = vld [vmem:[%s18187_s5 + $0x180] sm:$0xff] }
 0x40b   :  { %7586 = vmatpush1.bf16.msra.mxu1 %v12466_v43  ;;  %7423 = vmatprep.subr.bf16.mxu0 %v12473_v44  ;;  %v7631_v43 = vld [vmem:[%s18187_s5 + $0x48] sm:$0xff] }
 0x40c   :  { %7587 = vmatprep.subr.bf16.mxu1 %v12475_v46  ;;  %v7635_v44 = vld [vmem:[%s18187_s5 + $0x68] sm:$0xff]  ;;  %v12510_v46 = vcombine.low %v7623_v48, %v7627_v35 }
 0x40d   :  { %v12518_v0 = vcombine.low %v7631_v43, %v7635_v44  ;;  %v7671_v48 = vld [vmem:[%s18187_s5 + $0x188] sm:$0xff] }
 0x40e   :  { %7424 = vmatpush1.bf16.msra.mxu0 %v12472_v50  ;;  %v12519_v50 = vcombine.high %v7631_v43, %v7635_v44  ;;  %v7675_v35 = vld [vmem:[%s18187_s5 + $0x1a8] sm:$0xff]  ;;  %v12556_v43 = vcombine.low %v7670_v21, %v7674_v34 }
 0x40f   :  { %7588 = vmatpush1.bf16.msra.mxu1 %v12474_v51  ;;  %7425 = vmatprep.subr.bf16.mxu0 %v12481_v52  ;;  %v7639_v51 = vld [vmem:[%s18187_s5 + $0x88] sm:$0xff]  ;;  %v12558_v44 = vcombine.low %v7671_v48, %v7675_v35 }
 0x410   :  { %7589 = vmatprep.subr.bf16.mxu1 %v12483_v61  ;;  %v7643_v52 = vld [vmem:[%s18187_s5 + $0xa8] sm:$0xff]  ;;  %v12516_v61 = vcombine.low %v7630_v60, %v7634_v41  ;;  %v7682_v60 = vld [vmem:[%s18187_s5 + $0x1e0] sm:$0xff] }
 0x411   :  { %v12527_v63 = vcombine.high %v7639_v51, %v7643_v52  ;;  %v7679_v41 = vld [vmem:[%s18187_s5 + $0x1c8] sm:$0xff] }
 0x412   :  { %7426 = vmatpush1.bf16.msra.mxu0 %v12480_v2  ;;  %v7650_v2 = vld [vmem:[%s18187_s5 + $0xe0] sm:$0xff] }
 0x413   :  { %7590 = vmatpush1.bf16.msra.mxu1 %v12482_v3  ;;  %7427 = vmatprep.subr.bf16.mxu0 %v12489_v5  ;;  %v7651_v3 = vld [vmem:[%s18187_s5 + $0xe8] sm:$0xff]  ;;  %v12524_v5 = vcombine.low %v7638_v4, %v7642_v36  ;;  %v12533_v10 = vcombine.high %v7646_v13, %v7650_v2  ;;  %v7686_v4 = vld [vmem:[%s18187_s5 + $0x200] sm:$0xff] }
 0x414   :  { %7591 = vmatprep.subr.bf16.mxu1 %v12491_v6  ;;  %v12526_v6 = vcombine.low %v7639_v51, %v7643_v52  ;;  %v7690_v36 = vld [vmem:[%s18187_s5 + $0x220] sm:$0xff]  ;;  %v7691_v51 = vld [vmem:[%s18187_s5 + $0x228] sm:$0xff]  ;;  %v12564_v52 = vcombine.low %v7678_v32, %v7682_v60 }
 0x416   :  { %7428 = vmatpush1.bf16.msra.mxu0 %v12488_v57  ;;  %v7655_v57 = vld [vmem:[%s18187_s5 + $0x108] sm:$0xff] }
 0x417   :  { %7592 = vmatpush1.bf16.msra.mxu1 %v12490_v18  ;;  %7429 = vmatprep.subr.bf16.mxu0 %v12497_v19  ;;  %v7659_v18 = vld [vmem:[%s18187_s5 + $0x128] sm:$0xff]  ;;  %v12532_v19 = vcombine.low %v7646_v13, %v7650_v2  ;;  %v7698_v13 = vld [vmem:[%s18187_s5 + $0x260] sm:$0xff] }
 0x418   :  { %7593 = vmatprep.subr.bf16.mxu1 %v12499_v8  ;;  %v12543_v33 = vcombine.high %v7655_v57, %v7659_v18  ;;  %v7695_v2 = vld [vmem:[%s18187_s5 + $0x248] sm:$0xff] }
 0x41a   :  { %7430 = vmatpush1.bf16.msra.mxu0 %v12496_v26  ;;  %v7667_v26 = vld [vmem:[%s18187_s5 + $0x168] sm:$0xff] }
 0x41b   :  { %7594 = vmatpush1.bf16.msra.mxu1 %v12498_v27  ;;  %7431 = vmatprep.subr.bf16.mxu0 %v12505_v28  ;;  %v12540_v27 = vcombine.low %v7654_v14, %v7658_v7  ;;  %v12542_v28 = vcombine.low %v7655_v57, %v7659_v18  ;;  %v12551_v30 = vcombine.high %v7663_v25, %v7667_v26  ;;  %v7706_v14 = vld [vmem:[%s18187_s5 + $0x2a0] sm:$0xff]  ;;  %v7703_v7 = vld [vmem:[%s18187_s5 + $0x288] sm:$0xff] }
 0x41c   :  { %7595 = vmatprep.subr.bf16.mxu1 %v12507_v29  ;;  %v12549_v29 = vcombine.high %v7662_v23, %v7666_v12  ;;  %v7707_v57 = vld [vmem:[%s18187_s5 + $0x2a8] sm:$0xff] }
 0x41e   :  { %7432 = vmatpush1.bf16.msra.mxu0 %v12504_v38  ;;  %v12548_v38 = vcombine.low %v7662_v23, %v7666_v12  ;;  %v7714_v23 = vld [vmem:[%s18187_s5 + $0x2e0] sm:$0xff]  ;;  %v7711_v12 = vld [vmem:[%s18187_s5 + $0x2c8] sm:$0xff] }
 0x41f   :  { %7596 = vmatpush1.bf16.msra.mxu1 %v12506_v39  ;;  %10736 = vmatprep.subr.bf16.mxu0 %v12509_v40  ;;  %v12550_v39 = vcombine.low %v7663_v25, %v7667_v26  ;;  %v12557_v40 = vcombine.high %v7670_v21, %v7674_v34  ;;  %v7715_v25 = vld [vmem:[%s18187_s5 + $0x2e8] sm:$0xff]  ;;  %v7722_v21 = vld [vmem:[%s18187_s5 + $0x320] sm:$0xff] }
 0x420   :  { %10900 = vmatprep.subr.bf16.mxu1 %v12511_v9  ;;  %v12559_v9 = vcombine.high %v7671_v48, %v7675_v35  ;;  %v7719_v34 = vld [vmem:[%s18187_s5 + $0x308] sm:$0xff] }
 0x421   :  { %7434 = vmatmul.mubr.bf16.vlgmr.msra.gmra.mrb[12].mxu0 %v15739_v16  ;;  %v7723_v48 = vld [vmem:[%s18187_s5 + $0x328] sm:$0xff] }
 0x422   :  { %7598 = vmatmul.mubr.bf16.vlgmr.msra.gmra.mrb[12].mxu1 %v15739_v16  ;;  %10737 = vmatpush1.bf16.msra.mxu0 %v12508_v42  ;;  %v7647_v16 = vld [vmem:[%s18187_s5 + $0xc8] sm:$0xff] }
 0x423   :  { %10768 = vmatprep.mubr.bf16.mxu0 %v16547_v47  ;;  %10901 = vmatpush1.bf16.msra.mxu1 %v12510_v46  ;;  %v12535_v11 = vcombine.high %v7647_v16, %v7651_v3  ;;  %v12534_v8 = vcombine.low %v7647_v16, %v7651_v3  ;;  %v7683_v42 = vld [vmem:[%s18187_s5 + $0x1e8] sm:$0xff]  ;;  %v12565_v46 = vcombine.high %v7678_v32, %v7682_v60  ;;  %v7730_v32 = vld [vmem:[%s18187_s5 + $0x360] sm:$0xff] }
 0x424   :  { %10932 = vmatprep.mubr.bf16.mxu1 %v16547_v47  ;;  %10738 = vmatprep.subr.bf16.mxu0 %v12517_v45  ;;  %v12567_v45 = vcombine.high %v7679_v41, %v7683_v42  ;;  %v7699_v16 = vld [vmem:[%s18187_s5 + $0x268] sm:$0xff]  ;;  %v12572_v3 = vcombine.low %v7686_v4, %v7690_v36 }
 0x425   :  { %10902 = vmatprep.subr.bf16.mxu1 %v12519_v50  ;;  %v7687_v50 = vld [vmem:[%s18187_s5 + $0x208] sm:$0xff] }
 0x426   :  { %10739 = vmatpush1.bf16.msra.mxu0 %v12516_v61  ;;  %v12566_v61 = vcombine.low %v7679_v41, %v7683_v42  ;;  %v7727_v60 = vld [vmem:[%s18187_s5 + $0x348] sm:$0xff] }
 0x427   :  { %10903 = vmatpush1.bf16.msra.mxu1 %v12518_v0  ;;  %10740 = vmatprep.subr.bf16.mxu0 %v12525_v62  ;;  %v12573_v0 = vcombine.high %v7686_v4, %v7690_v36  ;;  %v12575_v62 = vcombine.high %v7687_v50, %v7691_v51  ;;  %v7731_v41 = vld [vmem:[%s18187_s5 + $0x368] sm:$0xff]  ;;  %v7738_v4 = vld [vmem:[%s18187_s5 + $0x3a0] sm:$0xff] }
 0x428   :  { %10904 = vmatprep.subr.bf16.mxu1 %v12527_v63  ;;  %v7694_v63 = vld [vmem:[%s18187_s5 + $0x240] sm:$0xff]  ;;  %v7735_v36 = vld [vmem:[%s18187_s5 + $0x388] sm:$0xff] }
 0x429   :  { %v12580_v18 = vcombine.low %v7694_v63, %v7698_v13 }
 0x42a   :  { %10741 = vmatpush1.bf16.msra.mxu0 %v12524_v5  ;;  %v12574_v5 = vcombine.low %v7687_v50, %v7691_v51  ;;  %v7739_v50 = vld [vmem:[%s18187_s5 + $0x3a8] sm:$0xff] }
 0x42b   :  { %10905 = vmatpush1.bf16.msra.mxu1 %v12526_v6  ;;  %10742 = vmatprep.subr.bf16.mxu0 %v12533_v10  ;;  %v12581_v6 = vcombine.high %v7694_v63, %v7698_v13  ;;  %v12583_v10 = vcombine.high %v7695_v2, %v7699_v16  ;;  %v7742_v63 = vld [vmem:[%s18187_s5 + $0x3c0] sm:$0xff] }
 0x42c   :  { %10906 = vmatprep.subr.bf16.mxu1 %v12535_v11  ;;  %v7702_v11 = vld [vmem:[%s18187_s5 + $0x280] sm:$0xff] }
 0x42d   :  { %v12588_v26 = vcombine.low %v7702_v11, %v7706_v14  ;;  %v7746_v13 = vld [vmem:[%s18187_s5 + $0x3e0] sm:$0xff] }
 0x42e   :  { %10743 = vmatpush1.bf16.msra.mxu0 %v12532_v19  ;;  %v12582_v19 = vcombine.low %v7695_v2, %v7699_v16  ;;  %v4365_v2 = vrot.slane %v16500_v17, %v15055_v37  ;;  %v7743_v16 = vld [vmem:[%s18187_s5 + $0x3c8] sm:$0xff] }
 0x42f   :  { %10907 = vmatpush1.bf16.msra.mxu1 %v12534_v8  ;;  %10744 = vmatprep.subr.bf16.mxu0 %v12541_v20  ;;  %v12589_v8 = vcombine.high %v7702_v11, %v7706_v14  ;;  %v12591_v20 = vcombine.high %v7703_v7, %v7707_v57  ;;  %v12629_v11 = vcombine.high %v7742_v63, %v7746_v13 }
 0x430   :  { %10908 = vmatprep.subr.bf16.mxu1 %v12543_v33  ;;  %v7710_v33 = vld [vmem:[%s18187_s5 + $0x2c0] sm:$0xff] }
 0x431   :  { %v12596_v35 = vcombine.low %v7710_v33, %v7714_v23 }
 0x432   :  { %10745 = vmatpush1.bf16.msra.mxu0 %v12540_v27  ;;  %v12590_v27 = vcombine.low %v7703_v7, %v7707_v57  ;;  %v7750_v7 = vld [vmem:[%s18187_s5 + $0x400] sm:$0xff] }
 0x433   :  { %10909 = vmatpush1.bf16.msra.mxu1 %v12542_v28  ;;  %10746 = vmatprep.subr.bf16.mxu0 %v12549_v29  ;;  %v12597_v28 = vcombine.high %v7710_v33, %v7714_v23  ;;  %v12599_v29 = vcombine.high %v7711_v12, %v7715_v25  ;;  %v7754_v57 = vld [vmem:[%s18187_s5 + $0x420] sm:$0xff] }
 0x434   :  { %10910 = vmatprep.subr.bf16.mxu1 %v12551_v30  ;;  %v7718_v30 = vld [vmem:[%s18187_s5 + $0x300] sm:$0xff]  ;;  %v12637_v23 = vcombine.high %v7750_v7, %v7754_v57 }
 0x435   :  { %v12604_v42 = vcombine.low %v7718_v30, %v7722_v21 }
 0x436   :  { %10747 = vmatpush1.bf16.msra.mxu0 %v12548_v38  ;;  %v12598_v38 = vcombine.low %v7711_v12, %v7715_v25 }
 0x437   :  { %10911 = vmatpush1.bf16.msra.mxu1 %v12550_v39  ;;  %10748 = vmatprep.subr.bf16.mxu0 %v12557_v40  ;;  %v12605_v39 = vcombine.high %v7718_v30, %v7722_v21  ;;  %v12607_v40 = vcombine.high %v7719_v34, %v7723_v48 }
 0x438   :  { %10912 = vmatprep.subr.bf16.mxu1 %v12559_v9  ;;  %v7726_v9 = vld [vmem:[%s18187_s5 + $0x340] sm:$0xff] }
 0x439   :  { %v12612_v51 = vcombine.low %v7726_v9, %v7730_v32 }
 0x43a   :  { %10749 = vmatpush1.bf16.msra.mxu0 %v12556_v43  ;;  %v12606_v43 = vcombine.low %v7719_v34, %v7723_v48  ;;  %v7766_v48 = vld [vmem:[%s18187_s5 + $0x480] sm:$0xff] }
 0x43b   :  { %10913 = vmatpush1.bf16.msra.mxu1 %v12558_v44  ;;  %10750 = vmatprep.subr.bf16.mxu0 %v12565_v46  ;;  %v12613_v44 = vcombine.high %v7726_v9, %v7730_v32  ;;  %v12615_v46 = vcombine.high %v7727_v60, %v7731_v41  ;;  %v7771_v9 = vld [vmem:[%s18187_s5 + $0x4a8] sm:$0xff] }
 0x43c   :  { %10914 = vmatprep.subr.bf16.mxu1 %v12567_v45  ;;  %v7734_v45 = vld [vmem:[%s18187_s5 + $0x380] sm:$0xff] }
 0x43e   :  { %10751 = vmatpush1.bf16.msra.mxu0 %v12564_v52  ;;  %v4353_v52 = vrot.slane %v16500_v17, %v15046_v22 }
 0x43f   :  { %10915 = vmatpush1.bf16.msra.mxu1 %v12566_v61  ;;  %10752 = vmatprep.subr.bf16.mxu0 %v12573_v0  ;;  %v12614_v61 = vcombine.low %v7727_v60, %v7731_v41  ;;  %v12621_v0 = vcombine.high %v7734_v45, %v7738_v4 }
 0x440   :  { %10916 = vmatprep.subr.bf16.mxu1 %v12575_v62  ;;  %v12623_v62 = vcombine.high %v7735_v36, %v7739_v50 }
 0x442   :  { %10753 = vmatpush1.bf16.msra.mxu0 %v12572_v3  ;;  %v7747_v3 = vld [vmem:[%s18187_s5 + $0x3e8] sm:$0xff] }
 0x443   :  { %10917 = vmatpush1.bf16.msra.mxu1 %v12574_v5  ;;  %10754 = vmatprep.subr.bf16.mxu0 %v12581_v6  ;;  %v12620_v5 = vcombine.low %v7734_v45, %v7738_v4  ;;  %v13028_v6 = vadd.f32 %v16393_v24, %v4353_v52  ;;  %v12631_v14 = vcombine.high %v7743_v16, %v7747_v3  ;;  %v7751_v24 = vld [vmem:[%s18187_s5 + $0x408] sm:$0xff]  ;;  %v7782_v52 = vld [vmem:[%s18187_s5 + $0x500] sm:$0xff] }
 0x444   :  { %10918 = vmatprep.subr.bf16.mxu1 %v12583_v10  ;;  %v12622_v10 = vcombine.low %v7735_v36, %v7739_v50  ;;  %v12630_v33 = vcombine.low %v7743_v16, %v7747_v3  ;;  %v7779_v45 = vld [vmem:[%s18187_s5 + $0x4e8] sm:$0xff]  ;;  %v7790_v3 = vld [vmem:[%s18187_s5 + $0x540] sm:$0xff] }
 0x446   :  { %10755 = vmatpush1.bf16.msra.mxu0 %v12580_v18  ;;  %v13031_v18 = vadd.f32 %v16405_v54, %v4365_v2  ;;  %v7758_v54 = vld [vmem:[%s18187_s5 + $0x440] sm:$0xff] }
 0x447   :  { %10919 = vmatpush1.bf16.msra.mxu1 %v12582_v19  ;;  %10756 = vmatprep.subr.bf16.mxu0 %v12589_v8  ;;  %v7755_v19 = vld [vmem:[%s18187_s5 + $0x428] sm:$0xff]  ;;  %v12628_v8 = vcombine.low %v7742_v63, %v7746_v13 }
 0x448   :  { %10920 = vmatprep.subr.bf16.mxu1 %v12591_v20  ;;  %v7606_v20 = vmax.f32 %v13028_v6, 0.0  ;;  %v12639_v12 = vcombine.high %v7751_v24, %v7755_v19  ;;  %v7609_v25 = vmax.f32 %v13031_v18, 0.0  ;;  %v12638_v21 = vcombine.low %v7751_v24, %v7755_v19  ;;  %v7791_v6 = vld [vmem:[%s18187_s5 + $0x548] sm:$0xff]  ;;  %v7798_v18 = vld [vmem:[%s18187_s5 + $0x580] sm:$0xff] }
 0x449   :  { %v7802_v24 = vld [vmem:[%s18187_s5 + $0x5a0] sm:$0xff]  ;;  %v7799_v19 = vld [vmem:[%s18187_s5 + $0x588] sm:$0xff] }
 0x44a   :  { %10757 = vmatpush1.bf16.msra.mxu0 %v12588_v26  ;;  %v7762_v26 = vld [vmem:[%s18187_s5 + $0x460] sm:$0xff]  ;;  %v16745_v30 = vpack.c.bf16 %v7606_v20, %v7606_v20 }
 0x44b   :  { %10921 = vmatpush1.bf16.msra.mxu1 %v12590_v27  ;;  %10758 = vmatprep.subr.bf16.mxu0 %v12597_v28  ;;  %v12636_v27 = vcombine.low %v7750_v7, %v7754_v57  ;;  %v7759_v28 = vld [vmem:[%s18187_s5 + $0x448] sm:$0xff]  ;;  %v12645_v34 = vcombine.high %v7758_v54, %v7762_v26  ;;  %v12644_v32 = vcombine.low %v7758_v54, %v7762_v26  ;;  %v7810_v54 = vld [vmem:[%s18187_s5 + $0x5e0] sm:$0xff] }
 0x44c   :  { %10922 = vmatprep.subr.bf16.mxu1 %v12599_v29  ;;  %v7763_v29 = vld [vmem:[%s18187_s5 + $0x468] sm:$0xff] }
 0x44d   :  { %v12646_v60 = vcombine.low %v7759_v28, %v7763_v29  ;;  %v7807_v26 = vld [vmem:[%s18187_s5 + $0x5c8] sm:$0xff] }
 0x44e   :  { %10759 = vmatpush1.bf16.msra.mxu0 %v12596_v35  ;;  %v7770_v35 = vld [vmem:[%s18187_s5 + $0x4a0] sm:$0xff] }
 0x44f   :  { %10923 = vmatpush1.bf16.msra.mxu1 %v12598_v38  ;;  %10760 = vmatprep.subr.bf16.mxu0 %v12605_v39  ;;  %v16753_v38 = vpack.c.bf16 %v7609_v25, %v7609_v25  ;;  %v12647_v39 = vcombine.high %v7759_v28, %v7763_v29  ;;  %v12653_v41 = vcombine.high %v7766_v48, %v7770_v35  ;;  %v7806_v25 = vld [vmem:[%s18187_s5 + $0x5c0] sm:$0xff] }
 0x450   :  { %10924 = vmatprep.subr.bf16.mxu1 %v12607_v40  ;;  %v7767_v40 = vld [vmem:[%s18187_s5 + $0x488] sm:$0xff]  ;;  %v12652_v4 = vcombine.low %v7766_v48, %v7770_v35  ;;  %v12684_v28 = vcombine.low %v7798_v18, %v7802_v24  ;;  %v7814_v48 = vld [vmem:[%s18187_s5 + $0x600] sm:$0xff] }
 0x451   :  { %v12654_v36 = vcombine.low %v7767_v40, %v7771_v9  ;;  %v7818_v35 = vld [vmem:[%s18187_s5 + $0x620] sm:$0xff] }
 0x452   :  { %10761 = vmatpush1.bf16.msra.mxu0 %v12604_v42  ;;  %v12655_v42 = vcombine.high %v7767_v40, %v7771_v9  ;;  %v7819_v40 = vld [vmem:[%s18187_s5 + $0x628] sm:$0xff]  ;;  %v12692_v9 = vcombine.low %v7806_v25, %v7810_v54 }
 0x453   :  { %10925 = vmatpush1.bf16.msra.mxu1 %v12606_v43  ;;  %10762 = vmatprep.subr.bf16.mxu0 %v12613_v44  ;;  %v7774_v43 = vld [vmem:[%s18187_s5 + $0x4c0] sm:$0xff] }
 0x454   :  { %10926 = vmatprep.subr.bf16.mxu1 %v12615_v46  ;;  %v7778_v44 = vld [vmem:[%s18187_s5 + $0x4e0] sm:$0xff]  ;;  %v7775_v46 = vld [vmem:[%s18187_s5 + $0x4c8] sm:$0xff] }
 0x455   :  { %v12661_v50 = vcombine.high %v7774_v43, %v7778_v44  ;;  %v12660_v63 = vcombine.low %v7774_v43, %v7778_v44  ;;  %v12662_v13 = vcombine.low %v7775_v46, %v7779_v45  ;;  %v7826_v43 = vld [vmem:[%s18187_s5 + $0x660] sm:$0xff]  ;;  %v7823_v44 = vld [vmem:[%s18187_s5 + $0x648] sm:$0xff] }
 0x456   :  { %10763 = vmatpush1.bf16.msra.mxu0 %v12612_v51  ;;  %v12663_v51 = vcombine.high %v7775_v46, %v7779_v45  ;;  %v7827_v46 = vld [vmem:[%s18187_s5 + $0x668] sm:$0xff]  ;;  %v12700_v45 = vcombine.low %v7814_v48, %v7818_v35 }
 0x457   :  { %10927 = vmatpush1.bf16.msra.mxu1 %v12614_v61  ;;  %10764 = vmatprep.subr.bf16.mxu0 %v12621_v0  ;;  %v7786_v61 = vld [vmem:[%s18187_s5 + $0x520] sm:$0xff]  ;;  %v7783_v0 = vld [vmem:[%s18187_s5 + $0x508] sm:$0xff] }
 0x458   :  { %10928 = vmatprep.subr.bf16.mxu1 %v12623_v62  ;;  %v7787_v62 = vld [vmem:[%s18187_s5 + $0x528] sm:$0xff]  ;;  %v12669_v2 = vcombine.high %v7782_v52, %v7786_v61 }
 0x459   :  { %v12671_v16 = vcombine.high %v7783_v0, %v7787_v62 }
 0x45a   :  { %10765 = vmatpush1.bf16.msra.mxu0 %v12620_v5  ;;  %v7794_v5 = vld [vmem:[%s18187_s5 + $0x560] sm:$0xff] }
 0x45b   :  { %10929 = vmatpush1.bf16.msra.mxu1 %v12622_v10  ;;  %10766 = vmatprep.subr.bf16.mxu0 %v12629_v11  ;;  %v7795_v10 = vld [vmem:[%s18187_s5 + $0x568] sm:$0xff]  ;;  %v12668_v11 = vcombine.low %v7782_v52, %v7786_v61  ;;  %v12677_v7 = vcombine.high %v7790_v3, %v7794_v5  ;;  %v12676_v20 = vcombine.low %v7790_v3, %v7794_v5  ;;  %v7834_v52 = vld [vmem:[%s18187_s5 + $0x6a0] sm:$0xff] }
 0x45c   :  { %10930 = vmatprep.subr.bf16.mxu1 %v12631_v14  ;;  %v12670_v14 = vcombine.low %v7783_v0, %v7787_v62  ;;  %v12679_v57 = vcombine.high %v7791_v6, %v7795_v10  ;;  %v7831_v61 = vld [vmem:[%s18187_s5 + $0x688] sm:$0xff]  ;;  %v7842_v3 = vld [vmem:[%s18187_s5 + $0x6e0] sm:$0xff] }
 0x45d   :  { %v7835_v0 = vld [vmem:[%s18187_s5 + $0x6a8] sm:$0xff] }
 0x45e   :  { %10767 = vmatpush1.bf16.msra.mxu0 %v12628_v8  ;;  %v7803_v8 = vld [vmem:[%s18187_s5 + $0x5a8] sm:$0xff] }
 0x45f   :  { %10931 = vmatpush1.bf16.msra.mxu1 %v12630_v33  ;;  %10777 = vmatprep.subr.bf16.mxu0 %v12637_v23  ;;  %v12678_v33 = vcombine.low %v7791_v6, %v7795_v10  ;;  %v12685_v23 = vcombine.high %v7798_v18, %v7802_v24  ;;  %v12686_v29 = vcombine.low %v7799_v19, %v7803_v8  ;;  %v7839_v5 = vld [vmem:[%s18187_s5 + $0x6c8] sm:$0xff]  ;;  %v7850_v18 = vld [vmem:[%s18187_s5 + $0x720] sm:$0xff] }
 0x460   :  { %10941 = vmatprep.subr.bf16.mxu1 %v12639_v12  ;;  %v12687_v12 = vcombine.high %v7799_v19, %v7803_v8  ;;  %v7843_v6 = vld [vmem:[%s18187_s5 + $0x6e8] sm:$0xff] }
 0x461   :  { %10769 = vmatmul.mubr.bf16.vlgmr.msra.gmra.mrb[16].mxu0 %v16745_v30  ;;  %v7847_v24 = vld [vmem:[%s18187_s5 + $0x708] sm:$0xff] }
 0x462   :  { %10933 = vmatmul.mubr.bf16.vlgmr.msra.gmra.mrb[16].mxu1 %v16745_v30  ;;  %10778 = vmatpush1.bf16.msra.mxu0 %v12636_v27  ;;  %v7811_v27 = vld [vmem:[%s18187_s5 + $0x5e8] sm:$0xff] }
 0x463   :  { %10809 = vmatprep.mubr.bf16.mxu0 %v16753_v38  ;;  %10942 = vmatpush1.bf16.msra.mxu1 %v12638_v21  ;;  %v12693_v21 = vcombine.high %v7806_v25, %v7810_v54  ;;  %v7851_v19 = vld [vmem:[%s18187_s5 + $0x728] sm:$0xff]  ;;  %v7858_v25 = vld [vmem:[%s18187_s5 + $0x760] sm:$0xff] }
 0x464   :  { %10973 = vmatprep.mubr.bf16.mxu1 %v16753_v38  ;;  %10779 = vmatprep.subr.bf16.mxu0 %v12645_v34  ;;  %v12695_v34 = vcombine.high %v7807_v26, %v7811_v27  ;;  %v7855_v54 = vld [vmem:[%s18187_s5 + $0x748] sm:$0xff] }
 0x465   :  { %10943 = vmatprep.subr.bf16.mxu1 %v12647_v39  ;;  %v7815_v39 = vld [vmem:[%s18187_s5 + $0x608] sm:$0xff] }
 0x466   :  { %10780 = vmatpush1.bf16.msra.mxu0 %v12644_v32  ;;  %v12694_v32 = vcombine.low %v7807_v26, %v7811_v27  ;;  %v7859_v26 = vld [vmem:[%s18187_s5 + $0x768] sm:$0xff] }
 0x467   :  { %10944 = vmatpush1.bf16.msra.mxu1 %v12646_v60  ;;  %10781 = vmatprep.subr.bf16.mxu0 %v12653_v41  ;;  %v12701_v60 = vcombine.high %v7814_v48, %v7818_v35  ;;  %v12703_v41 = vcombine.high %v7815_v39, %v7819_v40  ;;  %v7866_v48 = vld [vmem:[%s18187_s5 + $0x7a0] sm:$0xff]  ;;  %v7863_v35 = vld [vmem:[%s18187_s5 + $0x788] sm:$0xff] }
 0x468   :  { %10945 = vmatprep.subr.bf16.mxu1 %v12655_v42  ;;  %v7822_v42 = vld [vmem:[%s18187_s5 + $0x640] sm:$0xff] }
 0x469   :  { %v12708_v62 = vcombine.low %v7822_v42, %v7826_v43 }
 0x46a   :  { %10782 = vmatpush1.bf16.msra.mxu0 %v12652_v4  ;;  %v12702_v4 = vcombine.low %v7815_v39, %v7819_v40  ;;  %v7867_v39 = vld [vmem:[%s18187_s5 + $0x7a8] sm:$0xff] }
 0x46b   :  { %10946 = vmatpush1.bf16.msra.mxu1 %v12654_v36  ;;  %10783 = vmatprep.subr.bf16.mxu0 %v12661_v50  ;;  %v12709_v36 = vcombine.high %v7822_v42, %v7826_v43  ;;  %v12711_v50 = vcombine.high %v7823_v44, %v7827_v46  ;;  %v7870_v42 = vld [vmem:[%s18187_s5 + $0x7c0] sm:$0xff] }
 0x46c   :  { %10947 = vmatprep.subr.bf16.mxu1 %v12663_v51  ;;  %v7830_v51 = vld [vmem:[%s18187_s5 + $0x680] sm:$0xff] }
 0x46d   :  { %v12716_v10 = vcombine.low %v7830_v51, %v7834_v52  ;;  %v7874_v43 = vld [vmem:[%s18187_s5 + $0x7e0] sm:$0xff] }
 0x46e   :  { %10784 = vmatpush1.bf16.msra.mxu0 %v12660_v63  ;;  %v12710_v63 = vcombine.low %v7823_v44, %v7827_v46  ;;  %v7871_v44 = vld [vmem:[%s18187_s5 + $0x7c8] sm:$0xff] }
 0x46f   :  { %10948 = vmatpush1.bf16.msra.mxu1 %v12662_v13  ;;  %10785 = vmatprep.subr.bf16.mxu0 %v12669_v2  ;;  %v12717_v13 = vcombine.high %v7830_v51, %v7834_v52  ;;  %v12719_v2 = vcombine.high %v7831_v61, %v7835_v0  ;;  %v7878_v51 = vld [vmem:[%s18187_s5 + $0x800] sm:$0xff] }
 0x470   :  { %10949 = vmatprep.subr.bf16.mxu1 %v12671_v16  ;;  %v7838_v16 = vld [vmem:[%s18187_s5 + $0x6c0] sm:$0xff] }
 0x471   :  { %v12724_v8 = vcombine.low %v7838_v16, %v7842_v3  ;;  %v7882_v52 = vld [vmem:[%s18187_s5 + $0x820] sm:$0xff] }
 0x472   :  { %10786 = vmatpush1.bf16.msra.mxu0 %v12668_v11  ;;  %v12718_v11 = vcombine.low %v7831_v61, %v7835_v0  ;;  %v7879_v61 = vld [vmem:[%s18187_s5 + $0x808] sm:$0xff]  ;;  %v12756_v0 = vcombine.low %v7870_v42, %v7874_v43 }
 0x473   :  { %10950 = vmatpush1.bf16.msra.mxu1 %v12670_v14  ;;  %10787 = vmatprep.subr.bf16.mxu0 %v12677_v7  ;;  %v12725_v14 = vcombine.high %v7838_v16, %v7842_v3  ;;  %v12727_v7 = vcombine.high %v7839_v5, %v7843_v6  ;;  %v7886_v16 = vld [vmem:[%s18187_s5 + $0x840] sm:$0xff] }
 0x474   :  { %10951 = vmatprep.subr.bf16.mxu1 %v12679_v57  ;;  %v7846_v57 = vld [vmem:[%s18187_s5 + $0x700] sm:$0xff] }
 0x475   :  { %v12732_v27 = vcombine.low %v7846_v57, %v7850_v18  ;;  %v7890_v3 = vld [vmem:[%s18187_s5 + $0x860] sm:$0xff] }
 0x476   :  { %10788 = vmatpush1.bf16.msra.mxu0 %v12676_v20  ;;  %v12726_v20 = vcombine.low %v7839_v5, %v7843_v6  ;;  %v7887_v5 = vld [vmem:[%s18187_s5 + $0x848] sm:$0xff] }
 0x477   :  { %10952 = vmatpush1.bf16.msra.mxu1 %v12678_v33  ;;  %10789 = vmatprep.subr.bf16.mxu0 %v12685_v23  ;;  %v12733_v33 = vcombine.high %v7846_v57, %v7850_v18  ;;  %v12735_v23 = vcombine.high %v7847_v24, %v7851_v19  ;;  %v7891_v6 = vld [vmem:[%s18187_s5 + $0x868] sm:$0xff]  ;;  %v7894_v18 = vld [vmem:[%s18187_s5 + $0x880] sm:$0xff] }
 0x478   :  { %10953 = vmatprep.subr.bf16.mxu1 %v12687_v12  ;;  %v7854_v12 = vld [vmem:[%s18187_s5 + $0x740] sm:$0xff]  ;;  %v12775_v57 = vcombine.high %v7887_v5, %v7891_v6 }
 0x479   :  { %v12740_v40 = vcombine.low %v7854_v12, %v7858_v25 }
 0x47a   :  { %10790 = vmatpush1.bf16.msra.mxu0 %v12684_v28  ;;  %v12734_v28 = vcombine.low %v7847_v24, %v7851_v19  ;;  %v7898_v24 = vld [vmem:[%s18187_s5 + $0x8a0] sm:$0xff]  ;;  %v7895_v19 = vld [vmem:[%s18187_s5 + $0x888] sm:$0xff] }
 0x47b   :  { %10954 = vmatpush1.bf16.msra.mxu1 %v12686_v29  ;;  %10791 = vmatprep.subr.bf16.mxu0 %v12693_v21  ;;  %v12741_v29 = vcombine.high %v7854_v12, %v7858_v25  ;;  %v12743_v21 = vcombine.high %v7855_v54, %v7859_v26  ;;  %v7902_v25 = vld [vmem:[%s18187_s5 + $0x8c0] sm:$0xff] }
 0x47c   :  { %10955 = vmatprep.subr.bf16.mxu1 %v12695_v34  ;;  %v7862_v34 = vld [vmem:[%s18187_s5 + $0x780] sm:$0xff] }
 0x47d   :  { %v12748_v46 = vcombine.low %v7862_v34, %v7866_v48 }
 0x47e   :  { %10792 = vmatpush1.bf16.msra.mxu0 %v12692_v9  ;;  %v4361_v9 = vrot.slane %v16500_v17, %v15258_v59  ;;  %v7875_v17 = vld [vmem:[%s18187_s5 + $0x7e8] sm:$0xff] }
 0x47f   :  { %10956 = vmatpush1.bf16.msra.mxu1 %v12694_v32  ;;  %10793 = vmatprep.subr.bf16.mxu0 %v12701_v60  ;;  %v12742_v32 = vcombine.low %v7855_v54, %v7859_v26  ;;  %v12749_v60 = vcombine.high %v7862_v34, %v7866_v48  ;;  %v7906_v54 = vld [vmem:[%s18187_s5 + $0x8e0] sm:$0xff]  ;;  %v7903_v26 = vld [vmem:[%s18187_s5 + $0x8c8] sm:$0xff] }
 0x480   :  { %10957 = vmatprep.subr.bf16.mxu1 %v12703_v41  ;;  %v12751_v41 = vcombine.high %v7863_v35, %v7867_v39  ;;  %v7910_v48 = vld [vmem:[%s18187_s5 + $0x900] sm:$0xff] }
 0x482   :  { %10794 = vmatpush1.bf16.msra.mxu0 %v12700_v45  ;;  %v13030_v45 = vadd.f32 %v16395_v49, %v4361_v9  ;;  %v7883_v49 = vld [vmem:[%s18187_s5 + $0x828] sm:$0xff]  ;;  %v12788_v9 = vcombine.low %v7902_v25, %v7906_v54 }
 0x483   :  { %10958 = vmatpush1.bf16.msra.mxu1 %v12702_v4  ;;  %10795 = vmatprep.subr.bf16.mxu0 %v12709_v36  ;;  %v12750_v4 = vcombine.low %v7863_v35, %v7867_v39  ;;  %v12757_v36 = vcombine.high %v7870_v42, %v7874_v43  ;;  %v7914_v35 = vld [vmem:[%s18187_s5 + $0x920] sm:$0xff]  ;;  %v7911_v39 = vld [vmem:[%s18187_s5 + $0x908] sm:$0xff] }
 0x484   :  { %10959 = vmatprep.subr.bf16.mxu1 %v12711_v50  ;;  %v12759_v50 = vcombine.high %v7871_v44, %v7875_v17  ;;  %v7918_v42 = vld [vmem:[%s18187_s5 + $0x940] sm:$0xff] }
 0x485   :  { %v7922_v43 = vld [vmem:[%s18187_s5 + $0x960] sm:$0xff] }
 0x486   :  { %10796 = vmatpush1.bf16.msra.mxu0 %v12708_v62  ;;  %v7608_v62 = vmax.f32 %v13030_v45, 0.0 }
 0x487   :  { %10960 = vmatpush1.bf16.msra.mxu1 %v12710_v63  ;;  %10797 = vmatprep.subr.bf16.mxu0 %v12717_v13  ;;  %v12758_v63 = vcombine.low %v7871_v44, %v7875_v17  ;;  %v12765_v13 = vcombine.high %v7878_v51, %v7882_v52  ;;  %v7919_v44 = vld [vmem:[%s18187_s5 + $0x948] sm:$0xff] }
 0x488   :  { %10961 = vmatprep.subr.bf16.mxu1 %v12719_v2  ;;  %v12767_v2 = vcombine.high %v7879_v61, %v7883_v49  ;;  %v7923_v17 = vld [vmem:[%s18187_s5 + $0x968] sm:$0xff] }
 0x48a   :  { %10798 = vmatpush1.bf16.msra.mxu0 %v12716_v10  ;;  %v12764_v10 = vcombine.low %v7878_v51, %v7882_v52  ;;  %v7930_v51 = vld [vmem:[%s18187_s5 + $0x9a0] sm:$0xff]  ;;  %v7927_v52 = vld [vmem:[%s18187_s5 + $0x988] sm:$0xff] }
 0x48b   :  { %10962 = vmatpush1.bf16.msra.mxu1 %v12718_v11  ;;  %10799 = vmatprep.subr.bf16.mxu0 %v12725_v14  ;;  %v16948_v11 = vpack.c.bf16 %v7608_v62, %v7608_v62  ;;  %v12766_v14 = vcombine.low %v7879_v61, %v7883_v49  ;;  %v7931_v61 = vld [vmem:[%s18187_s5 + $0x9a8] sm:$0xff]  ;;  %v12804_v49 = vcombine.low %v7918_v42, %v7922_v43 }
 0x48c   :  { %10963 = vmatprep.subr.bf16.mxu1 %v12727_v7  ;;  %v12773_v7 = vcombine.high %v7886_v16, %v7890_v3 }
 0x48e   :  { %10800 = vmatpush1.bf16.msra.mxu0 %v12724_v8  ;;  %v7899_v8 = vld [vmem:[%s18187_s5 + $0x8a8] sm:$0xff] }
 0x48f   :  { %10964 = vmatpush1.bf16.msra.mxu1 %v12726_v20  ;;  %10801 = vmatprep.subr.bf16.mxu0 %v12733_v33  ;;  %v12772_v20 = vcombine.low %v7886_v16, %v7890_v3  ;;  %v12774_v33 = vcombine.low %v7887_v5, %v7891_v6  ;;  %v12783_v12 = vcombine.high %v7895_v19, %v7899_v8  ;;  %v7935_v16 = vld [vmem:[%s18187_s5 + $0x9c8] sm:$0xff] }
 0x490   :  { %10965 = vmatprep.subr.bf16.mxu1 %v12735_v23  ;;  %v12781_v23 = vcombine.high %v7894_v18, %v7898_v24  ;;  %v7939_v3 = vld [vmem:[%s18187_s5 + $0x9e8] sm:$0xff]  ;;  %v12814_v6 = vcombine.low %v7927_v52, %v7931_v61 }
 0x492   :  { %10802 = vmatpush1.bf16.msra.mxu0 %v12732_v27  ;;  %v7907_v27 = vld [vmem:[%s18187_s5 + $0x8e8] sm:$0xff] }
 0x493   :  { %10966 = vmatpush1.bf16.msra.mxu1 %v12734_v28  ;;  %10803 = vmatprep.subr.bf16.mxu0 %v12741_v29  ;;  %v12780_v28 = vcombine.low %v7894_v18, %v7898_v24  ;;  %v12782_v29 = vcombine.low %v7895_v19, %v7899_v8  ;;  %v12791_v34 = vcombine.high %v7903_v26, %v7907_v27  ;;  %v7943_v18 = vld [vmem:[%s18187_s5 + $0xa08] sm:$0xff] }
 0x494   :  { %10967 = vmatprep.subr.bf16.mxu1 %v12743_v21  ;;  %v12789_v21 = vcombine.high %v7902_v25, %v7906_v54  ;;  %v7947_v24 = vld [vmem:[%s18187_s5 + $0xa28] sm:$0xff]  ;;  %v12822_v8 = vcombine.low %v7935_v16, %v7939_v3 }
 0x495   :  { %v7951_v25 = vld [vmem:[%s18187_s5 + $0xa48] sm:$0xff] }
 0x496   :  { %10804 = vmatpush1.bf16.msra.mxu0 %v12740_v40  ;;  %v7915_v40 = vld [vmem:[%s18187_s5 + $0x928] sm:$0xff] }
 0x497   :  { %10968 = vmatpush1.bf16.msra.mxu1 %v12742_v32  ;;  %10805 = vmatprep.subr.bf16.mxu0 %v12749_v60  ;;  %v12790_v32 = vcombine.low %v7903_v26, %v7907_v27  ;;  %v12797_v60 = vcombine.high %v7910_v48, %v7914_v35  ;;  %v12798_v45 = vcombine.low %v7911_v39, %v7915_v40  ;;  %v7955_v54 = vld [vmem:[%s18187_s5 + $0xa68] sm:$0xff] }
 0x498   :  { %10969 = vmatprep.subr.bf16.mxu1 %v12751_v41  ;;  %v12799_v41 = vcombine.high %v7911_v39, %v7915_v40  ;;  %v12830_v27 = vcombine.low %v7943_v18, %v7947_v24  ;;  %v12838_v40 = vcombine.low %v7951_v25, %v7955_v54 }
 0x49a   :  { %10806 = vmatpush1.bf16.msra.mxu0 %v12748_v46  ;;  %v12796_v46 = vcombine.low %v7910_v48, %v7914_v35  ;;  %v7959_v48 = vld [vmem:[%s18187_s5 + $0xa88] sm:$0xff] }
 0x49b   :  { %10970 = vmatpush1.bf16.msra.mxu1 %v12750_v4  ;;  %10807 = vmatprep.subr.bf16.mxu0 %v12757_v36  ;;  %v12805_v4 = vcombine.high %v7918_v42, %v7922_v43  ;;  %v12807_v36 = vcombine.high %v7919_v44, %v7923_v17  ;;  %v7963_v35 = vld [vmem:[%s18187_s5 + $0xaa8] sm:$0xff] }
 0x49c   :  { %10971 = vmatprep.subr.bf16.mxu1 %v12759_v50  ;;  %v7926_v50 = vld [vmem:[%s18187_s5 + $0x980] sm:$0xff]  ;;  %v7967_v42 = vld [vmem:[%s18187_s5 + $0xac8] sm:$0xff] }
 0x49d   :  { %v12813_v62 = vcombine.high %v7926_v50, %v7930_v51  ;;  %v12812_v5 = vcombine.low %v7926_v50, %v7930_v51  ;;  %v7971_v43 = vld [vmem:[%s18187_s5 + $0xae8] sm:$0xff] }
 0x49e   :  { %10808 = vmatpush1.bf16.msra.mxu0 %v12756_v0  ;;  %v12806_v0 = vcombine.low %v7919_v44, %v7923_v17  ;;  %v12846_v17 = vcombine.low %v7959_v48, %v7963_v35  ;;  %v7975_v50 = vld [vmem:[%s18187_s5 + $0xb08] sm:$0xff] }
 0x49f   :  { %10972 = vmatpush1.bf16.msra.mxu1 %v12758_v63  ;;  %10818 = vmatprep.subr.bf16.mxu0 %v12765_v13  ;;  %v12815_v63 = vcombine.high %v7927_v52, %v7931_v61  ;;  %v7934_v13 = vld [vmem:[%s18187_s5 + $0x9c0] sm:$0xff]  ;;  %v7979_v51 = vld [vmem:[%s18187_s5 + $0xb28] sm:$0xff]  ;;  %v12854_v61 = vcombine.low %v7967_v42, %v7971_v43 }
 0x4a0   :  { %10982 = vmatprep.subr.bf16.mxu1 %v12767_v2  ;;  %v7938_v2 = vld [vmem:[%s18187_s5 + $0x9e0] sm:$0xff] }
 0x4a1   :  { %10810 = vmatmul.mubr.bf16.vlgmr.msra.gmra.mrb[16].mxu0 %v16948_v11  ;;  %v12820_v19 = vcombine.low %v7934_v13, %v7938_v2 }
 0x4a2   :  { %10974 = vmatmul.mubr.bf16.vlgmr.msra.gmra.mrb[16].mxu1 %v16948_v11  ;;  %10819 = vmatpush1.bf16.msra.mxu0 %v12764_v10  ;;  %v12821_v10 = vcombine.high %v7934_v13, %v7938_v2  ;;  %v7983_v13 = vld [vmem:[%s18187_s5 + $0xb48] sm:$0xff] }
 0x4a3   :  { %10983 = vmatpush1.bf16.msra.mxu1 %v12766_v14  ;;  %10820 = vmatprep.subr.bf16.mxu0 %v12773_v7  ;;  %v12823_v14 = vcombine.high %v7935_v16, %v7939_v3  ;;  %v7942_v7 = vld [vmem:[%s18187_s5 + $0xa00] sm:$0xff]  ;;  %v7987_v2 = vld [vmem:[%s18187_s5 + $0xb68] sm:$0xff]  ;;  %v12862_v3 = vcombine.low %v7975_v50, %v7979_v51 }
 0x4a4   :  { %10984 = vmatprep.subr.bf16.mxu1 %v12775_v57  ;;  %v7946_v57 = vld [vmem:[%s18187_s5 + $0xa20] sm:$0xff] }
 0x4a5   :  { %v12828_v26 = vcombine.low %v7942_v7, %v7946_v57 }
 0x4a6   :  { %10821 = vmatpush1.bf16.msra.mxu0 %v12772_v20  ;;  %v12829_v20 = vcombine.high %v7942_v7, %v7946_v57  ;;  %v7991_v7 = vld [vmem:[%s18187_s5 + $0xb88] sm:$0xff] }
 0x4a7   :  { %10985 = vmatpush1.bf16.msra.mxu1 %v12774_v33  ;;  %10822 = vmatprep.subr.bf16.mxu0 %v12781_v23  ;;  %v12831_v33 = vcombine.high %v7943_v18, %v7947_v24  ;;  %v7950_v23 = vld [vmem:[%s18187_s5 + $0xa40] sm:$0xff]  ;;  %v7995_v57 = vld [vmem:[%s18187_s5 + $0xba8] sm:$0xff]  ;;  %v12870_v24 = vcombine.low %v7983_v13, %v7987_v2 }
 0x4a8   :  { %10986 = vmatprep.subr.bf16.mxu1 %v12783_v12  ;;  %v7954_v12 = vld [vmem:[%s18187_s5 + $0xa60] sm:$0xff] }
 0x4a9   :  { %v12836_v39 = vcombine.low %v7950_v23, %v7954_v12 }
 0x4aa   :  { %10823 = vmatpush1.bf16.msra.mxu0 %v12780_v28  ;;  %v12837_v28 = vcombine.high %v7950_v23, %v7954_v12  ;;  %v7999_v23 = vld [vmem:[%s18187_s5 + $0xbc8] sm:$0xff] }
 0x4ab   :  { %10987 = vmatpush1.bf16.msra.mxu1 %v12782_v29  ;;  %10824 = vmatprep.subr.bf16.mxu0 %v12789_v21  ;;  %v12839_v29 = vcombine.high %v7951_v25, %v7955_v54  ;;  %v7958_v21 = vld [vmem:[%s18187_s5 + $0xa80] sm:$0xff]  ;;  %v8003_v12 = vld [vmem:[%s18187_s5 + $0xbe8] sm:$0xff]  ;;  %v12878_v54 = vcombine.low %v7991_v7, %v7995_v57 }
 0x4ac   :  { %10988 = vmatprep.subr.bf16.mxu1 %v12791_v34  ;;  %v7962_v34 = vld [vmem:[%s18187_s5 + $0xaa0] sm:$0xff] }
 0x4ad   :  { %v12844_v44 = vcombine.low %v7958_v21, %v7962_v34 }
 0x4ae   :  { %10825 = vmatpush1.bf16.msra.mxu0 %v12788_v9  ;;  %v12845_v9 = vcombine.high %v7958_v21, %v7962_v34  ;;  %v8007_v21 = vld [vmem:[%s18187_s5 + $0xc08] sm:$0xff] }
 0x4af   :  { %10989 = vmatpush1.bf16.msra.mxu1 %v12790_v32  ;;  %10826 = vmatprep.subr.bf16.mxu0 %v12797_v60  ;;  %v12847_v32 = vcombine.high %v7959_v48, %v7963_v35  ;;  %v7966_v60 = vld [vmem:[%s18187_s5 + $0xac0] sm:$0xff]  ;;  %v8011_v34 = vld [vmem:[%s18187_s5 + $0xc28] sm:$0xff]  ;;  %v12886_v35 = vcombine.low %v7999_v23, %v8003_v12 }
 0x4b0   :  { %10990 = vmatprep.subr.bf16.mxu1 %v12799_v41  ;;  %v7970_v41 = vld [vmem:[%s18187_s5 + $0xae0] sm:$0xff] }
 0x4b1   :  { %v12852_v52 = vcombine.low %v7966_v60, %v7970_v41 }
 0x4b2   :  { %10827 = vmatpush1.bf16.msra.mxu0 %v12796_v46  ;;  %v12853_v46 = vcombine.high %v7966_v60, %v7970_v41 }
 0x4b3   :  { %10991 = vmatpush1.bf16.msra.mxu1 %v12798_v45  ;;  %10828 = vmatprep.subr.bf16.mxu0 %v12805_v4  ;;  %v12855_v45 = vcombine.high %v7967_v42, %v7971_v43  ;;  %v7974_v4 = vld [vmem:[%s18187_s5 + $0xb00] sm:$0xff] }
 0x4b4   :  { %10992 = vmatprep.subr.bf16.mxu1 %v12807_v36  ;;  %v7978_v36 = vld [vmem:[%s18187_s5 + $0xb20] sm:$0xff] }
 0x4b5   :  { %v12860_v16 = vcombine.low %v7974_v4, %v7978_v36 }
 0x4b6   :  { %10829 = vmatpush1.bf16.msra.mxu0 %v12804_v49  ;;  %v12861_v49 = vcombine.high %v7974_v4, %v7978_v36 }
 0x4b7   :  { %10993 = vmatpush1.bf16.msra.mxu1 %v12806_v0  ;;  %10830 = vmatprep.subr.bf16.mxu0 %v12813_v62  ;;  %v12863_v0 = vcombine.high %v7975_v50, %v7979_v51  ;;  %v7982_v62 = vld [vmem:[%s18187_s5 + $0xb40] sm:$0xff] }
 0x4b8   :  { %10994 = vmatprep.subr.bf16.mxu1 %v12815_v63  ;;  %v7986_v63 = vld [vmem:[%s18187_s5 + $0xb60] sm:$0xff] }
 0x4b9   :  { %v12868_v18 = vcombine.low %v7982_v62, %v7986_v63 }
 0x4ba   :  { %10831 = vmatpush1.bf16.msra.mxu0 %v12812_v5  ;;  %v12869_v5 = vcombine.high %v7982_v62, %v7986_v63  ;;  %v8018_v63 = vld [vmem:[%s18187_s5 + $0xc60] sm:$0xff] }
 0x4bb   :  { %10995 = vmatpush1.bf16.msra.mxu1 %v12814_v6  ;;  %10832 = vmatprep.subr.bf16.mxu0 %v12821_v10  ;;  %v12871_v6 = vcombine.high %v7983_v13, %v7987_v2  ;;  %v7990_v10 = vld [vmem:[%s18187_s5 + $0xb80] sm:$0xff]  ;;  %v8015_v13 = vld [vmem:[%s18187_s5 + $0xc48] sm:$0xff] }
 0x4bc   :  { %10996 = vmatprep.subr.bf16.mxu1 %v12823_v14  ;;  %v7994_v14 = vld [vmem:[%s18187_s5 + $0xba0] sm:$0xff]  ;;  %v8019_v2 = vld [vmem:[%s18187_s5 + $0xc68] sm:$0xff] }
 0x4bd   :  { %v12876_v25 = vcombine.low %v7990_v10, %v7994_v14 }
 0x4be   :  { %10833 = vmatpush1.bf16.msra.mxu0 %v12820_v19  ;;  %v12877_v19 = vcombine.high %v7990_v10, %v7994_v14  ;;  %v8022_v10 = vld [vmem:[%s18187_s5 + $0xc80] sm:$0xff] }
 0x4bf   :  { %10997 = vmatpush1.bf16.msra.mxu1 %v12822_v8  ;;  %10834 = vmatprep.subr.bf16.mxu0 %v12829_v20  ;;  %v12879_v8 = vcombine.high %v7991_v7, %v7995_v57  ;;  %v7998_v20 = vld [vmem:[%s18187_s5 + $0xbc0] sm:$0xff]  ;;  %v12903_v7 = vcombine.high %v8015_v13, %v8019_v2 }
 0x4c0   :  { %10998 = vmatprep.subr.bf16.mxu1 %v12831_v33  ;;  %v8002_v33 = vld [vmem:[%s18187_s5 + $0xbe0] sm:$0xff] }
 0x4c1   :  { %v12884_v48 = vcombine.low %v7998_v20, %v8002_v33  ;;  %v8026_v57 = vld [vmem:[%s18187_s5 + $0xca0] sm:$0xff] }
 0x4c2   :  { %10835 = vmatpush1.bf16.msra.mxu0 %v12828_v26  ;;  %v12885_v26 = vcombine.high %v7998_v20, %v8002_v33  ;;  %v12902_v20 = vcombine.low %v8015_v13, %v8019_v2  ;;  %v12909_v33 = vcombine.high %v8022_v10, %v8026_v57  ;;  %v8062_v2 = vld [vmem:[%s18187_s5 + $0xdc0] sm:$0xff] }
 0x4c3   :  { %10999 = vmatpush1.bf16.msra.mxu1 %v12830_v27  ;;  %10836 = vmatprep.subr.bf16.mxu0 %v12837_v28  ;;  %v12887_v27 = vcombine.high %v7999_v23, %v8003_v12  ;;  %v8006_v28 = vld [vmem:[%s18187_s5 + $0xc00] sm:$0xff] }
 0x4c4   :  { %11000 = vmatprep.subr.bf16.mxu1 %v12839_v29  ;;  %v8010_v29 = vld [vmem:[%s18187_s5 + $0xc20] sm:$0xff] }
 0x4c5   :  { %v8030_v12 = vld [vmem:[%s18187_s5 + $0xcc0] sm:$0xff] }
 0x4c6   :  { %10837 = vmatpush1.bf16.msra.mxu0 %v12836_v39  ;;  %v12893_v39 = vcombine.high %v8006_v28, %v8010_v29 }
 0x4c7   :  { %11001 = vmatpush1.bf16.msra.mxu1 %v12838_v40  ;;  %10838 = vmatprep.subr.bf16.mxu0 %v12845_v9  ;;  %v12895_v40 = vcombine.high %v8007_v21, %v8011_v34  ;;  %v17135_v9 = vld [vmem:[%s18186_s4] sm:$0xff] }
 0x4c8   :  { %11002 = vmatprep.subr.bf16.mxu1 %v12847_v32  ;;  %v4369_v32 = vrot.slane %v17135_v9, %v15496_v53  ;;  %v4373_v60 = vrot.slane %v17135_v9, %v15499_v56  ;;  %v4381_v41 = vrot.slane %v17135_v9, %v15502_v58 }
 0x4ca   :  { %10839 = vmatpush1.bf16.msra.mxu0 %v12844_v44 }
 0x4cb   :  { %11003 = vmatpush1.bf16.msra.mxu1 %v12846_v17  ;;  %10840 = vmatprep.subr.bf16.mxu0 %v12853_v46 }
 0x4cc   :  { %11004 = vmatprep.subr.bf16.mxu1 %v12855_v45 }
 0x4ce   :  { %10841 = vmatpush1.bf16.msra.mxu0 %v12852_v52 }
 0x4cf   :  { %11005 = vmatpush1.bf16.msra.mxu1 %v12854_v61  ;;  %10842 = vmatprep.subr.bf16.mxu0 %v12861_v49 }
 0x4d0   :  { %11006 = vmatprep.subr.bf16.mxu1 %v12863_v0  ;;  %v8014_v0 = vld [vmem:[%s18187_s5 + $0xc40] sm:$0xff] }
 0x4d1   :  { %v12901_v14 = vcombine.high %v8014_v0, %v8018_v63 }
 0x4d2   :  { %10843 = vmatpush1.bf16.msra.mxu0 %v12860_v16 }
 0x4d3   :  { %11007 = vmatpush1.bf16.msra.mxu1 %v12862_v3  ;;  %10844 = vmatprep.subr.bf16.mxu0 %v12869_v5  ;;  %v12892_v3 = vcombine.low %v8006_v28, %v8010_v29  ;;  %v12894_v5 = vcombine.low %v8007_v21, %v8011_v34  ;;  %v8038_v34 = vld [vmem:[%s18187_s5 + $0xd00] sm:$0xff] }
 0x4d4   :  { %11008 = vmatprep.subr.bf16.mxu1 %v12871_v6 }
 0x4d6   :  { %10845 = vmatpush1.bf16.msra.mxu0 %v12868_v18  ;;  %v8023_v18 = vld [vmem:[%s18187_s5 + $0xc88] sm:$0xff] }
 0x4d7   :  { %11009 = vmatpush1.bf16.msra.mxu1 %v12870_v24  ;;  %10846 = vmatprep.subr.bf16.mxu0 %v12877_v19  ;;  %v8027_v24 = vld [vmem:[%s18187_s5 + $0xca8] sm:$0xff] }
 0x4d8   :  { %11010 = vmatprep.subr.bf16.mxu1 %v12879_v8  ;;  %v12900_v8 = vcombine.low %v8014_v0, %v8018_v63  ;;  %v12911_v23 = vcombine.high %v8023_v18, %v8027_v24  ;;  %v12910_v28 = vcombine.low %v8023_v18, %v8027_v24  ;;  %v8070_v24 = vld [vmem:[%s18187_s5 + $0xe00] sm:$0xff] }
 0x4da   :  { %10847 = vmatpush1.bf16.msra.mxu0 %v12876_v25  ;;  %v8034_v25 = vld [vmem:[%s18187_s5 + $0xce0] sm:$0xff] }
 0x4db   :  { %11011 = vmatpush1.bf16.msra.mxu1 %v12878_v54  ;;  %10848 = vmatprep.subr.bf16.mxu0 %v12885_v26  ;;  %v8031_v54 = vld [vmem:[%s18187_s5 + $0xcc8] sm:$0xff]  ;;  %v12917_v29 = vcombine.high %v8030_v12, %v8034_v25 }
 0x4dc   :  { %11012 = vmatprep.subr.bf16.mxu1 %v12887_v27  ;;  %v8035_v26 = vld [vmem:[%s18187_s5 + $0xce8] sm:$0xff]  ;;  %v12908_v27 = vcombine.low %v8022_v10, %v8026_v57 }
 0x4dd   :  { %v12919_v21 = vcombine.high %v8031_v54, %v8035_v26  ;;  %v8067_v10 = vld [vmem:[%s18187_s5 + $0xde8] sm:$0xff] }
 0x4de   :  { %10849 = vmatpush1.bf16.msra.mxu0 %v12884_v48  ;;  %v8042_v48 = vld [vmem:[%s18187_s5 + $0xd20] sm:$0xff] }
 0x4df   :  { %11013 = vmatpush1.bf16.msra.mxu1 %v12886_v35  ;;  %10859 = vmatprep.subr.bf16.mxu0 %v12893_v39  ;;  %v8039_v35 = vld [vmem:[%s18187_s5 + $0xd08] sm:$0xff] }
 0x4e0   :  { %11023 = vmatprep.subr.bf16.mxu1 %v12895_v40  ;;  %v8043_v39 = vld [vmem:[%s18187_s5 + $0xd28] sm:$0xff]  ;;  %v12916_v40 = vcombine.low %v8030_v12, %v8034_v25 }
 0x4f4   :  { %v7435_v42 = vpop.f32.mrb[12].mxu0 }
 0x4f5   :  { %v13032_v43 = vadd.f32 %v7435_v42, %v4369_v32  ;;  %v17143_v44 = vpop.f32.mrb[12].mxu1  ;;  %v7437_v17 = vpop.f32.mrb[13].mxu0  ;;  %v12918_v32 = vcombine.low %v8031_v54, %v8035_v26  ;;  %v8046_v42 = vld [vmem:[%s18187_s5 + $0xd40] sm:$0xff] }
 0x4f6   :  { %v13033_v46 = vadd.f32 %v7437_v17, %v4373_v60  ;;  %v7601_v45 = vpop.f32.mrb[13].mxu1  ;;  %v7439_v4 = vpop.f32.mrb[14].mxu0  ;;  %v12925_v60 = vcombine.high %v8038_v34, %v8042_v48  ;;  %v8047_v17 = vld [vmem:[%s18187_s5 + $0xd48] sm:$0xff]  ;;  %v8078_v26 = vld [vmem:[%s18187_s5 + $0xe40] sm:$0xff] }
 0x4f7   :  { %v7610_v36 = vmax.f32 %v13032_v43, 0.0  ;;  %v13035_v50 = vadd.f32 %v7601_v45, %v4381_v41  ;;  %v7603_v51 = vpop.f32.mrb[14].mxu1  ;;  %v7440_v52 = vpop.f32.mrb[15].mxu0  ;;  %v12927_v41 = vcombine.high %v8039_v35, %v8043_v39  ;;  %v8050_v43 = vld [vmem:[%s18187_s5 + $0xd60] sm:$0xff]  ;;  %v12924_v45 = vcombine.low %v8038_v34, %v8042_v48 }
 0x4f8   :  { %v7611_v61 = vmax.f32 %v13033_v46, 0.0  ;;  %v7604_v49 = vpop.f32.mrb[15].mxu1  ;;  %v8051_v46 = vld [vmem:[%s18187_s5 + $0xd68] sm:$0xff]  ;;  %v12926_v4 = vcombine.low %v8039_v35, %v8043_v39  ;;  %v8054_v51 = vld [vmem:[%s18187_s5 + $0xd80] sm:$0xff]  ;;  %v12932_v0 = vcombine.low %v8046_v42, %v8050_v43 }
 0x4f9   :  { %v7613_v62 = vmax.f32 %v13035_v50, 0.0  ;;  %v17159_v6 = vpack.c.bf16 %v7610_v36, %v7610_v36  ;;  %v12933_v36 = vcombine.high %v8046_v42, %v8050_v43  ;;  %v12935_v50 = vcombine.high %v8047_v17, %v8051_v46  ;;  %v8058_v52 = vld [vmem:[%s18187_s5 + $0xda0] sm:$0xff]  ;;  %v8059_v49 = vld [vmem:[%s18187_s5 + $0xda8] sm:$0xff] }
 0x4fa   :  { %v17157_v16 = vpack.c.bf16 %v7611_v61, %v7611_v61  ;;  %v8055_v61 = vld [vmem:[%s18187_s5 + $0xd88] sm:$0xff]  ;;  %v12941_v63 = vcombine.high %v8054_v51, %v8058_v52  ;;  %v8086_v39 = vld [vmem:[%s18187_s5 + $0xe80] sm:$0xff] }
 0x4fb   :  { %v17175_v19 = vpack.c.bf16 %v7613_v62, %v7613_v62  ;;  %v12934_v62 = vcombine.low %v8047_v17, %v8051_v46  ;;  %v12943_v13 = vcombine.high %v8055_v61, %v8059_v49  ;;  %v8094_v46 = vld [vmem:[%s18187_s5 + $0xec0] sm:$0xff] }
 0x4fc   :  { %10850 = vmatprep.mubr.bf16.mxu0 %v17157_v16  ;;  %11014 = vmatprep.mubr.bf16.mxu1 %v17157_v16 }
 0x4fd   :  { %10851 = vmatmul.mubr.bf16.vlgmr.msra.gmra.mrb[16].mxu0 %v17159_v6  ;;  %11015 = vmatmul.mubr.bf16.vlgmr.msra.gmra.mrb[16].mxu1 %v17159_v6 }
 0x4fe   :  { %10860 = vmatpush1.bf16.msra.mxu0 %v12892_v3  ;;  %11024 = vmatpush1.bf16.msra.mxu1 %v12894_v5  ;;  %v8066_v3 = vld [vmem:[%s18187_s5 + $0xde0] sm:$0xff]  ;;  %v8063_v5 = vld [vmem:[%s18187_s5 + $0xdc8] sm:$0xff] }
 0x4ff   :  { %10891 = vmatprep.mubr.bf16.mxu0 %v17175_v19  ;;  %11055 = vmatprep.mubr.bf16.mxu1 %v17175_v19  ;;  %v12949_v57 = vcombine.high %v8062_v2, %v8066_v3  ;;  %v12951_v18 = vcombine.high %v8063_v5, %v8067_v10  ;;  %v12950_v12 = vcombine.low %v8063_v5, %v8067_v10  ;;  %v8110_v10 = vld [vmem:[%s18187_s5 + $0xf40] sm:$0xff] }
 0x500   :  { %10861 = vmatprep.subr.bf16.mxu0 %v12901_v14  ;;  %11025 = vmatprep.subr.bf16.mxu1 %v12903_v7  ;;  %v12940_v14 = vcombine.low %v8054_v51, %v8058_v52  ;;  %v12942_v7 = vcombine.low %v8055_v61, %v8059_v49  ;;  %v8102_v49 = vld [vmem:[%s18187_s5 + $0xf00] sm:$0xff] }
 0x502   :  { %10862 = vmatpush1.bf16.msra.mxu0 %v12900_v8  ;;  %11026 = vmatpush1.bf16.msra.mxu1 %v12902_v20  ;;  %v8074_v8 = vld [vmem:[%s18187_s5 + $0xe20] sm:$0xff]  ;;  %v8071_v20 = vld [vmem:[%s18187_s5 + $0xe08] sm:$0xff] }
 0x503   :  { %10863 = vmatprep.subr.bf16.mxu0 %v12909_v33  ;;  %11027 = vmatprep.subr.bf16.mxu1 %v12911_v23  ;;  %v8075_v33 = vld [vmem:[%s18187_s5 + $0xe28] sm:$0xff]  ;;  %v12948_v23 = vcombine.low %v8062_v2, %v8066_v3  ;;  %v12957_v25 = vcombine.high %v8070_v24, %v8074_v8 }
 0x504   :  { %v12959_v54 = vcombine.high %v8071_v20, %v8075_v33  ;;  %v12958_v34 = vcombine.low %v8071_v20, %v8075_v33  ;;  %v8118_v33 = vld [vmem:[%s18187_s5 + $0xf80] sm:$0xff] }
 0x506   :  { %10864 = vmatpush1.bf16.msra.mxu0 %v12908_v27  ;;  %11028 = vmatpush1.bf16.msra.mxu1 %v12910_v28  ;;  %v8082_v27 = vld [vmem:[%s18187_s5 + $0xe60] sm:$0xff]  ;;  %v8079_v28 = vld [vmem:[%s18187_s5 + $0xe48] sm:$0xff] }
 0x507   :  { %10865 = vmatprep.subr.bf16.mxu0 %v12917_v29  ;;  %11029 = vmatprep.subr.bf16.mxu1 %v12919_v21  ;;  %v8083_v29 = vld [vmem:[%s18187_s5 + $0xe68] sm:$0xff]  ;;  %v12956_v21 = vcombine.low %v8070_v24, %v8074_v8  ;;  %v12965_v48 = vcombine.high %v8078_v26, %v8082_v27 }
 0x508   :  { %v12967_v35 = vcombine.high %v8079_v28, %v8083_v29  ;;  %v12966_v42 = vcombine.low %v8079_v28, %v8083_v29 }
 0x50a   :  { %10866 = vmatpush1.bf16.msra.mxu0 %v12916_v40  ;;  %11030 = vmatpush1.bf16.msra.mxu1 %v12918_v32  ;;  %v8090_v40 = vld [vmem:[%s18187_s5 + $0xea0] sm:$0xff]  ;;  %v8087_v32 = vld [vmem:[%s18187_s5 + $0xe88] sm:$0xff] }
 0x50b   :  { %10867 = vmatprep.subr.bf16.mxu0 %v12925_v60  ;;  %11031 = vmatprep.subr.bf16.mxu1 %v12927_v41  ;;  %v8091_v60 = vld [vmem:[%s18187_s5 + $0xea8] sm:$0xff]  ;;  %v12964_v41 = vcombine.low %v8078_v26, %v8082_v27  ;;  %v12973_v43 = vcombine.high %v8086_v39, %v8090_v40  ;;  %v4377_v27 = vrot.slane %v17135_v9, %v15686_v31 }
 0x50c   :  { %v12975_v17 = vcombine.high %v8087_v32, %v8091_v60  ;;  %v12974_v51 = vcombine.low %v8087_v32, %v8091_v60  ;;  %v8131_v9 = vld [vmem:[%s18187_s5 + $0xfe8] sm:$0xff] }
 0x50e   :  { %10868 = vmatpush1.bf16.msra.mxu0 %v12924_v45  ;;  %11032 = vmatpush1.bf16.msra.mxu1 %v12926_v4  ;;  %v8098_v45 = vld [vmem:[%s18187_s5 + $0xee0] sm:$0xff]  ;;  %v8095_v4 = vld [vmem:[%s18187_s5 + $0xec8] sm:$0xff] }
 0x50f   :  { %10869 = vmatprep.subr.bf16.mxu0 %v12933_v36  ;;  %11033 = vmatprep.subr.bf16.mxu1 %v12935_v50  ;;  %v8099_v36 = vld [vmem:[%s18187_s5 + $0xee8] sm:$0xff]  ;;  %v12972_v50 = vcombine.low %v8086_v39, %v8090_v40  ;;  %v12981_v52 = vcombine.high %v8094_v46, %v8098_v45  ;;  %v13034_v40 = vadd.f32 %v17143_v44, %v4377_v27  ;;  %v7629_v44 = vld [vmem:[%s18187_s5 + $0x38] sm:$0xff] }
 0x510   :  { %v12983_v61 = vcombine.high %v8095_v4, %v8099_v36  ;;  %v12982_v2 = vcombine.low %v8095_v4, %v8099_v36  ;;  %v7657_v27 = vld [vmem:[%s18187_s5 + $0x118] sm:$0xff] }
 0x512   :  { %10870 = vmatpush1.bf16.msra.mxu0 %v12932_v0  ;;  %11034 = vmatpush1.bf16.msra.mxu1 %v12934_v62  ;;  %v8106_v0 = vld [vmem:[%s18187_s5 + $0xf20] sm:$0xff]  ;;  %v8103_v62 = vld [vmem:[%s18187_s5 + $0xf08] sm:$0xff] }
 0x513   :  { %10871 = vmatprep.subr.bf16.mxu0 %v12941_v63  ;;  %11035 = vmatprep.subr.bf16.mxu1 %v12943_v13  ;;  %v8107_v63 = vld [vmem:[%s18187_s5 + $0xf28] sm:$0xff]  ;;  %v12980_v13 = vcombine.low %v8094_v46, %v8098_v45  ;;  %v12989_v3 = vcombine.high %v8102_v49, %v8106_v0  ;;  %v7612_v45 = vmax.f32 %v13034_v40, 0.0  ;;  %v7669_v40 = vld [vmem:[%s18187_s5 + $0x178] sm:$0xff] }
 0x514   :  { %v12991_v5 = vcombine.high %v8103_v62, %v8107_v63  ;;  %v12990_v24 = vcombine.low %v8103_v62, %v8107_v63 }
 0x516   :  { %10872 = vmatpush1.bf16.msra.mxu0 %v12940_v14  ;;  %11036 = vmatpush1.bf16.msra.mxu1 %v12942_v7  ;;  %v8114_v14 = vld [vmem:[%s18187_s5 + $0xf60] sm:$0xff]  ;;  %v8111_v7 = vld [vmem:[%s18187_s5 + $0xf48] sm:$0xff] }
 0x517   :  { %10873 = vmatprep.subr.bf16.mxu0 %v12949_v57  ;;  %11037 = vmatprep.subr.bf16.mxu1 %v12951_v18  ;;  %v8115_v57 = vld [vmem:[%s18187_s5 + $0xf68] sm:$0xff]  ;;  %v12988_v18 = vcombine.low %v8102_v49, %v8106_v0  ;;  %v12997_v8 = vcombine.high %v8110_v10, %v8114_v14  ;;  %v17364_v0 = vpack.c.bf16 %v7612_v45, %v7612_v45 }
 0x518   :  { %v12999_v20 = vcombine.high %v8111_v7, %v8115_v57  ;;  %v12998_v26 = vcombine.low %v8111_v7, %v8115_v57 }
 0x51a   :  { %10874 = vmatpush1.bf16.msra.mxu0 %v12948_v23  ;;  %11038 = vmatpush1.bf16.msra.mxu1 %v12950_v12  ;;  %v8122_v23 = vld [vmem:[%s18187_s5 + $0xfa0] sm:$0xff]  ;;  %v8119_v12 = vld [vmem:[%s18187_s5 + $0xf88] sm:$0xff] }
 0x51b   :  { %10875 = vmatprep.subr.bf16.mxu0 %v12957_v25  ;;  %11039 = vmatprep.subr.bf16.mxu1 %v12959_v54  ;;  %v8123_v25 = vld [vmem:[%s18187_s5 + $0xfa8] sm:$0xff]  ;;  %v12996_v54 = vcombine.low %v8110_v10, %v8114_v14  ;;  %v13005_v28 = vcombine.high %v8118_v33, %v8122_v23  ;;  %v7645_v10 = vld [vmem:[%s18187_s5 + $0xb8] sm:$0xff] }
 0x51c   :  { %v13007_v29 = vcombine.high %v8119_v12, %v8123_v25  ;;  %v13006_v39 = vcombine.low %v8119_v12, %v8123_v25 }
 0x51e   :  { %10876 = vmatpush1.bf16.msra.mxu0 %v12956_v21  ;;  %11040 = vmatpush1.bf16.msra.mxu1 %v12958_v34  ;;  %v8126_v21 = vld [vmem:[%s18187_s5 + $0xfc0] sm:$0xff] }
 0x51f   :  { %10877 = vmatprep.subr.bf16.mxu0 %v12965_v48  ;;  %11041 = vmatprep.subr.bf16.mxu1 %v12967_v35  ;;  %v8130_v34 = vld [vmem:[%s18187_s5 + $0xfe0] sm:$0xff]  ;;  %v8127_v48 = vld [vmem:[%s18187_s5 + $0xfc8] sm:$0xff]  ;;  %v13004_v35 = vcombine.low %v8118_v33, %v8122_v23 }
 0x520   :  { %v13013_v32 = vcombine.high %v8126_v21, %v8130_v34  ;;  %v13015_v60 = vcombine.high %v8127_v48, %v8131_v9  ;;  %v13014_v46 = vcombine.low %v8127_v48, %v8131_v9  ;;  %v7664_v9 = vld [vmem:[%s18187_s5 + $0x150] sm:$0xff] }
 0x522   :  { %10878 = vmatpush1.bf16.msra.mxu0 %v12964_v41  ;;  %11042 = vmatpush1.bf16.msra.mxu1 %v12966_v42  ;;  %v7624_v41 = vld [vmem:[%s18187_s5 + $0x10] sm:$0xff] }
 0x523   :  { %10879 = vmatprep.subr.bf16.mxu0 %v12973_v43  ;;  %11043 = vmatprep.subr.bf16.mxu1 %v12975_v17  ;;  %v7628_v42 = vld [vmem:[%s18187_s5 + $0x30] sm:$0xff]  ;;  %v7625_v43 = vld [vmem:[%s18187_s5 + $0x18] sm:$0xff]  ;;  %v13012_v17 = vcombine.low %v8126_v21, %v8130_v34 }
 0x524   :  { %v12513_v4 = vcombine.high %v7624_v41, %v7628_v42  ;;  %v12515_v36 = vcombine.high %v7625_v43, %v7629_v44  ;;  %v12512_v49 = vcombine.low %v7624_v41, %v7628_v42  ;;  %v12514_v62 = vcombine.low %v7625_v43, %v7629_v44  ;;  %v7672_v43 = vld [vmem:[%s18187_s5 + $0x190] sm:$0xff] }
 0x525   :  { %v7676_v44 = vld [vmem:[%s18187_s5 + $0x1b0] sm:$0xff] }
 0x526   :  { %10880 = vmatpush1.bf16.msra.mxu0 %v12972_v50  ;;  %11044 = vmatpush1.bf16.msra.mxu1 %v12974_v51  ;;  %v7632_v50 = vld [vmem:[%s18187_s5 + $0x50] sm:$0xff] }
 0x527   :  { %10881 = vmatprep.subr.bf16.mxu0 %v12981_v52  ;;  %11045 = vmatprep.subr.bf16.mxu1 %v12983_v61  ;;  %v7636_v51 = vld [vmem:[%s18187_s5 + $0x70] sm:$0xff]  ;;  %v7633_v52 = vld [vmem:[%s18187_s5 + $0x58] sm:$0xff] }
 0x528   :  { %v7637_v61 = vld [vmem:[%s18187_s5 + $0x78] sm:$0xff]  ;;  %v12521_v63 = vcombine.high %v7632_v50, %v7636_v51  ;;  %v12520_v14 = vcombine.low %v7632_v50, %v7636_v51  ;;  %v7680_v51 = vld [vmem:[%s18187_s5 + $0x1d0] sm:$0xff] }
 0x529   :  { %v12522_v7 = vcombine.low %v7633_v52, %v7637_v61 }
 0x52a   :  { %10882 = vmatpush1.bf16.msra.mxu0 %v12980_v13  ;;  %11046 = vmatpush1.bf16.msra.mxu1 %v12982_v2  ;;  %v12523_v13 = vcombine.high %v7633_v52, %v7637_v61  ;;  %v7640_v2 = vld [vmem:[%s18187_s5 + $0x90] sm:$0xff]  ;;  %v7681_v61 = vld [vmem:[%s18187_s5 + $0x1d8] sm:$0xff] }
 0x52b   :  { %10883 = vmatprep.subr.bf16.mxu0 %v12989_v3  ;;  %11047 = vmatprep.subr.bf16.mxu1 %v12991_v5  ;;  %v7644_v3 = vld [vmem:[%s18187_s5 + $0xb0] sm:$0xff]  ;;  %v7641_v5 = vld [vmem:[%s18187_s5 + $0x98] sm:$0xff] }
 0x52c   :  { %v12529_v57 = vcombine.high %v7640_v2, %v7644_v3  ;;  %v12528_v33 = vcombine.low %v7640_v2, %v7644_v3  ;;  %v12530_v23 = vcombine.low %v7641_v5, %v7645_v10  ;;  %v7684_v52 = vld [vmem:[%s18187_s5 + $0x1f0] sm:$0xff] }
 0x52d   :  { %v7688_v3 = vld [vmem:[%s18187_s5 + $0x210] sm:$0xff] }
 0x52e   :  { %10884 = vmatpush1.bf16.msra.mxu0 %v12988_v18  ;;  %11048 = vmatpush1.bf16.msra.mxu1 %v12990_v24  ;;  %v12531_v18 = vcombine.high %v7641_v5, %v7645_v10  ;;  %v7648_v24 = vld [vmem:[%s18187_s5 + $0xd0] sm:$0xff]  ;;  %v7689_v10 = vld [vmem:[%s18187_s5 + $0x218] sm:$0xff] }
 0x52f   :  { %10885 = vmatprep.subr.bf16.mxu0 %v12997_v8  ;;  %11049 = vmatprep.subr.bf16.mxu1 %v12999_v20  ;;  %v7652_v8 = vld [vmem:[%s18187_s5 + $0xf0] sm:$0xff]  ;;  %v7649_v20 = vld [vmem:[%s18187_s5 + $0xd8] sm:$0xff] }
 0x530   :  { %v12537_v12 = vcombine.high %v7648_v24, %v7652_v8  ;;  %v7692_v5 = vld [vmem:[%s18187_s5 + $0x230] sm:$0xff] }
 0x532   :  { %10886 = vmatpush1.bf16.msra.mxu0 %v12996_v54  ;;  %11050 = vmatpush1.bf16.msra.mxu1 %v12998_v26  ;;  %v7656_v54 = vld [vmem:[%s18187_s5 + $0x110] sm:$0xff] }
 0x533   :  { %10887 = vmatprep.subr.bf16.mxu0 %v13005_v28  ;;  %11051 = vmatprep.subr.bf16.mxu1 %v13007_v29  ;;  %v7660_v26 = vld [vmem:[%s18187_s5 + $0x130] sm:$0xff]  ;;  %v7661_v28 = vld [vmem:[%s18187_s5 + $0x138] sm:$0xff]  ;;  %v12536_v29 = vcombine.low %v7648_v24, %v7652_v8 }
 0x534   :  { %v12545_v34 = vcombine.high %v7656_v54, %v7660_v26  ;;  %v12547_v48 = vcombine.high %v7657_v27, %v7661_v28  ;;  %v7696_v8 = vld [vmem:[%s18187_s5 + $0x250] sm:$0xff] }
 0x536   :  { %10888 = vmatpush1.bf16.msra.mxu0 %v13004_v35  ;;  %11052 = vmatpush1.bf16.msra.mxu1 %v13006_v39  ;;  %v7668_v35 = vld [vmem:[%s18187_s5 + $0x170] sm:$0xff]  ;;  %v7665_v39 = vld [vmem:[%s18187_s5 + $0x158] sm:$0xff] }
 0x537   :  { %10889 = vmatprep.subr.bf16.mxu0 %v13013_v32  ;;  %11053 = vmatprep.subr.bf16.mxu1 %v13015_v60  ;;  %v12544_v32 = vcombine.low %v7656_v54, %v7660_v26  ;;  %v12546_v60 = vcombine.low %v7657_v27, %v7661_v28  ;;  %v12553_v41 = vcombine.high %v7664_v9, %v7668_v35  ;;  %v7704_v26 = vld [vmem:[%s18187_s5 + $0x290] sm:$0xff]  ;;  %v7705_v28 = vld [vmem:[%s18187_s5 + $0x298] sm:$0xff] }
 0x538   :  { %v12555_v42 = vcombine.high %v7665_v39, %v7669_v40  ;;  %v12552_v45 = vcombine.low %v7664_v9, %v7668_v35  ;;  %v7708_v27 = vld [vmem:[%s18187_s5 + $0x2b0] sm:$0xff] }
 0x539   :  { %v7712_v35 = vld [vmem:[%s18187_s5 + $0x2d0] sm:$0xff] }
 0x53a   :  { %10890 = vmatpush1.bf16.msra.mxu0 %v13012_v17  ;;  %11054 = vmatpush1.bf16.msra.mxu1 %v13014_v46  ;;  %v7673_v17 = vld [vmem:[%s18187_s5 + $0x198] sm:$0xff] }
 0x53b   :  { %11064 = vmatprep.subr.bf16.mxu0 %v12513_v4  ;;  %11228 = vmatprep.subr.bf16.mxu1 %v12515_v36  ;;  %v7677_v46 = vld [vmem:[%s18187_s5 + $0x1b8] sm:$0xff]  ;;  %v12554_v4 = vcombine.low %v7665_v39, %v7669_v40  ;;  %v12561_v36 = vcombine.high %v7672_v43, %v7676_v44  ;;  %v7716_v39 = vld [vmem:[%s18187_s5 + $0x2f0] sm:$0xff] }
 0x53c   :  { %v12563_v50 = vcombine.high %v7673_v17, %v7677_v46  ;;  %v7713_v40 = vld [vmem:[%s18187_s5 + $0x2d8] sm:$0xff] }
 0x53d   :  { %10892 = vmatmul.mubr.bf16.vlgmr.msra.gmra.mrb[16].mxu0 %v17364_v0  ;;  %11056 = vmatmul.mubr.bf16.vlgmr.msra.gmra.mrb[16].mxu1 %v17364_v0 }
 0x53e   :  { %11065 = vmatpush1.bf16.msra.mxu0 %v12512_v49  ;;  %11096 = vmatprep.mubr.bf16.mxu0 %v16547_v47  ;;  %v7685_v49 = vld [vmem:[%s18187_s5 + $0x1f8] sm:$0xff] }
 0x53f   :  { %11229 = vmatpush1.bf16.msra.mxu1 %v12514_v62  ;;  %11260 = vmatprep.mubr.bf16.mxu1 %v16547_v47  ;;  %v7653_v47 = vld [vmem:[%s18187_s5 + $0xf8] sm:$0xff]  ;;  %v12560_v62 = vcombine.low %v7672_v43, %v7676_v44  ;;  %v12571_v2 = vcombine.high %v7681_v61, %v7685_v49  ;;  %v7720_v44 = vld [vmem:[%s18187_s5 + $0x310] sm:$0xff] }
 0x540   :  { %11066 = vmatprep.subr.bf16.mxu0 %v12521_v63  ;;  %11230 = vmatprep.subr.bf16.mxu1 %v12523_v13  ;;  %v12539_v25 = vcombine.high %v7649_v20, %v7653_v47  ;;  %v12538_v21 = vcombine.low %v7649_v20, %v7653_v47  ;;  %v12562_v63 = vcombine.low %v7673_v17, %v7677_v46  ;;  %v7700_v20 = vld [vmem:[%s18187_s5 + $0x270] sm:$0xff]  ;;  %v7697_v47 = vld [vmem:[%s18187_s5 + $0x258] sm:$0xff] }
 0x541   :  { %v12569_v13 = vcombine.high %v7680_v51, %v7684_v52  ;;  %v7724_v17 = vld [vmem:[%s18187_s5 + $0x330] sm:$0xff]  ;;  %v7721_v46 = vld [vmem:[%s18187_s5 + $0x318] sm:$0xff] }
 0x542   :  { %11067 = vmatpush1.bf16.msra.mxu0 %v12520_v14  ;;  %v7693_v14 = vld [vmem:[%s18187_s5 + $0x238] sm:$0xff] }
 0x543   :  { %11231 = vmatpush1.bf16.msra.mxu1 %v12522_v7  ;;  %11068 = vmatprep.subr.bf16.mxu0 %v12529_v57  ;;  %v12568_v7 = vcombine.low %v7680_v51, %v7684_v52  ;;  %v12570_v57 = vcombine.low %v7681_v61, %v7685_v49  ;;  %v12579_v24 = vcombine.high %v7689_v10, %v7693_v14  ;;  %v7728_v52 = vld [vmem:[%s18187_s5 + $0x350] sm:$0xff]  ;;  %v7729_v49 = vld [vmem:[%s18187_s5 + $0x358] sm:$0xff] }
 0x544   :  { %11232 = vmatprep.subr.bf16.mxu1 %v12531_v18  ;;  %v12577_v18 = vcombine.high %v7688_v3, %v7692_v5  ;;  %v7732_v61 = vld [vmem:[%s18187_s5 + $0x370] sm:$0xff] }
 0x546   :  { %11069 = vmatpush1.bf16.msra.mxu0 %v12528_v33  ;;  %v7701_v33 = vld [vmem:[%s18187_s5 + $0x278] sm:$0xff] }
 0x547   :  { %11233 = vmatpush1.bf16.msra.mxu1 %v12530_v23  ;;  %11070 = vmatprep.subr.bf16.mxu0 %v12537_v12  ;;  %v12576_v23 = vcombine.low %v7688_v3, %v7692_v5  ;;  %v12578_v12 = vcombine.low %v7689_v10, %v7693_v14  ;;  %v12587_v54 = vcombine.high %v7697_v47, %v7701_v33  ;;  %v7736_v5 = vld [vmem:[%s18187_s5 + $0x390] sm:$0xff]  ;;  %v7737_v14 = vld [vmem:[%s18187_s5 + $0x398] sm:$0xff] }
 0x548   :  { %11234 = vmatprep.subr.bf16.mxu1 %v12539_v25  ;;  %v12585_v25 = vcombine.high %v7696_v8, %v7700_v20  ;;  %v7740_v10 = vld [vmem:[%s18187_s5 + $0x3b0] sm:$0xff] }
 0x54a   :  { %11071 = vmatpush1.bf16.msra.mxu0 %v12536_v29  ;;  %v7709_v29 = vld [vmem:[%s18187_s5 + $0x2b8] sm:$0xff] }
 0x54b   :  { %11235 = vmatpush1.bf16.msra.mxu1 %v12538_v21  ;;  %11072 = vmatprep.subr.bf16.mxu0 %v12545_v34  ;;  %v12584_v21 = vcombine.low %v7696_v8, %v7700_v20  ;;  %v12586_v34 = vcombine.low %v7697_v47, %v7701_v33  ;;  %v12595_v9 = vcombine.high %v7705_v28, %v7709_v29  ;;  %v7744_v20 = vld [vmem:[%s18187_s5 + $0x3d0] sm:$0xff]  ;;  %v7745_v33 = vld [vmem:[%s18187_s5 + $0x3d8] sm:$0xff] }
 0x54c   :  { %11236 = vmatprep.subr.bf16.mxu1 %v12547_v48  ;;  %v12593_v48 = vcombine.high %v7704_v26, %v7708_v27  ;;  %v7748_v47 = vld [vmem:[%s18187_s5 + $0x3f0] sm:$0xff] }
 0x54e   :  { %11073 = vmatpush1.bf16.msra.mxu0 %v12544_v32  ;;  %v7717_v32 = vld [vmem:[%s18187_s5 + $0x2f8] sm:$0xff] }
 0x54f   :  { %11237 = vmatpush1.bf16.msra.mxu1 %v12546_v60  ;;  %11074 = vmatprep.subr.bf16.mxu0 %v12553_v41  ;;  %v12592_v60 = vcombine.low %v7704_v26, %v7708_v27  ;;  %v12594_v41 = vcombine.low %v7705_v28, %v7709_v29  ;;  %v12603_v43 = vcombine.high %v7713_v40, %v7717_v32  ;;  %v7752_v27 = vld [vmem:[%s18187_s5 + $0x410] sm:$0xff]  ;;  %v7753_v29 = vld [vmem:[%s18187_s5 + $0x418] sm:$0xff] }
 0x550   :  { %11238 = vmatprep.subr.bf16.mxu1 %v12555_v42  ;;  %v12601_v42 = vcombine.high %v7712_v35, %v7716_v39  ;;  %v7756_v28 = vld [vmem:[%s18187_s5 + $0x430] sm:$0xff] }
 0x552   :  { %11075 = vmatpush1.bf16.msra.mxu0 %v12552_v45  ;;  %v7725_v45 = vld [vmem:[%s18187_s5 + $0x338] sm:$0xff] }
 0x553   :  { %11239 = vmatpush1.bf16.msra.mxu1 %v12554_v4  ;;  %11076 = vmatprep.subr.bf16.mxu0 %v12561_v36  ;;  %v12600_v4 = vcombine.low %v7712_v35, %v7716_v39  ;;  %v12602_v36 = vcombine.low %v7713_v40, %v7717_v32  ;;  %v12611_v51 = vcombine.high %v7721_v46, %v7725_v45  ;;  %v7760_v39 = vld [vmem:[%s18187_s5 + $0x450] sm:$0xff] }
 0x554   :  { %11240 = vmatprep.subr.bf16.mxu1 %v12563_v50  ;;  %v12609_v50 = vcombine.high %v7720_v44, %v7724_v17  ;;  %v7764_v40 = vld [vmem:[%s18187_s5 + $0x470] sm:$0xff]  ;;  %v12640_v32 = vcombine.low %v7752_v27, %v7756_v28 }
 0x556   :  { %11077 = vmatpush1.bf16.msra.mxu0 %v12560_v62  ;;  %v7733_v62 = vld [vmem:[%s18187_s5 + $0x378] sm:$0xff] }
 0x557   :  { %11241 = vmatpush1.bf16.msra.mxu1 %v12562_v63  ;;  %11078 = vmatprep.subr.bf16.mxu0 %v12569_v13  ;;  %v12608_v63 = vcombine.low %v7720_v44, %v7724_v17  ;;  %v12610_v13 = vcombine.low %v7721_v46, %v7725_v45  ;;  %v12619_v3 = vcombine.high %v7729_v49, %v7733_v62  ;;  %v7768_v44 = vld [vmem:[%s18187_s5 + $0x490] sm:$0xff]  ;;  %v7769_v45 = vld [vmem:[%s18187_s5 + $0x498] sm:$0xff] }
 0x558   :  { %11242 = vmatprep.subr.bf16.mxu1 %v12571_v2  ;;  %v12617_v2 = vcombine.high %v7728_v52, %v7732_v61  ;;  %v7772_v17 = vld [vmem:[%s18187_s5 + $0x4b0] sm:$0xff] }
 0x55a   :  { %11079 = vmatpush1.bf16.msra.mxu0 %v12568_v7  ;;  %v7741_v7 = vld [vmem:[%s18187_s5 + $0x3b8] sm:$0xff] }
 0x55b   :  { %11243 = vmatpush1.bf16.msra.mxu1 %v12570_v57  ;;  %11080 = vmatprep.subr.bf16.mxu0 %v12577_v18  ;;  %v12616_v57 = vcombine.low %v7728_v52, %v7732_v61  ;;  %v12618_v18 = vcombine.low %v7729_v49, %v7733_v62  ;;  %v12627_v8 = vcombine.high %v7737_v14, %v7741_v7  ;;  %v7776_v61 = vld [vmem:[%s18187_s5 + $0x4d0] sm:$0xff]  ;;  %v7781_v62 = vld [vmem:[%s18187_s5 + $0x4f8] sm:$0xff] }
 0x55c   :  { %11244 = vmatprep.subr.bf16.mxu1 %v12579_v24  ;;  %v12625_v24 = vcombine.high %v7736_v5, %v7740_v10  ;;  %v7780_v49 = vld [vmem:[%s18187_s5 + $0x4f0] sm:$0xff] }
 0x55e   :  { %11081 = vmatpush1.bf16.msra.mxu0 %v12576_v23  ;;  %v7749_v23 = vld [vmem:[%s18187_s5 + $0x3f8] sm:$0xff] }
 0x55f   :  { %11245 = vmatpush1.bf16.msra.mxu1 %v12578_v12  ;;  %11082 = vmatprep.subr.bf16.mxu0 %v12585_v25  ;;  %v12624_v12 = vcombine.low %v7736_v5, %v7740_v10  ;;  %v12626_v25 = vcombine.low %v7737_v14, %v7741_v7  ;;  %v12635_v26 = vcombine.high %v7745_v33, %v7749_v23  ;;  %v7788_v5 = vld [vmem:[%s18187_s5 + $0x530] sm:$0xff]  ;;  %v7785_v10 = vld [vmem:[%s18187_s5 + $0x518] sm:$0xff] }
 0x560   :  { %11246 = vmatprep.subr.bf16.mxu1 %v12587_v54  ;;  %v12633_v54 = vcombine.high %v7744_v20, %v7748_v47  ;;  %v7789_v14 = vld [vmem:[%s18187_s5 + $0x538] sm:$0xff]  ;;  %v12664_v7 = vcombine.low %v7776_v61, %v7780_v49 }
 0x562   :  { %11083 = vmatpush1.bf16.msra.mxu0 %v12584_v21  ;;  %v7757_v21 = vld [vmem:[%s18187_s5 + $0x438] sm:$0xff] }
 0x563   :  { %11247 = vmatpush1.bf16.msra.mxu1 %v12586_v34  ;;  %11084 = vmatprep.subr.bf16.mxu0 %v12593_v48  ;;  %v12632_v34 = vcombine.low %v7744_v20, %v7748_v47  ;;  %v12634_v48 = vcombine.low %v7745_v33, %v7749_v23  ;;  %v12643_v35 = vcombine.high %v7753_v29, %v7757_v21  ;;  %v7796_v20 = vld [vmem:[%s18187_s5 + $0x570] sm:$0xff]  ;;  %v7793_v47 = vld [vmem:[%s18187_s5 + $0x558] sm:$0xff] }
 0x564   :  { %11248 = vmatprep.subr.bf16.mxu1 %v12595_v9  ;;  %v12641_v9 = vcombine.high %v7752_v27, %v7756_v28  ;;  %v7797_v33 = vld [vmem:[%s18187_s5 + $0x578] sm:$0xff]  ;;  %v7804_v27 = vld [vmem:[%s18187_s5 + $0x5b0] sm:$0xff] }
 0x565   :  { %v7801_v28 = vld [vmem:[%s18187_s5 + $0x598] sm:$0xff] }
 0x566   :  { %11085 = vmatpush1.bf16.msra.mxu0 %v12592_v60  ;;  %v7761_v60 = vld [vmem:[%s18187_s5 + $0x458] sm:$0xff] }
 0x567   :  { %11249 = vmatpush1.bf16.msra.mxu1 %v12594_v41  ;;  %11086 = vmatprep.subr.bf16.mxu0 %v12601_v42  ;;  %v7765_v41 = vld [vmem:[%s18187_s5 + $0x478] sm:$0xff]  ;;  %v12642_v42 = vcombine.low %v7753_v29, %v7757_v21 }
 0x568   :  { %11250 = vmatprep.subr.bf16.mxu1 %v12603_v43  ;;  %v12649_v43 = vcombine.high %v7760_v39, %v7764_v40  ;;  %v12651_v46 = vcombine.high %v7761_v60, %v7765_v41  ;;  %v7805_v29 = vld [vmem:[%s18187_s5 + $0x5b8] sm:$0xff] }
 0x56a   :  { %11087 = vmatpush1.bf16.msra.mxu0 %v12600_v4  ;;  %v7773_v4 = vld [vmem:[%s18187_s5 + $0x4b8] sm:$0xff] }
 0x56b   :  { %11251 = vmatpush1.bf16.msra.mxu1 %v12602_v36  ;;  %11088 = vmatprep.subr.bf16.mxu0 %v12609_v50  ;;  %v12648_v36 = vcombine.low %v7760_v39, %v7764_v40  ;;  %v12650_v50 = vcombine.low %v7761_v60, %v7765_v41  ;;  %v12659_v52 = vcombine.high %v7769_v45, %v7773_v4  ;;  %v7812_v39 = vld [vmem:[%s18187_s5 + $0x5f0] sm:$0xff]  ;;  %v7809_v40 = vld [vmem:[%s18187_s5 + $0x5d8] sm:$0xff] }
 0x56c   :  { %11252 = vmatprep.subr.bf16.mxu1 %v12611_v51  ;;  %v12657_v51 = vcombine.high %v7768_v44, %v7772_v17  ;;  %v12690_v41 = vcombine.low %v7801_v28, %v7805_v29 }
 0x56e   :  { %11089 = vmatpush1.bf16.msra.mxu0 %v12608_v63  ;;  %v12658_v63 = vcombine.low %v7769_v45, %v7773_v4  ;;  %v7821_v45 = vld [vmem:[%s18187_s5 + $0x638] sm:$0xff] }
 0x56f   :  { %11253 = vmatpush1.bf16.msra.mxu1 %v12610_v13  ;;  %11090 = vmatprep.subr.bf16.mxu0 %v12617_v2  ;;  %v12665_v13 = vcombine.high %v7776_v61, %v7780_v49  ;;  %v7828_v61 = vld [vmem:[%s18187_s5 + $0x670] sm:$0xff]  ;;  %v7825_v49 = vld [vmem:[%s18187_s5 + $0x658] sm:$0xff] }
 0x570   :  { %11254 = vmatprep.subr.bf16.mxu1 %v12619_v3  ;;  %v7784_v3 = vld [vmem:[%s18187_s5 + $0x510] sm:$0xff] }
 0x571   :  { %v12672_v23 = vcombine.low %v7784_v3, %v7788_v5 }
 0x572   :  { %11091 = vmatpush1.bf16.msra.mxu0 %v12616_v57 }
 0x573   :  { %11255 = vmatpush1.bf16.msra.mxu1 %v12618_v18  ;;  %11092 = vmatprep.subr.bf16.mxu0 %v12625_v24  ;;  %v12673_v18 = vcombine.high %v7784_v3, %v7788_v5  ;;  %v12675_v24 = vcombine.high %v7785_v10, %v7789_v14  ;;  %v7836_v3 = vld [vmem:[%s18187_s5 + $0x6b0] sm:$0xff]  ;;  %v7833_v5 = vld [vmem:[%s18187_s5 + $0x698] sm:$0xff] }
 0x574   :  { %11256 = vmatprep.subr.bf16.mxu1 %v12627_v8  ;;  %v7792_v8 = vld [vmem:[%s18187_s5 + $0x550] sm:$0xff] }
 0x575   :  { %v12680_v21 = vcombine.low %v7792_v8, %v7796_v20 }
 0x576   :  { %11093 = vmatpush1.bf16.msra.mxu0 %v12624_v12  ;;  %v12674_v12 = vcombine.low %v7785_v10, %v7789_v14  ;;  %v7837_v10 = vld [vmem:[%s18187_s5 + $0x6b8] sm:$0xff] }
 0x577   :  { %11257 = vmatpush1.bf16.msra.mxu1 %v12626_v25  ;;  %11094 = vmatprep.subr.bf16.mxu0 %v12633_v54  ;;  %v12681_v25 = vcombine.high %v7792_v8, %v7796_v20  ;;  %v12683_v54 = vcombine.high %v7793_v47, %v7797_v33  ;;  %v7844_v8 = vld [vmem:[%s18187_s5 + $0x6f0] sm:$0xff]  ;;  %v7841_v20 = vld [vmem:[%s18187_s5 + $0x6d8] sm:$0xff] }
 0x578   :  { %11258 = vmatprep.subr.bf16.mxu1 %v12635_v26  ;;  %v7800_v26 = vld [vmem:[%s18187_s5 + $0x590] sm:$0xff] }
 0x579   :  { %v12688_v60 = vcombine.low %v7800_v26, %v7804_v27 }
 0x57a   :  { %11095 = vmatpush1.bf16.msra.mxu0 %v12632_v34  ;;  %v12682_v34 = vcombine.low %v7793_v47, %v7797_v33  ;;  %v7845_v47 = vld [vmem:[%s18187_s5 + $0x6f8] sm:$0xff] }
 0x57b   :  { %11259 = vmatpush1.bf16.msra.mxu1 %v12634_v48  ;;  %11105 = vmatprep.subr.bf16.mxu0 %v12641_v9  ;;  %v12689_v48 = vcombine.high %v7800_v26, %v7804_v27  ;;  %v12691_v9 = vcombine.high %v7801_v28, %v7805_v29  ;;  %v7852_v26 = vld [vmem:[%s18187_s5 + $0x730] sm:$0xff]  ;;  %v7849_v27 = vld [vmem:[%s18187_s5 + $0x718] sm:$0xff] }
 0x57c   :  { %11269 = vmatprep.subr.bf16.mxu1 %v12643_v35  ;;  %v7808_v35 = vld [vmem:[%s18187_s5 + $0x5d0] sm:$0xff]  ;;  %v7853_v28 = vld [vmem:[%s18187_s5 + $0x738] sm:$0xff] }
 0x57d   :  { %11097 = vmatmul.mubr.bf16.vlgmr.msra.gmra.mrb[20].mxu0 %v16745_v30  ;;  %v12696_v4 = vcombine.low %v7808_v35, %v7812_v39 }
 0x57e   :  { %11261 = vmatmul.mubr.bf16.vlgmr.msra.gmra.mrb[20].mxu1 %v16745_v30  ;;  %11106 = vmatpush1.bf16.msra.mxu0 %v12640_v32  ;;  %v7777_v30 = vld [vmem:[%s18187_s5 + $0x4d8] sm:$0xff] }
 0x57f   :  { %11137 = vmatprep.mubr.bf16.mxu0 %v16753_v38  ;;  %11270 = vmatpush1.bf16.msra.mxu1 %v12642_v42  ;;  %v12667_v2 = vcombine.high %v7777_v30, %v7781_v62  ;;  %v12666_v57 = vcombine.low %v7777_v30, %v7781_v62  ;;  %v7813_v32 = vld [vmem:[%s18187_s5 + $0x5f8] sm:$0xff]  ;;  %v12697_v42 = vcombine.high %v7808_v35, %v7812_v39  ;;  %v7860_v35 = vld [vmem:[%s18187_s5 + $0x770] sm:$0xff] }
 0x580   :  { %11301 = vmatprep.mubr.bf16.mxu1 %v16753_v38  ;;  %11107 = vmatprep.subr.bf16.mxu0 %v12649_v43  ;;  %v12656_v38 = vcombine.low %v7768_v44, %v7772_v17  ;;  %v12699_v43 = vcombine.high %v7809_v40, %v7813_v32  ;;  %v7816_v44 = vld [vmem:[%s18187_s5 + $0x610] sm:$0xff]  ;;  %v7829_v30 = vld [vmem:[%s18187_s5 + $0x678] sm:$0xff] }
 0x581   :  { %11271 = vmatprep.subr.bf16.mxu1 %v12651_v46  ;;  %v7820_v17 = vld [vmem:[%s18187_s5 + $0x630] sm:$0xff]  ;;  %v7817_v46 = vld [vmem:[%s18187_s5 + $0x618] sm:$0xff] }
 0x582   :  { %11108 = vmatpush1.bf16.msra.mxu0 %v12648_v36  ;;  %v12698_v36 = vcombine.low %v7809_v40, %v7813_v32  ;;  %v12704_v62 = vcombine.low %v7816_v44, %v7820_v17  ;;  %v7857_v39 = vld [vmem:[%s18187_s5 + $0x758] sm:$0xff] }
 0x583   :  { %11272 = vmatpush1.bf16.msra.mxu1 %v12650_v50  ;;  %11109 = vmatprep.subr.bf16.mxu0 %v12657_v51  ;;  %v12705_v50 = vcombine.high %v7816_v44, %v7820_v17  ;;  %v12707_v51 = vcombine.high %v7817_v46, %v7821_v45  ;;  %v7861_v40 = vld [vmem:[%s18187_s5 + $0x778] sm:$0xff]  ;;  %v7868_v44 = vld [vmem:[%s18187_s5 + $0x7b0] sm:$0xff] }
 0x584   :  { %11273 = vmatprep.subr.bf16.mxu1 %v12659_v52  ;;  %v7824_v52 = vld [vmem:[%s18187_s5 + $0x650] sm:$0xff]  ;;  %v7865_v17 = vld [vmem:[%s18187_s5 + $0x798] sm:$0xff] }
 0x585   :  { %v12712_v14 = vcombine.low %v7824_v52, %v7828_v61 }
 0x586   :  { %11110 = vmatpush1.bf16.msra.mxu0 %v12656_v38  ;;  %v12706_v38 = vcombine.low %v7817_v46, %v7821_v45  ;;  %v7869_v46 = vld [vmem:[%s18187_s5 + $0x7b8] sm:$0xff] }
 0x587   :  { %11274 = vmatpush1.bf16.msra.mxu1 %v12658_v63  ;;  %11111 = vmatprep.subr.bf16.mxu0 %v12665_v13  ;;  %v12713_v63 = vcombine.high %v7824_v52, %v7828_v61  ;;  %v12715_v13 = vcombine.high %v7825_v49, %v7829_v30  ;;  %v7876_v52 = vld [vmem:[%s18187_s5 + $0x7f0] sm:$0xff]  ;;  %v7873_v61 = vld [vmem:[%s18187_s5 + $0x7d8] sm:$0xff] }
 0x588   :  { %11275 = vmatprep.subr.bf16.mxu1 %v12667_v2  ;;  %v7832_v2 = vld [vmem:[%s18187_s5 + $0x690] sm:$0xff] }
 0x589   :  { %v12720_v33 = vcombine.low %v7832_v2, %v7836_v3 }
 0x58a   :  { %11112 = vmatpush1.bf16.msra.mxu0 %v12664_v7  ;;  %v12714_v7 = vcombine.low %v7825_v49, %v7829_v30  ;;  %v7877_v49 = vld [vmem:[%s18187_s5 + $0x7f8] sm:$0xff] }
 0x58b   :  { %11276 = vmatpush1.bf16.msra.mxu1 %v12666_v57  ;;  %11113 = vmatprep.subr.bf16.mxu0 %v12673_v18  ;;  %v12721_v57 = vcombine.high %v7832_v2, %v7836_v3  ;;  %v12723_v18 = vcombine.high %v7833_v5, %v7837_v10  ;;  %v7884_v2 = vld [vmem:[%s18187_s5 + $0x830] sm:$0xff]  ;;  %v7881_v3 = vld [vmem:[%s18187_s5 + $0x818] sm:$0xff] }
 0x58c   :  { %11277 = vmatprep.subr.bf16.mxu1 %v12675_v24  ;;  %v7840_v24 = vld [vmem:[%s18187_s5 + $0x6d0] sm:$0xff] }
 0x58d   :  { %v12728_v29 = vcombine.low %v7840_v24, %v7844_v8 }
 0x58e   :  { %11114 = vmatpush1.bf16.msra.mxu0 %v12672_v23  ;;  %v12722_v23 = vcombine.low %v7833_v5, %v7837_v10  ;;  %v7885_v5 = vld [vmem:[%s18187_s5 + $0x838] sm:$0xff] }
 0x58f   :  { %11278 = vmatpush1.bf16.msra.mxu1 %v12674_v12  ;;  %11115 = vmatprep.subr.bf16.mxu0 %v12681_v25  ;;  %v12729_v12 = vcombine.high %v7840_v24, %v7844_v8  ;;  %v12731_v25 = vcombine.high %v7841_v20, %v7845_v47  ;;  %v7892_v24 = vld [vmem:[%s18187_s5 + $0x870] sm:$0xff] }
 0x590   :  { %11279 = vmatprep.subr.bf16.mxu1 %v12683_v54  ;;  %v7848_v54 = vld [vmem:[%s18187_s5 + $0x710] sm:$0xff] }
 0x591   :  { %v12736_v32 = vcombine.low %v7848_v54, %v7852_v26 }
 0x592   :  { %11116 = vmatpush1.bf16.msra.mxu0 %v12680_v21  ;;  %v12730_v21 = vcombine.low %v7841_v20, %v7845_v47  ;;  %v7889_v20 = vld [vmem:[%s18187_s5 + $0x858] sm:$0xff] }
 0x593   :  { %11280 = vmatpush1.bf16.msra.mxu1 %v12682_v34  ;;  %11117 = vmatprep.subr.bf16.mxu0 %v12689_v48  ;;  %v12737_v34 = vcombine.high %v7848_v54, %v7852_v26  ;;  %v12739_v48 = vcombine.high %v7849_v27, %v7853_v28  ;;  %v7893_v47 = vld [vmem:[%s18187_s5 + $0x878] sm:$0xff] }
 0x594   :  { %11281 = vmatprep.subr.bf16.mxu1 %v12691_v9  ;;  %v7856_v9 = vld [vmem:[%s18187_s5 + $0x750] sm:$0xff]  ;;  %v12779_v54 = vcombine.high %v7889_v20, %v7893_v47  ;;  %v7897_v26 = vld [vmem:[%s18187_s5 + $0x898] sm:$0xff] }
 0x595   :  { %v12744_v45 = vcombine.low %v7856_v9, %v7860_v35 }
 0x596   :  { %11118 = vmatpush1.bf16.msra.mxu0 %v12688_v60  ;;  %v12738_v60 = vcombine.low %v7849_v27, %v7853_v28  ;;  %v7901_v27 = vld [vmem:[%s18187_s5 + $0x8b8] sm:$0xff] }
 0x597   :  { %11282 = vmatpush1.bf16.msra.mxu1 %v12690_v41  ;;  %11119 = vmatprep.subr.bf16.mxu0 %v12697_v42  ;;  %v12745_v41 = vcombine.high %v7856_v9, %v7860_v35  ;;  %v12747_v42 = vcombine.high %v7857_v39, %v7861_v40  ;;  %v7908_v9 = vld [vmem:[%s18187_s5 + $0x8f0] sm:$0xff]  ;;  %v7909_v35 = vld [vmem:[%s18187_s5 + $0x8f8] sm:$0xff] }
 0x598   :  { %11283 = vmatprep.subr.bf16.mxu1 %v12699_v43  ;;  %v7864_v43 = vld [vmem:[%s18187_s5 + $0x790] sm:$0xff] }
 0x599   :  { %v12752_v30 = vcombine.low %v7864_v43, %v7868_v44 }
 0x59a   :  { %11120 = vmatpush1.bf16.msra.mxu0 %v12696_v4  ;;  %v12746_v4 = vcombine.low %v7857_v39, %v7861_v40  ;;  %v12786_v39 = vcombine.low %v7897_v26, %v7901_v27 }
 0x59b   :  { %11284 = vmatpush1.bf16.msra.mxu1 %v12698_v36  ;;  %11121 = vmatprep.subr.bf16.mxu0 %v12705_v50  ;;  %v12753_v36 = vcombine.high %v7864_v43, %v7868_v44  ;;  %v12755_v50 = vcombine.high %v7865_v17, %v7869_v46  ;;  %v7917_v43 = vld [vmem:[%s18187_s5 + $0x938] sm:$0xff] }
 0x59c   :  { %11285 = vmatprep.subr.bf16.mxu1 %v12707_v51  ;;  %v7872_v51 = vld [vmem:[%s18187_s5 + $0x7d0] sm:$0xff] }
 0x59d   :  { %v12760_v10 = vcombine.low %v7872_v51, %v7876_v52 }
 0x59e   :  { %11122 = vmatpush1.bf16.msra.mxu0 %v12704_v62  ;;  %v12754_v62 = vcombine.low %v7865_v17, %v7869_v46 }
 0x59f   :  { %11286 = vmatpush1.bf16.msra.mxu1 %v12706_v38  ;;  %11123 = vmatprep.subr.bf16.mxu0 %v12713_v63  ;;  %v12761_v38 = vcombine.high %v7872_v51, %v7876_v52  ;;  %v12763_v63 = vcombine.high %v7873_v61, %v7877_v49  ;;  %v7925_v51 = vld [vmem:[%s18187_s5 + $0x978] sm:$0xff] }
 0x5a0   :  { %11287 = vmatprep.subr.bf16.mxu1 %v12715_v13  ;;  %v7880_v13 = vld [vmem:[%s18187_s5 + $0x810] sm:$0xff] }
 0x5a1   :  { %v12768_v8 = vcombine.low %v7880_v13, %v7884_v2 }
 0x5a2   :  { %11124 = vmatpush1.bf16.msra.mxu0 %v12712_v14  ;;  %v12762_v14 = vcombine.low %v7873_v61, %v7877_v49 }
 0x5a3   :  { %11288 = vmatpush1.bf16.msra.mxu1 %v12714_v7  ;;  %11125 = vmatprep.subr.bf16.mxu0 %v12721_v57  ;;  %v12769_v7 = vcombine.high %v7880_v13, %v7884_v2  ;;  %v12771_v57 = vcombine.high %v7881_v3, %v7885_v5  ;;  %v7933_v13 = vld [vmem:[%s18187_s5 + $0x9b8] sm:$0xff] }
 0x5a4   :  { %11289 = vmatprep.subr.bf16.mxu1 %v12723_v18  ;;  %v7888_v18 = vld [vmem:[%s18187_s5 + $0x850] sm:$0xff] }
 0x5a5   :  { %v12776_v28 = vcombine.low %v7888_v18, %v7892_v24 }
 0x5a6   :  { %11126 = vmatpush1.bf16.msra.mxu0 %v12720_v33  ;;  %v12770_v33 = vcombine.low %v7881_v3, %v7885_v5 }
 0x5a7   :  { %11290 = vmatpush1.bf16.msra.mxu1 %v12722_v23  ;;  %11127 = vmatprep.subr.bf16.mxu0 %v12729_v12  ;;  %v12777_v23 = vcombine.high %v7888_v18, %v7892_v24  ;;  %v7896_v12 = vld [vmem:[%s18187_s5 + $0x890] sm:$0xff]  ;;  %v7941_v18 = vld [vmem:[%s18187_s5 + $0x9f8] sm:$0xff] }
 0x5a8   :  { %11291 = vmatprep.subr.bf16.mxu1 %v12731_v25  ;;  %v7900_v25 = vld [vmem:[%s18187_s5 + $0x8b0] sm:$0xff] }
 0x5aa   :  { %11128 = vmatpush1.bf16.msra.mxu0 %v12728_v29  ;;  %v12778_v29 = vcombine.low %v7889_v20, %v7893_v47 }
 0x5ab   :  { %11292 = vmatpush1.bf16.msra.mxu1 %v12730_v21  ;;  %11129 = vmatprep.subr.bf16.mxu0 %v12737_v34  ;;  %v12785_v21 = vcombine.high %v7896_v12, %v7900_v25  ;;  %v12787_v34 = vcombine.high %v7897_v26, %v7901_v27 }
 0x5ac   :  { %11293 = vmatprep.subr.bf16.mxu1 %v12739_v48  ;;  %v7904_v48 = vld [vmem:[%s18187_s5 + $0x8d0] sm:$0xff] }
 0x5ad   :  { %v12793_v40 = vcombine.high %v7904_v48, %v7908_v9  ;;  %v12792_v44 = vcombine.low %v7904_v48, %v7908_v9  ;;  %v7957_v48 = vld [vmem:[%s18187_s5 + $0xa78] sm:$0xff] }
 0x5ae   :  { %11130 = vmatpush1.bf16.msra.mxu0 %v12736_v32 }
 0x5af   :  { %11294 = vmatpush1.bf16.msra.mxu1 %v12738_v60  ;;  %11131 = vmatprep.subr.bf16.mxu0 %v12745_v41  ;;  %v7912_v60 = vld [vmem:[%s18187_s5 + $0x910] sm:$0xff] }
 0x5b0   :  { %11295 = vmatprep.subr.bf16.mxu1 %v12747_v42  ;;  %v7916_v41 = vld [vmem:[%s18187_s5 + $0x930] sm:$0xff]  ;;  %v7913_v42 = vld [vmem:[%s18187_s5 + $0x918] sm:$0xff] }
 0x5b1   :  { %v12801_v46 = vcombine.high %v7912_v60, %v7916_v41  ;;  %v12800_v52 = vcombine.low %v7912_v60, %v7916_v41  ;;  %v12802_v61 = vcombine.low %v7913_v42, %v7917_v43  ;;  %v7965_v60 = vld [vmem:[%s18187_s5 + $0xab8] sm:$0xff] }
 0x5b2   :  { %11132 = vmatpush1.bf16.msra.mxu0 %v12744_v45  ;;  %v12803_v45 = vcombine.high %v7913_v42, %v7917_v43 }
 0x5b3   :  { %11296 = vmatpush1.bf16.msra.mxu1 %v12746_v4  ;;  %11133 = vmatprep.subr.bf16.mxu0 %v12753_v36  ;;  %v7920_v4 = vld [vmem:[%s18187_s5 + $0x950] sm:$0xff] }
 0x5b4   :  { %11297 = vmatprep.subr.bf16.mxu1 %v12755_v50  ;;  %v7924_v36 = vld [vmem:[%s18187_s5 + $0x970] sm:$0xff]  ;;  %v7921_v50 = vld [vmem:[%s18187_s5 + $0x958] sm:$0xff] }
 0x5b5   :  { %v12809_v49 = vcombine.high %v7920_v4, %v7924_v36  ;;  %v12808_v2 = vcombine.low %v7920_v4, %v7924_v36  ;;  %v12810_v3 = vcombine.low %v7921_v50, %v7925_v51  ;;  %v7973_v4 = vld [vmem:[%s18187_s5 + $0xaf8] sm:$0xff] }
 0x5b6   :  { %11134 = vmatpush1.bf16.msra.mxu0 %v12752_v30  ;;  %v12811_v30 = vcombine.high %v7921_v50, %v7925_v51 }
 0x5b7   :  { %11298 = vmatpush1.bf16.msra.mxu1 %v12754_v62  ;;  %11135 = vmatprep.subr.bf16.mxu0 %v12761_v38  ;;  %v7928_v62 = vld [vmem:[%s18187_s5 + $0x990] sm:$0xff] }
 0x5b8   :  { %11299 = vmatprep.subr.bf16.mxu1 %v12763_v63  ;;  %v7932_v38 = vld [vmem:[%s18187_s5 + $0x9b0] sm:$0xff]  ;;  %v7929_v63 = vld [vmem:[%s18187_s5 + $0x998] sm:$0xff] }
 0x5b9   :  { %v12817_v5 = vcombine.high %v7928_v62, %v7932_v38  ;;  %v12816_v24 = vcombine.low %v7928_v62, %v7932_v38  ;;  %v7981_v62 = vld [vmem:[%s18187_s5 + $0xb38] sm:$0xff] }
 0x5ba   :  { %11136 = vmatpush1.bf16.msra.mxu0 %v12760_v10  ;;  %v12819_v10 = vcombine.high %v7929_v63, %v7933_v13 }
 0x5bb   :  { %11300 = vmatpush1.bf16.msra.mxu1 %v12762_v14  ;;  %11146 = vmatprep.subr.bf16.mxu0 %v12769_v7  ;;  %v7936_v14 = vld [vmem:[%s18187_s5 + $0x9d0] sm:$0xff] }
 0x5bc   :  { %11310 = vmatprep.subr.bf16.mxu1 %v12771_v57  ;;  %v7940_v7 = vld [vmem:[%s18187_s5 + $0x9f0] sm:$0xff]  ;;  %v7937_v57 = vld [vmem:[%s18187_s5 + $0x9d8] sm:$0xff] }
 0x5bd   :  { %11138 = vmatmul.mubr.bf16.vlgmr.msra.gmra.mrb[20].mxu0 %v16948_v11  ;;  %v12825_v20 = vcombine.high %v7936_v14, %v7940_v7  ;;  %v12827_v47 = vcombine.high %v7937_v57, %v7941_v18  ;;  %v12826_v26 = vcombine.low %v7937_v57, %v7941_v18 }
 0x5be   :  { %11302 = vmatmul.mubr.bf16.vlgmr.msra.gmra.mrb[20].mxu1 %v16948_v11  ;;  %11147 = vmatpush1.bf16.msra.mxu0 %v12768_v8  ;;  %v7905_v11 = vld [vmem:[%s18187_s5 + $0x8d8] sm:$0xff]  ;;  %v12818_v8 = vcombine.low %v7929_v63, %v7933_v13 }
 0x5bf   :  { %11178 = vmatprep.mubr.bf16.mxu0 %v17157_v16  ;;  %11311 = vmatpush1.bf16.msra.mxu1 %v12770_v33  ;;  %v12795_v32 = vcombine.high %v7905_v11, %v7909_v35  ;;  %v12794_v17 = vcombine.low %v7905_v11, %v7909_v35  ;;  %v7944_v33 = vld [vmem:[%s18187_s5 + $0xa10] sm:$0xff] }
 0x5c0   :  { %11342 = vmatprep.mubr.bf16.mxu1 %v17157_v16  ;;  %11148 = vmatprep.subr.bf16.mxu0 %v12777_v23  ;;  %v12784_v16 = vcombine.low %v7896_v12, %v7900_v25  ;;  %v7948_v23 = vld [vmem:[%s18187_s5 + $0xa30] sm:$0xff]  ;;  %v7945_v12 = vld [vmem:[%s18187_s5 + $0xa18] sm:$0xff] }
 0x5c1   :  { %11312 = vmatprep.subr.bf16.mxu1 %v12779_v54  ;;  %v7949_v25 = vld [vmem:[%s18187_s5 + $0xa38] sm:$0xff]  ;;  %v12824_v54 = vcombine.low %v7936_v14, %v7940_v7  ;;  %v12833_v27 = vcombine.high %v7944_v33, %v7948_v23  ;;  %v12832_v9 = vcombine.low %v7944_v33, %v7948_v23 }
 0x5c2   :  { %11149 = vmatpush1.bf16.msra.mxu0 %v12776_v28  ;;  %v12835_v28 = vcombine.high %v7945_v12, %v7949_v25  ;;  %v12834_v11 = vcombine.low %v7945_v12, %v7949_v25  ;;  %v7989_v14 = vld [vmem:[%s18187_s5 + $0xb78] sm:$0xff] }
 0x5c3   :  { %11313 = vmatpush1.bf16.msra.mxu1 %v12778_v29  ;;  %11150 = vmatprep.subr.bf16.mxu0 %v12785_v21  ;;  %v7952_v29 = vld [vmem:[%s18187_s5 + $0xa50] sm:$0xff]  ;;  %v7997_v33 = vld [vmem:[%s18187_s5 + $0xbb8] sm:$0xff] }
 0x5c4   :  { %11314 = vmatprep.subr.bf16.mxu1 %v12787_v34  ;;  %v7956_v21 = vld [vmem:[%s18187_s5 + $0xa70] sm:$0xff]  ;;  %v7953_v34 = vld [vmem:[%s18187_s5 + $0xa58] sm:$0xff] }
 0x5c5   :  { %v12841_v35 = vcombine.high %v7952_v29, %v7956_v21  ;;  %v12840_v41 = vcombine.low %v7952_v29, %v7956_v21  ;;  %v12842_v42 = vcombine.low %v7953_v34, %v7957_v48  ;;  %v8005_v29 = vld [vmem:[%s18187_s5 + $0xbf8] sm:$0xff] }
 0x5c6   :  { %11151 = vmatpush1.bf16.msra.mxu0 %v12784_v16  ;;  %v12843_v16 = vcombine.high %v7953_v34, %v7957_v48 }
 0x5c7   :  { %11315 = vmatpush1.bf16.msra.mxu1 %v12786_v39  ;;  %11152 = vmatprep.subr.bf16.mxu0 %v12793_v40  ;;  %v7960_v39 = vld [vmem:[%s18187_s5 + $0xa90] sm:$0xff] }
 0x5c8   :  { %11316 = vmatprep.subr.bf16.mxu1 %v12795_v32  ;;  %v7964_v40 = vld [vmem:[%s18187_s5 + $0xab0] sm:$0xff]  ;;  %v7961_v32 = vld [vmem:[%s18187_s5 + $0xa98] sm:$0xff] }
 0x5c9   :  { %v12849_v43 = vcombine.high %v7960_v39, %v7964_v40  ;;  %v12848_v36 = vcombine.low %v7960_v39, %v7964_v40  ;;  %v12850_v50 = vcombine.low %v7961_v32, %v7965_v60  ;;  %v8013_v39 = vld [vmem:[%s18187_s5 + $0xc38] sm:$0xff] }
 0x5ca   :  { %11153 = vmatpush1.bf16.msra.mxu0 %v12792_v44  ;;  %v12851_v44 = vcombine.high %v7961_v32, %v7965_v60 }
 0x5cb   :  { %11317 = vmatpush1.bf16.msra.mxu1 %v12794_v17  ;;  %11154 = vmatprep.subr.bf16.mxu0 %v12801_v46  ;;  %v7968_v17 = vld [vmem:[%s18187_s5 + $0xad0] sm:$0xff] }
 0x5cc   :  { %11318 = vmatprep.subr.bf16.mxu1 %v12803_v45  ;;  %v7972_v46 = vld [vmem:[%s18187_s5 + $0xaf0] sm:$0xff]  ;;  %v7969_v45 = vld [vmem:[%s18187_s5 + $0xad8] sm:$0xff] }
 0x5cd   :  { %v12857_v51 = vcombine.high %v7968_v17, %v7972_v46  ;;  %v12856_v38 = vcombine.low %v7968_v17, %v7972_v46  ;;  %v12858_v63 = vcombine.low %v7969_v45, %v7973_v4  ;;  %v8017_v17 = vld [vmem:[%s18187_s5 + $0xc58] sm:$0xff] }
 0x5ce   :  { %11155 = vmatpush1.bf16.msra.mxu0 %v12800_v52  ;;  %v12859_v52 = vcombine.high %v7969_v45, %v7973_v4  ;;  %v8021_v46 = vld [vmem:[%s18187_s5 + $0xc78] sm:$0xff] }
 0x5cf   :  { %11319 = vmatpush1.bf16.msra.mxu1 %v12802_v61  ;;  %11156 = vmatprep.subr.bf16.mxu0 %v12809_v49  ;;  %v7976_v61 = vld [vmem:[%s18187_s5 + $0xb10] sm:$0xff] }
 0x5d0   :  { %11320 = vmatprep.subr.bf16.mxu1 %v12811_v30  ;;  %v7980_v49 = vld [vmem:[%s18187_s5 + $0xb30] sm:$0xff]  ;;  %v7977_v30 = vld [vmem:[%s18187_s5 + $0xb18] sm:$0xff] }
 0x5d1   :  { %v12865_v13 = vcombine.high %v7976_v61, %v7980_v49  ;;  %v12864_v7 = vcombine.low %v7976_v61, %v7980_v49  ;;  %v12866_v57 = vcombine.low %v7977_v30, %v7981_v62  ;;  %v8029_v61 = vld [vmem:[%s18187_s5 + $0xcb8] sm:$0xff] }
 0x5d2   :  { %11157 = vmatpush1.bf16.msra.mxu0 %v12808_v2  ;;  %v12867_v2 = vcombine.high %v7977_v30, %v7981_v62  ;;  %v12906_v30 = vcombine.low %v8017_v17, %v8021_v46 }
 0x5d3   :  { %11321 = vmatpush1.bf16.msra.mxu1 %v12810_v3  ;;  %11158 = vmatprep.subr.bf16.mxu0 %v12817_v5  ;;  %v7984_v3 = vld [vmem:[%s18187_s5 + $0xb50] sm:$0xff] }
 0x5d4   :  { %11322 = vmatprep.subr.bf16.mxu1 %v12819_v10  ;;  %v7988_v5 = vld [vmem:[%s18187_s5 + $0xb70] sm:$0xff]  ;;  %v7985_v10 = vld [vmem:[%s18187_s5 + $0xb58] sm:$0xff] }
 0x5d5   :  { %v12873_v18 = vcombine.high %v7984_v3, %v7988_v5  ;;  %v12872_v23 = vcombine.low %v7984_v3, %v7988_v5  ;;  %v12874_v12 = vcombine.low %v7985_v10, %v7989_v14 }
 0x5d6   :  { %11159 = vmatpush1.bf16.msra.mxu0 %v12816_v24  ;;  %v12875_v24 = vcombine.high %v7985_v10, %v7989_v14  ;;  %v8040_v14 = vld [vmem:[%s18187_s5 + $0xd10] sm:$0xff] }
 0x5d7   :  { %11323 = vmatpush1.bf16.msra.mxu1 %v12818_v8  ;;  %11160 = vmatprep.subr.bf16.mxu0 %v12825_v20  ;;  %v7992_v8 = vld [vmem:[%s18187_s5 + $0xb90] sm:$0xff] }
 0x5d8   :  { %11324 = vmatprep.subr.bf16.mxu1 %v12827_v47  ;;  %v7996_v20 = vld [vmem:[%s18187_s5 + $0xbb0] sm:$0xff]  ;;  %v7993_v47 = vld [vmem:[%s18187_s5 + $0xb98] sm:$0xff] }
 0x5d9   :  { %v12881_v25 = vcombine.high %v7992_v8, %v7996_v20  ;;  %v12880_v21 = vcombine.low %v7992_v8, %v7996_v20  ;;  %v12882_v34 = vcombine.low %v7993_v47, %v7997_v33 }
 0x5da   :  { %11161 = vmatpush1.bf16.msra.mxu0 %v12824_v54  ;;  %v12883_v54 = vcombine.high %v7993_v47, %v7997_v33  ;;  %v8048_v33 = vld [vmem:[%s18187_s5 + $0xd50] sm:$0xff] }
 0x5db   :  { %11325 = vmatpush1.bf16.msra.mxu1 %v12826_v26  ;;  %11162 = vmatprep.subr.bf16.mxu0 %v12833_v27  ;;  %v8000_v26 = vld [vmem:[%s18187_s5 + $0xbd0] sm:$0xff] }
 0x5dc   :  { %11326 = vmatprep.subr.bf16.mxu1 %v12835_v28  ;;  %v8004_v27 = vld [vmem:[%s18187_s5 + $0xbf0] sm:$0xff]  ;;  %v8001_v28 = vld [vmem:[%s18187_s5 + $0xbd8] sm:$0xff] }
 0x5dd   :  { %v12889_v48 = vcombine.high %v8000_v26, %v8004_v27  ;;  %v12888_v40 = vcombine.low %v8000_v26, %v8004_v27  ;;  %v12890_v32 = vcombine.low %v8001_v28, %v8005_v29  ;;  %v18009_v26 = vld [vmem:[%s18188_s6] sm:$0xff] }
 0x5de   :  { %11163 = vmatpush1.bf16.msra.mxu0 %v12832_v9  ;;  %v12891_v9 = vcombine.high %v8001_v28, %v8005_v29 }
 0x5df   :  { %11327 = vmatpush1.bf16.msra.mxu1 %v12834_v11  ;;  %11164 = vmatprep.subr.bf16.mxu0 %v12841_v35  ;;  %v8008_v11 = vld [vmem:[%s18187_s5 + $0xc10] sm:$0xff] }
 0x5e0   :  { %11328 = vmatprep.subr.bf16.mxu1 %v12843_v16  ;;  %v8012_v35 = vld [vmem:[%s18187_s5 + $0xc30] sm:$0xff]  ;;  %v8009_v16 = vld [vmem:[%s18187_s5 + $0xc18] sm:$0xff] }
 0x5e1   :  { %v12897_v60 = vcombine.high %v8008_v11, %v8012_v35  ;;  %v12898_v45 = vcombine.low %v8009_v16, %v8013_v39 }
 0x5e2   :  { %11165 = vmatpush1.bf16.msra.mxu0 %v12840_v41  ;;  %v12899_v41 = vcombine.high %v8009_v16, %v8013_v39  ;;  %v18030_v16 = vld [vmem:[%s18189_s7] sm:$0xff]  ;;  %v8143_v39 = vrot.slane %v18009_v26, %v14843_v15 }
 0x5e3   :  { %11329 = vmatpush1.bf16.msra.mxu1 %v12842_v42  ;;  %11166 = vmatprep.subr.bf16.mxu0 %v12849_v43  ;;  %v8016_v42 = vld [vmem:[%s18187_s5 + $0xc50] sm:$0xff] }
 0x5e4   :  { %11330 = vmatprep.subr.bf16.mxu1 %v12851_v44  ;;  %v8020_v43 = vld [vmem:[%s18187_s5 + $0xc70] sm:$0xff]  ;;  %v12896_v44 = vcombine.low %v8008_v11, %v8012_v35  ;;  %v8057_v11 = vld [vmem:[%s18187_s5 + $0xd98] sm:$0xff] }
 0x5e5   :  { %v12905_v4 = vcombine.high %v8016_v42, %v8020_v43  ;;  %v12904_v49 = vcombine.low %v8016_v42, %v8020_v43  ;;  %v8061_v35 = vld [vmem:[%s18187_s5 + $0xdb8] sm:$0xff] }
 0x5e6   :  { %11167 = vmatpush1.bf16.msra.mxu0 %v12848_v36  ;;  %v8024_v36 = vld [vmem:[%s18187_s5 + $0xc90] sm:$0xff] }
 0x5e7   :  { %11331 = vmatpush1.bf16.msra.mxu1 %v12850_v50  ;;  %11168 = vmatprep.subr.bf16.mxu0 %v12857_v51  ;;  %v8028_v50 = vld [vmem:[%s18187_s5 + $0xcb0] sm:$0xff]  ;;  %v12907_v51 = vcombine.high %v8017_v17, %v8021_v46 }
 0x5e8   :  { %11332 = vmatprep.subr.bf16.mxu1 %v12859_v52  ;;  %v8025_v52 = vld [vmem:[%s18187_s5 + $0xc98] sm:$0xff]  ;;  %v12913_v62 = vcombine.high %v8024_v36, %v8028_v50  ;;  %v8064_v17 = vld [vmem:[%s18187_s5 + $0xdd0] sm:$0xff] }
 0x5e9   :  { %v12914_v3 = vcombine.low %v8025_v52, %v8029_v61  ;;  %v8068_v46 = vld [vmem:[%s18187_s5 + $0xdf0] sm:$0xff] }
 0x5ea   :  { %11169 = vmatpush1.bf16.msra.mxu0 %v12856_v38  ;;  %v12915_v38 = vcombine.high %v8025_v52, %v8029_v61  ;;  %v8065_v52 = vld [vmem:[%s18187_s5 + $0xdd8] sm:$0xff] }
 0x5eb   :  { %11333 = vmatpush1.bf16.msra.mxu1 %v12858_v63  ;;  %11170 = vmatprep.subr.bf16.mxu0 %v12865_v13  ;;  %v8032_v63 = vld [vmem:[%s18187_s5 + $0xcd0] sm:$0xff]  ;;  %v8069_v61 = vld [vmem:[%s18187_s5 + $0xdf8] sm:$0xff] }
 0x5ec   :  { %11334 = vmatprep.subr.bf16.mxu1 %v12867_v2  ;;  %v8036_v13 = vld [vmem:[%s18187_s5 + $0xcf0] sm:$0xff]  ;;  %v8037_v2 = vld [vmem:[%s18187_s5 + $0xcf8] sm:$0xff] }
 0x5ed   :  { %v12921_v5 = vcombine.high %v8032_v63, %v8036_v13 }
 0x5ee   :  { %11171 = vmatpush1.bf16.msra.mxu0 %v12864_v7  ;;  %v8044_v7 = vld [vmem:[%s18187_s5 + $0xd30] sm:$0xff] }
 0x5ef   :  { %11335 = vmatpush1.bf16.msra.mxu1 %v12866_v57  ;;  %11172 = vmatprep.subr.bf16.mxu0 %v12873_v18  ;;  %v8041_v57 = vld [vmem:[%s18187_s5 + $0xd18] sm:$0xff]  ;;  %v12929_v20 = vcombine.high %v8040_v14, %v8044_v7 }
 0x5f0   :  { %11336 = vmatprep.subr.bf16.mxu1 %v12875_v24  ;;  %v8045_v18 = vld [vmem:[%s18187_s5 + $0xd38] sm:$0xff]  ;;  %v12920_v24 = vcombine.low %v8032_v63, %v8036_v13 }
 0x5f1   :  { %v12931_v47 = vcombine.high %v8041_v57, %v8045_v18  ;;  %v12930_v27 = vcombine.low %v8041_v57, %v8045_v18  ;;  %v12955_v57 = vcombine.high %v8065_v52, %v8069_v61  ;;  %v8076_v18 = vld [vmem:[%s18187_s5 + $0xe30] sm:$0xff] }
 0x5f2   :  { %11173 = vmatpush1.bf16.msra.mxu0 %v12872_v23  ;;  %v8052_v23 = vld [vmem:[%s18187_s5 + $0xd70] sm:$0xff] }
 0x5f3   :  { %11337 = vmatpush1.bf16.msra.mxu1 %v12874_v12  ;;  %11174 = vmatprep.subr.bf16.mxu0 %v12881_v25  ;;  %v8049_v12 = vld [vmem:[%s18187_s5 + $0xd58] sm:$0xff]  ;;  %v12937_v28 = vcombine.high %v8048_v33, %v8052_v23 }
 0x5f4   :  { %11338 = vmatprep.subr.bf16.mxu1 %v12883_v54  ;;  %v8053_v25 = vld [vmem:[%s18187_s5 + $0xd78] sm:$0xff]  ;;  %v12928_v54 = vcombine.low %v8040_v14, %v8044_v7  ;;  %v11413_v14 = vrot.slane %v18030_v16, %v15258_v59 }
 0x5f5   :  { %v12939_v29 = vcombine.high %v8049_v12, %v8053_v25 }
 0x5f6   :  { %11175 = vmatpush1.bf16.msra.mxu0 %v12880_v21  ;;  %v8056_v21 = vld [vmem:[%s18187_s5 + $0xd90] sm:$0xff] }
 0x5f7   :  { %11339 = vmatpush1.bf16.msra.mxu1 %v12882_v34  ;;  %11176 = vmatprep.subr.bf16.mxu0 %v12889_v48  ;;  %v8060_v34 = vld [vmem:[%s18187_s5 + $0xdb0] sm:$0xff]  ;;  %v8139_v48 = vrot.slane %v18009_v26, %v15046_v22 }
 0x5f8   :  { %11340 = vmatprep.subr.bf16.mxu1 %v12891_v9  ;;  %v8147_v9 = vrot.slane %v18009_v26, %v15258_v59  ;;  %v12944_v13 = vcombine.low %v8056_v21, %v8060_v34  ;;  %v8077_v59 = vld [vmem:[%s18187_s5 + $0xe38] sm:$0xff] }
 0x5fa   :  { %11177 = vmatpush1.bf16.msra.mxu0 %v12888_v40  ;;  %v8151_v40 = vrot.slane %v18009_v26, %v15055_v37 }
 0x5fb   :  { %11341 = vmatpush1.bf16.msra.mxu1 %v12890_v32  ;;  %11187 = vmatprep.subr.bf16.mxu0 %v12897_v60  ;;  %v12936_v32 = vcombine.low %v8048_v33, %v8052_v23  ;;  %v12938_v60 = vcombine.low %v8049_v12, %v8053_v25  ;;  %v11417_v33 = vrot.slane %v18030_v16, %v15055_v37  ;;  %v8081_v37 = vld [vmem:[%s18187_s5 + $0xe58] sm:$0xff] }
 0x5fc   :  { %11351 = vmatprep.subr.bf16.mxu1 %v12899_v41  ;;  %v12945_v41 = vcombine.high %v8056_v21, %v8060_v34  ;;  %v12952_v23 = vcombine.low %v8064_v17, %v8068_v46  ;;  %v12954_v12 = vcombine.low %v8065_v52, %v8069_v61  ;;  %v8084_v21 = vld [vmem:[%s18187_s5 + $0xe70] sm:$0xff]  ;;  %v8085_v34 = vld [vmem:[%s18187_s5 + $0xe78] sm:$0xff] }
 0x5fd   :  { %11179 = vmatmul.mubr.bf16.vlgmr.msra.gmra.mrb[20].mxu0 %v17159_v6 }
 0x5fe   :  { %11343 = vmatmul.mubr.bf16.vlgmr.msra.gmra.mrb[20].mxu1 %v17159_v6  ;;  %11188 = vmatpush1.bf16.msra.mxu0 %v12896_v44  ;;  %v8033_v6 = vld [vmem:[%s18187_s5 + $0xcd8] sm:$0xff]  ;;  %v12947_v44 = vcombine.high %v8057_v11, %v8061_v35 }
 0x5ff   :  { %11219 = vmatprep.mubr.bf16.mxu0 %v17175_v19  ;;  %11352 = vmatpush1.bf16.msra.mxu1 %v12898_v45  ;;  %v12923_v10 = vcombine.high %v8033_v6, %v8037_v2  ;;  %v12922_v8 = vcombine.low %v8033_v6, %v8037_v2 }
 0x600   :  { %11383 = vmatprep.mubr.bf16.mxu1 %v17175_v19  ;;  %11189 = vmatprep.subr.bf16.mxu0 %v12905_v4  ;;  %v12912_v19 = vcombine.low %v8024_v36, %v8028_v50  ;;  %v11405_v4 = vrot.slane %v18030_v16, %v15046_v22 }
 0x601   :  { %11353 = vmatprep.subr.bf16.mxu1 %v12907_v51 }
 0x602   :  { %11190 = vmatpush1.bf16.msra.mxu0 %v12904_v49 }
 0x603   :  { %11354 = vmatpush1.bf16.msra.mxu1 %v12906_v30  ;;  %11191 = vmatprep.subr.bf16.mxu0 %v12913_v62  ;;  %v11409_v30 = vrot.slane %v18030_v16, %v14843_v15  ;;  %v8072_v15 = vld [vmem:[%s18187_s5 + $0xe10] sm:$0xff] }
 0x604   :  { %11355 = vmatprep.subr.bf16.mxu1 %v12915_v38  ;;  %v12961_v25 = vcombine.high %v8072_v15, %v8076_v18 }
 0x606   :  { %11192 = vmatpush1.bf16.msra.mxu0 %v12912_v19 }
 0x607   :  { %11356 = vmatpush1.bf16.msra.mxu1 %v12914_v3  ;;  %11193 = vmatprep.subr.bf16.mxu0 %v12921_v5  ;;  %v12946_v3 = vcombine.low %v8057_v11, %v8061_v35  ;;  %v12953_v5 = vcombine.high %v8064_v17, %v8068_v46  ;;  %v12960_v11 = vcombine.low %v8072_v15, %v8076_v18 }
 0x608   :  { %11357 = vmatprep.subr.bf16.mxu1 %v12923_v10  ;;  %v12970_v17 = vcombine.low %v8081_v37, %v8085_v34 }
 0x60a   :  { %11194 = vmatpush1.bf16.msra.mxu0 %v12920_v24 }
 0x60b   :  { %11358 = vmatpush1.bf16.msra.mxu1 %v12922_v8  ;;  %11195 = vmatprep.subr.bf16.mxu0 %v12929_v20  ;;  %v8073_v8 = vld [vmem:[%s18187_s5 + $0xe18] sm:$0xff] }
 0x60c   :  { %11359 = vmatprep.subr.bf16.mxu1 %v12931_v47  ;;  %v12962_v35 = vcombine.low %v8073_v8, %v8077_v59 }
 0x60e   :  { %11196 = vmatpush1.bf16.msra.mxu0 %v12928_v54 }
 0x60f   :  { %11360 = vmatpush1.bf16.msra.mxu1 %v12930_v27  ;;  %11197 = vmatprep.subr.bf16.mxu0 %v12937_v28  ;;  %v12963_v28 = vcombine.high %v8073_v8, %v8077_v59  ;;  %v8120_v8 = vld [vmem:[%s18187_s5 + $0xf90] sm:$0xff] }
 0x610   :  { %v10893_v42 = vpop.f32.mrb[16].mxu0  ;;  %v11057_v43 = vpop.f32.mrb[16].mxu1  ;;  %11361 = vmatprep.subr.bf16.mxu1 %v12939_v29  ;;  %v8080_v29 = vld [vmem:[%s18187_s5 + $0xe50] sm:$0xff] }
 0x611   :  { %v13036_v45 = vadd.f32 %v10893_v42, %v8139_v48  ;;  %v13038_v36 = vadd.f32 %v11057_v43, %v8147_v9  ;;  %v10895_v50 = vpop.f32.mrb[17].mxu0  ;;  %v11059_v51 = vpop.f32.mrb[17].mxu1  ;;  %v8089_v42 = vld [vmem:[%s18187_s5 + $0xe98] sm:$0xff]  ;;  %v8124_v59 = vld [vmem:[%s18187_s5 + $0xfb0] sm:$0xff] }
 0x612   :  { %v13037_v49 = vadd.f32 %v10895_v50, %v8143_v39  ;;  %v13039_v62 = vadd.f32 %v11059_v51, %v8151_v40  ;;  %v10897_v38 = vpop.f32.mrb[18].mxu0  ;;  %v11061_v63 = vpop.f32.mrb[18].mxu1  ;;  %11198 = vmatpush1.bf16.msra.mxu0 %v12936_v32  ;;  %v12969_v39 = vcombine.high %v8080_v29, %v8084_v21  ;;  %v12971_v32 = vcombine.high %v8081_v37, %v8085_v34  ;;  %v8093_v43 = vld [vmem:[%s18187_s5 + $0xeb8] sm:$0xff] }
 0x613   :  { %v11392_v6 = vmax.f32 %v13036_v45, 0.0  ;;  %11362 = vmatpush1.bf16.msra.mxu1 %v12938_v60  ;;  %v10898_v2 = vpop.f32.mrb[19].mxu0  ;;  %v11062_v19 = vpop.f32.mrb[19].mxu1  ;;  %11199 = vmatprep.subr.bf16.mxu0 %v12945_v41  ;;  %v11394_v10 = vmax.f32 %v13038_v36, 0.0  ;;  %v8088_v60 = vld [vmem:[%s18187_s5 + $0xe90] sm:$0xff]  ;;  %v12979_v45 = vcombine.high %v8089_v42, %v8093_v43  ;;  %v8097_v50 = vld [vmem:[%s18187_s5 + $0xed8] sm:$0xff]  ;;  %v12978_v61 = vcombine.low %v8089_v42, %v8093_v43 }
 0x614   :  { %v11393_v7 = vmax.f32 %v13037_v49, 0.0  ;;  %11363 = vmatprep.subr.bf16.mxu1 %v12947_v44  ;;  %v11395_v47 = vmax.f32 %v13039_v62, 0.0  ;;  %v8092_v41 = vld [vmem:[%s18187_s5 + $0xeb0] sm:$0xff]  ;;  %v12968_v44 = vcombine.low %v8080_v29, %v8084_v21  ;;  %v8101_v51 = vld [vmem:[%s18187_s5 + $0xef8] sm:$0xff]  ;;  %v13008_v21 = vcombine.low %v8120_v8, %v8124_v59 }
 0x615   :  { %v11442_v24 = vmul.f32 %v11405_v4, %v11392_v6  ;;  %v11444_v54 = vmul.f32 %v11413_v14, %v11394_v10  ;;  %v12977_v46 = vcombine.high %v8088_v60, %v8092_v41  ;;  %v8096_v4 = vld [vmem:[%s18187_s5 + $0xed0] sm:$0xff]  ;;  %v12976_v52 = vcombine.low %v8088_v60, %v8092_v41  ;;  %v8105_v63 = vld [vmem:[%s18187_s5 + $0xf18] sm:$0xff] }
 0x616   :  { %v11443_v20 = vmul.f32 %v11409_v30, %v11393_v7  ;;  %11200 = vmatpush1.bf16.msra.mxu0 %v12944_v13  ;;  %v11445_v48 = vmul.f32 %v11417_v33, %v11395_v47  ;;  %v8100_v36 = vld [vmem:[%s18187_s5 + $0xef0] sm:$0xff]  ;;  %v12987_v30 = vcombine.high %v8097_v50, %v8101_v51  ;;  %v8109_v13 = vld [vmem:[%s18187_s5 + $0xf38] sm:$0xff]  ;;  %v12986_v2 = vcombine.low %v8097_v50, %v8101_v51 }
 0x617   :  { %11364 = vmatpush1.bf16.msra.mxu1 %v12946_v3  ;;  %11201 = vmatprep.subr.bf16.mxu0 %v12953_v5  ;;  %v12985_v49 = vcombine.high %v8096_v4, %v8100_v36  ;;  %v8104_v62 = vld [vmem:[%s18187_s5 + $0xf10] sm:$0xff]  ;;  %v12984_v6 = vcombine.low %v8096_v4, %v8100_v36  ;;  %v12995_v3 = vcombine.high %v8105_v63, %v8109_v13  ;;  %v8113_v14 = vld [vmem:[%s18187_s5 + $0xf58] sm:$0xff] }
 0x618   :  { %v11450_v27 = vadd.f32 %v11443_v20, %v11442_v24  ;;  %11365 = vmatprep.subr.bf16.mxu1 %v12955_v57  ;;  %v8108_v38 = vld [vmem:[%s18187_s5 + $0xf30] sm:$0xff]  ;;  %v8117_v7 = vld [vmem:[%s18187_s5 + $0xf78] sm:$0xff]  ;;  %v12994_v15 = vcombine.low %v8105_v63, %v8109_v13  ;;  %v8163_v60 = vrot.slane %v18009_v26, %v15686_v31  ;;  %v8159_v41 = vrot.slane %v18009_v26, %v15499_v56 }
 0x619   :  { %v12993_v19 = vcombine.high %v8104_v62, %v8108_v38  ;;  %v8112_v5 = vld [vmem:[%s18187_s5 + $0xf50] sm:$0xff]  ;;  %v12992_v57 = vcombine.low %v8104_v62, %v8108_v38  ;;  %v13003_v24 = vcombine.high %v8113_v14, %v8117_v7  ;;  %v8121_v20 = vld [vmem:[%s18187_s5 + $0xf98] sm:$0xff]  ;;  %v8167_v42 = vrot.slane %v18009_v26, %v15502_v58 }
 0x61a   :  { %v11451_v9 = vadd.f32 %v11450_v27, %v11444_v54  ;;  %11202 = vmatpush1.bf16.msra.mxu0 %v12952_v23  ;;  %v8116_v10 = vld [vmem:[%s18187_s5 + $0xf70] sm:$0xff]  ;;  %v8125_v47 = vld [vmem:[%s18187_s5 + $0xfb8] sm:$0xff]  ;;  %v13002_v23 = vcombine.low %v8113_v14, %v8117_v7  ;;  %v11425_v36 = vrot.slane %v18030_v16, %v15499_v56  ;;  %v11433_v56 = vrot.slane %v18030_v16, %v15502_v58 }
 0x61b   :  { %11366 = vmatpush1.bf16.msra.mxu1 %v12954_v12  ;;  %11203 = vmatprep.subr.bf16.mxu0 %v12961_v25  ;;  %v13001_v18 = vcombine.high %v8112_v5, %v8116_v10  ;;  %v13000_v33 = vcombine.low %v8112_v5, %v8116_v10  ;;  %v13009_v12 = vcombine.high %v8120_v8, %v8124_v59  ;;  %v8128_v54 = vld [vmem:[%s18187_s5 + $0xfd0] sm:$0xff]  ;;  %v8133_v29 = vld [vmem:[%s18187_s5 + $0xff8] sm:$0xff] }
 0x61c   :  { %v18080_v40 = vadd.f32 %v11451_v9, %v11445_v48  ;;  %11367 = vmatprep.subr.bf16.mxu1 %v12963_v28  ;;  %v13011_v25 = vcombine.high %v8121_v20, %v8125_v47  ;;  %v8132_v27 = vld [vmem:[%s18187_s5 + $0xff0] sm:$0xff]  ;;  %v8129_v28 = vld [vmem:[%s18187_s5 + $0xfd8] sm:$0xff]  ;;  %v13010_v37 = vcombine.low %v8121_v20, %v8125_v47 }
 0x61d   :  { %v13017_v34 = vcombine.high %v8128_v54, %v8132_v27  ;;  %v13019_v48 = vcombine.high %v8129_v28, %v8133_v29  ;;  %v13016_v9 = vcombine.low %v8128_v54, %v8132_v27 }
 0x61e   :  { %11204 = vmatpush1.bf16.msra.mxu0 %v12960_v11  ;;  %v13018_v11 = vcombine.low %v8129_v28, %v8133_v29 }
 0x61f   :  { %11368 = vmatpush1.bf16.msra.mxu1 %v12962_v35  ;;  %11205 = vmatprep.subr.bf16.mxu0 %v12969_v39  ;;  %v13192_v35 = vmov 0   ;;  %v14_v39 = vstv %s18190_s8 }
 0x620   :  { %11369 = vmatprep.subr.bf16.mxu1 %v12971_v32  ;;  %13189 = vset.pattern.permute.xlu0 %v13192_v35  ;;  %15 = vst [vmem:[#allocation2] sm:$0x1] %v14_v39  ;;  %v8155_v32 = vrot.slane %v18009_v26, %v15496_v53 }
 0x622   :  { %11206 = vmatpush1.bf16.msra.mxu0 %v12968_v44  ;;  %v11421_v44 = vrot.slane %v18030_v16, %v15496_v53  ;;  %v11429_v53 = vrot.slane %v18030_v16, %v15686_v31 }
 0x623   :  { %11370 = vmatpush1.bf16.msra.mxu1 %v12970_v17  ;;  %11207 = vmatprep.subr.bf16.mxu0 %v12977_v46 }
 0x624   :  { %11371 = vmatprep.subr.bf16.mxu1 %v12979_v45 }
 0x626   :  { %11208 = vmatpush1.bf16.msra.mxu0 %v12976_v52 }
 0x627   :  { %11372 = vmatpush1.bf16.msra.mxu1 %v12978_v61  ;;  %11209 = vmatprep.subr.bf16.mxu0 %v12985_v49  ;;  %v11459_v7 = vld [vmem:[#allocation2] sm:$0x1] }
 0x628   :  { %11373 = vmatprep.subr.bf16.mxu1 %v12987_v30 }
 0x62a   :  { %11210 = vmatpush1.bf16.msra.mxu0 %v12984_v6 }
 0x62b   :  { %11374 = vmatpush1.bf16.msra.mxu1 %v12986_v2  ;;  %11211 = vmatprep.subr.bf16.mxu0 %v12993_v19 }
 0x62c   :  { %11375 = vmatprep.subr.bf16.mxu1 %v12995_v3 }
 0x62e   :  { %11212 = vmatpush1.bf16.msra.mxu0 %v12992_v57 }
 0x62f   :  { %11376 = vmatpush1.bf16.msra.mxu1 %v12994_v15  ;;  %11213 = vmatprep.subr.bf16.mxu0 %v13001_v18  ;;  %v11472_v15 = vand.u32 127, %v564_v55 }
 0x630   :  { %11377 = vmatprep.subr.bf16.mxu1 %v13003_v24 }
 0x631   :  { %v11475_v31 = vsub.s32 %v11472_v15, %v14828_v1 }
 0x632   :  { %11214 = vmatpush1.bf16.msra.mxu0 %v13000_v33 }
 0x633   :  { %11378 = vmatpush1.bf16.msra.mxu1 %v13002_v23  ;;  %11215 = vmatprep.subr.bf16.mxu0 %v13009_v12 }
 0x634   :  { %11379 = vmatprep.subr.bf16.mxu1 %v13011_v25 }
 0x636   :  { %11216 = vmatpush1.bf16.msra.mxu0 %v13008_v21 }
 0x637   :  { %11380 = vmatpush1.bf16.msra.mxu1 %v13010_v37  ;;  %11217 = vmatprep.subr.bf16.mxu0 %v13017_v34 }
 0x638   :  { %11381 = vmatprep.subr.bf16.mxu1 %v13019_v48 }
 0x63a   :  { %11218 = vmatpush1.bf16.msra.mxu0 %v13016_v9 }
 0x63b   :  { %11382 = vmatpush1.bf16.msra.mxu1 %v13018_v11 }
 0x63d   :  { %11220 = vmatmul.mubr.bf16.vlgmr.msra.gmra.mrb[20].mxu0 %v17364_v0 }
 0x63e   :  { %11384 = vmatmul.mubr.bf16.vlgmr.msra.gmra.mrb[20].mxu1 %v17364_v0 }
 0x710   :  { %v11221_v0 = vpop.f32.mrb[20].mxu0 }
 0x711   :  { %v13040_v43 = vadd.f32 %v11221_v0, %v8155_v32  ;;  %v11385_v17 = vpop.f32.mrb[20].mxu1  ;;  %v11223_v46 = vpop.f32.mrb[21].mxu0 }
 0x712   :  { %v13042_v45 = vadd.f32 %v11385_v17, %v8163_v60  ;;  %v13041_v4 = vadd.f32 %v11223_v46, %v8159_v41  ;;  %v11387_v50 = vpop.f32.mrb[21].mxu1  ;;  %v11225_v51 = vpop.f32.mrb[22].mxu0 }
 0x713   :  { %v11396_v52 = vmax.f32 %v13040_v43, 0.0  ;;  %v13043_v61 = vadd.f32 %v11387_v50, %v8167_v42  ;;  %v11389_v49 = vpop.f32.mrb[22].mxu1  ;;  %v11226_v30 = vpop.f32.mrb[23].mxu0 }
 0x714   :  { %v11397_v62 = vmax.f32 %v13041_v4, 0.0  ;;  %v11390_v26 = vpop.f32.mrb[23].mxu1  ;;  %v11398_v63 = vmax.f32 %v13042_v45, 0.0 }
 0x715   :  { %v11446_v38 = vmul.f32 %v11421_v44, %v11396_v52  ;;  %v11399_v2 = vmax.f32 %v13043_v61, 0.0 }
 0x716   :  { %v11447_v13 = vmul.f32 %v11425_v36, %v11397_v62  ;;  %v11448_v19 = vmul.f32 %v11429_v53, %v11398_v63 }
 0x717   :  { %v11453_v6 = vadd.f32 %v18080_v40, %v11446_v38  ;;  %v11449_v5 = vmul.f32 %v11433_v56, %v11399_v2 }
 0x719   :  { %v11454_v3 = vadd.f32 %v11453_v6, %v11447_v13 }
 0x71b   :  { %v11455_v10 = vadd.f32 %v11454_v3, %v11448_v19 }
 0x71d   :  { %v11456_v14 = vadd.f32 %v11455_v10, %v11449_v5 }
 0x71f   :  { %11457 = vadd.xlane.f32.xlu0 %v11456_v14 }
 0x735   :  { %11462 = vperm.xlu0 %13189, %v11459_v7  }
 0x7ac   :  { %v11458_v57 = vpop.xlane.xlu0 %11457 }
 0x7b4   :  { %v11463_v18 = vpop.permute.xlu0 %11462 }
 0x7b5   :  { %v11468_v40 = vrot.slane %v11463_v18, %v15046_v22 }
 0x7b7   :  { %v11469_v24 = vadd.f32 %v11468_v40, %v11458_v57 }
 0x7b9   :  { %v11476_v8 = vrot.slane %v11469_v24, %v11475_v31 }
 0x7bb   :  { %11479 = vst.msk [vmem:[%s18191_s9] sm:$0x1] %vm11478_vm0, %v11476_v8 }

</bundles_post_ra>
